<compile_context>
chip_gen: v7x
topology: tpu7x:2x2x1
jax: 0.10.0
libtpu: 0.0.40
codegen_flags: <defaults>
</compile_context>

<pallas_src>
import functools

import jax
import jax.numpy as jnp
import numpy as np
from jax import lax
from jax.experimental import pallas as pl
from jax.experimental.pallas import tpu as pltpu

# ----------------------------- configuration -------------------------------
LAYERSIZE = 32
N_ACTIONS = 5
N_TIMESTEPS = 10
PLATE = 4        # tactile plate spatial size (size=4 config)
POSE_W = 4
JOINT_W = 7
LANE = 128       # TPU lane width
SUBLANE = 8      # batch rows padded to a multiple of 8 (f32 sublane tile)
EMB = 256        # packed combined-embedding width (5 x 32 real features)


def rup(n, m):
    return ((n + m - 1) // m) * m


# ----------------------------- raw parameters ------------------------------
def _init_linear(key, out_f, in_f):
    k1, k2 = jax.random.split(key)
    scale = 1.0 / np.sqrt(in_f)
    w = jax.random.normal(k1, (out_f, in_f), jnp.float32) * scale
    b = jax.random.normal(k2, (out_f,), jnp.float32) * scale
    return w, b


def _init_conv(key, shape):  # shape = (out_ch, in_ch, *kernel)
    k1, k2 = jax.random.split(key)
    fan_in = int(np.prod(shape[1:]))
    scale = 1.0 / np.sqrt(fan_in)
    w = jax.random.normal(k1, shape, jnp.float32) * scale
    b = jax.random.normal(k2, (shape[0],), jnp.float32) * scale
    return w, b


def init_params(key):
    keys = jax.random.split(key, 32)
    p = {}
    # tactile: Conv2Plus1D(2->16, spatial=2, temporal=5), Conv2Plus1D(16->32, 2, 3)
    p['t_c1a'] = _init_conv(keys[0], (16, 2, 1, 2, 2))
    p['t_c1b'] = _init_conv(keys[1], (16, 16, 5, 1, 1))
    p['t_c2a'] = _init_conv(keys[2], (32, 16, 1, 2, 2))
    p['t_c2b'] = _init_conv(keys[3], (32, 32, 3, 1, 1))
    p['t_l1'] = _init_linear(keys[4], LAYERSIZE, 512)
    p['t_l2'] = _init_linear(keys[5], LAYERSIZE, LAYERSIZE)
    # pose embedding
    p['p_c1'] = _init_conv(keys[6], (16, 1, 5, 1))
    p['p_c2'] = _init_conv(keys[7], (32, 16, 2, 1))
    p['p_l1'] = _init_linear(keys[8], LAYERSIZE, 640)
    p['p_l2'] = _init_linear(keys[9], LAYERSIZE, LAYERSIZE)
    # joint torque / velocity / position embeddings
    for i, name in enumerate(['jt', 'jv', 'jp']):
        base = 10 + i * 4
        p[f'{name}_c1'] = _init_conv(keys[base], (16, 1, 5, 1))
        p[f'{name}_c2'] = _init_conv(keys[base + 1], (32, 16, 2, 1))
        p[f'{name}_l1'] = _init_linear(keys[base + 2], LAYERSIZE, 1120)
        p[f'{name}_l2'] = _init_linear(keys[base + 3], LAYERSIZE, LAYERSIZE)
    # dueling heads
    p['adv_l1'] = _init_linear(keys[22], LAYERSIZE, LAYERSIZE * 5)
    p['adv_l2'] = _init_linear(keys[23], N_ACTIONS, LAYERSIZE)
    p['val_l1'] = _init_linear(keys[24], LAYERSIZE, LAYERSIZE * 5)
    p['val_l2'] = _init_linear(keys[25], 1, LAYERSIZE)
    return p


# --------------------- plain-JAX (f32) structural reference ----------------
def _conv3d(x, wb):
    w, b = wb
    y = lax.conv_general_dilated(x, w, (1, 1, 1), 'VALID',
                                 dimension_numbers=('NCDHW', 'OIDHW', 'NCDHW'))
    return y + b[None, :, None, None, None]


def _conv2d(x, wb):
    w, b = wb
    y = lax.conv_general_dilated(x, w, (1, 1), 'VALID',
                                 dimension_numbers=('NCHW', 'OIHW', 'NCHW'))
    return y + b[None, :, None, None]


def _linear(x, wb):
    w, b = wb
    return x @ w.T + b


def reference_forward(p, myrmex, pose, j_pos, j_tau, j_vel):
    relu = lambda v: jnp.maximum(v, 0.0)
    B = myrmex.shape[0]
    t = _conv3d(_conv3d(myrmex, p['t_c1a']), p['t_c1b'])
    t = relu(t)
    t = _conv3d(_conv3d(t, p['t_c2a']), p['t_c2b'])
    t = relu(t).reshape(B, -1)
    t = relu(_linear(t, p['t_l1']))
    t = relu(_linear(t, p['t_l2']))

    def branch2d(x, pre):
        h = relu(_conv2d(x, p[f'{pre}_c1']))
        h = relu(_conv2d(h, p[f'{pre}_c2'])).reshape(B, -1)
        h = relu(_linear(h, p[f'{pre}_l1']))
        h = relu(_linear(h, p[f'{pre}_l2']))
        return h

    e_p = branch2d(pose, 'p')
    e_jt = branch2d(j_tau, 'jt')
    e_jv = branch2d(j_vel, 'jv')
    e_jp = branch2d(j_pos, 'jp')
    comb = jnp.concatenate([t, e_p, e_jt, e_jv, e_jp], axis=1)
    adv = _linear(relu(_linear(comb, p['adv_l1'])), p['adv_l2'])
    val = _linear(relu(_linear(comb, p['val_l1'])), p['val_l2'])
    return val + (adv - adv.mean())   # global mean, exactly as the PyTorch module


# ----------------- offline weight preparation (off the hot path) -----------
def _affine_from_fn(fn, in_dim):
    """fn maps (n, in_dim) -> (n, out_dim) and is affine. Returns (M, c) with
    fn(x) == x @ M + c (exact by linearity)."""
    c = fn(jnp.zeros((1, in_dim), jnp.float32))
    M = fn(jnp.eye(in_dim, dtype=jnp.float32)) - c
    return M, c


def prepare_params(p):
    """Build the padded bf16 weight matrices / f32 biases consumed by the kernel."""
    bf16 = jnp.bfloat16

    def pad_to(M, rows, cols):
        out = np.zeros((rows, cols), np.float32)
        M = np.asarray(M, np.float32)
        out[:M.shape[0], :M.shape[1]] = M
        return out

    def pack_l2(wb, off):
        # place a branch's 32 l2 outputs at lanes [off, off+32) of the 256-lane
        # packed embedding (disjoint blocks -> the 5 branch outputs simply sum).
        W, b = np.asarray(wb[0]), np.asarray(wb[1])
        Wo = np.zeros((LAYERSIZE, EMB), np.float32)
        Wo[:, off:off + LAYERSIZE] = W.T
        bo = np.zeros((1, EMB), np.float32)
        bo[0, off:off + LAYERSIZE] = b
        return jnp.asarray(Wo, bf16), jnp.asarray(bo, jnp.float32)

    # --- tactile: each Conv2Plus1D pair (no ReLU inside) composes to one affine map
    def t_pair1(xf):
        x = xf.reshape(-1, 2, N_TIMESTEPS, PLATE, PLATE)
        y = _conv3d(_conv3d(x, p['t_c1a']), p['t_c1b'])
        return y.reshape(y.shape[0], -1)                     # (n, 864)

    def t_pair2(xf):
        x = xf.reshape(-1, 16, N_TIMESTEPS - 4, PLATE - 1, PLATE - 1)
        y = _conv3d(_conv3d(x, p['t_c2a']), p['t_c2b'])
        return y.reshape(y.shape[0], -1)                     # (n, 512)

    T1, tc1 = _affine_from_fn(t_pair1, 2 * N_TIMESTEPS * PLATE * PLATE)       # 320->864
    T2, tc2 = _affine_from_fn(t_pair2, 16 * 6 * (PLATE - 1) ** 2)             # 864->512
    t_l2w, t_l2b = pack_l2(p['t_l2'], 0)
    tact = [jnp.asarray(pad_to(T1, 384, 896), bf16),
            jnp.asarray(pad_to(tc1, 1, 896), jnp.float32),
            jnp.asarray(pad_to(T2, 896, 512), bf16),
            jnp.asarray(pad_to(tc2, 1, 512), jnp.float32),
            jnp.asarray(np.asarray(p['t_l1'][0]).T, bf16),                    # (512, 32)
            jnp.asarray(np.asarray(p['t_l1'][1]).reshape(1, -1), jnp.float32),
            t_l2w, t_l2b]

    # --- pose / joint branches: banded ("chunked") reformulation of conv2
    def conv_branch_params(pre, Wd, off):
        W1, b1 = np.asarray(p[f'{pre}_c1'][0]), np.asarray(p[f'{pre}_c1'][1])  # (16,1,5,1)
        W2, b2 = np.asarray(p[f'{pre}_c2'][0]), np.asarray(p[f'{pre}_c2'][1])  # (32,16,2,1)
        W3, b3 = np.asarray(p[f'{pre}_l1'][0]), np.asarray(p[f'{pre}_l1'][1])  # (32, 160*Wd/4..)
        CO = 256 if Wd * 32 > 128 else 128          # chunk output lanes (joint 224->256)

        # stage-1 Toeplitz with lane layout  t*128 + w*16 + c  (6 time blocks of 128)
        A1 = np.zeros((128, 6 * 128), np.float32)
        a1 = np.zeros((1, 6 * 128), np.float32)
        for t in range(6):
            for w in range(Wd):
                col = t * 128 + w * 16
                a1[0, col:col + 16] = b1
                for dt in range(5):
                    A1[(t + dt) * Wd + w, col:col + 16] = W1[:, 0, dt, 0]

        # shared per-time-chunk conv2 matrix S: input lanes dt*128 + w*16 + c,
        # output lanes w*32 + c2   (identical for every output time step)
        S = np.zeros((256, CO), np.float32)
        b2c = np.zeros((1, CO), np.float32)
        for dt in range(2):
            for w in range(Wd):
                S[dt * 128 + w * 16: dt * 128 + w * 16 + 16,
                  w * 32: w * 32 + 32] = W2[:, :, dt, 0].T
        for w in range(Wd):
            b2c[0, w * 32: w * 32 + 32] = b2

        # l1 weight permuted to the chunk layout, 5 chunks stacked along K
        W3r = W3.reshape(32, 32, 5, Wd)                              # (d, c2, to, w)
        blk = np.transpose(W3r, (2, 3, 1, 0)).reshape(5, Wd * 32, 32)
        W3s = np.zeros((5 * CO, 32), np.float32)
        for to in range(5):
            W3s[to * CO: to * CO + Wd * 32, :] = blk[to]

        W4o, b4o = pack_l2(p[f'{pre}_l2'], off)
        return [jnp.asarray(A1, bf16), jnp.asarray(a1, jnp.float32),
                jnp.asarray(S, bf16), jnp.asarray(b2c, jnp.float32),
                jnp.asarray(W3s, bf16),
                jnp.asarray(b3.reshape(1, -1), jnp.float32),
                W4o, b4o]

    # --- packed dueling head: adv/val hidden layers share one dense-K matmul
    Wa1, ba1 = np.asarray(p['adv_l1'][0]), np.asarray(p['adv_l1'][1])   # (32, 160)
    Wv1, bv1 = np.asarray(p['val_l1'][0]), np.asarray(p['val_l1'][1])
    Wa2, ba2 = np.asarray(p['adv_l2'][0]), np.asarray(p['adv_l2'][1])   # (5, 32)
    Wv2, bv2 = np.asarray(p['val_l2'][0]), np.asarray(p['val_l2'][1])   # (1, 32)
    WH1 = np.zeros((EMB, 64), np.float32)
    WH1[:160, 0:32] = Wa1.T
    WH1[:160, 32:64] = Wv1.T
    bh1 = np.zeros((1, 64), np.float32)
    bh1[0, :32] = ba1
    bh1[0, 32:] = bv1
    WH2 = np.zeros((64, LANE), np.float32)
    WH2[0:32, 0:N_ACTIONS] = Wa2.T
    WH2[32:64, N_ACTIONS:N_ACTIONS + 1] = Wv2.T
    bh2 = np.zeros((1, LANE), np.float32)
    bh2[0, :N_ACTIONS] = ba2
    bh2[0, N_ACTIONS] = bv2[0]
    head = [jnp.asarray(WH1, bf16), jnp.asarray(bh1, jnp.float32),
            jnp.asarray(WH2, bf16), jnp.asarray(bh2, jnp.float32)]

    return (tact
            + conv_branch_params('p', POSE_W, 32)
            + conv_branch_params('jt', JOINT_W, 64)
            + conv_branch_params('jv', JOINT_W, 96)
            + conv_branch_params('jp', JOINT_W, 128)
            + head)


# ------------------------------ fused kernel -------------------------------
def _relu(x):
    return jnp.maximum(x, 0.0)


def _fused_kernel(*refs, b_real, n_actions):
    """refs = 5 input activations, 5*8 branch params, 4 head params, 1 output."""
    x_t, x_p, x_jt, x_jv, x_jp = refs[0:5]
    w = refs[5:-1]
    out_ref = refs[-1]

    def mm(a, wref):
        return jnp.dot(a.astype(jnp.bfloat16), wref[...],
                       preferred_element_type=jnp.float32)

    def dense_branch(x_ref, i):                              # tactile
        W1, b1, W2, b2, W3, b3, W4, b4 = (w[i + k] for k in range(8))
        h = _relu(mm(x_ref[...], W1) + b1[...])
        h = _relu(mm(h, W2) + b2[...])
        h = _relu(mm(h, W3) + b3[...])
        return _relu(mm(h, W4) + b4[...])                    # (B, 256) f32

    def conv_branch(x_ref, i):                               # pose / joints
        A1, a1, S, b2, W3, b3, W4, b4 = (w[i + k] for k in range(8))
        h1 = _relu(mm(x_ref[...], A1) + a1[...])             # (B, 768) f32
        # conv2: 5 overlapping, 128-aligned time windows stacked along rows ->
        # one (5B, 256) @ (256, CO) MXU pass with the shared channel-mix matrix.
        H = jnp.concatenate([h1[:, t * 128:(t + 2) * 128] for t in range(5)], axis=0)
        H2 = _relu(mm(H, S) + b2[...])                       # (5B, CO) f32
        Bp = h1.shape[0]
        # l1: chunks re-laid along lanes (aligned slices/concat), one matmul.
        G = jnp.concatenate([H2[t * Bp:(t + 1) * Bp, :] for t in range(5)], axis=1)
        y = _relu(mm(G, W3) + b3[...])                       # (B, 32)
        return _relu(mm(y, W4) + b4[...])                    # (B, 256)

    # branch embeddings occupy disjoint 32-lane blocks -> sum == concat
    e = (dense_branch(x_t, 0) + conv_branch(x_p, 8) + conv_branch(x_jt, 16)
         + conv_branch(x_jv, 24) + conv_branch(x_jp, 32))

    WH1, bh1, WH2, bh2 = w[40], w[41], w[42], w[43]
    hh = _relu(mm(e, WH1) + bh1[...])                        # (B, 64)
    va = mm(hh, WH2) + bh2[...]                              # (B, 128) f32

    # dueling combine; mean matches torch's global advantage.mean() and excludes
    # the padded batch rows (row < b_real).
    lane = lax.broadcasted_iota(jnp.int32, va.shape, 1)
    row = lax.broadcasted_iota(jnp.int32, va.shape, 0)
    adv_mask = lane < n_actions
    valid = jnp.logical_and(adv_mask, row < b_real)
    adv_mean = jnp.sum(jnp.where(valid, va, 0.0)) / float(b_real * n_actions)
    value = jnp.sum(jnp.where(lane == n_actions, va, 0.0), axis=-1, keepdims=True)
    q = jnp.where(adv_mask, va - adv_mean + value, 0.0)
    out_ref[...] = q                                         # lane-dense f32 store


# ------------------------------ JAX wrapper --------------------------------
def dueling_placenet_forward(prepared, myrmex, pose, j_pos, j_tau, j_vel):
    B = myrmex.shape[0]
    B_pad = rup(max(B, 1), SUBLANE)

    def prep_x(x, k_pad):
        f = x.reshape(B, -1).astype(jnp.float32)
        k = f.shape[1]
        out = jnp.zeros((B_pad, k_pad), jnp.float32).at[:B, :k].set(f)
        return out.astype(jnp.bfloat16)

    # branch order from the PyTorch forward: tactile, pose, j_tau, j_vel, j_pos
    xs = [prep_x(myrmex, 384), prep_x(pose, 128), prep_x(j_tau, 128),
          prep_x(j_vel, 128), prep_x(j_pos, 128)]
    flat_params = list(prepared)
    n_in = len(xs) + len(flat_params)

    q_pad = pl.pallas_call(
        functools.partial(_fused_kernel, b_real=B, n_actions=N_ACTIONS),
        out_shape=jax.ShapeDtypeStruct((B_pad, LANE), jnp.float32),
        in_specs=[pl.BlockSpec(memory_space=pltpu.MemorySpace.VMEM)] * n_in,
        out_specs=pl.BlockSpec(memory_space=pltpu.MemorySpace.VMEM),
        compiler_params=pltpu.CompilerParams(vmem_limit_bytes=24 * 1024 * 1024),
    )(*xs, *flat_params)
    return q_pad[:B, :N_ACTIONS]


# --------------------------------- main -------------------------------------
if __name__ == "__main__":
    key = jax.random.PRNGKey(0)
    kp, kx = jax.random.split(key)
    params = init_params(kp)
    prepared = prepare_params(params)   # one-time weight preprocessing (off hot path)

    B = 2
    kk = jax.random.split(kx, 5)
    myrmex = jax.random.normal(kk[0], (B, 2, N_TIMESTEPS, PLATE, PLATE), jnp.float32)
    pose = jax.random.normal(kk[1], (B, 1, N_TIMESTEPS, POSE_W), jnp.float32)
    j_pos = jax.random.normal(kk[2], (B, 1, N_TIMESTEPS, JOINT_W), jnp.float32)
    j_tau = jax.random.normal(kk[3], (B, 1, N_TIMESTEPS, JOINT_W), jnp.float32)
    j_vel = jax.random.normal(kk[4], (B, 1, N_TIMESTEPS, JOINT_W), jnp.float32)

    fwd = jax.jit(dueling_placenet_forward)
    q = fwd(prepared, myrmex, pose, j_pos, j_tau, j_vel)
    q = jax.block_until_ready(q)

    q_ref = reference_forward(params, myrmex, pose, j_pos, j_tau, j_vel)
    np.testing.assert_allclose(np.asarray(q), np.asarray(q_ref), rtol=5e-2, atol=5e-2)
    print("KERNEL_OK")
</pallas_src>

<mosaic_0001>
module attributes {stable_mosaic.version = 11 : i64} {
  func.func @_fused_kernel(%arg0: memref<8x384xbf16, #tpu.memory_space<vmem>>, %arg1: memref<8x128xbf16, #tpu.memory_space<vmem>>, %arg2: memref<8x128xbf16, #tpu.memory_space<vmem>>, %arg3: memref<8x128xbf16, #tpu.memory_space<vmem>>, %arg4: memref<8x128xbf16, #tpu.memory_space<vmem>>, %arg5: memref<384x896xbf16, #tpu.memory_space<vmem>>, %arg6: memref<1x896xf32, #tpu.memory_space<vmem>>, %arg7: memref<896x512xbf16, #tpu.memory_space<vmem>>, %arg8: memref<1x512xf32, #tpu.memory_space<vmem>>, %arg9: memref<512x32xbf16, #tpu.memory_space<vmem>>, %arg10: memref<1x32xf32, #tpu.memory_space<vmem>>, %arg11: memref<32x256xbf16, #tpu.memory_space<vmem>>, %arg12: memref<1x256xf32, #tpu.memory_space<vmem>>, %arg13: memref<128x768xbf16, #tpu.memory_space<vmem>>, %arg14: memref<1x768xf32, #tpu.memory_space<vmem>>, %arg15: memref<256x128xbf16, #tpu.memory_space<vmem>>, %arg16: memref<1x128xf32, #tpu.memory_space<vmem>>, %arg17: memref<640x32xbf16, #tpu.memory_space<vmem>>, %arg18: memref<1x32xf32, #tpu.memory_space<vmem>>, %arg19: memref<32x256xbf16, #tpu.memory_space<vmem>>, %arg20: memref<1x256xf32, #tpu.memory_space<vmem>>, %arg21: memref<128x768xbf16, #tpu.memory_space<vmem>>, %arg22: memref<1x768xf32, #tpu.memory_space<vmem>>, %arg23: memref<256x256xbf16, #tpu.memory_space<vmem>>, %arg24: memref<1x256xf32, #tpu.memory_space<vmem>>, %arg25: memref<1280x32xbf16, #tpu.memory_space<vmem>>, %arg26: memref<1x32xf32, #tpu.memory_space<vmem>>, %arg27: memref<32x256xbf16, #tpu.memory_space<vmem>>, %arg28: memref<1x256xf32, #tpu.memory_space<vmem>>, %arg29: memref<128x768xbf16, #tpu.memory_space<vmem>>, %arg30: memref<1x768xf32, #tpu.memory_space<vmem>>, %arg31: memref<256x256xbf16, #tpu.memory_space<vmem>>, %arg32: memref<1x256xf32, #tpu.memory_space<vmem>>, %arg33: memref<1280x32xbf16, #tpu.memory_space<vmem>>, %arg34: memref<1x32xf32, #tpu.memory_space<vmem>>, %arg35: memref<32x256xbf16, #tpu.memory_space<vmem>>, %arg36: memref<1x256xf32, #tpu.memory_space<vmem>>, %arg37: memref<128x768xbf16, #tpu.memory_space<vmem>>, %arg38: memref<1x768xf32, #tpu.memory_space<vmem>>, %arg39: memref<256x256xbf16, #tpu.memory_space<vmem>>, %arg40: memref<1x256xf32, #tpu.memory_space<vmem>>, %arg41: memref<1280x32xbf16, #tpu.memory_space<vmem>>, %arg42: memref<1x32xf32, #tpu.memory_space<vmem>>, %arg43: memref<32x256xbf16, #tpu.memory_space<vmem>>, %arg44: memref<1x256xf32, #tpu.memory_space<vmem>>, %arg45: memref<256x64xbf16, #tpu.memory_space<vmem>>, %arg46: memref<1x64xf32, #tpu.memory_space<vmem>>, %arg47: memref<64x128xbf16, #tpu.memory_space<vmem>>, %arg48: memref<1x128xf32, #tpu.memory_space<vmem>>, %arg49: memref<8x128xf32, #tpu.memory_space<vmem>>) attributes {dimension_semantics = [], scalar_prefetch = 0 : i64, scratch_operands = 0 : i64, tpu.core_type = #tpu.core_type<tc>} {
    %c0 = arith.constant 0 : index
    %c0_0 = arith.constant 0 : index
    %0 = vector.load %arg0[%c0, %c0_0] : memref<8x384xbf16, #tpu.memory_space<vmem>>, vector<8x384xbf16>
    %c0_1 = arith.constant 0 : index
    %c0_2 = arith.constant 0 : index
    %1 = vector.load %arg5[%c0_1, %c0_2] : memref<384x896xbf16, #tpu.memory_space<vmem>>, vector<384x896xbf16>
    %cst = arith.constant dense<0.000000e+00> : vector<8x896xf32>
    %2 = tpu.matmul %0, %1, %cst {dimension_numbers = #tpu.dot_dimension_numbers<[1], [0], [0], [1], [0, 0, 1, 1], [], []>} : vector<8x384xbf16>, vector<384x896xbf16>, vector<8x896xf32> -> vector<8x896xf32>
    %c0_3 = arith.constant 0 : index
    %c0_4 = arith.constant 0 : index
    %3 = vector.load %arg6[%c0_3, %c0_4] : memref<1x896xf32, #tpu.memory_space<vmem>>, vector<1x896xf32>
    %4 = vector.broadcast %3 : vector<1x896xf32> to vector<8x896xf32>
    %5 = arith.addf %2, %4 : vector<8x896xf32>
    %cst_5 = arith.constant 0.000000e+00 : f32
    %6 = vector.broadcast %cst_5 : f32 to vector<8x896xf32>
    %7 = arith.maximumf %5, %6 : vector<8x896xf32>
    %8 = arith.truncf %7 : vector<8x896xf32> to vector<8x896xbf16>
    %c0_6 = arith.constant 0 : index
    %c0_7 = arith.constant 0 : index
    %9 = vector.load %arg7[%c0_6, %c0_7] : memref<896x512xbf16, #tpu.memory_space<vmem>>, vector<896x512xbf16>
    %cst_8 = arith.constant dense<0.000000e+00> : vector<8x512xf32>
    %10 = tpu.matmul %8, %9, %cst_8 {dimension_numbers = #tpu.dot_dimension_numbers<[1], [0], [0], [1], [0, 0, 1, 1], [], []>} : vector<8x896xbf16>, vector<896x512xbf16>, vector<8x512xf32> -> vector<8x512xf32>
    %c0_9 = arith.constant 0 : index
    %c0_10 = arith.constant 0 : index
    %11 = vector.load %arg8[%c0_9, %c0_10] : memref<1x512xf32, #tpu.memory_space<vmem>>, vector<1x512xf32>
    %12 = vector.broadcast %11 : vector<1x512xf32> to vector<8x512xf32>
    %13 = arith.addf %10, %12 : vector<8x512xf32>
    %cst_11 = arith.constant 0.000000e+00 : f32
    %14 = vector.broadcast %cst_11 : f32 to vector<8x512xf32>
    %15 = arith.maximumf %13, %14 : vector<8x512xf32>
    %16 = arith.truncf %15 : vector<8x512xf32> to vector<8x512xbf16>
    %c0_12 = arith.constant 0 : index
    %c0_13 = arith.constant 0 : index
    %17 = vector.load %arg9[%c0_12, %c0_13] : memref<512x32xbf16, #tpu.memory_space<vmem>>, vector<512x32xbf16>
    %cst_14 = arith.constant dense<0.000000e+00> : vector<8x32xf32>
    %18 = tpu.matmul %16, %17, %cst_14 {dimension_numbers = #tpu.dot_dimension_numbers<[1], [0], [0], [1], [0, 0, 1, 1], [], []>} : vector<8x512xbf16>, vector<512x32xbf16>, vector<8x32xf32> -> vector<8x32xf32>
    %c0_15 = arith.constant 0 : index
    %c0_16 = arith.constant 0 : index
    %19 = vector.load %arg10[%c0_15, %c0_16] : memref<1x32xf32, #tpu.memory_space<vmem>>, vector<1x32xf32>
    %20 = vector.broadcast %19 : vector<1x32xf32> to vector<8x32xf32>
    %21 = arith.addf %18, %20 : vector<8x32xf32>
    %cst_17 = arith.constant 0.000000e+00 : f32
    %22 = vector.broadcast %cst_17 : f32 to vector<8x32xf32>
    %23 = arith.maximumf %21, %22 : vector<8x32xf32>
    %24 = arith.truncf %23 : vector<8x32xf32> to vector<8x32xbf16>
    %c0_18 = arith.constant 0 : index
    %c0_19 = arith.constant 0 : index
    %25 = vector.load %arg11[%c0_18, %c0_19] : memref<32x256xbf16, #tpu.memory_space<vmem>>, vector<32x256xbf16>
    %cst_20 = arith.constant dense<0.000000e+00> : vector<8x256xf32>
    %26 = tpu.matmul %24, %25, %cst_20 {dimension_numbers = #tpu.dot_dimension_numbers<[1], [0], [0], [1], [0, 0, 1, 1], [], []>} : vector<8x32xbf16>, vector<32x256xbf16>, vector<8x256xf32> -> vector<8x256xf32>
    %c0_21 = arith.constant 0 : index
    %c0_22 = arith.constant 0 : index
    %27 = vector.load %arg12[%c0_21, %c0_22] : memref<1x256xf32, #tpu.memory_space<vmem>>, vector<1x256xf32>
    %28 = vector.broadcast %27 : vector<1x256xf32> to vector<8x256xf32>
    %29 = arith.addf %26, %28 : vector<8x256xf32>
    %cst_23 = arith.constant 0.000000e+00 : f32
    %30 = vector.broadcast %cst_23 : f32 to vector<8x256xf32>
    %31 = arith.maximumf %29, %30 : vector<8x256xf32>
    %c0_24 = arith.constant 0 : index
    %c0_25 = arith.constant 0 : index
    %32 = vector.load %arg1[%c0_24, %c0_25] : memref<8x128xbf16, #tpu.memory_space<vmem>>, vector<8x128xbf16>
    %c0_26 = arith.constant 0 : index
    %c0_27 = arith.constant 0 : index
    %33 = vector.load %arg13[%c0_26, %c0_27] : memref<128x768xbf16, #tpu.memory_space<vmem>>, vector<128x768xbf16>
    %cst_28 = arith.constant dense<0.000000e+00> : vector<8x768xf32>
    %34 = tpu.matmul %32, %33, %cst_28 {dimension_numbers = #tpu.dot_dimension_numbers<[1], [0], [0], [1], [0, 0, 1, 1], [], []>} : vector<8x128xbf16>, vector<128x768xbf16>, vector<8x768xf32> -> vector<8x768xf32>
    %c0_29 = arith.constant 0 : index
    %c0_30 = arith.constant 0 : index
    %35 = vector.load %arg14[%c0_29, %c0_30] : memref<1x768xf32, #tpu.memory_space<vmem>>, vector<1x768xf32>
    %36 = vector.broadcast %35 : vector<1x768xf32> to vector<8x768xf32>
    %37 = arith.addf %34, %36 : vector<8x768xf32>
    %cst_31 = arith.constant 0.000000e+00 : f32
    %38 = vector.broadcast %cst_31 : f32 to vector<8x768xf32>
    %39 = arith.maximumf %37, %38 : vector<8x768xf32>
    %40 = vector.extract_strided_slice %39 {offsets = [0, 0], sizes = [8, 256], strides = [1, 1]} : vector<8x768xf32> to vector<8x256xf32>
    %41 = vector.extract_strided_slice %39 {offsets = [0, 128], sizes = [8, 256], strides = [1, 1]} : vector<8x768xf32> to vector<8x256xf32>
    %42 = vector.extract_strided_slice %39 {offsets = [0, 256], sizes = [8, 256], strides = [1, 1]} : vector<8x768xf32> to vector<8x256xf32>
    %43 = vector.extract_strided_slice %39 {offsets = [0, 384], sizes = [8, 256], strides = [1, 1]} : vector<8x768xf32> to vector<8x256xf32>
    %44 = vector.extract_strided_slice %39 {offsets = [0, 512], sizes = [8, 256], strides = [1, 1]} : vector<8x768xf32> to vector<8x256xf32>
    %45 = tpu.concatenate %40, %41, %42, %43, %44 in 0 : vector<8x256xf32>, vector<8x256xf32>, vector<8x256xf32>, vector<8x256xf32>, vector<8x256xf32> -> vector<40x256xf32>
    %46 = arith.truncf %45 : vector<40x256xf32> to vector<40x256xbf16>
    %c0_32 = arith.constant 0 : index
    %c0_33 = arith.constant 0 : index
    %47 = vector.load %arg15[%c0_32, %c0_33] : memref<256x128xbf16, #tpu.memory_space<vmem>>, vector<256x128xbf16>
    %cst_34 = arith.constant dense<0.000000e+00> : vector<40x128xf32>
    %48 = tpu.matmul %46, %47, %cst_34 {dimension_numbers = #tpu.dot_dimension_numbers<[1], [0], [0], [1], [0, 0, 1, 1], [], []>} : vector<40x256xbf16>, vector<256x128xbf16>, vector<40x128xf32> -> vector<40x128xf32>
    %c0_35 = arith.constant 0 : index
    %c0_36 = arith.constant 0 : index
    %49 = vector.load %arg16[%c0_35, %c0_36] : memref<1x128xf32, #tpu.memory_space<vmem>>, vector<1x128xf32>
    %50 = vector.broadcast %49 : vector<1x128xf32> to vector<40x128xf32>
    %51 = arith.addf %48, %50 : vector<40x128xf32>
    %cst_37 = arith.constant 0.000000e+00 : f32
    %52 = vector.broadcast %cst_37 : f32 to vector<40x128xf32>
    %53 = arith.maximumf %51, %52 : vector<40x128xf32>
    %54 = vector.extract_strided_slice %53 {offsets = [0, 0], sizes = [8, 128], strides = [1, 1]} : vector<40x128xf32> to vector<8x128xf32>
    %55 = vector.extract_strided_slice %53 {offsets = [8, 0], sizes = [8, 128], strides = [1, 1]} : vector<40x128xf32> to vector<8x128xf32>
    %56 = vector.extract_strided_slice %53 {offsets = [16, 0], sizes = [8, 128], strides = [1, 1]} : vector<40x128xf32> to vector<8x128xf32>
    %57 = vector.extract_strided_slice %53 {offsets = [24, 0], sizes = [8, 128], strides = [1, 1]} : vector<40x128xf32> to vector<8x128xf32>
    %58 = vector.extract_strided_slice %53 {offsets = [32, 0], sizes = [8, 128], strides = [1, 1]} : vector<40x128xf32> to vector<8x128xf32>
    %59 = tpu.concatenate %54, %55, %56, %57, %58 in 1 : vector<8x128xf32>, vector<8x128xf32>, vector<8x128xf32>, vector<8x128xf32>, vector<8x128xf32> -> vector<8x640xf32>
    %60 = arith.truncf %59 : vector<8x640xf32> to vector<8x640xbf16>
    %c0_38 = arith.constant 0 : index
    %c0_39 = arith.constant 0 : index
    %61 = vector.load %arg17[%c0_38, %c0_39] : memref<640x32xbf16, #tpu.memory_space<vmem>>, vector<640x32xbf16>
    %cst_40 = arith.constant dense<0.000000e+00> : vector<8x32xf32>
    %62 = tpu.matmul %60, %61, %cst_40 {dimension_numbers = #tpu.dot_dimension_numbers<[1], [0], [0], [1], [0, 0, 1, 1], [], []>} : vector<8x640xbf16>, vector<640x32xbf16>, vector<8x32xf32> -> vector<8x32xf32>
    %c0_41 = arith.constant 0 : index
    %c0_42 = arith.constant 0 : index
    %63 = vector.load %arg18[%c0_41, %c0_42] : memref<1x32xf32, #tpu.memory_space<vmem>>, vector<1x32xf32>
    %64 = vector.broadcast %63 : vector<1x32xf32> to vector<8x32xf32>
    %65 = arith.addf %62, %64 : vector<8x32xf32>
    %cst_43 = arith.constant 0.000000e+00 : f32
    %66 = vector.broadcast %cst_43 : f32 to vector<8x32xf32>
    %67 = arith.maximumf %65, %66 : vector<8x32xf32>
    %68 = arith.truncf %67 : vector<8x32xf32> to vector<8x32xbf16>
    %c0_44 = arith.constant 0 : index
    %c0_45 = arith.constant 0 : index
    %69 = vector.load %arg19[%c0_44, %c0_45] : memref<32x256xbf16, #tpu.memory_space<vmem>>, vector<32x256xbf16>
    %cst_46 = arith.constant dense<0.000000e+00> : vector<8x256xf32>
    %70 = tpu.matmul %68, %69, %cst_46 {dimension_numbers = #tpu.dot_dimension_numbers<[1], [0], [0], [1], [0, 0, 1, 1], [], []>} : vector<8x32xbf16>, vector<32x256xbf16>, vector<8x256xf32> -> vector<8x256xf32>
    %c0_47 = arith.constant 0 : index
    %c0_48 = arith.constant 0 : index
    %71 = vector.load %arg20[%c0_47, %c0_48] : memref<1x256xf32, #tpu.memory_space<vmem>>, vector<1x256xf32>
    %72 = vector.broadcast %71 : vector<1x256xf32> to vector<8x256xf32>
    %73 = arith.addf %70, %72 : vector<8x256xf32>
    %cst_49 = arith.constant 0.000000e+00 : f32
    %74 = vector.broadcast %cst_49 : f32 to vector<8x256xf32>
    %75 = arith.maximumf %73, %74 : vector<8x256xf32>
    %76 = arith.addf %31, %75 : vector<8x256xf32>
    %c0_50 = arith.constant 0 : index
    %c0_51 = arith.constant 0 : index
    %77 = vector.load %arg2[%c0_50, %c0_51] : memref<8x128xbf16, #tpu.memory_space<vmem>>, vector<8x128xbf16>
    %c0_52 = arith.constant 0 : index
    %c0_53 = arith.constant 0 : index
    %78 = vector.load %arg21[%c0_52, %c0_53] : memref<128x768xbf16, #tpu.memory_space<vmem>>, vector<128x768xbf16>
    %cst_54 = arith.constant dense<0.000000e+00> : vector<8x768xf32>
    %79 = tpu.matmul %77, %78, %cst_54 {dimension_numbers = #tpu.dot_dimension_numbers<[1], [0], [0], [1], [0, 0, 1, 1], [], []>} : vector<8x128xbf16>, vector<128x768xbf16>, vector<8x768xf32> -> vector<8x768xf32>
    %c0_55 = arith.constant 0 : index
    %c0_56 = arith.constant 0 : index
    %80 = vector.load %arg22[%c0_55, %c0_56] : memref<1x768xf32, #tpu.memory_space<vmem>>, vector<1x768xf32>
    %81 = vector.broadcast %80 : vector<1x768xf32> to vector<8x768xf32>
    %82 = arith.addf %79, %81 : vector<8x768xf32>
    %cst_57 = arith.constant 0.000000e+00 : f32
    %83 = vector.broadcast %cst_57 : f32 to vector<8x768xf32>
    %84 = arith.maximumf %82, %83 : vector<8x768xf32>
    %85 = vector.extract_strided_slice %84 {offsets = [0, 0], sizes = [8, 256], strides = [1, 1]} : vector<8x768xf32> to vector<8x256xf32>
    %86 = vector.extract_strided_slice %84 {offsets = [0, 128], sizes = [8, 256], strides = [1, 1]} : vector<8x768xf32> to vector<8x256xf32>
    %87 = vector.extract_strided_slice %84 {offsets = [0, 256], sizes = [8, 256], strides = [1, 1]} : vector<8x768xf32> to vector<8x256xf32>
    %88 = vector.extract_strided_slice %84 {offsets = [0, 384], sizes = [8, 256], strides = [1, 1]} : vector<8x768xf32> to vector<8x256xf32>
    %89 = vector.extract_strided_slice %84 {offsets = [0, 512], sizes = [8, 256], strides = [1, 1]} : vector<8x768xf32> to vector<8x256xf32>
    %90 = tpu.concatenate %85, %86, %87, %88, %89 in 0 : vector<8x256xf32>, vector<8x256xf32>, vector<8x256xf32>, vector<8x256xf32>, vector<8x256xf32> -> vector<40x256xf32>
    %91 = arith.truncf %90 : vector<40x256xf32> to vector<40x256xbf16>
    %c0_58 = arith.constant 0 : index
    %c0_59 = arith.constant 0 : index
    %92 = vector.load %arg23[%c0_58, %c0_59] : memref<256x256xbf16, #tpu.memory_space<vmem>>, vector<256x256xbf16>
    %cst_60 = arith.constant dense<0.000000e+00> : vector<40x256xf32>
    %93 = tpu.matmul %91, %92, %cst_60 {dimension_numbers = #tpu.dot_dimension_numbers<[1], [0], [0], [1], [0, 0, 1, 1], [], []>} : vector<40x256xbf16>, vector<256x256xbf16>, vector<40x256xf32> -> vector<40x256xf32>
    %c0_61 = arith.constant 0 : index
    %c0_62 = arith.constant 0 : index
    %94 = vector.load %arg24[%c0_61, %c0_62] : memref<1x256xf32, #tpu.memory_space<vmem>>, vector<1x256xf32>
    %95 = vector.broadcast %94 : vector<1x256xf32> to vector<40x256xf32>
    %96 = arith.addf %93, %95 : vector<40x256xf32>
    %cst_63 = arith.constant 0.000000e+00 : f32
    %97 = vector.broadcast %cst_63 : f32 to vector<40x256xf32>
    %98 = arith.maximumf %96, %97 : vector<40x256xf32>
    %99 = vector.extract_strided_slice %98 {offsets = [0, 0], sizes = [8, 256], strides = [1, 1]} : vector<40x256xf32> to vector<8x256xf32>
    %100 = vector.extract_strided_slice %98 {offsets = [8, 0], sizes = [8, 256], strides = [1, 1]} : vector<40x256xf32> to vector<8x256xf32>
    %101 = vector.extract_strided_slice %98 {offsets = [16, 0], sizes = [8, 256], strides = [1, 1]} : vector<40x256xf32> to vector<8x256xf32>
    %102 = vector.extract_strided_slice %98 {offsets = [24, 0], sizes = [8, 256], strides = [1, 1]} : vector<40x256xf32> to vector<8x256xf32>
    %103 = vector.extract_strided_slice %98 {offsets = [32, 0], sizes = [8, 256], strides = [1, 1]} : vector<40x256xf32> to vector<8x256xf32>
    %104 = tpu.concatenate %99, %100, %101, %102, %103 in 1 : vector<8x256xf32>, vector<8x256xf32>, vector<8x256xf32>, vector<8x256xf32>, vector<8x256xf32> -> vector<8x1280xf32>
    %105 = arith.truncf %104 : vector<8x1280xf32> to vector<8x1280xbf16>
    %c0_64 = arith.constant 0 : index
    %c0_65 = arith.constant 0 : index
    %106 = vector.load %arg25[%c0_64, %c0_65] : memref<1280x32xbf16, #tpu.memory_space<vmem>>, vector<1280x32xbf16>
    %cst_66 = arith.constant dense<0.000000e+00> : vector<8x32xf32>
    %107 = tpu.matmul %105, %106, %cst_66 {dimension_numbers = #tpu.dot_dimension_numbers<[1], [0], [0], [1], [0, 0, 1, 1], [], []>} : vector<8x1280xbf16>, vector<1280x32xbf16>, vector<8x32xf32> -> vector<8x32xf32>
    %c0_67 = arith.constant 0 : index
    %c0_68 = arith.constant 0 : index
    %108 = vector.load %arg26[%c0_67, %c0_68] : memref<1x32xf32, #tpu.memory_space<vmem>>, vector<1x32xf32>
    %109 = vector.broadcast %108 : vector<1x32xf32> to vector<8x32xf32>
    %110 = arith.addf %107, %109 : vector<8x32xf32>
    %cst_69 = arith.constant 0.000000e+00 : f32
    %111 = vector.broadcast %cst_69 : f32 to vector<8x32xf32>
    %112 = arith.maximumf %110, %111 : vector<8x32xf32>
    %113 = arith.truncf %112 : vector<8x32xf32> to vector<8x32xbf16>
    %c0_70 = arith.constant 0 : index
    %c0_71 = arith.constant 0 : index
    %114 = vector.load %arg27[%c0_70, %c0_71] : memref<32x256xbf16, #tpu.memory_space<vmem>>, vector<32x256xbf16>
    %cst_72 = arith.constant dense<0.000000e+00> : vector<8x256xf32>
    %115 = tpu.matmul %113, %114, %cst_72 {dimension_numbers = #tpu.dot_dimension_numbers<[1], [0], [0], [1], [0, 0, 1, 1], [], []>} : vector<8x32xbf16>, vector<32x256xbf16>, vector<8x256xf32> -> vector<8x256xf32>
    %c0_73 = arith.constant 0 : index
    %c0_74 = arith.constant 0 : index
    %116 = vector.load %arg28[%c0_73, %c0_74] : memref<1x256xf32, #tpu.memory_space<vmem>>, vector<1x256xf32>
    %117 = vector.broadcast %116 : vector<1x256xf32> to vector<8x256xf32>
    %118 = arith.addf %115, %117 : vector<8x256xf32>
    %cst_75 = arith.constant 0.000000e+00 : f32
    %119 = vector.broadcast %cst_75 : f32 to vector<8x256xf32>
    %120 = arith.maximumf %118, %119 : vector<8x256xf32>
    %121 = arith.addf %76, %120 : vector<8x256xf32>
    %c0_76 = arith.constant 0 : index
    %c0_77 = arith.constant 0 : index
    %122 = vector.load %arg3[%c0_76, %c0_77] : memref<8x128xbf16, #tpu.memory_space<vmem>>, vector<8x128xbf16>
    %c0_78 = arith.constant 0 : index
    %c0_79 = arith.constant 0 : index
    %123 = vector.load %arg29[%c0_78, %c0_79] : memref<128x768xbf16, #tpu.memory_space<vmem>>, vector<128x768xbf16>
    %cst_80 = arith.constant dense<0.000000e+00> : vector<8x768xf32>
    %124 = tpu.matmul %122, %123, %cst_80 {dimension_numbers = #tpu.dot_dimension_numbers<[1], [0], [0], [1], [0, 0, 1, 1], [], []>} : vector<8x128xbf16>, vector<128x768xbf16>, vector<8x768xf32> -> vector<8x768xf32>
    %c0_81 = arith.constant 0 : index
    %c0_82 = arith.constant 0 : index
    %125 = vector.load %arg30[%c0_81, %c0_82] : memref<1x768xf32, #tpu.memory_space<vmem>>, vector<1x768xf32>
    %126 = vector.broadcast %125 : vector<1x768xf32> to vector<8x768xf32>
    %127 = arith.addf %124, %126 : vector<8x768xf32>
    %cst_83 = arith.constant 0.000000e+00 : f32
    %128 = vector.broadcast %cst_83 : f32 to vector<8x768xf32>
    %129 = arith.maximumf %127, %128 : vector<8x768xf32>
    %130 = vector.extract_strided_slice %129 {offsets = [0, 0], sizes = [8, 256], strides = [1, 1]} : vector<8x768xf32> to vector<8x256xf32>
    %131 = vector.extract_strided_slice %129 {offsets = [0, 128], sizes = [8, 256], strides = [1, 1]} : vector<8x768xf32> to vector<8x256xf32>
    %132 = vector.extract_strided_slice %129 {offsets = [0, 256], sizes = [8, 256], strides = [1, 1]} : vector<8x768xf32> to vector<8x256xf32>
    %133 = vector.extract_strided_slice %129 {offsets = [0, 384], sizes = [8, 256], strides = [1, 1]} : vector<8x768xf32> to vector<8x256xf32>
    %134 = vector.extract_strided_slice %129 {offsets = [0, 512], sizes = [8, 256], strides = [1, 1]} : vector<8x768xf32> to vector<8x256xf32>
    %135 = tpu.concatenate %130, %131, %132, %133, %134 in 0 : vector<8x256xf32>, vector<8x256xf32>, vector<8x256xf32>, vector<8x256xf32>, vector<8x256xf32> -> vector<40x256xf32>
    %136 = arith.truncf %135 : vector<40x256xf32> to vector<40x256xbf16>
    %c0_84 = arith.constant 0 : index
    %c0_85 = arith.constant 0 : index
    %137 = vector.load %arg31[%c0_84, %c0_85] : memref<256x256xbf16, #tpu.memory_space<vmem>>, vector<256x256xbf16>
    %cst_86 = arith.constant dense<0.000000e+00> : vector<40x256xf32>
    %138 = tpu.matmul %136, %137, %cst_86 {dimension_numbers = #tpu.dot_dimension_numbers<[1], [0], [0], [1], [0, 0, 1, 1], [], []>} : vector<40x256xbf16>, vector<256x256xbf16>, vector<40x256xf32> -> vector<40x256xf32>
    %c0_87 = arith.constant 0 : index
    %c0_88 = arith.constant 0 : index
    %139 = vector.load %arg32[%c0_87, %c0_88] : memref<1x256xf32, #tpu.memory_space<vmem>>, vector<1x256xf32>
    %140 = vector.broadcast %139 : vector<1x256xf32> to vector<40x256xf32>
    %141 = arith.addf %138, %140 : vector<40x256xf32>
    %cst_89 = arith.constant 0.000000e+00 : f32
    %142 = vector.broadcast %cst_89 : f32 to vector<40x256xf32>
    %143 = arith.maximumf %141, %142 : vector<40x256xf32>
    %144 = vector.extract_strided_slice %143 {offsets = [0, 0], sizes = [8, 256], strides = [1, 1]} : vector<40x256xf32> to vector<8x256xf32>
    %145 = vector.extract_strided_slice %143 {offsets = [8, 0], sizes = [8, 256], strides = [1, 1]} : vector<40x256xf32> to vector<8x256xf32>
    %146 = vector.extract_strided_slice %143 {offsets = [16, 0], sizes = [8, 256], strides = [1, 1]} : vector<40x256xf32> to vector<8x256xf32>
    %147 = vector.extract_strided_slice %143 {offsets = [24, 0], sizes = [8, 256], strides = [1, 1]} : vector<40x256xf32> to vector<8x256xf32>
    %148 = vector.extract_strided_slice %143 {offsets = [32, 0], sizes = [8, 256], strides = [1, 1]} : vector<40x256xf32> to vector<8x256xf32>
    %149 = tpu.concatenate %144, %145, %146, %147, %148 in 1 : vector<8x256xf32>, vector<8x256xf32>, vector<8x256xf32>, vector<8x256xf32>, vector<8x256xf32> -> vector<8x1280xf32>
    %150 = arith.truncf %149 : vector<8x1280xf32> to vector<8x1280xbf16>
    %c0_90 = arith.constant 0 : index
    %c0_91 = arith.constant 0 : index
    %151 = vector.load %arg33[%c0_90, %c0_91] : memref<1280x32xbf16, #tpu.memory_space<vmem>>, vector<1280x32xbf16>
    %cst_92 = arith.constant dense<0.000000e+00> : vector<8x32xf32>
    %152 = tpu.matmul %150, %151, %cst_92 {dimension_numbers = #tpu.dot_dimension_numbers<[1], [0], [0], [1], [0, 0, 1, 1], [], []>} : vector<8x1280xbf16>, vector<1280x32xbf16>, vector<8x32xf32> -> vector<8x32xf32>
    %c0_93 = arith.constant 0 : index
    %c0_94 = arith.constant 0 : index
    %153 = vector.load %arg34[%c0_93, %c0_94] : memref<1x32xf32, #tpu.memory_space<vmem>>, vector<1x32xf32>
    %154 = vector.broadcast %153 : vector<1x32xf32> to vector<8x32xf32>
    %155 = arith.addf %152, %154 : vector<8x32xf32>
    %cst_95 = arith.constant 0.000000e+00 : f32
    %156 = vector.broadcast %cst_95 : f32 to vector<8x32xf32>
    %157 = arith.maximumf %155, %156 : vector<8x32xf32>
    %158 = arith.truncf %157 : vector<8x32xf32> to vector<8x32xbf16>
    %c0_96 = arith.constant 0 : index
    %c0_97 = arith.constant 0 : index
    %159 = vector.load %arg35[%c0_96, %c0_97] : memref<32x256xbf16, #tpu.memory_space<vmem>>, vector<32x256xbf16>
    %cst_98 = arith.constant dense<0.000000e+00> : vector<8x256xf32>
    %160 = tpu.matmul %158, %159, %cst_98 {dimension_numbers = #tpu.dot_dimension_numbers<[1], [0], [0], [1], [0, 0, 1, 1], [], []>} : vector<8x32xbf16>, vector<32x256xbf16>, vector<8x256xf32> -> vector<8x256xf32>
    %c0_99 = arith.constant 0 : index
    %c0_100 = arith.constant 0 : index
    %161 = vector.load %arg36[%c0_99, %c0_100] : memref<1x256xf32, #tpu.memory_space<vmem>>, vector<1x256xf32>
    %162 = vector.broadcast %161 : vector<1x256xf32> to vector<8x256xf32>
    %163 = arith.addf %160, %162 : vector<8x256xf32>
    %cst_101 = arith.constant 0.000000e+00 : f32
    %164 = vector.broadcast %cst_101 : f32 to vector<8x256xf32>
    %165 = arith.maximumf %163, %164 : vector<8x256xf32>
    %166 = arith.addf %121, %165 : vector<8x256xf32>
    %c0_102 = arith.constant 0 : index
    %c0_103 = arith.constant 0 : index
    %167 = vector.load %arg4[%c0_102, %c0_103] : memref<8x128xbf16, #tpu.memory_space<vmem>>, vector<8x128xbf16>
    %c0_104 = arith.constant 0 : index
    %c0_105 = arith.constant 0 : index
    %168 = vector.load %arg37[%c0_104, %c0_105] : memref<128x768xbf16, #tpu.memory_space<vmem>>, vector<128x768xbf16>
    %cst_106 = arith.constant dense<0.000000e+00> : vector<8x768xf32>
    %169 = tpu.matmul %167, %168, %cst_106 {dimension_numbers = #tpu.dot_dimension_numbers<[1], [0], [0], [1], [0, 0, 1, 1], [], []>} : vector<8x128xbf16>, vector<128x768xbf16>, vector<8x768xf32> -> vector<8x768xf32>
    %c0_107 = arith.constant 0 : index
    %c0_108 = arith.constant 0 : index
    %170 = vector.load %arg38[%c0_107, %c0_108] : memref<1x768xf32, #tpu.memory_space<vmem>>, vector<1x768xf32>
    %171 = vector.broadcast %170 : vector<1x768xf32> to vector<8x768xf32>
    %172 = arith.addf %169, %171 : vector<8x768xf32>
    %cst_109 = arith.constant 0.000000e+00 : f32
    %173 = vector.broadcast %cst_109 : f32 to vector<8x768xf32>
    %174 = arith.maximumf %172, %173 : vector<8x768xf32>
    %175 = vector.extract_strided_slice %174 {offsets = [0, 0], sizes = [8, 256], strides = [1, 1]} : vector<8x768xf32> to vector<8x256xf32>
    %176 = vector.extract_strided_slice %174 {offsets = [0, 128], sizes = [8, 256], strides = [1, 1]} : vector<8x768xf32> to vector<8x256xf32>
    %177 = vector.extract_strided_slice %174 {offsets = [0, 256], sizes = [8, 256], strides = [1, 1]} : vector<8x768xf32> to vector<8x256xf32>
    %178 = vector.extract_strided_slice %174 {offsets = [0, 384], sizes = [8, 256], strides = [1, 1]} : vector<8x768xf32> to vector<8x256xf32>
    %179 = vector.extract_strided_slice %174 {offsets = [0, 512], sizes = [8, 256], strides = [1, 1]} : vector<8x768xf32> to vector<8x256xf32>
    %180 = tpu.concatenate %175, %176, %177, %178, %179 in 0 : vector<8x256xf32>, vector<8x256xf32>, vector<8x256xf32>, vector<8x256xf32>, vector<8x256xf32> -> vector<40x256xf32>
    %181 = arith.truncf %180 : vector<40x256xf32> to vector<40x256xbf16>
    %c0_110 = arith.constant 0 : index
    %c0_111 = arith.constant 0 : index
    %182 = vector.load %arg39[%c0_110, %c0_111] : memref<256x256xbf16, #tpu.memory_space<vmem>>, vector<256x256xbf16>
    %cst_112 = arith.constant dense<0.000000e+00> : vector<40x256xf32>
    %183 = tpu.matmul %181, %182, %cst_112 {dimension_numbers = #tpu.dot_dimension_numbers<[1], [0], [0], [1], [0, 0, 1, 1], [], []>} : vector<40x256xbf16>, vector<256x256xbf16>, vector<40x256xf32> -> vector<40x256xf32>
    %c0_113 = arith.constant 0 : index
    %c0_114 = arith.constant 0 : index
    %184 = vector.load %arg40[%c0_113, %c0_114] : memref<1x256xf32, #tpu.memory_space<vmem>>, vector<1x256xf32>
    %185 = vector.broadcast %184 : vector<1x256xf32> to vector<40x256xf32>
    %186 = arith.addf %183, %185 : vector<40x256xf32>
    %cst_115 = arith.constant 0.000000e+00 : f32
    %187 = vector.broadcast %cst_115 : f32 to vector<40x256xf32>
    %188 = arith.maximumf %186, %187 : vector<40x256xf32>
    %189 = vector.extract_strided_slice %188 {offsets = [0, 0], sizes = [8, 256], strides = [1, 1]} : vector<40x256xf32> to vector<8x256xf32>
    %190 = vector.extract_strided_slice %188 {offsets = [8, 0], sizes = [8, 256], strides = [1, 1]} : vector<40x256xf32> to vector<8x256xf32>
    %191 = vector.extract_strided_slice %188 {offsets = [16, 0], sizes = [8, 256], strides = [1, 1]} : vector<40x256xf32> to vector<8x256xf32>
    %192 = vector.extract_strided_slice %188 {offsets = [24, 0], sizes = [8, 256], strides = [1, 1]} : vector<40x256xf32> to vector<8x256xf32>
    %193 = vector.extract_strided_slice %188 {offsets = [32, 0], sizes = [8, 256], strides = [1, 1]} : vector<40x256xf32> to vector<8x256xf32>
    %194 = tpu.concatenate %189, %190, %191, %192, %193 in 1 : vector<8x256xf32>, vector<8x256xf32>, vector<8x256xf32>, vector<8x256xf32>, vector<8x256xf32> -> vector<8x1280xf32>
    %195 = arith.truncf %194 : vector<8x1280xf32> to vector<8x1280xbf16>
    %c0_116 = arith.constant 0 : index
    %c0_117 = arith.constant 0 : index
    %196 = vector.load %arg41[%c0_116, %c0_117] : memref<1280x32xbf16, #tpu.memory_space<vmem>>, vector<1280x32xbf16>
    %cst_118 = arith.constant dense<0.000000e+00> : vector<8x32xf32>
    %197 = tpu.matmul %195, %196, %cst_118 {dimension_numbers = #tpu.dot_dimension_numbers<[1], [0], [0], [1], [0, 0, 1, 1], [], []>} : vector<8x1280xbf16>, vector<1280x32xbf16>, vector<8x32xf32> -> vector<8x32xf32>
    %c0_119 = arith.constant 0 : index
    %c0_120 = arith.constant 0 : index
    %198 = vector.load %arg42[%c0_119, %c0_120] : memref<1x32xf32, #tpu.memory_space<vmem>>, vector<1x32xf32>
    %199 = vector.broadcast %198 : vector<1x32xf32> to vector<8x32xf32>
    %200 = arith.addf %197, %199 : vector<8x32xf32>
    %cst_121 = arith.constant 0.000000e+00 : f32
    %201 = vector.broadcast %cst_121 : f32 to vector<8x32xf32>
    %202 = arith.maximumf %200, %201 : vector<8x32xf32>
    %203 = arith.truncf %202 : vector<8x32xf32> to vector<8x32xbf16>
    %c0_122 = arith.constant 0 : index
    %c0_123 = arith.constant 0 : index
    %204 = vector.load %arg43[%c0_122, %c0_123] : memref<32x256xbf16, #tpu.memory_space<vmem>>, vector<32x256xbf16>
    %cst_124 = arith.constant dense<0.000000e+00> : vector<8x256xf32>
    %205 = tpu.matmul %203, %204, %cst_124 {dimension_numbers = #tpu.dot_dimension_numbers<[1], [0], [0], [1], [0, 0, 1, 1], [], []>} : vector<8x32xbf16>, vector<32x256xbf16>, vector<8x256xf32> -> vector<8x256xf32>
    %c0_125 = arith.constant 0 : index
    %c0_126 = arith.constant 0 : index
    %206 = vector.load %arg44[%c0_125, %c0_126] : memref<1x256xf32, #tpu.memory_space<vmem>>, vector<1x256xf32>
    %207 = vector.broadcast %206 : vector<1x256xf32> to vector<8x256xf32>
    %208 = arith.addf %205, %207 : vector<8x256xf32>
    %cst_127 = arith.constant 0.000000e+00 : f32
    %209 = vector.broadcast %cst_127 : f32 to vector<8x256xf32>
    %210 = arith.maximumf %208, %209 : vector<8x256xf32>
    %211 = arith.addf %166, %210 : vector<8x256xf32>
    %212 = arith.truncf %211 : vector<8x256xf32> to vector<8x256xbf16>
    %c0_128 = arith.constant 0 : index
    %c0_129 = arith.constant 0 : index
    %213 = vector.load %arg45[%c0_128, %c0_129] : memref<256x64xbf16, #tpu.memory_space<vmem>>, vector<256x64xbf16>
    %cst_130 = arith.constant dense<0.000000e+00> : vector<8x64xf32>
    %214 = tpu.matmul %212, %213, %cst_130 {dimension_numbers = #tpu.dot_dimension_numbers<[1], [0], [0], [1], [0, 0, 1, 1], [], []>} : vector<8x256xbf16>, vector<256x64xbf16>, vector<8x64xf32> -> vector<8x64xf32>
    %c0_131 = arith.constant 0 : index
    %c0_132 = arith.constant 0 : index
    %215 = vector.load %arg46[%c0_131, %c0_132] : memref<1x64xf32, #tpu.memory_space<vmem>>, vector<1x64xf32>
    %216 = vector.broadcast %215 : vector<1x64xf32> to vector<8x64xf32>
    %217 = arith.addf %214, %216 : vector<8x64xf32>
    %cst_133 = arith.constant 0.000000e+00 : f32
    %218 = vector.broadcast %cst_133 : f32 to vector<8x64xf32>
    %219 = arith.maximumf %217, %218 : vector<8x64xf32>
    %220 = arith.truncf %219 : vector<8x64xf32> to vector<8x64xbf16>
    %c0_134 = arith.constant 0 : index
    %c0_135 = arith.constant 0 : index
    %221 = vector.load %arg47[%c0_134, %c0_135] : memref<64x128xbf16, #tpu.memory_space<vmem>>, vector<64x128xbf16>
    %cst_136 = arith.constant dense<0.000000e+00> : vector<8x128xf32>
    %222 = tpu.matmul %220, %221, %cst_136 {dimension_numbers = #tpu.dot_dimension_numbers<[1], [0], [0], [1], [0, 0, 1, 1], [], []>} : vector<8x64xbf16>, vector<64x128xbf16>, vector<8x128xf32> -> vector<8x128xf32>
    %c0_137 = arith.constant 0 : index
    %c0_138 = arith.constant 0 : index
    %223 = vector.load %arg48[%c0_137, %c0_138] : memref<1x128xf32, #tpu.memory_space<vmem>>, vector<1x128xf32>
    %224 = vector.broadcast %223 : vector<1x128xf32> to vector<8x128xf32>
    %225 = arith.addf %222, %224 : vector<8x128xf32>
    %226 = tpu.iota {dimensions = array<i32: 1>} : vector<8x128xi32>
    %227 = tpu.iota {dimensions = array<i32: 0>} : vector<8x128xi32>
    %c5_i32 = arith.constant 5 : i32
    %228 = vector.broadcast %c5_i32 : i32 to vector<8x128xi32>
    %229 = arith.cmpi slt, %226, %228 : vector<8x128xi32>
    %c2_i32 = arith.constant 2 : i32
    %230 = vector.broadcast %c2_i32 : i32 to vector<8x128xi32>
    %231 = arith.cmpi slt, %227, %230 : vector<8x128xi32>
    %232 = arith.andi %229, %231 : vector<8x128xi1>
    %cst_139 = arith.constant 0.000000e+00 : f32
    %233 = vector.broadcast %cst_139 : f32 to vector<8x128xf32>
    %234 = arith.select %232, %225, %233 : vector<8x128xi1>, vector<8x128xf32>
    %235 = vector.shape_cast %234 : vector<8x128xf32> to vector<1x8x128xf32>
    %cst_140 = arith.constant dense<0.000000e+00> : vector<1xf32>
    %236 = vector.multi_reduction <add>, %235, %cst_140 [1, 2] : vector<1x8x128xf32> to vector<1xf32>
    %237 = vector.shape_cast %236 : vector<1xf32> to vector<1x1x1xf32>
    %238 = vector.extract %237[0, 0, 0] : f32 from vector<1x1x1xf32>
    %cst_141 = arith.constant 1.000000e+01 : f32
    %239 = arith.divf %238, %cst_141 : f32
    %c5_i32_142 = arith.constant 5 : i32
    %240 = vector.broadcast %c5_i32_142 : i32 to vector<8x128xi32>
    %241 = arith.cmpi eq, %226, %240 : vector<8x128xi32>
    %cst_143 = arith.constant 0.000000e+00 : f32
    %242 = vector.broadcast %cst_143 : f32 to vector<8x128xf32>
    %243 = arith.select %241, %225, %242 : vector<8x128xi1>, vector<8x128xf32>
    %cst_144 = arith.constant dense<0.000000e+00> : vector<8xf32>
    %244 = vector.multi_reduction <add>, %243, %cst_144 [1] : vector<8x128xf32> to vector<8xf32>
    %245 = vector.shape_cast %244 : vector<8xf32> to vector<8x1xf32>
    %246 = vector.broadcast %239 : f32 to vector<8x128xf32>
    %247 = arith.subf %225, %246 : vector<8x128xf32>
    %248 = vector.broadcast %245 : vector<8x1xf32> to vector<8x128xf32>
    %249 = arith.addf %247, %248 : vector<8x128xf32>
    %cst_145 = arith.constant 0.000000e+00 : f32
    %250 = vector.broadcast %cst_145 : f32 to vector<8x128xf32>
    %251 = arith.select %229, %249, %250 : vector<8x128xi1>, vector<8x128xf32>
    %c0_146 = arith.constant 0 : index
    %c0_147 = arith.constant 0 : index
    %252 = vector.load %arg49[%c0_146, %c0_147] : memref<8x128xf32, #tpu.memory_space<vmem>>, vector<8x128xf32>
    tpu.vector_store %arg49[%c0_146, %c0_147], %251 {strides = array<i32>} : memref<8x128xf32, #tpu.memory_space<vmem>>, vector<8x128xf32>,
    return
  }
}

</mosaic_0001>

<bundles_post_ra>
// kernel: dueling_placenet_forward.1
= control target key start
LH: loop header
LB: loop body
LE: loop exit
PB: predicated region body
PF: predicated region fallthrough
CT: control target
= control target key end

     0   :  { %s14719_s6 = smov 1   ;;  %s14720_s10 = smov 2   ;;  %s16429_s0 = inlined_call_operand.smem [shape: u32[50], index: -1, kind: input, shape index: {}] }
   0x1   :  { %s14819_s5 = sld [smem:[%s16429_s0]]   ;;  %s14721_s14 = smov 3  }
   0x2   :  { %s14824_s9 = sld [smem:[%s16429_s0 + %s14719_s6]]   ;;  %s14722_s18 = smov 4  }
   0x3   :  { %s14829_s13 = sld [smem:[%s16429_s0 + %s14720_s10]]   ;;  %s14723_s22 = smov 5  }
   0x4   :  { %s14834_s17 = sld [smem:[%s16429_s0 + %s14721_s14]]   ;;  %s14724_s26 = smov 6  }
   0x5   :  { %s14839_s21 = sld [smem:[%s16429_s0 + %s14722_s18]]   ;;  %s14725_s30 = smov 7  }
   0x6   :  { %s14844_s25 = sld [smem:[%s16429_s0 + %s14723_s22]]   ;;  %s14726_s4 = smov 8  }
   0x7   :  { %16458 = sst [smem:[#allocation72_spill]] %s14819_s5  ;;  %s14727_s10 = smov 9  }
   0x8   :  { %16459 = sst [smem:[#allocation73_spill]] %s14824_s9  ;;  %s14728_s15 = smov 10  }
   0x9   :  { %16460 = sst [smem:[#allocation74_spill]] %s14829_s13  ;;  %s14729_s20 = smov 11  }
   0xa   :  { %16461 = sst [smem:[#allocation75_spill]] %s14834_s17  ;;  %s14731_s1 = smov 13  }
   0xb   :  { %16462 = sst [smem:[#allocation76_spill]] %s14839_s21  ;;  %s14732_s7 = smov 14  }
   0xc   :  { %16463 = sst [smem:[#allocation77_spill]] %s14844_s25  ;;  %s14734_s22 = smov 16  }
   0xd   :  { %s14849_s29 = sld [smem:[%s16429_s0 + %s14724_s26]]   ;;  %s14730_s26 = smov 12  }
   0xe   :  { %s14854_s3 = sld [smem:[%s16429_s0 + %s14725_s30]]   ;;  %s14735_s28 = smov 17  }
   0xf   :  { %s14859_s8 = sld [smem:[%s16429_s0 + %s14726_s4]]  }
  0x10   :  { %s14864_s14 = sld [smem:[%s16429_s0 + %s14727_s10]]  }
  0x11   :  { %s14869_s19 = sld [smem:[%s16429_s0 + %s14728_s15]]   ;;  %s14733_s15 = smov 15  }
  0x12   :  { %s14874_s24 = sld [smem:[%s16429_s0 + %s14729_s20]]  }
  0x13   :  { %16464 = sst [smem:[#allocation78_spill]] %s14849_s29 }
  0x14   :  { %16465 = sst [smem:[#allocation79_spill]] %s14854_s3 }
  0x15   :  { %s14879_s30 = sld [smem:[%s16429_s0 + %s14730_s26]]  }
  0x16   :  { %16466 = sst [smem:[#allocation80_spill]] %s14864_s14 }
  0x17   :  { %16467 = sst [smem:[#allocation81_spill]] %s14869_s19 }
  0x18   :  { %s14884_s6 = sld [smem:[%s16429_s0 + %s14731_s1]]  }
  0x19   :  { %s14889_s12 = sld [smem:[%s16429_s0 + %s14732_s7]]   ;;  %s14736_s7 = smov 18  }
  0x1a   :  { %s14894_s20 = sld [smem:[%s16429_s0 + %s14733_s15]]   ;;  %s14737_s15 = smov 19  }
  0x1b   :  { %16468 = sst [smem:[#allocation82_spill]] %s14879_s30 }
  0x1c   :  { %s14899_s27 = sld [smem:[%s16429_s0 + %s14734_s22]]   ;;  %s14738_s22 = smov 20  }
  0x1d   :  { %s14904_s4 = sld [smem:[%s16429_s0 + %s14735_s28]]   ;;  %s14739_s28 = smov 21  }
  0x1e   :  { %16469 = sst [smem:[#allocation83_spill]] %s14884_s6 }
  0x1f   :  { %s14909_s21 = sld [smem:[%s16429_s0 + %s14736_s7]]   ;;  %s14740_s7 = smov 22  }
  0x20   :  { %16470 = sst [smem:[#allocation84_spill]] %s14894_s20 }
  0x21   :  { %s14914_s17 = sld [smem:[%s16429_s0 + %s14737_s15]]   ;;  %s14741_s15 = smov 23  }
  0x22   :  { %s14919_s13 = sld [smem:[%s16429_s0 + %s14738_s22]]   ;;  %s14742_s22 = smov 24  }
  0x23   :  { %16471 = sst [smem:[#allocation85_spill]] %s14904_s4 }
  0x24   :  { %s14924_s4 = sld [smem:[%s16429_s0 + %s14739_s28]]   ;;  %s14743_s28 = smov 25  }
  0x25   :  { %16472 = sst [smem:[#allocation86_spill]] %s14909_s21 }
  0x26   :  { %s14929_s9 = sld [smem:[%s16429_s0 + %s14740_s7]]   ;;  %s14744_s7 = smov 26  }
  0x27   :  { %s14934_s6 = sld [smem:[%s16429_s0 + %s14741_s15]]   ;;  %s14745_s15 = smov 27  }
  0x28   :  { %16473 = sst [smem:[#allocation87_spill]] %s14919_s13 }
  0x29   :  { %s14939_s14 = sld [smem:[%s16429_s0 + %s14742_s22]]   ;;  %s14746_s22 = smov 28  }
  0x2a   :  { %16474 = sst [smem:[#allocation88_spill]] %s14924_s4 }
  0x2b   :  { %s14944_s4 = sld [smem:[%s16429_s0 + %s14743_s28]]   ;;  %s14747_s28 = smov 29  }
  0x2c   :  { %s14949_s3 = sld [smem:[%s16429_s0 + %s14744_s7]]   ;;  %s14748_s7 = smov 30  }
  0x2d   :  { %16475 = sst [smem:[#allocation89_spill]] %s14934_s6 }
  0x2e   :  { %s14954_s5 = sld [smem:[%s16429_s0 + %s14745_s15]]   ;;  %s14749_s15 = smov 31  }
  0x2f   :  { %s14959_s25 = sld [smem:[%s16429_s0 + %s14746_s22]]   ;;  %s14750_s22 = smov 32  }
  0x30   :  { %s14974_s6 = sld [smem:[%s16429_s0 + %s14749_s15]]   ;;  %s14753_s15 = smov 35  }
  0x31   :  { %16476 = sst [smem:[#allocation90_spill]] %s14944_s4 }
  0x32   :  { %16477 = sst [smem:[#allocation91_spill]] %s14949_s3 }
  0x33   :  { %s14964_s4 = sld [smem:[%s16429_s0 + %s14747_s28]]   ;;  %s14751_s28 = smov 33  }
  0x34   :  { %s14969_s3 = sld [smem:[%s16429_s0 + %s14748_s7]]   ;;  %s14752_s7 = smov 34  }
  0x35   :  { %16478 = sst [smem:[#allocation92_spill]] %s14959_s25 }
  0x36   :  { %s14979_s25 = sld [smem:[%s16429_s0 + %s14750_s22]]   ;;  %s14754_s22 = smov 36  }
  0x37   :  { %s14984_s13 = sld [smem:[%s16429_s0 + %s14751_s28]]   ;;  %s14755_s28 = smov 37  }
  0x38   :  { %s14994_s21 = sld [smem:[%s16429_s0 + %s14753_s15]]   ;;  %s14757_s15 = smov 39  }
  0x3a   :  { %16479 = sst [smem:[#allocation93_spill]] %s14969_s3 }
  0x3b   :  { %s14989_s3 = sld [smem:[%s16429_s0 + %s14752_s7]]   ;;  %s14756_s7 = smov 38  }
  0x3c   :  { %16480 = sst [smem:[#allocation94_spill]] %s14979_s25 }
  0x3d   :  { %16481 = sst [smem:[#allocation95_spill]] %s14984_s13 }
  0x3e   :  { %16482 = sst [smem:[#allocation96_spill]] %s14994_s21 }
  0x3f   :  { %s14999_s25 = sld [smem:[%s16429_s0 + %s14754_s22]]   ;;  %s14758_s22 = smov 40  }
  0x40   :  { %s15004_s13 = sld [smem:[%s16429_s0 + %s14755_s28]]   ;;  %s14759_s28 = smov 41  }
  0x41   :  { %s15009_s20 = sld [smem:[%s16429_s0 + %s14756_s7]]   ;;  %s14760_s7 = smov 42  }
  0x42   :  { %s15014_s21 = sld [smem:[%s16429_s0 + %s14757_s15]]   ;;  %s14761_s15 = smov 43  }
  0x43   :  { %s15019_s30 = sld [smem:[%s16429_s0 + %s14758_s22]]   ;;  %s14762_s22 = smov 44  }
  0x44   :  { %s15029_s19 = sld [smem:[%s16429_s0 + %s14760_s7]]   ;;  %s14764_s7 = smov 46  }
  0x45   :  { %s15039_s29 = sld [smem:[%s16429_s0 + %s14762_s22]]   ;;  %s14766_s22 = smov 48  }
  0x46   :  { %16483 = sst [smem:[#allocation97_spill]] %s15004_s13 }
  0x47   :  { %s15024_s13 = sld [smem:[%s16429_s0 + %s14759_s28]]   ;;  %s14763_s28 = smov 45  }
  0x48   :  { %16484 = sst [smem:[#allocation98_spill]] %s15014_s21 }
  0x49   :  { %s15034_s21 = sld [smem:[%s16429_s0 + %s14761_s15]]   ;;  %s14765_s15 = smov 47  }
  0x4a   :  { %16486 = sst [smem:[#allocation100_spill]] %s15029_s19 }
  0x4b   :  { %16488 = sst [smem:[#allocation102_spill]] %s15039_s29 }
  0x4c   :  { %s15049_s19 = sld [smem:[%s16429_s0 + %s14764_s7]]  }
  0x4d   :  { %16485 = sst [smem:[#allocation99_spill]] %s15024_s13 }
  0x4e   :  { %s15044_s13 = sld [smem:[%s16429_s0 + %s14763_s28]]   ;;  %s14767_s28 = smov 49  }
  0x4f   :  { %16487 = sst [smem:[#allocation101_spill]] %s15034_s21 }
  0x50   :  { %s15054_s21 = sld [smem:[%s16429_s0 + %s14765_s15]]  }
  0x51   :  { %s15059_s29 = sld [smem:[%s16429_s0 + %s14766_s22]]  }
  0x54   :  { %16489 = sst [smem:[#allocation103_spill]] %s15044_s13 }
  0x55   :  { %s15064_s13 = sld [smem:[%s16429_s0 + %s14767_s28]]  }
  0x56   :  { %104 = vsyncpa [#allocation3], 0 }
  0x57   :  { %105 = vsyncpa [#allocation5], 0 }
  0x58   :  { %106 = vsyncpa [#allocation8], 0 }
  0x59   :  { %107 = vsyncpa [#allocation11], 0 }
  0x5a   :  { %108 = vsyncpa [#allocation14], 0 }
  0x5b   :  { %109 = vsyncpa [#allocation17], 0 }
  0x5c   :  { %110 = vsyncpa [#allocation20], 0 }
  0x5d   :  { %111 = vsyncpa [#allocation23], 0 }
  0x5e   :  { %112 = vsyncpa [#allocation26], 0 }
  0x5f   :  { %113 = vsyncpa [#allocation29], 0 }
  0x60   :  { %114 = vsyncpa [#allocation32], 0 }
  0x61   :  { %115 = vsyncpa [#allocation35], 0 }
  0x62   :  { %116 = vsyncpa [#allocation38], 0 }
  0x63   :  { %117 = vsyncpa [#allocation41], 0 }
  0x64   :  { %118 = vsyncpa [#allocation44], 0 }
  0x65   :  { %119 = vsyncpa [#allocation47], 0 }
  0x66   :  { %120 = vsyncpa [#allocation50], 0 }
  0x67   :  { %121 = vsyncpa [#allocation53], 0  ;;  %s14768_s0 = smov [#allocation4]   ;;  %s14769_s10 = smov [#allocation7]  }
  0x68   :  { %s152_s7 = sshll.u32 %s14768_s0, 4  ;;  %s173_s11 = sshll.u32 %s14769_s10, 4  ;;  %s153_s7 = int_to_ptr.vmem [resolvable:$true] %s152_s7  ;;  %s15066_s11 = int_to_ptr.vmem [resolvable:$true] %s173_s11 }
  0x69   :  { %s13935_s15 = scalar_lea.hbm %s14859_s8, 64 }
  0x6a   :  { %p13936_p0 = scmp.ne.s32.totalorder %s14859_s8, %s13935_s15  ;;  %p13939_p1 = scmp.lt.u32.totalorder %s13935_s15, %s14859_s8 }
  0x6c   :  { %p13941_p2 = pnand %p13939_p1, %p13936_p0 }
  0x6e   :  { %13944 = shalt.err (!%p13941_p2)
}
  0x6f   :  { %s13945_s16 = scalar_lea.vmem %s153_s7, 64  ;;  %p13950_p4 = scmp.lt.s32.totalorder %s153_s7, %s153_s7 }
  0x70   :  { %p13946_p3 = scmp.ne.s32.totalorder %s153_s7, %s13945_s16  ;;  %p13951_p5 = scmp.lt.s32.totalorder %s13945_s16, %s13945_s16 }
  0x72   :  { %p13952_p6 = por %p13951_p5, %p13950_p4 }
  0x74   :  { %p13953_p7 = pnand %p13952_p6, %p13946_p3 }
  0x76   :  { %13956 = shalt.err (!%p13953_p7)
}
  0x77   :  { %155 = dma.hbm_to_vmem [thread:$0]  %s14859_s8, 64, %s153_s7, [#allocation5]  }
  0x78   :  { %s13957_s18 = scalar_lea.hbm %s14874_s24, 512 }
  0x79   :  { %p13958_p8 = scmp.ne.s32.totalorder %s14874_s24, %s13957_s18  ;;  %p13961_p9 = scmp.lt.u32.totalorder %s13957_s18, %s14874_s24 }
  0x7b   :  { %p13963_p10 = pnand %p13961_p9, %p13958_p8 }
  0x7d   :  { %13966 = shalt.err (!%p13963_p10)
}
  0x7e   :  { %s13967_s22 = scalar_lea.vmem %s15066_s11, 512  ;;  %p13972_p12 = scmp.lt.s32.totalorder %s15066_s11, %s15066_s11 }
  0x7f   :  { %p13968_p11 = scmp.ne.s32.totalorder %s15066_s11, %s13967_s22  ;;  %p13973_p13 = scmp.lt.s32.totalorder %s13967_s22, %s13967_s22 }
  0x81   :  { %p13974_p0 = por %p13973_p13, %p13972_p12 }
  0x83   :  { %p13975_p1 = pnand %p13974_p0, %p13968_p11 }
  0x85   :  { %13978 = shalt.err (!%p13975_p1)
}
  0x86   :  { %s14770_s23 = smov 128   ;;  %s14771_s8 = smov 8  }
  0x87   :  { %179 = dma.hbm_to_vmem [thread:$0]  %s14874_s24, 512, %s15066_s11, [#allocation8], %s14770_s23, %s14770_s23, %s14771_s8  }
  0x88   :  { %s14772_s26 = smov [#allocation10]   ;;  %s14773_s1 = smov [#allocation13]  }
  0x89   :  { %s198_s28 = sshll.u32 %s14772_s26, 4  ;;  %s220_s2 = sshll.u32 %s14773_s1, 4  ;;  %s199_s28 = int_to_ptr.vmem [resolvable:$true] %s198_s28  ;;  %s221_s2 = int_to_ptr.vmem [resolvable:$true] %s220_s2 }
  0x8a   :  { %s13979_s0 = scalar_lea.hbm %s14889_s12, 96 }
  0x8b   :  { %p13980_p2 = scmp.ne.s32.totalorder %s14889_s12, %s13979_s0  ;;  %p13983_p3 = scmp.lt.u32.totalorder %s13979_s0, %s14889_s12 }
  0x8d   :  { %p13985_p4 = pnand %p13983_p3, %p13980_p2 }
  0x8f   :  { %13988 = shalt.err (!%p13985_p4)
}
  0x90   :  { %s13989_s7 = scalar_lea.vmem %s199_s28, 96  ;;  %p13994_p6 = scmp.lt.s32.totalorder %s199_s28, %s199_s28 }
  0x91   :  { %p13990_p5 = scmp.ne.s32.totalorder %s199_s28, %s13989_s7  ;;  %p13995_p7 = scmp.lt.s32.totalorder %s13989_s7, %s13989_s7 }
  0x93   :  { %p13996_p8 = por %p13995_p7, %p13994_p6 }
  0x95   :  { %p13997_p9 = pnand %p13996_p8, %p13990_p5 }
  0x97   :  { %14000 = shalt.err (!%p13997_p9)
}
  0x98   :  { %201 = dma.hbm_to_vmem [thread:$0]  %s14889_s12, 96, %s199_s28, [#allocation11]  }
  0x99   :  { %s14001_s24 = scalar_lea.hbm %s14899_s27, 16 }
  0x9a   :  { %p14002_p10 = scmp.ne.s32.totalorder %s14899_s27, %s14001_s24  ;;  %p14005_p11 = scmp.lt.u32.totalorder %s14001_s24, %s14899_s27 }
  0x9c   :  { %p14007_p12 = pnand %p14005_p11, %p14002_p10 }
  0x9e   :  { %14010 = shalt.err (!%p14007_p12)
}
  0x9f   :  { %s14011_s10 = scalar_lea.vmem %s221_s2, 16  ;;  %s14015_s11 = scalar_lea.vmem %s221_s2, 32 }
  0xa0   :  { %p14012_p13 = scmp.ne.s32.totalorder %s221_s2, %s14011_s10  ;;  %p14016_p0 = scmp.lt.s32.totalorder %s221_s2, %s221_s2 }
  0xa1   :  { %p14017_p1 = scmp.lt.s32.totalorder %s14015_s11, %s14011_s10 }
  0xa3   :  { %p14018_p2 = por %p14017_p1, %p14016_p0 }
  0xa5   :  { %p14019_p3 = pnand %p14018_p2, %p14012_p13 }
  0xa7   :  { %14022 = shalt.err (!%p14019_p3)
}
  0xa8   :  { %223 = dma.hbm_to_vmem [thread:$0]  %s14899_s27, 16, %s221_s2, [#allocation14]  }
  0xa9   :  { %s14774_s15 = smov [#allocation16]   ;;  %s14775_s16 = smov [#allocation19]  }
  0xaa   :  { %s241_s12 = sshll.u32 %s14774_s15, 4  ;;  %s266_s18 = sshll.u32 %s14775_s16, 4  ;;  %s242_s12 = int_to_ptr.vmem [resolvable:$true] %s241_s12  ;;  %s267_s18 = int_to_ptr.vmem [resolvable:$true] %s266_s18 }
  0xab   :  { %s14023_s22 = scalar_lea.hbm %s14914_s17, 512 }
  0xac   :  { %p14024_p4 = scmp.ne.s32.totalorder %s14914_s17, %s14023_s22  ;;  %p14027_p5 = scmp.lt.u32.totalorder %s14023_s22, %s14914_s17 }
  0xae   :  { %p14029_p6 = pnand %p14027_p5, %p14024_p4 }
  0xb0   :  { %14032 = shalt.err (!%p14029_p6)
}
  0xb1   :  { %s14033_s26 = scalar_lea.vmem %s242_s12, 512  ;;  %p14038_p8 = scmp.lt.s32.totalorder %s242_s12, %s242_s12 }
  0xb2   :  { %p14034_p7 = scmp.ne.s32.totalorder %s242_s12, %s14033_s26  ;;  %p14039_p9 = scmp.lt.s32.totalorder %s14033_s26, %s14033_s26 }
  0xb4   :  { %p14040_p10 = por %p14039_p9, %p14038_p8 }
  0xb6   :  { %p14041_p11 = pnand %p14040_p10, %p14034_p7 }
  0xb8   :  { %14044 = shalt.err (!%p14041_p11)
}
  0xb9   :  { %247 = dma.hbm_to_vmem [thread:$0]  %s14914_s17, 512, %s242_s12, [#allocation17], %s14770_s23, %s14770_s23, %s14771_s8  }
  0xba   :  { %s14045_s27 = scalar_lea.hbm %s14929_s9, 96 }
  0xbb   :  { %p14046_p12 = scmp.ne.s32.totalorder %s14929_s9, %s14045_s27  ;;  %p14049_p13 = scmp.lt.u32.totalorder %s14045_s27, %s14929_s9 }
  0xbd   :  { %p14051_p0 = pnand %p14049_p13, %p14046_p12 }
  0xbf   :  { %14054 = shalt.err (!%p14051_p0)
}
  0xc0   :  { %s14055_s28 = scalar_lea.vmem %s267_s18, 96  ;;  %p14060_p2 = scmp.lt.s32.totalorder %s267_s18, %s267_s18 }
  0xc1   :  { %p14056_p1 = scmp.ne.s32.totalorder %s267_s18, %s14055_s28  ;;  %p14061_p3 = scmp.lt.s32.totalorder %s14055_s28, %s14055_s28 }
  0xc3   :  { %p14062_p4 = por %p14061_p3, %p14060_p2 }
  0xc5   :  { %p14063_p5 = pnand %p14062_p4, %p14056_p1 }
  0xc7   :  { %14066 = shalt.err (!%p14063_p5)
}
  0xc8   :  { %269 = dma.hbm_to_vmem [thread:$0]  %s14929_s9, 96, %s267_s18, [#allocation20]  }
  0xc9   :  { %s14776_s1 = smov [#allocation22]   ;;  %s14777_s17 = smov [#allocation25]  }
  0xca   :  { %s288_s2 = sshll.u32 %s14776_s1, 4  ;;  %s309_s0 = sshll.u32 %s14777_s17, 4  ;;  %s289_s2 = int_to_ptr.vmem [resolvable:$true] %s288_s2  ;;  %s15103_s0 = int_to_ptr.vmem [resolvable:$true] %s309_s0 }
  0xcb   :  { %s14067_s7 = scalar_lea.hbm %s14939_s14, 32 }
  0xcc   :  { %p14068_p6 = scmp.ne.s32.totalorder %s14939_s14, %s14067_s7  ;;  %p14071_p7 = scmp.lt.u32.totalorder %s14067_s7, %s14939_s14 }
  0xce   :  { %p14073_p8 = pnand %p14071_p7, %p14068_p6 }
  0xd0   :  { %14076 = shalt.err (!%p14073_p8)
}
  0xd1   :  { %s14077_s24 = scalar_lea.vmem %s289_s2, 32  ;;  %p14082_p10 = scmp.lt.s32.totalorder %s289_s2, %s289_s2 }
  0xd2   :  { %p14078_p9 = scmp.ne.s32.totalorder %s289_s2, %s14077_s24  ;;  %p14083_p11 = scmp.lt.s32.totalorder %s14077_s24, %s14077_s24 }
  0xd4   :  { %p14084_p12 = por %p14083_p11, %p14082_p10 }
  0xd6   :  { %p14085_p13 = pnand %p14084_p12, %p14078_p9 }
  0xd8   :  { %14088 = shalt.err (!%p14085_p13)
}
  0xd9   :  { %291 = dma.hbm_to_vmem [thread:$0]  %s14939_s14, 32, %s289_s2, [#allocation23]  }
  0xda   :  { %s14089_s9 = scalar_lea.hbm %s14954_s5, 512 }
  0xdb   :  { %p14090_p0 = scmp.ne.s32.totalorder %s14954_s5, %s14089_s9  ;;  %p14093_p1 = scmp.lt.u32.totalorder %s14089_s9, %s14954_s5 }
  0xdd   :  { %p14095_p2 = pnand %p14093_p1, %p14090_p0 }
  0xdf   :  { %14098 = shalt.err (!%p14095_p2)
}
  0xe0   :  { %s14099_s10 = scalar_lea.vmem %s15103_s0, 512  ;;  %p14104_p4 = scmp.lt.s32.totalorder %s15103_s0, %s15103_s0 }
  0xe1   :  { %p14100_p3 = scmp.ne.s32.totalorder %s15103_s0, %s14099_s10  ;;  %p14105_p5 = scmp.lt.s32.totalorder %s14099_s10, %s14099_s10 }
  0xe3   :  { %p14106_p6 = por %p14105_p5, %p14104_p4 }
  0xe5   :  { %p14107_p7 = pnand %p14106_p6, %p14100_p3 }
  0xe7   :  { %14110 = shalt.err (!%p14107_p7)
}
  0xe8   :  { %315 = dma.hbm_to_vmem [thread:$0]  %s14954_s5, 512, %s15103_s0, [#allocation26], %s14770_s23, %s14770_s23, %s14771_s8  }
  0xe9   :  { %s14778_s14 = smov [#allocation28]   ;;  %s14111_s15 = scalar_lea.hbm %s14964_s4, 6144 }
  0xea   :  { %s331_s11 = sshll.u32 %s14778_s14, 4  ;;  %p14112_p8 = scmp.ne.s32.totalorder %s14964_s4, %s14111_s15  ;;  %s332_s11 = int_to_ptr.vmem [resolvable:$true] %s331_s11 }
  0xeb   :  { %p14115_p9 = scmp.lt.u32.totalorder %s14111_s15, %s14964_s4 }
  0xed   :  { %p14117_p10 = pnand %p14115_p9, %p14112_p8 }
  0xef   :  { %14120 = shalt.err (!%p14117_p10)
}
  0xf0   :  { %s14121_s12 = scalar_lea.vmem %s332_s11, 6144  ;;  %p14126_p12 = scmp.lt.s32.totalorder %s332_s11, %s332_s11 }
  0xf1   :  { %p14122_p11 = scmp.ne.s32.totalorder %s332_s11, %s14121_s12  ;;  %p14127_p13 = scmp.lt.s32.totalorder %s14121_s12, %s14121_s12 }
  0xf3   :  { %p14128_p0 = por %p14127_p13, %p14126_p12 }
  0xf5   :  { %p14129_p1 = pnand %p14128_p0, %p14122_p11 }
  0xf7   :  { %14132 = shalt.err (!%p14129_p1)
}
  0xf8   :  { %s14779_s16 = smov 384   ;;  %s14780_s5 = smov 24  }
  0xf9   :  { %337 = dma.hbm_to_vmem [thread:$0]  %s14964_s4, 6144, %s332_s11, [#allocation29], %s14779_s16, %s14779_s16, %s14780_s5  }
  0xfa   :  { %s14781_s18 = smov [#allocation31]   ;;  %s14782_s26 = smov [#allocation34]  }
  0xfb   :  { %s353_s22 = sshll.u32 %s14781_s18, 4  ;;  %s378_s27 = sshll.u32 %s14782_s26, 4  ;;  %s354_s22 = int_to_ptr.vmem [resolvable:$true] %s353_s22  ;;  %s379_s27 = int_to_ptr.vmem [resolvable:$true] %s378_s27 }
  0xfc   :  { %s14133_s28 = scalar_lea.hbm %s14974_s6, 4096 }
  0xfd   :  { %p14134_p2 = scmp.ne.s32.totalorder %s14974_s6, %s14133_s28  ;;  %p14137_p3 = scmp.lt.u32.totalorder %s14133_s28, %s14974_s6 }
  0xff   :  { %p14139_p4 = pnand %p14137_p3, %p14134_p2 }
 0x101   :  { %14142 = shalt.err (!%p14139_p4)
}
 0x102   :  { %s14143_s1 = scalar_lea.vmem %s354_s22, 4096  ;;  %p14148_p6 = scmp.lt.s32.totalorder %s354_s22, %s354_s22 }
 0x103   :  { %p14144_p5 = scmp.ne.s32.totalorder %s354_s22, %s14143_s1  ;;  %p14149_p7 = scmp.lt.s32.totalorder %s14143_s1, %s14143_s1 }
 0x105   :  { %p14150_p8 = por %p14149_p7, %p14148_p6 }
 0x107   :  { %p14151_p9 = pnand %p14150_p8, %p14144_p5 }
 0x109   :  { %14154 = shalt.err (!%p14151_p9)
}
 0x10a   :  { %359 = dma.hbm_to_vmem [thread:$0]  %s14974_s6, 4096, %s354_s22, [#allocation32], %s14770_s23, %s14770_s23, %s14771_s8  }
 0x10b   :  { %s14155_s4 = scalar_lea.hbm %s14989_s3, 16 }
 0x10c   :  { %p14156_p10 = scmp.ne.s32.totalorder %s14989_s3, %s14155_s4  ;;  %p14159_p11 = scmp.lt.u32.totalorder %s14155_s4, %s14989_s3 }
 0x10e   :  { %p14161_p12 = pnand %p14159_p11, %p14156_p10 }
 0x110   :  { %14164 = shalt.err (!%p14161_p12)
}
 0x111   :  { %s14165_s2 = scalar_lea.vmem %s379_s27, 16  ;;  %s14169_s17 = scalar_lea.vmem %s379_s27, 32 }
 0x112   :  { %p14166_p13 = scmp.ne.s32.totalorder %s379_s27, %s14165_s2  ;;  %p14170_p0 = scmp.lt.s32.totalorder %s379_s27, %s379_s27 }
 0x113   :  { %p14171_p1 = scmp.lt.s32.totalorder %s14169_s17, %s14165_s2 }
 0x115   :  { %p14172_p2 = por %p14171_p1, %p14170_p0 }
 0x117   :  { %p14173_p3 = pnand %p14172_p2, %p14166_p13 }
 0x119   :  { %14176 = shalt.err (!%p14173_p3)
}
 0x11a   :  { %381 = dma.hbm_to_vmem [thread:$0]  %s14989_s3, 16, %s379_s27, [#allocation35]  }
 0x11b   :  { %s14783_s6 = smov [#allocation37]   ;;  %s14784_s7 = smov [#allocation40]  }
 0x11c   :  { %s400_s0 = sshll.u32 %s14783_s6, 4  ;;  %s422_s24 = sshll.u32 %s14784_s7, 4  ;;  %s401_s0 = int_to_ptr.vmem [resolvable:$true] %s400_s0  ;;  %s423_s24 = int_to_ptr.vmem [resolvable:$true] %s422_s24 }
 0x11d   :  { %s14177_s9 = scalar_lea.hbm %s14999_s25, 32 }
 0x11e   :  { %p14178_p4 = scmp.ne.s32.totalorder %s14999_s25, %s14177_s9  ;;  %p14181_p5 = scmp.lt.u32.totalorder %s14177_s9, %s14999_s25 }
 0x120   :  { %p14183_p6 = pnand %p14181_p5, %p14178_p4 }
 0x122   :  { %14186 = shalt.err (!%p14183_p6)
}
 0x123   :  { %s14187_s10 = scalar_lea.vmem %s401_s0, 32  ;;  %p14192_p8 = scmp.lt.s32.totalorder %s401_s0, %s401_s0 }
 0x124   :  { %p14188_p7 = scmp.ne.s32.totalorder %s401_s0, %s14187_s10  ;;  %p14193_p9 = scmp.lt.s32.totalorder %s14187_s10, %s14187_s10 }
 0x126   :  { %p14194_p10 = por %p14193_p9, %p14192_p8 }
 0x128   :  { %p14195_p11 = pnand %p14194_p10, %p14188_p7 }
 0x12a   :  { %14198 = shalt.err (!%p14195_p11)
}
 0x12b   :  { %403 = dma.hbm_to_vmem [thread:$0]  %s14999_s25, 32, %s401_s0, [#allocation38]  }
 0x12c   :  { %s14199_s3 = scalar_lea.hbm %s15009_s20, 96 }
 0x12d   :  { %p14200_p12 = scmp.ne.s32.totalorder %s15009_s20, %s14199_s3  ;;  %p14203_p13 = scmp.lt.u32.totalorder %s14199_s3, %s15009_s20 }
 0x12f   :  { %p14205_p0 = pnand %p14203_p13, %p14200_p12 }
 0x131   :  { %14208 = shalt.err (!%p14205_p0)
}
 0x132   :  { %s14209_s14 = scalar_lea.vmem %s423_s24, 96  ;;  %p14214_p2 = scmp.lt.s32.totalorder %s423_s24, %s423_s24 }
 0x133   :  { %p14210_p1 = scmp.ne.s32.totalorder %s423_s24, %s14209_s14  ;;  %p14215_p3 = scmp.lt.s32.totalorder %s14209_s14, %s14209_s14 }
 0x135   :  { %p14216_p4 = por %p14215_p3, %p14214_p2 }
 0x137   :  { %p14217_p5 = pnand %p14216_p4, %p14210_p1 }
 0x139   :  { %14220 = shalt.err (!%p14217_p5)
}
 0x13a   :  { %425 = dma.hbm_to_vmem [thread:$0]  %s15009_s20, 96, %s423_s24, [#allocation41]  }
 0x13b   :  { %s14785_s11 = smov [#allocation43]   ;;  %s14786_s15 = smov [#allocation46]  }
 0x13c   :  { %s444_s25 = sshll.u32 %s14785_s11, 4  ;;  %s465_s12 = sshll.u32 %s14786_s15, 4  ;;  %s445_s25 = int_to_ptr.vmem [resolvable:$true] %s444_s25  ;;  %s466_s12 = int_to_ptr.vmem [resolvable:$true] %s465_s12 }
 0x13d   :  { %s14221_s18 = scalar_lea.hbm %s15019_s30, 32 }
 0x13e   :  { %p14222_p6 = scmp.ne.s32.totalorder %s15019_s30, %s14221_s18  ;;  %p14225_p7 = scmp.lt.u32.totalorder %s14221_s18, %s15019_s30 }
 0x140   :  { %p14227_p8 = pnand %p14225_p7, %p14222_p6 }
 0x142   :  { %14230 = shalt.err (!%p14227_p8)
}
 0x143   :  { %s14231_s22 = scalar_lea.vmem %s445_s25, 32  ;;  %p14236_p10 = scmp.lt.s32.totalorder %s445_s25, %s445_s25 }
 0x144   :  { %p14232_p9 = scmp.ne.s32.totalorder %s445_s25, %s14231_s22  ;;  %p14237_p11 = scmp.lt.s32.totalorder %s14231_s22, %s14231_s22 }
 0x146   :  { %p14238_p12 = por %p14237_p11, %p14236_p10 }
 0x148   :  { %p14239_p13 = pnand %p14238_p12, %p14232_p9 }
 0x14a   :  { %14242 = shalt.err (!%p14239_p13)
}
 0x14b   :  { %s16490_s26 = sld [smem:[#allocation101_spill]] }
 0x14c   :  { %447 = dma.hbm_to_vmem [thread:$0]  %s15019_s30, 32, %s445_s25, [#allocation44]  }
 0x151   :  { %s14243_s20 = scalar_lea.hbm %s16490_s26, 512 }
 0x152   :  { %p14244_p0 = scmp.ne.s32.totalorder %s16490_s26, %s14243_s20  ;;  %p14247_p1 = scmp.lt.u32.totalorder %s14243_s20, %s16490_s26 }
 0x154   :  { %p14249_p2 = pnand %p14247_p1, %p14244_p0 }
 0x156   :  { %14252 = shalt.err (!%p14249_p2)
}
 0x157   :  { %s14253_s27 = scalar_lea.vmem %s466_s12, 512  ;;  %p14258_p4 = scmp.lt.s32.totalorder %s466_s12, %s466_s12 }
 0x158   :  { %p14254_p3 = scmp.ne.s32.totalorder %s466_s12, %s14253_s27  ;;  %p14259_p5 = scmp.lt.s32.totalorder %s14253_s27, %s14253_s27 }
 0x15a   :  { %p14260_p6 = por %p14259_p5, %p14258_p4 }
 0x15c   :  { %p14261_p7 = pnand %p14260_p6, %p14254_p3 }
 0x15e   :  { %14264 = shalt.err (!%p14261_p7)
}
 0x15f   :  { %471 = dma.hbm_to_vmem [thread:$0]  %s16490_s26, 512, %s466_s12, [#allocation47], %s14770_s23, %s14770_s23, %s14771_s8  }
 0x160   :  { %s14787_s30 = smov [#allocation49]   ;;  %s14788_s1 = smov [#allocation2]  }
 0x161   :  { %s490_s28 = sshll.u32 %s14787_s30, 4  ;;  %s140_s4 = sshll.u32 %s14788_s1, 4  ;;  %s491_s28 = int_to_ptr.vmem [resolvable:$true] %s490_s28  ;;  %s141_s4 = int_to_ptr.vmem [resolvable:$true] %s140_s4 }
 0x162   :  { %s14265_s2 = scalar_lea.hbm %s15049_s19, 16 }
 0x163   :  { %p14266_p8 = scmp.ne.s32.totalorder %s15049_s19, %s14265_s2  ;;  %p14269_p9 = scmp.lt.u32.totalorder %s14265_s2, %s15049_s19 }
 0x165   :  { %p14271_p10 = pnand %p14269_p9, %p14266_p8 }
 0x167   :  { %14274 = shalt.err (!%p14271_p10)
}
 0x168   :  { %s14275_s17 = scalar_lea.vmem %s491_s28, 16  ;;  %s14279_s6 = scalar_lea.vmem %s491_s28, 32 }
 0x169   :  { %p14276_p11 = scmp.ne.s32.totalorder %s491_s28, %s14275_s17  ;;  %p14280_p12 = scmp.lt.s32.totalorder %s491_s28, %s491_s28 }
 0x16a   :  { %p14281_p13 = scmp.lt.s32.totalorder %s14279_s6, %s14275_s17 }
 0x16c   :  { %p14282_p0 = por %p14281_p13, %p14280_p12 }
 0x16e   :  { %p14283_p1 = pnand %p14282_p0, %p14276_p11 }
 0x170   :  { %14286 = shalt.err (!%p14283_p1)
}
 0x171   :  { %s16491_s0 = sld [smem:[#allocation78_spill]] }
 0x172   :  { %493 = dma.hbm_to_vmem [thread:$0]  %s15049_s19, 16, %s491_s28, [#allocation50]  }
 0x177   :  { %s14287_s7 = scalar_lea.hbm %s16491_s0, 112 }
 0x178   :  { %p14288_p2 = scmp.ne.s32.totalorder %s16491_s0, %s14287_s7  ;;  %p14291_p3 = scmp.lt.u32.totalorder %s14287_s7, %s16491_s0 }
 0x17a   :  { %p14293_p4 = pnand %p14291_p3, %p14288_p2 }
 0x17c   :  { %14296 = shalt.err (!%p14293_p4)
}
 0x17d   :  { %s14297_s24 = scalar_lea.vmem %s141_s4, 112  ;;  %s14301_s9 = scalar_lea.vmem %s141_s4, 128 }
 0x17e   :  { %p14298_p5 = scmp.ne.s32.totalorder %s141_s4, %s14297_s24  ;;  %p14302_p6 = scmp.lt.s32.totalorder %s141_s4, %s141_s4 }
 0x17f   :  { %p14303_p7 = scmp.lt.s32.totalorder %s14301_s9, %s14297_s24 }
 0x181   :  { %p14304_p8 = por %p14303_p7, %p14302_p6 }
 0x183   :  { %p14305_p9 = pnand %p14304_p8, %p14298_p5 }
 0x185   :  { %14308 = shalt.err (!%p14305_p9)
}
 0x186   :  { %s16492_s10 = sld [smem:[#allocation81_spill]]  ;;  %s14789_s19 = smov [#allocation6]  }
 0x187   :  { %143 = dma.hbm_to_vmem [thread:$0]  %s16491_s0, 112, %s141_s4, [#allocation3]  }
 0x188   :  { %s164_s3 = sshll.u32 %s14789_s19, 4  ;;  %s14790_s14 = smov [#allocation9]   ;;  %s165_s3 = int_to_ptr.vmem [resolvable:$true] %s164_s3 }
 0x189   :  { %s186_s11 = sshll.u32 %s14790_s14, 4  ;;  %s187_s11 = int_to_ptr.vmem [resolvable:$true] %s186_s11 }
 0x18c   :  { %s14309_s25 = scalar_lea.hbm %s16492_s10, 16 }
 0x18d   :  { %p14310_p10 = scmp.ne.s32.totalorder %s16492_s10, %s14309_s25  ;;  %p14313_p11 = scmp.lt.u32.totalorder %s14309_s25, %s16492_s10 }
 0x18f   :  { %p14315_p12 = pnand %p14313_p11, %p14310_p10 }
 0x191   :  { %14318 = shalt.err (!%p14315_p12)
}
 0x192   :  { %s14319_s15 = scalar_lea.vmem %s165_s3, 16  ;;  %s14323_s12 = scalar_lea.vmem %s165_s3, 32 }
 0x193   :  { %p14320_p13 = scmp.ne.s32.totalorder %s165_s3, %s14319_s15  ;;  %p14324_p0 = scmp.lt.s32.totalorder %s165_s3, %s165_s3 }
 0x194   :  { %p14325_p1 = scmp.lt.s32.totalorder %s14323_s12, %s14319_s15 }
 0x196   :  { %p14326_p2 = por %p14325_p1, %p14324_p0 }
 0x198   :  { %p14327_p3 = pnand %p14326_p2, %p14320_p13 }
 0x19a   :  { %14330 = shalt.err (!%p14327_p3)
}
 0x19b   :  { %s16493_s18 = sld [smem:[#allocation82_spill]] }
 0x19c   :  { %167 = dma.hbm_to_vmem [thread:$0]  %s16492_s10, 16, %s165_s3, [#allocation5]  }
 0x1a1   :  { %s14331_s22 = scalar_lea.hbm %s16493_s18, 32 }
 0x1a2   :  { %p14332_p4 = scmp.ne.s32.totalorder %s16493_s18, %s14331_s22  ;;  %p14335_p5 = scmp.lt.u32.totalorder %s14331_s22, %s16493_s18 }
 0x1a4   :  { %p14337_p6 = pnand %p14335_p5, %p14332_p4 }
 0x1a6   :  { %14340 = shalt.err (!%p14337_p6)
}
 0x1a7   :  { %s14341_s26 = scalar_lea.vmem %s187_s11, 32  ;;  %p14346_p8 = scmp.lt.s32.totalorder %s187_s11, %s187_s11 }
 0x1a8   :  { %p14342_p7 = scmp.ne.s32.totalorder %s187_s11, %s14341_s26  ;;  %p14347_p9 = scmp.lt.s32.totalorder %s14341_s26, %s14341_s26 }
 0x1aa   :  { %p14348_p10 = por %p14347_p9, %p14346_p8 }
 0x1ac   :  { %p14349_p11 = pnand %p14348_p10, %p14342_p7 }
 0x1ae   :  { %14352 = shalt.err (!%p14349_p11)
}
 0x1af   :  { %s16494_s20 = sld [smem:[#allocation84_spill]]  ;;  %s14791_s27 = smov [#allocation12]  }
 0x1b0   :  { %189 = dma.hbm_to_vmem [thread:$0]  %s16493_s18, 32, %s187_s11, [#allocation8]  }
 0x1b1   :  { %s207_s30 = sshll.u32 %s14791_s27, 4  ;;  %s208_s30 = int_to_ptr.vmem [resolvable:$true] %s207_s30 }
 0x1b5   :  { %s14353_s28 = scalar_lea.hbm %s16494_s20, 2048 }
 0x1b6   :  { %p14354_p12 = scmp.ne.s32.totalorder %s16494_s20, %s14353_s28  ;;  %p14357_p13 = scmp.lt.u32.totalorder %s14353_s28, %s16494_s20 }
 0x1b8   :  { %p14359_p0 = pnand %p14357_p13, %p14354_p12 }
 0x1ba   :  { %14362 = shalt.err (!%p14359_p0)
}
 0x1bb   :  { %s14363_s1 = scalar_lea.vmem %s208_s30, 2048  ;;  %p14368_p2 = scmp.lt.s32.totalorder %s208_s30, %s208_s30 }
 0x1bc   :  { %p14364_p1 = scmp.ne.s32.totalorder %s208_s30, %s14363_s1  ;;  %p14369_p3 = scmp.lt.s32.totalorder %s14363_s1, %s14363_s1 }
 0x1be   :  { %p14370_p4 = por %p14369_p3, %p14368_p2 }
 0x1c0   :  { %p14371_p5 = pnand %p14370_p4, %p14364_p1 }
 0x1c2   :  { %14374 = shalt.err (!%p14371_p5)
}
 0x1c3   :  { %s14792_s4 = smov 64   ;;  %s16495_s2 = sld [smem:[#allocation86_spill]] }
 0x1c4   :  { %s14793_s17 = smov 4   ;;  %s14794_s6 = smov [#allocation15]  }
 0x1c5   :  { %213 = dma.hbm_to_vmem [thread:$0]  %s16494_s20, 2048, %s208_s30, [#allocation11], %s14792_s4, %s14792_s4, %s14793_s17  }
 0x1c6   :  { %s232_s0 = sshll.u32 %s14794_s6, 4  ;;  %s14795_s7 = smov [#allocation18]   ;;  %s233_s0 = int_to_ptr.vmem [resolvable:$true] %s232_s0 }
 0x1c7   :  { %s254_s24 = sshll.u32 %s14795_s7, 4  ;;  %s255_s24 = int_to_ptr.vmem [resolvable:$true] %s254_s24 }
 0x1c9   :  { %s14375_s9 = scalar_lea.hbm %s16495_s2, 16 }
 0x1ca   :  { %p14376_p6 = scmp.ne.s32.totalorder %s16495_s2, %s14375_s9  ;;  %p14379_p7 = scmp.lt.u32.totalorder %s14375_s9, %s16495_s2 }
 0x1cc   :  { %p14381_p8 = pnand %p14379_p7, %p14376_p6 }
 0x1ce   :  { %14384 = shalt.err (!%p14381_p8)
}
 0x1cf   :  { %s14385_s10 = scalar_lea.vmem %s233_s0, 16  ;;  %s14389_s19 = scalar_lea.vmem %s233_s0, 32 }
 0x1d0   :  { %p14386_p9 = scmp.ne.s32.totalorder %s233_s0, %s14385_s10  ;;  %p14390_p10 = scmp.lt.s32.totalorder %s233_s0, %s233_s0 }
 0x1d1   :  { %p14391_p11 = scmp.lt.s32.totalorder %s14389_s19, %s14385_s10 }
 0x1d3   :  { %p14392_p12 = por %p14391_p11, %p14390_p10 }
 0x1d5   :  { %p14393_p13 = pnand %p14392_p12, %p14386_p9 }
 0x1d7   :  { %14396 = shalt.err (!%p14393_p13)
}
 0x1d8   :  { %s16496_s3 = sld [smem:[#allocation87_spill]] }
 0x1d9   :  { %235 = dma.hbm_to_vmem [thread:$0]  %s16495_s2, 16, %s233_s0, [#allocation14]  }
 0x1de   :  { %s14397_s14 = scalar_lea.hbm %s16496_s3, 32 }
 0x1df   :  { %p14398_p0 = scmp.ne.s32.totalorder %s16496_s3, %s14397_s14  ;;  %p14401_p1 = scmp.lt.u32.totalorder %s14397_s14, %s16496_s3 }
 0x1e1   :  { %p14403_p2 = pnand %p14401_p1, %p14398_p0 }
 0x1e3   :  { %14406 = shalt.err (!%p14403_p2)
}
 0x1e4   :  { %s14407_s11 = scalar_lea.vmem %s255_s24, 32  ;;  %p14412_p4 = scmp.lt.s32.totalorder %s255_s24, %s255_s24 }
 0x1e5   :  { %p14408_p3 = scmp.ne.s32.totalorder %s255_s24, %s14407_s11  ;;  %p14413_p5 = scmp.lt.s32.totalorder %s14407_s11, %s14407_s11 }
 0x1e7   :  { %p14414_p6 = por %p14413_p5, %p14412_p4 }
 0x1e9   :  { %p14415_p7 = pnand %p14414_p6, %p14408_p3 }
 0x1eb   :  { %14418 = shalt.err (!%p14415_p7)
}
 0x1ec   :  { %s16497_s25 = sld [smem:[#allocation89_spill]]  ;;  %s14796_s15 = smov [#allocation21]  }
 0x1ed   :  { %257 = dma.hbm_to_vmem [thread:$0]  %s16496_s3, 32, %s255_s24, [#allocation17]  }
 0x1ee   :  { %s275_s12 = sshll.u32 %s14796_s15, 4  ;;  %s14797_s18 = smov [#allocation24]   ;;  %s276_s12 = int_to_ptr.vmem [resolvable:$true] %s275_s12 }
 0x1ef   :  { %s300_s22 = sshll.u32 %s14797_s18, 4  ;;  %s301_s22 = int_to_ptr.vmem [resolvable:$true] %s300_s22 }
 0x1f2   :  { %s14419_s26 = scalar_lea.hbm %s16497_s25, 4096 }
 0x1f3   :  { %p14420_p8 = scmp.ne.s32.totalorder %s16497_s25, %s14419_s26  ;;  %p14423_p9 = scmp.lt.u32.totalorder %s14419_s26, %s16497_s25 }
 0x1f5   :  { %p14425_p10 = pnand %p14423_p9, %p14420_p8 }
 0x1f7   :  { %14428 = shalt.err (!%p14425_p10)
}
 0x1f8   :  { %s14429_s20 = scalar_lea.vmem %s276_s12, 4096  ;;  %p14434_p12 = scmp.lt.s32.totalorder %s276_s12, %s276_s12 }
 0x1f9   :  { %p14430_p11 = scmp.ne.s32.totalorder %s276_s12, %s14429_s20  ;;  %p14435_p13 = scmp.lt.s32.totalorder %s14429_s20, %s14429_s20 }
 0x1fb   :  { %p14436_p0 = por %p14435_p13, %p14434_p12 }
 0x1fd   :  { %p14437_p1 = pnand %p14436_p0, %p14430_p11 }
 0x1ff   :  { %14440 = shalt.err (!%p14437_p1)
}
 0x200   :  { %s16498_s27 = sld [smem:[#allocation91_spill]] }
 0x201   :  { %281 = dma.hbm_to_vmem [thread:$0]  %s16497_s25, 4096, %s276_s12, [#allocation20], %s14770_s23, %s14770_s23, %s14771_s8  }
 0x206   :  { %s14441_s30 = scalar_lea.hbm %s16498_s27, 16 }
 0x207   :  { %p14442_p2 = scmp.ne.s32.totalorder %s16498_s27, %s14441_s30  ;;  %p14445_p3 = scmp.lt.u32.totalorder %s14441_s30, %s16498_s27 }
 0x209   :  { %p14447_p4 = pnand %p14445_p3, %p14442_p2 }
 0x20b   :  { %14450 = shalt.err (!%p14447_p4)
}
 0x20c   :  { %s14451_s28 = scalar_lea.vmem %s301_s22, 16  ;;  %s14455_s1 = scalar_lea.vmem %s301_s22, 32 }
 0x20d   :  { %p14452_p5 = scmp.ne.s32.totalorder %s301_s22, %s14451_s28  ;;  %p14456_p6 = scmp.lt.s32.totalorder %s301_s22, %s301_s22 }
 0x20e   :  { %p14457_p7 = scmp.lt.s32.totalorder %s14455_s1, %s14451_s28 }
 0x210   :  { %p14458_p8 = por %p14457_p7, %p14456_p6 }
 0x212   :  { %p14459_p9 = pnand %p14458_p8, %p14452_p5 }
 0x214   :  { %14462 = shalt.err (!%p14459_p9)
}
 0x215   :  { %s16499_s2 = sld [smem:[#allocation92_spill]]  ;;  %s14798_s6 = smov [#allocation27]  }
 0x216   :  { %303 = dma.hbm_to_vmem [thread:$0]  %s16498_s27, 16, %s301_s22, [#allocation23]  }
 0x217   :  { %s322_s0 = sshll.u32 %s14798_s6, 4  ;;  %s14799_s7 = smov [#allocation30]   ;;  %s323_s0 = int_to_ptr.vmem [resolvable:$true] %s322_s0 }
 0x218   :  { %s344_s24 = sshll.u32 %s14799_s7, 4  ;;  %s345_s24 = int_to_ptr.vmem [resolvable:$true] %s344_s24 }
 0x21b   :  { %s14463_s9 = scalar_lea.hbm %s16499_s2, 32 }
 0x21c   :  { %p14464_p10 = scmp.ne.s32.totalorder %s16499_s2, %s14463_s9  ;;  %p14467_p11 = scmp.lt.u32.totalorder %s14463_s9, %s16499_s2 }
 0x21e   :  { %p14469_p12 = pnand %p14467_p11, %p14464_p10 }
 0x220   :  { %14472 = shalt.err (!%p14469_p12)
}
 0x221   :  { %s14473_s10 = scalar_lea.vmem %s323_s0, 32  ;;  %p14478_p0 = scmp.lt.s32.totalorder %s323_s0, %s323_s0 }
 0x222   :  { %p14474_p13 = scmp.ne.s32.totalorder %s323_s0, %s14473_s10  ;;  %p14479_p1 = scmp.lt.s32.totalorder %s14473_s10, %s14473_s10 }
 0x224   :  { %p14480_p2 = por %p14479_p1, %p14478_p0 }
 0x226   :  { %p14481_p3 = pnand %p14480_p2, %p14474_p13 }
 0x228   :  { %14484 = shalt.err (!%p14481_p3)
}
 0x229   :  { %s16500_s19 = sld [smem:[#allocation93_spill]] }
 0x22a   :  { %325 = dma.hbm_to_vmem [thread:$0]  %s16499_s2, 32, %s323_s0, [#allocation26]  }
 0x22f   :  { %s14485_s3 = scalar_lea.hbm %s16500_s19, 96 }
 0x230   :  { %p14486_p4 = scmp.ne.s32.totalorder %s16500_s19, %s14485_s3  ;;  %p14489_p5 = scmp.lt.u32.totalorder %s14485_s3, %s16500_s19 }
 0x232   :  { %p14491_p6 = pnand %p14489_p5, %p14486_p4 }
 0x234   :  { %14494 = shalt.err (!%p14491_p6)
}
 0x235   :  { %s14495_s14 = scalar_lea.vmem %s345_s24, 96  ;;  %p14500_p8 = scmp.lt.s32.totalorder %s345_s24, %s345_s24 }
 0x236   :  { %p14496_p7 = scmp.ne.s32.totalorder %s345_s24, %s14495_s14  ;;  %p14501_p9 = scmp.lt.s32.totalorder %s14495_s14, %s14495_s14 }
 0x238   :  { %p14502_p10 = por %p14501_p9, %p14500_p8 }
 0x23a   :  { %p14503_p11 = pnand %p14502_p10, %p14496_p7 }
 0x23c   :  { %14506 = shalt.err (!%p14503_p11)
}
 0x23d   :  { %s16501_s11 = sld [smem:[#allocation94_spill]]  ;;  %s14800_s25 = smov [#allocation33]  }
 0x23e   :  { %347 = dma.hbm_to_vmem [thread:$0]  %s16500_s19, 96, %s345_s24, [#allocation29]  }
 0x23f   :  { %s366_s15 = sshll.u32 %s14800_s25, 4  ;;  %s14801_s12 = smov [#allocation36]   ;;  %s367_s15 = int_to_ptr.vmem [resolvable:$true] %s366_s15 }
 0x240   :  { %s387_s18 = sshll.u32 %s14801_s12, 4  ;;  %s15208_s18 = int_to_ptr.vmem [resolvable:$true] %s387_s18 }
 0x243   :  { %s14507_s22 = scalar_lea.hbm %s16501_s11, 32 }
 0x244   :  { %p14508_p12 = scmp.ne.s32.totalorder %s16501_s11, %s14507_s22  ;;  %p14511_p13 = scmp.lt.u32.totalorder %s14507_s22, %s16501_s11 }
 0x246   :  { %p14513_p0 = pnand %p14511_p13, %p14508_p12 }
 0x248   :  { %14516 = shalt.err (!%p14513_p0)
}
 0x249   :  { %s14517_s26 = scalar_lea.vmem %s367_s15, 32  ;;  %p14522_p2 = scmp.lt.s32.totalorder %s367_s15, %s367_s15 }
 0x24a   :  { %p14518_p1 = scmp.ne.s32.totalorder %s367_s15, %s14517_s26  ;;  %p14523_p3 = scmp.lt.s32.totalorder %s14517_s26, %s14517_s26 }
 0x24c   :  { %p14524_p4 = por %p14523_p3, %p14522_p2 }
 0x24e   :  { %p14525_p5 = pnand %p14524_p4, %p14518_p1 }
 0x250   :  { %14528 = shalt.err (!%p14525_p5)
}
 0x251   :  { %s16502_s20 = sld [smem:[#allocation96_spill]] }
 0x252   :  { %369 = dma.hbm_to_vmem [thread:$0]  %s16501_s11, 32, %s367_s15, [#allocation32]  }
 0x257   :  { %s14529_s27 = scalar_lea.hbm %s16502_s20, 512 }
 0x258   :  { %p14530_p6 = scmp.ne.s32.totalorder %s16502_s20, %s14529_s27  ;;  %p14533_p7 = scmp.lt.u32.totalorder %s14529_s27, %s16502_s20 }
 0x25a   :  { %p14535_p8 = pnand %p14533_p7, %p14530_p6 }
 0x25c   :  { %14538 = shalt.err (!%p14535_p8)
}
 0x25d   :  { %s14539_s30 = scalar_lea.vmem %s15208_s18, 512  ;;  %p14544_p10 = scmp.lt.s32.totalorder %s15208_s18, %s15208_s18 }
 0x25e   :  { %p14540_p9 = scmp.ne.s32.totalorder %s15208_s18, %s14539_s30  ;;  %p14545_p11 = scmp.lt.s32.totalorder %s14539_s30, %s14539_s30 }
 0x260   :  { %p14546_p12 = por %p14545_p11, %p14544_p10 }
 0x262   :  { %p14547_p13 = pnand %p14546_p12, %p14540_p9 }
 0x264   :  { %14550 = shalt.err (!%p14547_p13)
}
 0x265   :  { %s16503_s28 = sld [smem:[#allocation97_spill]]  ;;  %s14802_s1 = smov [#allocation39]  }
 0x266   :  { %393 = dma.hbm_to_vmem [thread:$0]  %s16502_s20, 512, %s15208_s18, [#allocation35], %s14770_s23, %s14770_s23, %s14771_s8  }
 0x267   :  { %s409_s2 = sshll.u32 %s14802_s1, 4  ;;  %s14803_s6 = smov [#allocation42]   ;;  %s410_s2 = int_to_ptr.vmem [resolvable:$true] %s409_s2 }
 0x268   :  { %s431_s0 = sshll.u32 %s14803_s6, 4  ;;  %s15226_s0 = int_to_ptr.vmem [resolvable:$true] %s431_s0 }
 0x26b   :  { %s14551_s7 = scalar_lea.hbm %s16503_s28, 6144 }
 0x26c   :  { %p14552_p0 = scmp.ne.s32.totalorder %s16503_s28, %s14551_s7  ;;  %p14555_p1 = scmp.lt.u32.totalorder %s14551_s7, %s16503_s28 }
 0x26e   :  { %p14557_p2 = pnand %p14555_p1, %p14552_p0 }
 0x270   :  { %14560 = shalt.err (!%p14557_p2)
}
 0x271   :  { %s14561_s24 = scalar_lea.vmem %s410_s2, 6144  ;;  %p14566_p4 = scmp.lt.s32.totalorder %s410_s2, %s410_s2 }
 0x272   :  { %p14562_p3 = scmp.ne.s32.totalorder %s410_s2, %s14561_s24  ;;  %p14567_p5 = scmp.lt.s32.totalorder %s14561_s24, %s14561_s24 }
 0x274   :  { %p14568_p6 = por %p14567_p5, %p14566_p4 }
 0x276   :  { %p14569_p7 = pnand %p14568_p6, %p14562_p3 }
 0x278   :  { %14572 = shalt.err (!%p14569_p7)
}
 0x279   :  { %s16504_s9 = sld [smem:[#allocation98_spill]] }
 0x27a   :  { %415 = dma.hbm_to_vmem [thread:$0]  %s16503_s28, 6144, %s410_s2, [#allocation38], %s14779_s16, %s14779_s16, %s14780_s5  }
 0x27f   :  { %s14573_s10 = scalar_lea.hbm %s16504_s9, 4096 }
 0x280   :  { %p14574_p8 = scmp.ne.s32.totalorder %s16504_s9, %s14573_s10  ;;  %p14577_p9 = scmp.lt.u32.totalorder %s14573_s10, %s16504_s9 }
 0x282   :  { %p14579_p10 = pnand %p14577_p9, %p14574_p8 }
 0x284   :  { %14582 = shalt.err (!%p14579_p10)
}
 0x285   :  { %s14583_s19 = scalar_lea.vmem %s15226_s0, 4096  ;;  %p14588_p12 = scmp.lt.s32.totalorder %s15226_s0, %s15226_s0 }
 0x286   :  { %p14584_p11 = scmp.ne.s32.totalorder %s15226_s0, %s14583_s19  ;;  %p14589_p13 = scmp.lt.s32.totalorder %s14583_s19, %s14583_s19 }
 0x288   :  { %p14590_p0 = por %p14589_p13, %p14588_p12 }
 0x28a   :  { %p14591_p1 = pnand %p14590_p0, %p14584_p11 }
 0x28c   :  { %14594 = shalt.err (!%p14591_p1)
}
 0x28d   :  { %s16505_s16 = sld [smem:[#allocation100_spill]]  ;;  %s14804_s5 = smov [#allocation45]  }
 0x28e   :  { %437 = dma.hbm_to_vmem [thread:$0]  %s16504_s9, 4096, %s15226_s0, [#allocation41], %s14770_s23, %s14770_s23, %s14771_s8  }
 0x28f   :  { %s456_s3 = sshll.u32 %s14804_s5, 4  ;;  %s14805_s14 = smov [#allocation48]   ;;  %s457_s3 = int_to_ptr.vmem [resolvable:$true] %s456_s3 }
 0x290   :  { %s478_s11 = sshll.u32 %s14805_s14, 4  ;;  %s479_s11 = int_to_ptr.vmem [resolvable:$true] %s478_s11 }
 0x293   :  { %s14595_s25 = scalar_lea.hbm %s16505_s16, 16 }
 0x294   :  { %p14596_p2 = scmp.ne.s32.totalorder %s16505_s16, %s14595_s25  ;;  %p14599_p3 = scmp.lt.u32.totalorder %s14595_s25, %s16505_s16 }
 0x296   :  { %p14601_p4 = pnand %p14599_p3, %p14596_p2 }
 0x298   :  { %14604 = shalt.err (!%p14601_p4)
}
 0x299   :  { %s14605_s15 = scalar_lea.vmem %s457_s3, 16  ;;  %s14609_s12 = scalar_lea.vmem %s457_s3, 32 }
 0x29a   :  { %p14606_p5 = scmp.ne.s32.totalorder %s457_s3, %s14605_s15  ;;  %p14610_p6 = scmp.lt.s32.totalorder %s457_s3, %s457_s3 }
 0x29b   :  { %p14611_p7 = scmp.lt.s32.totalorder %s14609_s12, %s14605_s15 }
 0x29d   :  { %p14612_p8 = por %p14611_p7, %p14610_p6 }
 0x29f   :  { %p14613_p9 = pnand %p14612_p8, %p14606_p5 }
 0x2a1   :  { %14616 = shalt.err (!%p14613_p9)
}
 0x2a2   :  { %s16506_s23 = sld [smem:[#allocation102_spill]] }
 0x2a3   :  { %459 = dma.hbm_to_vmem [thread:$0]  %s16505_s16, 16, %s457_s3, [#allocation44]  }
 0x2a8   :  { %s14617_s8 = scalar_lea.hbm %s16506_s23, 32 }
 0x2a9   :  { %p14618_p10 = scmp.ne.s32.totalorder %s16506_s23, %s14617_s8  ;;  %p14621_p11 = scmp.lt.u32.totalorder %s14617_s8, %s16506_s23 }
 0x2ab   :  { %p14623_p12 = pnand %p14621_p11, %p14618_p10 }
 0x2ad   :  { %14626 = shalt.err (!%p14623_p12)
}
 0x2ae   :  { %s14627_s18 = scalar_lea.vmem %s479_s11, 32  ;;  %p14632_p0 = scmp.lt.s32.totalorder %s479_s11, %s479_s11 }
 0x2af   :  { %p14628_p13 = scmp.ne.s32.totalorder %s479_s11, %s14627_s18  ;;  %p14633_p1 = scmp.lt.s32.totalorder %s14627_s18, %s14627_s18 }
 0x2b1   :  { %p14634_p2 = por %p14633_p1, %p14632_p0 }
 0x2b3   :  { %p14635_p3 = pnand %p14634_p2, %p14628_p13 }
 0x2b5   :  { %14638 = shalt.err (!%p14635_p3)
}
 0x2b6   :  { %481 = dma.hbm_to_vmem [thread:$0]  %s16506_s23, 32, %s479_s11, [#allocation47]  }
 0x2b7   :  { %s14806_s22 = smov [#allocation51]   ;;  %s14807_s20 = smov [#allocation52]  }
 0x2b8   :  { %s499_s26 = sshll.u32 %s14806_s22, 4  ;;  %s512_s27 = sshll.u32 %s14807_s20, 4  ;;  %s500_s26 = int_to_ptr.vmem [resolvable:$true] %s499_s26  ;;  %s513_s27 = int_to_ptr.vmem [resolvable:$true] %s512_s27 }
 0x2b9   :  { %s14639_s30 = scalar_lea.hbm %s15054_s21, 512 }
 0x2ba   :  { %p14640_p4 = scmp.ne.s32.totalorder %s15054_s21, %s14639_s30  ;;  %p14643_p5 = scmp.lt.u32.totalorder %s14639_s30, %s15054_s21 }
 0x2bc   :  { %p14645_p6 = pnand %p14643_p5, %p14640_p4 }
 0x2be   :  { %14648 = shalt.err (!%p14645_p6)
}
 0x2bf   :  { %s14649_s28 = scalar_lea.vmem %s500_s26, 512  ;;  %p14654_p8 = scmp.lt.s32.totalorder %s500_s26, %s500_s26 }
 0x2c0   :  { %p14650_p7 = scmp.ne.s32.totalorder %s500_s26, %s14649_s28  ;;  %p14655_p9 = scmp.lt.s32.totalorder %s14649_s28, %s14649_s28 }
 0x2c2   :  { %p14656_p10 = por %p14655_p9, %p14654_p8 }
 0x2c4   :  { %p14657_p11 = pnand %p14656_p10, %p14650_p7 }
 0x2c6   :  { %14660 = shalt.err (!%p14657_p11)
}
 0x2c7   :  { %505 = dma.hbm_to_vmem [thread:$0]  %s15054_s21, 512, %s500_s26, [#allocation50], %s14792_s4, %s14792_s4, %s14793_s17  }
 0x2c8   :  { %s14661_s1 = scalar_lea.hbm %s15059_s29, 16 }
 0x2c9   :  { %p14662_p12 = scmp.ne.s32.totalorder %s15059_s29, %s14661_s1  ;;  %p14665_p13 = scmp.lt.u32.totalorder %s14661_s1, %s15059_s29 }
 0x2cb   :  { %p14667_p0 = pnand %p14665_p13, %p14662_p12 }
 0x2cd   :  { %14670 = shalt.err (!%p14667_p0)
}
 0x2ce   :  { %s14671_s2 = scalar_lea.vmem %s513_s27, 16  ;;  %s14675_s6 = scalar_lea.vmem %s513_s27, 32 }
 0x2cf   :  { %p14672_p1 = scmp.ne.s32.totalorder %s513_s27, %s14671_s2  ;;  %p14676_p2 = scmp.lt.s32.totalorder %s513_s27, %s513_s27 }
 0x2d0   :  { %p14677_p3 = scmp.lt.s32.totalorder %s14675_s6, %s14671_s2 }
 0x2d2   :  { %p14678_p4 = por %p14677_p3, %p14676_p2 }
 0x2d4   :  { %p14679_p5 = pnand %p14678_p4, %p14672_p1 }
 0x2d6   :  { %14682 = shalt.err (!%p14679_p5)
}
 0x2d7   :  { %515 = dma.hbm_to_vmem [thread:$0]  %s15059_s29, 16, %s513_s27, [#allocation53]  }
 0x2d8   :  { %14683 = dma.done.wait [#allocation3], 112  }
 0x2d9   :  { %14684 = vsyncadd [#allocation3], 4294967184 }
 0x2da   :  { %14685 = dma.done.wait [#allocation5], 80  }
 0x2db   :  { %14686 = vsyncadd [#allocation5], 4294967216 }
 0x2dc   :  { %14687 = dma.done.wait [#allocation8], 544  }
 0x2dd   :  { %14688 = vsyncadd [#allocation8], 4294966752 }
 0x2de   :  { %14689 = dma.done.wait [#allocation11], 2144  }
 0x2df   :  { %14690 = vsyncadd [#allocation11], 4294965152 }
 0x2e0   :  { %14691 = dma.done.wait [#allocation14], 32  }
 0x2e1   :  { %14692 = vsyncadd [#allocation14], 4294967264 }
 0x2e2   :  { %14693 = dma.done.wait [#allocation17], 544  }
 0x2e3   :  { %14694 = vsyncadd [#allocation17], 4294966752 }
 0x2e4   :  { %14695 = dma.done.wait [#allocation20], 4192  }
 0x2e5   :  { %14696 = vsyncadd [#allocation20], 4294963104 }
 0x2e6   :  { %14697 = dma.done.wait [#allocation23], 48  }
 0x2e7   :  { %14698 = vsyncadd [#allocation23], 4294967248 }
 0x2e8   :  { %14699 = dma.done.wait [#allocation26], 544  }
 0x2e9   :  { %14700 = vsyncadd [#allocation26], 4294966752 }
 0x2ea   :  { %14701 = dma.done.wait [#allocation29], 6240  }
 0x2eb   :  { %14702 = vsyncadd [#allocation29], 4294961056 }
 0x2ec   :  { %14703 = dma.done.wait [#allocation32], 4128  }
 0x2ed   :  { %14704 = vsyncadd [#allocation32], 4294963168 }
 0x2ee   :  { %14705 = dma.done.wait [#allocation35], 528  }
 0x2ef   :  { %14706 = vsyncadd [#allocation35], 4294966768 }
 0x2f0   :  { %14707 = dma.done.wait [#allocation38], 6176  }
 0x2f1   :  { %14708 = vsyncadd [#allocation38], 4294961120 }
 0x2f2   :  { %14709 = dma.done.wait [#allocation41], 4192  }
 0x2f3   :  { %14710 = vsyncadd [#allocation41], 4294963104 }
 0x2f4   :  { %14711 = dma.done.wait [#allocation44], 48  }
 0x2f5   :  { %14712 = vsyncadd [#allocation44], 4294967248 }
 0x2f6   :  { %14713 = dma.done.wait [#allocation47], 544  }
 0x2f7   :  { %14714 = vsyncadd [#allocation47], 4294966752 }
 0x2f8   :  { %14715 = dma.done.wait [#allocation50], 528  }
 0x2f9   :  { %14716 = vsyncadd [#allocation50], 4294966768 }
 0x2fa   :  { %14717 = dma.done.wait [#allocation53], 16  }
 0x2fb   :  { %14718 = vsyncadd [#allocation53], 4294967280  ;;  %s16507_s21 = sld [smem:[#allocation77_spill]]  ;;  %s16508_s29 = sld [smem:[#allocation72_spill]]  ;;  %vm14810_vm0 = vmmov 0   ;;  %vm4148_vm1 = vcmask 261120  }
 0x2fc   :  { %s16509_s4 = sld [smem:[#allocation79_spill]]  ;;  %s16510_s17 = sld [smem:[#allocation80_spill]]  ;;  %vm10625_vm2 = vcmask 523264  }
 0x2fd   :  { %s16511_s0 = sld [smem:[#allocation83_spill]]  ;;  %s16512_s7 = sld [smem:[#allocation73_spill]] }
 0x2fe   :  { %s16513_s24 = sld [smem:[#allocation85_spill]]  ;;  %s16514_s9 = sld [smem:[#allocation88_spill]] }
 0x2ff   :  { %s16515_s10 = sld [smem:[#allocation74_spill]]  ;;  %s16517_s16 = sld [smem:[#allocation75_spill]] }
 0x300   :  { %s16516_s19 = sld [smem:[#allocation90_spill]]  ;;  %s16518_s5 = sld [smem:[#allocation95_spill]] }
 0x301   :  { %v12545_v0 = vld [vmem:[%s16507_s21 + $0x4] ss:$28 sps:$4 sm:$0xff]   ;;  %v12548_v2 = vld [vmem:[%s16507_s21 + $0x3c] ss:$28 sps:$4 sm:$0xff]   ;;  %v12551_v4 = vld [vmem:[%s16507_s21 + $0x74] ss:$28 sps:$4 sm:$0xff]  }
 0x302   :  { %v12547_v1 = vld [vmem:[%s16507_s21] ss:$28 sps:$4 sm:$0xff]   ;;  %1725 = vmatprep.subr.bf16.mxu0 %v12545_v0  ;;  %v12550_v3 = vld [vmem:[%s16507_s21 + $0x38] ss:$28 sps:$4 sm:$0xff]   ;;  %v12553_v5 = vld [vmem:[%s16507_s21 + $0x70] ss:$28 sps:$4 sm:$0xff]  }
 0x303   :  { %1726 = vmatpush1.bf16.msra.mxu0 %v12547_v1  ;;  %v12554_v6 = vld [vmem:[%s16507_s21 + $0xac] ss:$28 sps:$4 sm:$0xff]   ;;  %v12557_v10 = vld [vmem:[%s16507_s21 + $0xe4] ss:$28 sps:$4 sm:$0xff]   ;;  %v12560_v14 = vld [vmem:[%s16507_s21 + $0x11c] ss:$28 sps:$4 sm:$0xff]  }
 0x304   :  { %1727 = vmatprep.subr.bf16.mxu0 %v12548_v2  ;;  %v12556_v7 = vld [vmem:[%s16507_s21 + $0xa8] ss:$28 sps:$4 sm:$0xff]   ;;  %v12577_v12 = vld [vmem:[%s16507_s21 + $0x40] ss:$28 sps:$4 sm:$0xff]   ;;  %v12583_v16 = vld [vmem:[%s16507_s21 + $0x78] ss:$28 sps:$4 sm:$0xff]  }
 0x305   :  { %v12569_v8 = vld [vmem:[%s16507_s21 + $0xc] ss:$28 sps:$4 sm:$0xff]   ;;  %v12575_v11 = vld [vmem:[%s16507_s21 + $0x44] ss:$28 sps:$4 sm:$0xff]   ;;  %v12581_v15 = vld [vmem:[%s16507_s21 + $0x7c] ss:$28 sps:$4 sm:$0xff]  }
 0x306   :  { %v12571_v9 = vld [vmem:[%s16507_s21 + $0x8] ss:$28 sps:$4 sm:$0xff]   ;;  %1807 = vmatprep.subr.bf16.mxu1 %v12569_v8  ;;  %v12559_v13 = vld [vmem:[%s16507_s21 + $0xe0] ss:$28 sps:$4 sm:$0xff]   ;;  %v12562_v17 = vld [vmem:[%s16507_s21 + $0x118] ss:$28 sps:$4 sm:$0xff]  }
 0x307   :  { %1728 = vmatpush1.bf16.msra.mxu0 %v12550_v3  ;;  %1808 = vmatpush1.bf16.msra.mxu1 %v12571_v9  ;;  %v12587_v18 = vld [vmem:[%s16507_s21 + $0xb4] ss:$28 sps:$4 sm:$0xff]   ;;  %v12593_v22 = vld [vmem:[%s16507_s21 + $0xec] ss:$28 sps:$4 sm:$0xff]   ;;  %v12599_v26 = vld [vmem:[%s16507_s21 + $0x124] ss:$28 sps:$4 sm:$0xff]  }
 0x308   :  { %1729 = vmatprep.subr.bf16.mxu0 %v12551_v4  ;;  %1809 = vmatprep.subr.bf16.mxu1 %v12575_v11  ;;  %v12563_v19 = vld [vmem:[%s16507_s21 + $0x154] ss:$28 sps:$4 sm:$0xff]   ;;  %v12566_v23 = vld [vmem:[%s16507_s21 + $0x18c] ss:$28 sps:$4 sm:$0xff]   ;;  %v12572_v27 = vld [vmem:[%s16507_s21 + $0x1c4] ss:$28 sps:$4 sm:$0xff]  }
 0x309   :  { %v12589_v20 = vld [vmem:[%s16507_s21 + $0xb0] ss:$28 sps:$4 sm:$0xff]   ;;  %v12595_v24 = vld [vmem:[%s16507_s21 + $0xe8] ss:$28 sps:$4 sm:$0xff]   ;;  %v12601_v28 = vld [vmem:[%s16507_s21 + $0x120] ss:$28 sps:$4 sm:$0xff]  }
 0x30a   :  { %v12565_v21 = vld [vmem:[%s16507_s21 + $0x150] ss:$28 sps:$4 sm:$0xff]   ;;  %v12568_v25 = vld [vmem:[%s16507_s21 + $0x188] ss:$28 sps:$4 sm:$0xff]   ;;  %v12574_v29 = vld [vmem:[%s16507_s21 + $0x1c0] ss:$28 sps:$4 sm:$0xff]  }
 0x30b   :  { %1730 = vmatpush1.bf16.msra.mxu0 %v12553_v5  ;;  %1810 = vmatpush1.bf16.msra.mxu1 %v12577_v12  ;;  %v12605_v30 = vld [vmem:[%s16507_s21 + $0x15c] ss:$28 sps:$4 sm:$0xff]   ;;  %v619_v32 = vld [vmem:[%s16508_s29] sm:$0xff]  ;;  %v12611_v36 = vld [vmem:[%s16507_s21 + $0x194] ss:$28 sps:$4 sm:$0xff]   ;;  %s16519_s3 = sld [smem:[#allocation76_spill]] }
 0x30c   :  { %1731 = vmatprep.subr.bf16.mxu0 %v12554_v6  ;;  %1811 = vmatprep.subr.bf16.mxu1 %v12581_v15  ;;  %v12578_v31 = vld [vmem:[%s16507_s21 + $0x1fc] ss:$28 sps:$4 sm:$0xff]   ;;  %v15301_v35 = vcombine.high %v619_v32, %v619_v32  ;;  %v12584_v37 = vld [vmem:[%s16507_s21 + $0x234] ss:$28 sps:$4 sm:$0xff]   ;;  %v12617_v40 = vld [vmem:[%s16507_s21 + $0x1cc] ss:$28 sps:$4 sm:$0xff]   ;;  %v15331_v62 = vcombine.low %v619_v32, %v619_v32 }
 0x30d   :  { %v12580_v33 = vld [vmem:[%s16507_s21 + $0x1f8] ss:$28 sps:$4 sm:$0xff]   ;;  %v12586_v38 = vld [vmem:[%s16507_s21 + $0x230] ss:$28 sps:$4 sm:$0xff]   ;;  %v12592_v42 = vld [vmem:[%s16507_s21 + $0x268] ss:$28 sps:$4 sm:$0xff]  }
 0x30e   :  { %v12607_v34 = vld [vmem:[%s16507_s21 + $0x158] ss:$28 sps:$4 sm:$0xff]   ;;  %1757 = vmatprep.mubr.bf16.mxu0 %v15301_v35  ;;  %1839 = vmatprep.mubr.bf16.mxu1 %v15301_v35  ;;  %v12613_v39 = vld [vmem:[%s16507_s21 + $0x190] ss:$28 sps:$4 sm:$0xff]   ;;  %v12619_v43 = vld [vmem:[%s16507_s21 + $0x1c8] ss:$28 sps:$4 sm:$0xff]  }
 0x30f   :  { %1732 = vmatpush1.bf16.msra.mxu0 %v12556_v7  ;;  %1812 = vmatpush1.bf16.msra.mxu1 %v12583_v16  ;;  %v12590_v41 = vld [vmem:[%s16507_s21 + $0x26c] ss:$28 sps:$4 sm:$0xff]   ;;  %v12625_v44 = vld [vmem:[%s16507_s21 + $0x204] ss:$28 sps:$4 sm:$0xff]   ;;  %v12631_v48 = vld [vmem:[%s16507_s21 + $0x23c] ss:$28 sps:$4 sm:$0xff]  }
 0x310   :  { %1733 = vmatprep.subr.bf16.mxu0 %v12557_v10  ;;  %1813 = vmatprep.subr.bf16.mxu1 %v12587_v18  ;;  %v12596_v45 = vld [vmem:[%s16507_s21 + $0x2a4] ss:$28 sps:$4 sm:$0xff]   ;;  %v12602_v49 = vld [vmem:[%s16507_s21 + $0x2dc] ss:$28 sps:$4 sm:$0xff]   ;;  %v12637_v52 = vld [vmem:[%s16507_s21 + $0x274] ss:$28 sps:$4 sm:$0xff]  }
 0x311   :  { %v12598_v46 = vld [vmem:[%s16507_s21 + $0x2a0] ss:$28 sps:$4 sm:$0xff]   ;;  %v12604_v50 = vld [vmem:[%s16507_s21 + $0x2d8] ss:$28 sps:$4 sm:$0xff]   ;;  %v12610_v54 = vld [vmem:[%s16507_s21 + $0x310] ss:$28 sps:$4 sm:$0xff]  }
 0x312   :  { %v12627_v47 = vld [vmem:[%s16507_s21 + $0x200] ss:$28 sps:$4 sm:$0xff]   ;;  %v12633_v51 = vld [vmem:[%s16507_s21 + $0x238] ss:$28 sps:$4 sm:$0xff]   ;;  %v12639_v55 = vld [vmem:[%s16507_s21 + $0x270] ss:$28 sps:$4 sm:$0xff]  }
 0x313   :  { %1734 = vmatpush1.bf16.msra.mxu0 %v12559_v13  ;;  %1814 = vmatpush1.bf16.msra.mxu1 %v12589_v20  ;;  %v12608_v53 = vld [vmem:[%s16507_s21 + $0x314] ss:$28 sps:$4 sm:$0xff]   ;;  %v12643_v56 = vld [vmem:[%s16507_s21 + $0x2ac] ss:$28 sps:$4 sm:$0xff]   ;;  %v12649_v60 = vld [vmem:[%s16507_s21 + $0x2e4] ss:$28 sps:$4 sm:$0xff]  }
 0x314   :  { %1735 = vmatprep.subr.bf16.mxu0 %v12560_v14  ;;  %1815 = vmatprep.subr.bf16.mxu1 %v12593_v22  ;;  %v12614_v57 = vld [vmem:[%s16507_s21 + $0x34c] ss:$28 sps:$4 sm:$0xff]   ;;  %v12623_v61 = vld [vmem:[%s16507_s21 + $0x384] ss:$28 sps:$4 sm:$0xff]   ;;  %v12655_v1 = vld [vmem:[%s16507_s21 + $0x31c] ss:$28 sps:$4 sm:$0xff]  }
 0x315   :  { %v12645_v58 = vld [vmem:[%s16507_s21 + $0x2a8] ss:$28 sps:$4 sm:$0xff]   ;;  %v12651_v63 = vld [vmem:[%s16507_s21 + $0x2e0] ss:$28 sps:$4 sm:$0xff]   ;;  %v12657_v3 = vld [vmem:[%s16507_s21 + $0x318] ss:$28 sps:$4 sm:$0xff]  }
 0x316   :  { %v12616_v59 = vld [vmem:[%s16507_s21 + $0x348] ss:$28 sps:$4 sm:$0xff]   ;;  %v12621_v0 = vld [vmem:[%s16507_s21 + $0x380] ss:$28 sps:$4 sm:$0xff]   ;;  %v12628_v4 = vld [vmem:[%s16507_s21 + $0x3b8] ss:$28 sps:$4 sm:$0xff]  }
 0x317   :  { %1736 = vmatpush1.bf16.msra.mxu0 %v12562_v17  ;;  %1816 = vmatpush1.bf16.msra.mxu1 %v12595_v24  ;;  %v12630_v2 = vld [vmem:[%s16507_s21 + $0x3bc] ss:$28 sps:$4 sm:$0xff]   ;;  %v12661_v5 = vld [vmem:[%s16507_s21 + $0x354] ss:$28 sps:$4 sm:$0xff]   ;;  %v14808_v7 = vmov 0   ;;  %s16520_s14 = sld [smem:[#allocation99_spill]] }
 0x318   :  { %1737 = vmatprep.subr.bf16.mxu0 %v12563_v19  ;;  %1817 = vmatprep.subr.bf16.mxu1 %v12599_v26  ;;  %v12636_v6 = vld [vmem:[%s16507_s21 + $0x3f4] ss:$28 sps:$4 sm:$0xff]   ;;  %v12669_v10 = vld [vmem:[%s16507_s21 + $0x38c] ss:$28 sps:$4 sm:$0xff]   ;;  %v12676_v14 = vld [vmem:[%s16507_s21 + $0x3c4] ss:$28 sps:$4 sm:$0xff]  }
 0x319   :  { %v12663_v8 = vld [vmem:[%s16507_s21 + $0x350] ss:$28 sps:$4 sm:$0xff]   ;;  %v12667_v12 = vld [vmem:[%s16507_s21 + $0x388] ss:$28 sps:$4 sm:$0xff]   ;;  %v12674_v16 = vld [vmem:[%s16507_s21 + $0x3c0] ss:$28 sps:$4 sm:$0xff]  }
 0x31a   :  { %v12634_v9 = vld [vmem:[%s16507_s21 + $0x3f0] ss:$28 sps:$4 sm:$0xff]   ;;  %v12640_v13 = vld [vmem:[%s16507_s21 + $0x428] ss:$28 sps:$4 sm:$0xff]   ;;  %v12646_v17 = vld [vmem:[%s16507_s21 + $0x460] ss:$28 sps:$4 sm:$0xff]  }
 0x31b   :  { %1738 = vmatpush1.bf16.msra.mxu0 %v12565_v21  ;;  %1818 = vmatpush1.bf16.msra.mxu1 %v12601_v28  ;;  %v12642_v11 = vld [vmem:[%s16507_s21 + $0x42c] ss:$28 sps:$4 sm:$0xff]   ;;  %v12648_v15 = vld [vmem:[%s16507_s21 + $0x464] ss:$28 sps:$4 sm:$0xff]   ;;  %v12682_v18 = vld [vmem:[%s16507_s21 + $0x3fc] ss:$28 sps:$4 sm:$0xff]  }
 0x31c   :  { %1739 = vmatprep.subr.bf16.mxu0 %v12566_v23  ;;  %1819 = vmatprep.subr.bf16.mxu1 %v12605_v30  ;;  %v12654_v19 = vld [vmem:[%s16507_s21 + $0x49c] ss:$28 sps:$4 sm:$0xff]   ;;  %v12688_v22 = vld [vmem:[%s16507_s21 + $0x434] ss:$28 sps:$4 sm:$0xff]   ;;  %v12694_v26 = vld [vmem:[%s16507_s21 + $0x46c] ss:$28 sps:$4 sm:$0xff]  }
 0x31d   :  { %v12680_v20 = vld [vmem:[%s16507_s21 + $0x3f8] ss:$28 sps:$4 sm:$0xff]   ;;  %v12686_v24 = vld [vmem:[%s16507_s21 + $0x430] ss:$28 sps:$4 sm:$0xff]   ;;  %v12664_v28 = vld [vmem:[%s16507_s21 + $0x508] ss:$28 sps:$4 sm:$0xff]  }
 0x31e   :  { %v12652_v21 = vld [vmem:[%s16507_s21 + $0x498] ss:$28 sps:$4 sm:$0xff]   ;;  %v12700_v30 = vld [vmem:[%s16507_s21 + $0x4a4] ss:$28 sps:$4 sm:$0xff]   ;;  %s16521_s11 = sld [smem:[#allocation103_spill]] }
 0x31f   :  { %1740 = vmatpush1.bf16.msra.mxu0 %v12568_v25  ;;  %1820 = vmatpush1.bf16.msra.mxu1 %v12607_v34  ;;  %v12660_v23 = vld [vmem:[%s16507_s21 + $0x4d4] ss:$28 sps:$4 sm:$0xff]   ;;  %v12698_v34 = vld [vmem:[%s16507_s21 + $0x4a0] ss:$28 sps:$4 sm:$0xff]  }
 0x320   :  { %1741 = vmatprep.subr.bf16.mxu0 %v12572_v27  ;;  %1821 = vmatprep.subr.bf16.mxu1 %v12611_v36  ;;  %v12658_v25 = vld [vmem:[%s16507_s21 + $0x4d0] ss:$28 sps:$4 sm:$0xff]   ;;  %v12706_v36 = vld [vmem:[%s16507_s21 + $0x4dc] ss:$28 sps:$4 sm:$0xff]  }
 0x321   :  { %v12666_v27 = vld [vmem:[%s16507_s21 + $0x50c] ss:$28 sps:$4 sm:$0xff]   ;;  %v12673_v32 = vld [vmem:[%s16507_s21 + $0x14] ss:$28 sps:$4 sm:$0xff]  }
 0x323   :  { %1742 = vmatpush1.bf16.msra.mxu0 %v12574_v29  ;;  %1822 = vmatpush1.bf16.msra.mxu1 %v12613_v39  ;;  %v12692_v29 = vld [vmem:[%s16507_s21 + $0x468] ss:$28 sps:$4 sm:$0xff]   ;;  %v12704_v39 = vld [vmem:[%s16507_s21 + $0x4d8] ss:$28 sps:$4 sm:$0xff]  }
 0x324   :  { %1743 = vmatprep.subr.bf16.mxu0 %v12578_v31  ;;  %1823 = vmatprep.subr.bf16.mxu1 %v12617_v40  ;;  %v15369_v31 = vld [vmem:[%s16508_s29 + $0x8] ss:$0 sps:$4 sm:$0xff]   ;;  %v12712_v40 = vld [vmem:[%s16507_s21 + $0x514] ss:$28 sps:$4 sm:$0xff]  }
 0x327   :  { %1744 = vmatpush1.bf16.msra.mxu0 %v12580_v33  ;;  %1824 = vmatpush1.bf16.msra.mxu1 %v12619_v43  ;;  %v12671_v33 = vld [vmem:[%s16507_s21 + $0x10] ss:$28 sps:$4 sm:$0xff]  }
 0x328   :  { %1745 = vmatprep.subr.bf16.mxu0 %v12584_v37  ;;  %1825 = vmatprep.subr.bf16.mxu1 %v12625_v44  ;;  %v12679_v37 = vld [vmem:[%s16507_s21 + $0x4c] ss:$28 sps:$4 sm:$0xff]   ;;  %v12743_v44 = vld [vmem:[%s16507_s21 + $0x1d8] ss:$28 sps:$4 sm:$0xff]  }
 0x329   :  { %v12710_v43 = vld [vmem:[%s16507_s21 + $0x510] ss:$28 sps:$4 sm:$0xff]  }
 0x32b   :  { %1746 = vmatpush1.bf16.msra.mxu0 %v12586_v38  ;;  %1826 = vmatpush1.bf16.msra.mxu1 %v12627_v47  ;;  %v12677_v38 = vld [vmem:[%s16507_s21 + $0x48] ss:$28 sps:$4 sm:$0xff]   ;;  %v12689_v47 = vld [vmem:[%s16507_s21 + $0xb8] ss:$28 sps:$4 sm:$0xff]  }
 0x32c   :  { %1747 = vmatprep.subr.bf16.mxu0 %v12590_v41  ;;  %1827 = vmatprep.subr.bf16.mxu1 %v12631_v48  ;;  %v12685_v41 = vld [vmem:[%s16507_s21 + $0x84] ss:$28 sps:$4 sm:$0xff]   ;;  %v12748_v48 = vld [vmem:[%s16507_s21 + $0x210] ss:$28 sps:$4 sm:$0xff]  }
 0x32f   :  { %1748 = vmatpush1.bf16.msra.mxu0 %v12592_v42  ;;  %1828 = vmatpush1.bf16.msra.mxu1 %v12633_v51  ;;  %v12683_v42 = vld [vmem:[%s16507_s21 + $0x80] ss:$28 sps:$4 sm:$0xff]   ;;  %v12749_v51 = vld [vmem:[%s16507_s21 + $0x50] ss:$28 sps:$4 sm:$0xff]  }
 0x330   :  { %1749 = vmatprep.subr.bf16.mxu0 %v12596_v45  ;;  %1829 = vmatprep.subr.bf16.mxu1 %v12637_v52  ;;  %v12691_v45 = vld [vmem:[%s16507_s21 + $0xbc] ss:$28 sps:$4 sm:$0xff]   ;;  %v12753_v52 = vld [vmem:[%s16507_s21 + $0x248] ss:$28 sps:$4 sm:$0xff]  }
 0x333   :  { %1750 = vmatpush1.bf16.msra.mxu0 %v12598_v46  ;;  %1830 = vmatpush1.bf16.msra.mxu1 %v12639_v55  ;;  %v12744_v46 = vld [vmem:[%s16507_s21 + $0x18] ss:$28 sps:$4 sm:$0xff]   ;;  %v12754_v55 = vld [vmem:[%s16507_s21 + $0x88] ss:$28 sps:$4 sm:$0xff]  }
 0x334   :  { %1751 = vmatprep.subr.bf16.mxu0 %v12602_v49  ;;  %1831 = vmatprep.subr.bf16.mxu1 %v12643_v56  ;;  %v12697_v49 = vld [vmem:[%s16507_s21 + $0xf4] ss:$28 sps:$4 sm:$0xff]   ;;  %v12758_v56 = vld [vmem:[%s16507_s21 + $0x280] ss:$28 sps:$4 sm:$0xff]  }
 0x337   :  { %1752 = vmatpush1.bf16.msra.mxu0 %v12604_v50  ;;  %1832 = vmatpush1.bf16.msra.mxu1 %v12645_v58  ;;  %v12695_v50 = vld [vmem:[%s16507_s21 + $0xf0] ss:$28 sps:$4 sm:$0xff]   ;;  %v12759_v58 = vld [vmem:[%s16507_s21 + $0xc0] ss:$28 sps:$4 sm:$0xff]  }
 0x338   :  { %1753 = vmatprep.subr.bf16.mxu0 %v12608_v53  ;;  %1833 = vmatprep.subr.bf16.mxu1 %v12649_v60  ;;  %v12703_v53 = vld [vmem:[%s16507_s21 + $0x12c] ss:$28 sps:$4 sm:$0xff]   ;;  %v12715_v60 = vld [vmem:[%s16507_s21 + $0x19c] ss:$28 sps:$4 sm:$0xff]  }
 0x33b   :  { %1754 = vmatpush1.bf16.msra.mxu0 %v12610_v54  ;;  %1834 = vmatpush1.bf16.msra.mxu1 %v12651_v63  ;;  %v12701_v54 = vld [vmem:[%s16507_s21 + $0x128] ss:$28 sps:$4 sm:$0xff]   ;;  %v12713_v63 = vld [vmem:[%s16507_s21 + $0x198] ss:$28 sps:$4 sm:$0xff]  }
 0x33c   :  { %1755 = vmatprep.subr.bf16.mxu0 %v12614_v57  ;;  %1835 = vmatprep.subr.bf16.mxu1 %v12655_v1  ;;  %v12709_v57 = vld [vmem:[%s16507_s21 + $0x164] ss:$28 sps:$4 sm:$0xff]   ;;  %v12718_v1 = vld [vmem:[%s16507_s21 + $0x1d4] ss:$28 sps:$4 sm:$0xff]  }
 0x33f   :  { %1756 = vmatpush1.bf16.msra.mxu0 %v12616_v59  ;;  %1836 = vmatpush1.bf16.msra.mxu1 %v12657_v3  ;;  %v12763_v59 = vld [vmem:[%s16507_s21 + $0x2b8] ss:$28 sps:$4 sm:$0xff]   ;;  %v12716_v3 = vld [vmem:[%s16507_s21 + $0x1d0] ss:$28 sps:$4 sm:$0xff]  }
 0x340   :  { %1766 = vmatprep.subr.bf16.mxu0 %v12623_v61  ;;  %1837 = vmatprep.subr.bf16.mxu1 %v12661_v5  ;;  %v12764_v61 = vld [vmem:[%s16507_s21 + $0xf8] ss:$28 sps:$4 sm:$0xff]   ;;  %v12721_v5 = vld [vmem:[%s16507_s21 + $0x20c] ss:$28 sps:$4 sm:$0xff]  }
 0x342   :  { %1758 = vmatmul.mubr.bf16.vlgmr.msra.gmra.mrb[0].mxu0 %v15331_v62 }
 0x343   :  { %1767 = vmatpush1.bf16.msra.mxu0 %v12621_v0  ;;  %1798 = vmatprep.mubr.bf16.mxu0 %v14808_v7  ;;  %v12768_v0 = vld [vmem:[%s16507_s21 + $0x2f0] ss:$28 sps:$4 sm:$0xff]  }
 0x344   :  { %1768 = vmatprep.subr.bf16.mxu0 %v12630_v2  ;;  %1838 = vmatpush1.bf16.msra.mxu1 %v12663_v8  ;;  %v12769_v2 = vld [vmem:[%s16507_s21 + $0x130] ss:$28 sps:$4 sm:$0xff]   ;;  %v12719_v8 = vld [vmem:[%s16507_s21 + $0x208] ss:$28 sps:$4 sm:$0xff]  }
 0x345   :  { %1848 = vmatprep.subr.bf16.mxu1 %v12669_v10  ;;  %v12724_v10 = vld [vmem:[%s16507_s21 + $0x244] ss:$28 sps:$4 sm:$0xff]  }
 0x347   :  { %1769 = vmatpush1.bf16.msra.mxu0 %v12628_v4  ;;  %1840 = vmatmul.mubr.bf16.vlgmr.msra.gmra.mrb[0].mxu1 %v15331_v62  ;;  %v12773_v4 = vld [vmem:[%s16507_s21 + $0x328] ss:$28 sps:$4 sm:$0xff]  }
 0x348   :  { %1770 = vmatprep.subr.bf16.mxu0 %v12636_v6  ;;  %1849 = vmatpush1.bf16.msra.mxu1 %v12667_v12  ;;  %v12774_v6 = vld [vmem:[%s16507_s21 + $0x168] ss:$28 sps:$4 sm:$0xff]   ;;  %v12722_v12 = vld [vmem:[%s16507_s21 + $0x240] ss:$28 sps:$4 sm:$0xff]  }
 0x349   :  { %1880 = vmatprep.mubr.bf16.mxu1 %v14808_v7  ;;  %1850 = vmatprep.subr.bf16.mxu1 %v12676_v14  ;;  %v12780_v14 = vld [vmem:[%s16507_s21 + $0x398] ss:$28 sps:$4 sm:$0xff]  }
 0x34b   :  { %1771 = vmatpush1.bf16.msra.mxu0 %v12634_v9  ;;  %v12778_v9 = vld [vmem:[%s16507_s21 + $0x360] ss:$28 sps:$4 sm:$0xff]  }
 0x34c   :  { %1772 = vmatprep.subr.bf16.mxu0 %v12642_v11  ;;  %1851 = vmatpush1.bf16.msra.mxu1 %v12674_v16  ;;  %v12779_v11 = vld [vmem:[%s16507_s21 + $0x1a0] ss:$28 sps:$4 sm:$0xff]   ;;  %v14809_v16 = vmov 0.0  }
 0x34d   :  { %1852 = vmatprep.subr.bf16.mxu1 %v12682_v18  ;;  %v12781_v18 = vld [vmem:[%s16507_s21 + $0x3d0] ss:$28 sps:$4 sm:$0xff]  }
 0x34f   :  { %1773 = vmatpush1.bf16.msra.mxu0 %v12640_v13  ;;  %v12727_v13 = vld [vmem:[%s16507_s21 + $0x27c] ss:$28 sps:$4 sm:$0xff]  }
 0x350   :  { %1774 = vmatprep.subr.bf16.mxu0 %v12648_v15  ;;  %1853 = vmatpush1.bf16.msra.mxu1 %v12680_v20  ;;  %v12725_v15 = vld [vmem:[%s16507_s21 + $0x278] ss:$28 sps:$4 sm:$0xff]   ;;  %v12733_v20 = vld [vmem:[%s16507_s21 + $0x2ec] ss:$28 sps:$4 sm:$0xff]  }
 0x351   :  { %1854 = vmatprep.subr.bf16.mxu1 %v12688_v22  ;;  %v12731_v22 = vld [vmem:[%s16507_s21 + $0x2e8] ss:$28 sps:$4 sm:$0xff]  }
 0x353   :  { %1775 = vmatpush1.bf16.msra.mxu0 %v12646_v17  ;;  %v12730_v17 = vld [vmem:[%s16507_s21 + $0x2b4] ss:$28 sps:$4 sm:$0xff]  }
 0x354   :  { %1776 = vmatprep.subr.bf16.mxu0 %v12654_v19  ;;  %1855 = vmatpush1.bf16.msra.mxu1 %v12686_v24  ;;  %v12728_v19 = vld [vmem:[%s16507_s21 + $0x2b0] ss:$28 sps:$4 sm:$0xff]   ;;  %v12783_v24 = vld [vmem:[%s16507_s21 + $0x440] ss:$28 sps:$4 sm:$0xff]  }
 0x355   :  { %1856 = vmatprep.subr.bf16.mxu1 %v12694_v26  ;;  %v12739_v26 = vld [vmem:[%s16507_s21 + $0x35c] ss:$28 sps:$4 sm:$0xff]  }
 0x357   :  { %1777 = vmatpush1.bf16.msra.mxu0 %v12652_v21  ;;  %v12782_v21 = vld [vmem:[%s16507_s21 + $0x408] ss:$28 sps:$4 sm:$0xff]  }
 0x358   :  { %1778 = vmatprep.subr.bf16.mxu0 %v12660_v23  ;;  %1857 = vmatpush1.bf16.msra.mxu1 %v12692_v29  ;;  %v12736_v23 = vld [vmem:[%s16507_s21 + $0x324] ss:$28 sps:$4 sm:$0xff]   ;;  %v12742_v29 = vld [vmem:[%s16507_s21 + $0x394] ss:$28 sps:$4 sm:$0xff]  }
 0x359   :  { %1858 = vmatprep.subr.bf16.mxu1 %v12700_v30  ;;  %v12740_v30 = vld [vmem:[%s16507_s21 + $0x390] ss:$28 sps:$4 sm:$0xff]  }
 0x35b   :  { %1779 = vmatpush1.bf16.msra.mxu0 %v12658_v25  ;;  %v12734_v25 = vld [vmem:[%s16507_s21 + $0x320] ss:$28 sps:$4 sm:$0xff]  }
 0x35c   :  { %1780 = vmatprep.subr.bf16.mxu0 %v12666_v27  ;;  %1859 = vmatpush1.bf16.msra.mxu1 %v12698_v34  ;;  %v12784_v27 = vld [vmem:[%s16507_s21 + $0x478] ss:$28 sps:$4 sm:$0xff]   ;;  %v12786_v34 = vld [vmem:[%s16507_s21 + $0x4e8] ss:$28 sps:$4 sm:$0xff]  }
 0x35d   :  { %1860 = vmatprep.subr.bf16.mxu1 %v12706_v36  ;;  %v12745_v36 = vld [vmem:[%s16507_s21 + $0x3c8] ss:$28 sps:$4 sm:$0xff]  }
 0x35f   :  { %1781 = vmatpush1.bf16.msra.mxu0 %v12664_v28  ;;  %v12737_v28 = vld [vmem:[%s16507_s21 + $0x358] ss:$28 sps:$4 sm:$0xff]  }
 0x360   :  { %1889 = vmatprep.subr.bf16.mxu0 %v12673_v32  ;;  %1861 = vmatpush1.bf16.msra.mxu1 %v12704_v39  ;;  %v12747_v32 = vld [vmem:[%s16507_s21 + $0x3cc] ss:$28 sps:$4 sm:$0xff]   ;;  %v12750_v39 = vld [vmem:[%s16507_s21 + $0x400] ss:$28 sps:$4 sm:$0xff]  }
 0x361   :  { %1862 = vmatprep.subr.bf16.mxu1 %v12712_v40  ;;  %v12790_v40 = vld [vmem:[%s16509_s4 + $0x4] ss:$16 sps:$4 sm:$0xff]  }
 0x362   :  { %1799 = vmatmul.mubr.bf16.vlgmr.msra.gmra.mrb[0].mxu0 %v15369_v31 }
 0x363   :  { %1890 = vmatpush1.bf16.msra.mxu0 %v12671_v33  ;;  %1921 = vmatprep.mubr.bf16.mxu0 %v15301_v35  ;;  %v12785_v33 = vld [vmem:[%s16507_s21 + $0x4b0] ss:$28 sps:$4 sm:$0xff]  }
 0x364   :  { %1891 = vmatprep.subr.bf16.mxu0 %v12679_v37  ;;  %1863 = vmatpush1.bf16.msra.mxu1 %v12710_v43  ;;  %v12752_v37 = vld [vmem:[%s16507_s21 + $0x404] ss:$28 sps:$4 sm:$0xff]  }
 0x365   :  { %11834 = vmatprep.subr.bf16.mxu1 %v12743_v44  ;;  %v12796_v43 = vld [vmem:[%s16509_s4 + $0x24] ss:$16 sps:$4 sm:$0xff]  }
 0x366   :  { %v12762_v44 = vld [vmem:[%s16507_s21 + $0x474] ss:$28 sps:$4 sm:$0xff]  }
 0x367   :  { %1892 = vmatpush1.bf16.msra.mxu0 %v12677_v38  ;;  %1881 = vmatmul.mubr.bf16.vlgmr.msra.gmra.mrb[0].mxu1 %v15369_v31  ;;  %v12787_v38 = vld [vmem:[%s16507_s21 + $0x520] ss:$28 sps:$4 sm:$0xff]  }
 0x368   :  { %1893 = vmatprep.subr.bf16.mxu0 %v12685_v41  ;;  %11835 = vmatpush3.bf16.msra.mxu1 %v12744_v46  ;;  %v12757_v41 = vld [vmem:[%s16507_s21 + $0x43c] ss:$28 sps:$4 sm:$0xff]   ;;  %v12760_v46 = vld [vmem:[%s16507_s21 + $0x470] ss:$28 sps:$4 sm:$0xff]  }
 0x369   :  { %2003 = vmatprep.mubr.bf16.mxu1 %v15301_v35  ;;  %11836 = vmatprep.subr.bf16.mxu1 %v12748_v48  ;;  %v12707_v35 = vld [vmem:[%s16507_s21 + $0x160] ss:$28 sps:$4 sm:$0xff]   ;;  %v12767_v48 = vld [vmem:[%s16507_s21 + $0x4ac] ss:$28 sps:$4 sm:$0xff]  }
 0x36b   :  { %1894 = vmatpush1.bf16.msra.mxu0 %v12683_v42  ;;  %v12755_v42 = vld [vmem:[%s16507_s21 + $0x438] ss:$28 sps:$4 sm:$0xff]  }
 0x36c   :  { %1895 = vmatprep.subr.bf16.mxu0 %v12691_v45  ;;  %11837 = vmatpush3.bf16.msra.mxu1 %v12749_v51  ;;  %v12794_v45 = vld [vmem:[%s16509_s4 + $0x20] ss:$16 sps:$4 sm:$0xff]   ;;  %v12808_v51 = vld [vmem:[%s16509_s4 + $0x64] ss:$16 sps:$4 sm:$0xff]  }
 0x36d   :  { %11838 = vmatprep.subr.bf16.mxu1 %v12753_v52  ;;  %v12772_v52 = vld [vmem:[%s16507_s21 + $0x4e4] ss:$28 sps:$4 sm:$0xff]  }
 0x36f   :  { %1896 = vmatpush1.bf16.msra.mxu0 %v12689_v47  ;;  %v12802_v47 = vld [vmem:[%s16509_s4 + $0x44] ss:$16 sps:$4 sm:$0xff]  }
 0x370   :  { %1897 = vmatprep.subr.bf16.mxu0 %v12697_v49  ;;  %11839 = vmatpush3.bf16.msra.mxu1 %v12754_v55  ;;  %v12800_v49 = vld [vmem:[%s16509_s4 + $0x40] ss:$16 sps:$4 sm:$0xff]   ;;  %v12814_v55 = vld [vmem:[%s16509_s4 + $0x84] ss:$16 sps:$4 sm:$0xff]  }
 0x371   :  { %11840 = vmatprep.subr.bf16.mxu1 %v12758_v56  ;;  %v12777_v56 = vld [vmem:[%s16507_s21 + $0x51c] ss:$28 sps:$4 sm:$0xff]  }
 0x373   :  { %1898 = vmatpush1.bf16.msra.mxu0 %v12695_v50  ;;  %v12765_v50 = vld [vmem:[%s16507_s21 + $0x4a8] ss:$28 sps:$4 sm:$0xff]  }
 0x374   :  { %1899 = vmatprep.subr.bf16.mxu0 %v12703_v53  ;;  %11841 = vmatpush3.bf16.msra.mxu1 %v12759_v58  ;;  %v12806_v53 = vld [vmem:[%s16509_s4 + $0x60] ss:$16 sps:$4 sm:$0xff]   ;;  %v12820_v58 = vld [vmem:[%s16509_s4 + $0xa4] ss:$16 sps:$4 sm:$0xff]  }
 0x375   :  { %11842 = vmatprep.subr.bf16.mxu1 %v12763_v59  ;;  %v12793_v59 = vld [vmem:[%s16509_s4 + $0xc] ss:$16 sps:$4 sm:$0xff]  }
 0x377   :  { %1900 = vmatpush1.bf16.msra.mxu0 %v12701_v54  ;;  %v12770_v54 = vld [vmem:[%s16507_s21 + $0x4e0] ss:$28 sps:$4 sm:$0xff]  }
 0x378   :  { %1901 = vmatprep.subr.bf16.mxu0 %v12709_v57  ;;  %11843 = vmatpush3.bf16.msra.mxu1 %v12764_v61  ;;  %v12812_v57 = vld [vmem:[%s16509_s4 + $0x80] ss:$16 sps:$4 sm:$0xff]   ;;  %v12791_v61 = vld [vmem:[%s16509_s4 + $0x8] ss:$16 sps:$4 sm:$0xff]  }
 0x379   :  { %11844 = vmatprep.subr.bf16.mxu1 %v12768_v0  ;;  %v12799_v0 = vld [vmem:[%s16509_s4 + $0x2c] ss:$16 sps:$4 sm:$0xff]  }
 0x37b   :  { %1902 = vmatpush1.bf16.msra.mxu0 %v12707_v35  ;;  %v12775_v35 = vld [vmem:[%s16507_s21 + $0x518] ss:$28 sps:$4 sm:$0xff]  }
 0x37c   :  { %1903 = vmatprep.subr.bf16.mxu0 %v12715_v60  ;;  %11845 = vmatpush3.bf16.msra.mxu1 %v12769_v2  ;;  %v12818_v60 = vld [vmem:[%s16509_s4 + $0xa0] ss:$16 sps:$4 sm:$0xff]   ;;  %v12797_v2 = vld [vmem:[%s16509_s4 + $0x28] ss:$16 sps:$4 sm:$0xff]  }
 0x37d   :  { %11846 = vmatprep.subr.bf16.mxu1 %v12773_v4  ;;  %v12805_v4 = vld [vmem:[%s16509_s4 + $0x4c] ss:$16 sps:$4 sm:$0xff]  }
 0x37f   :  { %1904 = vmatpush1.bf16.msra.mxu0 %v12713_v63  ;;  %v12826_v63 = vld [vmem:[%s16509_s4 + $0xc4] ss:$16 sps:$4 sm:$0xff]  }
 0x380   :  { %1905 = vmatprep.subr.bf16.mxu0 %v12718_v1  ;;  %11847 = vmatpush3.bf16.msra.mxu1 %v12774_v6  ;;  %v12824_v1 = vld [vmem:[%s16509_s4 + $0xc0] ss:$16 sps:$4 sm:$0xff]   ;;  %v12803_v6 = vld [vmem:[%s16509_s4 + $0x48] ss:$16 sps:$4 sm:$0xff]  }
 0x381   :  { %11848 = vmatprep.subr.bf16.mxu1 %v12778_v9  ;;  %v12836_v9 = vld [vmem:[%s16509_s4 + $0x100] ss:$16 sps:$4 sm:$0xff]  }
 0x383   :  { %1906 = vmatpush1.bf16.msra.mxu0 %v12716_v3  ;;  %v12832_v3 = vld [vmem:[%s16509_s4 + $0xe4] ss:$16 sps:$4 sm:$0xff]  }
 0x384   :  { %1907 = vmatprep.subr.bf16.mxu0 %v12721_v5  ;;  %11849 = vmatpush3.bf16.msra.mxu1 %v12779_v11  ;;  %v12830_v5 = vld [vmem:[%s16509_s4 + $0xe0] ss:$16 sps:$4 sm:$0xff]   ;;  %v12844_v11 = vld [vmem:[%s16509_s4 + $0x124] ss:$16 sps:$4 sm:$0xff]  }
 0x385   :  { %12353 = vmatprep.subr.bf16.mxu1 %v14809_v16 }
 0x387   :  { %1908 = vmatpush1.bf16.msra.mxu0 %v12719_v8  ;;  %2004 = vmatmul.mubr.bf16.vlgmr.msra.gmra.mrb[4].mxu1 %v15331_v62  ;;  %v12838_v8 = vld [vmem:[%s16509_s4 + $0x104] ss:$16 sps:$4 sm:$0xff]  }
 0x388   :  { %1909 = vmatprep.subr.bf16.mxu0 %v12724_v10  ;;  %12354 = vmatpush3.bf16.msra.mxu1 %v12780_v14  ;;  %v12809_v10 = vld [vmem:[%s16509_s4 + $0x68] ss:$16 sps:$4 sm:$0xff]  }
 0x389   :  { %12369 = vmatprep.mubr.msk.bf16.mxu1 %vm14810_vm0, %v14809_v16  ;;  %12355 = vmatprep.subr.bf16.mxu1 %v14809_v16  ;;  %v12815_v14 = vld [vmem:[%s16509_s4 + $0x88] ss:$16 sps:$4 sm:$0xff]  }
 0x38b   :  { %1910 = vmatpush1.bf16.msra.mxu0 %v12722_v12  ;;  %v12817_v12 = vld [vmem:[%s16509_s4 + $0x8c] ss:$16 sps:$4 sm:$0xff]  }
 0x38c   :  { %1911 = vmatprep.subr.bf16.mxu0 %v12727_v13  ;;  %12356 = vmatpush3.bf16.msra.mxu1 %v12781_v18  ;;  %v12842_v13 = vld [vmem:[%s16509_s4 + $0x120] ss:$16 sps:$4 sm:$0xff]  }
 0x38d   :  { %12357 = vmatprep.subr.bf16.mxu1 %v14809_v16  ;;  %v12848_v18 = vld [vmem:[%s16509_s4 + $0x140] ss:$16 sps:$4 sm:$0xff]  }
 0x38f   :  { %1912 = vmatpush1.bf16.msra.mxu0 %v12725_v15  ;;  %v12850_v15 = vld [vmem:[%s16509_s4 + $0x144] ss:$16 sps:$4 sm:$0xff]  }
 0x390   :  { %1913 = vmatprep.subr.bf16.mxu0 %v12730_v17  ;;  %12358 = vmatpush3.bf16.msra.mxu1 %v12782_v21  ;;  %v12823_v17 = vld [vmem:[%s16509_s4 + $0xac] ss:$16 sps:$4 sm:$0xff]  }
 0x391   :  { %12359 = vmatprep.subr.bf16.mxu1 %v14809_v16  ;;  %v12829_v21 = vld [vmem:[%s16509_s4 + $0xcc] ss:$16 sps:$4 sm:$0xff]  }
 0x393   :  { %1914 = vmatpush1.bf16.msra.mxu0 %v12728_v19  ;;  %v12821_v19 = vld [vmem:[%s16509_s4 + $0xa8] ss:$16 sps:$4 sm:$0xff]  }
 0x394   :  { %1915 = vmatprep.subr.bf16.mxu0 %v12733_v20  ;;  %12360 = vmatpush3.bf16.msra.mxu1 %v12783_v24  ;;  %v12856_v20 = vld [vmem:[%s16509_s4 + $0x164] ss:$16 sps:$4 sm:$0xff]  }
 0x395   :  { %12361 = vmatprep.subr.bf16.mxu1 %v14809_v16  ;;  %v12862_v24 = vld [vmem:[%s16509_s4 + $0x184] ss:$16 sps:$4 sm:$0xff]  }
 0x397   :  { %1916 = vmatpush1.bf16.msra.mxu0 %v12731_v22  ;;  %v12854_v22 = vld [vmem:[%s16509_s4 + $0x160] ss:$16 sps:$4 sm:$0xff]  }
 0x398   :  { %1917 = vmatprep.subr.bf16.mxu0 %v12736_v23  ;;  %12362 = vmatpush3.bf16.msra.mxu1 %v12784_v27  ;;  %v12827_v23 = vld [vmem:[%s16509_s4 + $0xc8] ss:$16 sps:$4 sm:$0xff]  }
 0x399   :  { %12363 = vmatprep.subr.bf16.mxu1 %v14809_v16  ;;  %v12833_v27 = vld [vmem:[%s16509_s4 + $0xe8] ss:$16 sps:$4 sm:$0xff]  }
 0x39b   :  { %1918 = vmatpush1.bf16.msra.mxu0 %v12734_v25  ;;  %v12835_v25 = vld [vmem:[%s16509_s4 + $0xec] ss:$16 sps:$4 sm:$0xff]  }
 0x39c   :  { %1919 = vmatprep.subr.bf16.mxu0 %v12739_v26  ;;  %12364 = vmatpush3.bf16.msra.mxu1 %v12785_v33  ;;  %v12860_v26 = vld [vmem:[%s16509_s4 + $0x180] ss:$16 sps:$4 sm:$0xff]   ;;  %v12874_v33 = vld [vmem:[%s16509_s4 + $0x1c4] ss:$16 sps:$4 sm:$0xff]  }
 0x39d   :  { %12365 = vmatprep.subr.bf16.mxu1 %v14809_v16 }
 0x39f   :  { %1920 = vmatpush1.bf16.msra.mxu0 %v12737_v28  ;;  %v12868_v28 = vld [vmem:[%s16509_s4 + $0x1a4] ss:$16 sps:$4 sm:$0xff]  }
 0x3a0   :  { %1930 = vmatprep.subr.bf16.mxu0 %v12742_v29  ;;  %12366 = vmatpush3.bf16.msra.mxu1 %v12786_v34  ;;  %v12841_v29 = vld [vmem:[%s16509_s4 + $0x10c] ss:$16 sps:$4 sm:$0xff]  }
 0x3a1   :  { %12367 = vmatprep.subr.bf16.mxu1 %v14809_v16  ;;  %v12847_v34 = vld [vmem:[%s16509_s4 + $0x12c] ss:$16 sps:$4 sm:$0xff]  }
 0x3a2   :  { %1922 = vmatmul.mubr.bf16.vlgmr.msra.gmra.mrb[4].mxu0 %v15331_v62  ;;  %v12788_v62 = vld [vmem:[%s16509_s4] ss:$16 sps:$4 sm:$0xff]  }
 0x3a3   :  { %1931 = vmatpush1.bf16.msra.mxu0 %v12740_v30  ;;  %1962 = vmatprep.mubr.bf16.mxu0 %v14808_v7  ;;  %v12866_v30 = vld [vmem:[%s16509_s4 + $0x1a0] ss:$16 sps:$4 sm:$0xff]  }
 0x3a4   :  { %1932 = vmatprep.subr.bf16.mxu0 %v12747_v32  ;;  %12368 = vmatpush3.bf16.msra.mxu1 %v12787_v38  ;;  %v12839_v32 = vld [vmem:[%s16509_s4 + $0x108] ss:$16 sps:$4 sm:$0xff]   ;;  %v12880_v38 = vld [vmem:[%s16509_s4 + $0x1e4] ss:$16 sps:$4 sm:$0xff]  }
 0x3a5   :  { %3431 = vmatprep.subr.bf16.mxu1 %v12790_v40  ;;  %v12878_v40 = vld [vmem:[%s16509_s4 + $0x1e0] ss:$16 sps:$4 sm:$0xff]  }
 0x3a7   :  { %1933 = vmatpush1.bf16.msra.mxu0 %v12745_v36  ;;  %12370 = vmatmul.mubr.bf16.vlgmr.msra.gmra.mrb[8].mxu1 %v15369_v31  ;;  %v12872_v36 = vld [vmem:[%s16509_s4 + $0x1c0] ss:$16 sps:$4 sm:$0xff]  }
 0x3a8   :  { %1934 = vmatprep.subr.bf16.mxu0 %v12752_v37  ;;  %3432 = vmatpush1.bf16.msra.mxu1 %v12788_v62  ;;  %v12845_v37 = vld [vmem:[%s16509_s4 + $0x128] ss:$16 sps:$4 sm:$0xff]   ;;  %v12886_v62 = vld [vmem:[%s16509_s4 + $0x204] ss:$16 sps:$4 sm:$0xff]  }
 0x3a9   :  { %3433 = vmatprep.subr.bf16.mxu1 %v12796_v43  ;;  %v12857_v43 = vld [vmem:[%s16509_s4 + $0x168] ss:$16 sps:$4 sm:$0xff]  }
 0x3ab   :  { %1935 = vmatpush1.bf16.msra.mxu0 %v12750_v39  ;;  %v12853_v39 = vld [vmem:[%s16509_s4 + $0x14c] ss:$16 sps:$4 sm:$0xff]  }
 0x3ac   :  { %1936 = vmatprep.subr.bf16.mxu0 %v12757_v41  ;;  %3434 = vmatpush1.bf16.msra.mxu1 %v12794_v45  ;;  %v12851_v41 = vld [vmem:[%s16509_s4 + $0x148] ss:$16 sps:$4 sm:$0xff]  }
 0x3ad   :  { %3435 = vmatprep.subr.bf16.mxu1 %v12802_v47  ;;  %v12863_v45 = vld [vmem:[%s16509_s4 + $0x188] ss:$16 sps:$4 sm:$0xff]  }
 0x3ae   :  { %v12869_v47 = vld [vmem:[%s16509_s4 + $0x1a8] ss:$16 sps:$4 sm:$0xff]  }
 0x3af   :  { %1937 = vmatpush1.bf16.msra.mxu0 %v12755_v42  ;;  %v12859_v42 = vld [vmem:[%s16509_s4 + $0x16c] ss:$16 sps:$4 sm:$0xff]  }
 0x3b0   :  { %1938 = vmatprep.subr.bf16.mxu0 %v12762_v44  ;;  %3436 = vmatpush1.bf16.msra.mxu1 %v12800_v49  ;;  %v12865_v44 = vld [vmem:[%s16509_s4 + $0x18c] ss:$16 sps:$4 sm:$0xff]   ;;  %v12875_v49 = vld [vmem:[%s16509_s4 + $0x1c8] ss:$16 sps:$4 sm:$0xff]  }
 0x3b1   :  { %3437 = vmatprep.subr.bf16.mxu1 %v12808_v51  ;;  %v12881_v51 = vld [vmem:[%s16509_s4 + $0x1e8] ss:$16 sps:$4 sm:$0xff]  }
 0x3b3   :  { %1939 = vmatpush1.bf16.msra.mxu0 %v12760_v46  ;;  %v12871_v46 = vld [vmem:[%s16509_s4 + $0x1ac] ss:$16 sps:$4 sm:$0xff]  }
 0x3b4   :  { %1940 = vmatprep.subr.bf16.mxu0 %v12767_v48  ;;  %3438 = vmatpush1.bf16.msra.mxu1 %v12806_v53  ;;  %v12877_v48 = vld [vmem:[%s16509_s4 + $0x1cc] ss:$16 sps:$4 sm:$0xff]   ;;  %v815_v53 = vlaneseq }
 0x3b5   :  { %3439 = vmatprep.subr.bf16.mxu1 %v12814_v55 }
 0x3b7   :  { %1941 = vmatpush1.bf16.msra.mxu0 %v12765_v50  ;;  %v12883_v50 = vld [vmem:[%s16509_s4 + $0x1ec] ss:$16 sps:$4 sm:$0xff]  }
 0x3b8   :  { %1942 = vmatprep.subr.bf16.mxu0 %v12772_v52  ;;  %3440 = vmatpush1.bf16.msra.mxu1 %v12812_v57  ;;  %v12889_v52 = vld [vmem:[%s16509_s4 + $0x20c] ss:$16 sps:$4 sm:$0xff]  }
 0x3b9   :  { %3441 = vmatprep.subr.bf16.mxu1 %v12820_v58 }
 0x3bb   :  { %1943 = vmatpush1.bf16.msra.mxu0 %v12770_v54  ;;  %v15534_v54 = vshrl.u32 %v815_v53, 7 }
 0x3bc   :  { %1944 = vmatprep.subr.bf16.mxu0 %v12777_v56  ;;  %3442 = vmatpush1.bf16.msra.mxu1 %v12818_v60  ;;  %v15539_v56 = vld [vmem:[#allocation2] sm:$0xff] }
 0x3bd   :  { %3443 = vmatprep.subr.bf16.mxu1 %v12826_v63  ;;  %v15537_v55 = vsub.s32 0, %v15534_v54  ;;  %v15542_v57 = vsub.s32 1, %v15534_v54  ;;  %vm10674_vm4 = vcmp.lt.s32.totalorder %v15534_v54, 2 }
 0x3bf   :  { %1945 = vmatpush1.bf16.msra.mxu0 %v12775_v35  ;;  %v818_v35 = vrot.slane %v15539_v56, %v15537_v55  ;;  %v822_v58 = vrot.slane %v15539_v56, %v15542_v57 }
 0x3c0   :  { %3595 = vmatprep.subr.bf16.mxu0 %v12793_v59  ;;  %3444 = vmatpush1.bf16.msra.mxu1 %v12824_v1 }
 0x3c1   :  { %3445 = vmatprep.subr.bf16.mxu1 %v12832_v3  ;;  %v15549_v3 = vsub.s32 3, %v15534_v54 }
 0x3c2   :  { %1963 = vmatmul.mubr.bf16.vlgmr.msra.gmra.mrb[4].mxu0 %v15369_v31  ;;  %v12811_v31 = vld [vmem:[%s16509_s4 + $0x6c] ss:$16 sps:$4 sm:$0xff]  }
 0x3c3   :  { %3596 = vmatpush1.bf16.msra.mxu0 %v12791_v61 }
 0x3c4   :  { %3597 = vmatprep.subr.bf16.mxu0 %v12799_v0  ;;  %3446 = vmatpush1.bf16.msra.mxu1 %v12830_v5  ;;  %v12884_v5 = vld [vmem:[%s16509_s4 + $0x200] ss:$16 sps:$4 sm:$0xff]  }
 0x3c5   :  { %3447 = vmatprep.subr.bf16.mxu1 %v12838_v8 }
 0x3c7   :  { %3598 = vmatpush1.bf16.msra.mxu0 %v12797_v2 }
 0x3c8   :  { %3599 = vmatprep.subr.bf16.mxu0 %v12805_v4  ;;  %3448 = vmatpush1.bf16.msra.mxu1 %v12836_v9  ;;  %v12892_v9 = vld [vmem:[%s16509_s4 + $0x224] ss:$16 sps:$4 sm:$0xff]  }
 0x3c9   :  { %3449 = vmatprep.subr.bf16.mxu1 %v12844_v11  ;;  %v830_v11 = vrot.slane %v15539_v56, %v15549_v3 }
 0x3cb   :  { %3600 = vmatpush1.bf16.msra.mxu0 %v12803_v6  ;;  %v12887_v6 = vld [vmem:[%s16509_s4 + $0x208] ss:$16 sps:$4 sm:$0xff]  }
 0x3cc   :  { %3601 = vmatprep.subr.bf16.mxu0 %v12811_v31  ;;  %3450 = vmatpush1.bf16.msra.mxu1 %v12842_v13  ;;  %v12893_v13 = vld [vmem:[%s16509_s4 + $0x228] ss:$16 sps:$4 sm:$0xff]  }
 0x3cd   :  { %3451 = vmatprep.subr.bf16.mxu1 %v12850_v15  ;;  %v12901_v15 = vld [vmem:[%s16509_s4 + $0x24c] ss:$16 sps:$4 sm:$0xff]  }
 0x3cf   :  { %3602 = vmatpush1.bf16.msra.mxu0 %v12809_v10  ;;  %v12895_v10 = vld [vmem:[%s16509_s4 + $0x22c] ss:$16 sps:$4 sm:$0xff]  }
 0x3d0   :  { %3603 = vmatprep.subr.bf16.mxu0 %v12817_v12  ;;  %3452 = vmatpush1.bf16.msra.mxu1 %v12848_v18  ;;  %v12890_v12 = vld [vmem:[%s16509_s4 + $0x220] ss:$16 sps:$4 sm:$0xff]  }
 0x3d1   :  { %3453 = vmatprep.subr.bf16.mxu1 %v12856_v20 }
 0x3d3   :  { %3604 = vmatpush1.bf16.msra.mxu0 %v12815_v14  ;;  %v12898_v14 = vld [vmem:[%s16509_s4 + $0x244] ss:$16 sps:$4 sm:$0xff]  }
 0x3d4   :  { %3605 = vmatprep.subr.bf16.mxu0 %v12823_v17  ;;  %3454 = vmatpush1.bf16.msra.mxu1 %v12854_v22  ;;  %v12899_v22 = vld [vmem:[%s16509_s4 + $0x248] ss:$16 sps:$4 sm:$0xff]  }
 0x3d5   :  { %3455 = vmatprep.subr.bf16.mxu1 %v12862_v24  ;;  %v12904_v24 = vld [vmem:[%s16509_s4 + $0x264] ss:$16 sps:$4 sm:$0xff]  }
 0x3d7   :  { %3606 = vmatpush1.bf16.msra.mxu0 %v12821_v19 }
 0x3d8   :  { %3607 = vmatprep.subr.bf16.mxu0 %v12829_v21  ;;  %3456 = vmatpush1.bf16.msra.mxu1 %v12860_v26  ;;  %v12896_v21 = vld [vmem:[%s16509_s4 + $0x240] ss:$16 sps:$4 sm:$0xff]  }
 0x3d9   :  { %3457 = vmatprep.subr.bf16.mxu1 %v12868_v28  ;;  %v12902_v28 = vld [vmem:[%s16509_s4 + $0x260] ss:$16 sps:$4 sm:$0xff]  }
 0x3db   :  { %3608 = vmatpush1.bf16.msra.mxu0 %v12827_v23 }
 0x3dc   :  { %3609 = vmatprep.subr.bf16.mxu0 %v12835_v25  ;;  %3458 = vmatpush1.bf16.msra.mxu1 %v12866_v30  ;;  %v12907_v25 = vld [vmem:[%s16509_s4 + $0x26c] ss:$16 sps:$4 sm:$0xff]   ;;  %v12910_v30 = vld [vmem:[%s16509_s4 + $0x284] ss:$16 sps:$4 sm:$0xff]  }
 0x3dd   :  { %3459 = vmatprep.subr.bf16.mxu1 %v12874_v33  ;;  %v12908_v33 = vld [vmem:[%s16509_s4 + $0x280] ss:$16 sps:$4 sm:$0xff]  }
 0x3df   :  { %3610 = vmatpush1.bf16.msra.mxu0 %v12833_v27 }
 0x3e0   :  { %3611 = vmatprep.subr.bf16.mxu0 %v12841_v29  ;;  %3460 = vmatpush1.bf16.msra.mxu1 %v12872_v36  ;;  %v12905_v29 = vld [vmem:[%s16509_s4 + $0x268] ss:$16 sps:$4 sm:$0xff]   ;;  %v12916_v36 = vld [vmem:[%s16509_s4 + $0x2a4] ss:$16 sps:$4 sm:$0xff]  }
 0x3e1   :  { %3461 = vmatprep.subr.bf16.mxu1 %v12880_v38  ;;  %v12914_v38 = vld [vmem:[%s16509_s4 + $0x2a0] ss:$16 sps:$4 sm:$0xff]  }
 0x3e3   :  { %3612 = vmatpush1.bf16.msra.mxu0 %v12839_v32  ;;  %v12913_v32 = vld [vmem:[%s16509_s4 + $0x28c] ss:$16 sps:$4 sm:$0xff]  }
 0x3e4   :  { %3613 = vmatprep.subr.bf16.mxu0 %v12847_v34  ;;  %3462 = vmatpush1.bf16.msra.mxu1 %v12878_v40  ;;  %v12911_v34 = vld [vmem:[%s16509_s4 + $0x288] ss:$16 sps:$4 sm:$0xff]   ;;  %v12922_v40 = vld [vmem:[%s16509_s4 + $0x2c4] ss:$16 sps:$4 sm:$0xff]  }
 0x3e5   :  { %3472 = vmatprep.subr.bf16.mxu1 %v12886_v62  ;;  %v12920_v62 = vld [vmem:[%s16509_s4 + $0x2c0] ss:$16 sps:$4 sm:$0xff]  }
 0x3e7   :  { %3614 = vmatpush1.bf16.msra.mxu0 %v12845_v37  ;;  %v12919_v37 = vld [vmem:[%s16509_s4 + $0x2ac] ss:$16 sps:$4 sm:$0xff]  }
 0x3e8   :  { %3615 = vmatprep.subr.bf16.mxu0 %v12853_v39  ;;  %v12917_v39 = vld [vmem:[%s16509_s4 + $0x2a8] ss:$16 sps:$4 sm:$0xff]  }
 0x3eb   :  { %3616 = vmatpush1.bf16.msra.mxu0 %v12851_v41  ;;  %v12925_v41 = vld [vmem:[%s16509_s4 + $0x2cc] ss:$16 sps:$4 sm:$0xff]  }
 0x3ec   :  { %3617 = vmatprep.subr.bf16.mxu0 %v12859_v42  ;;  %v12923_v42 = vld [vmem:[%s16509_s4 + $0x2c8] ss:$16 sps:$4 sm:$0xff]  }
 0x3ef   :  { %3618 = vmatpush1.bf16.msra.mxu0 %v12857_v43  ;;  %v12928_v43 = vld [vmem:[%s16509_s4 + $0x2e4] ss:$16 sps:$4 sm:$0xff]  }
 0x3f0   :  { %3619 = vmatprep.subr.bf16.mxu0 %v12865_v44  ;;  %v12931_v44 = vld [vmem:[%s16509_s4 + $0x2ec] ss:$16 sps:$4 sm:$0xff]  }
 0x3f3   :  { %3620 = vmatpush1.bf16.msra.mxu0 %v12863_v45  ;;  %v12926_v45 = vld [vmem:[%s16509_s4 + $0x2e0] ss:$16 sps:$4 sm:$0xff]  }
 0x3f4   :  { %3621 = vmatprep.subr.bf16.mxu0 %v12871_v46  ;;  %v12929_v46 = vld [vmem:[%s16509_s4 + $0x2e8] ss:$16 sps:$4 sm:$0xff]  }
 0x3f7   :  { %3622 = vmatpush1.bf16.msra.mxu0 %v12869_v47  ;;  %v12934_v47 = vld [vmem:[%s16509_s4 + $0x304] ss:$16 sps:$4 sm:$0xff]  }
 0x3f8   :  { %3623 = vmatprep.subr.bf16.mxu0 %v12877_v48  ;;  %v12937_v48 = vld [vmem:[%s16509_s4 + $0x30c] ss:$16 sps:$4 sm:$0xff]  }
 0x3fb   :  { %3624 = vmatpush1.bf16.msra.mxu0 %v12875_v49  ;;  %v12932_v49 = vld [vmem:[%s16509_s4 + $0x300] ss:$16 sps:$4 sm:$0xff]  }
 0x3fc   :  { %3625 = vmatprep.subr.bf16.mxu0 %v12883_v50  ;;  %v12935_v50 = vld [vmem:[%s16509_s4 + $0x308] ss:$16 sps:$4 sm:$0xff]  }
 0x3ff   :  { %3626 = vmatpush1.bf16.msra.mxu0 %v12881_v51  ;;  %v12940_v51 = vld [vmem:[%s16509_s4 + $0x324] ss:$16 sps:$4 sm:$0xff]  }
 0x400   :  { %3636 = vmatprep.subr.bf16.mxu0 %v12889_v52  ;;  %v12943_v52 = vld [vmem:[%s16509_s4 + $0x32c] ss:$16 sps:$4 sm:$0xff]  }
 0x435   :  { %v1800_v59 = vpop.f32.mrb[0].mxu0 }
 0x436   :  { %v12405_v60 = vadd.f32 %v1800_v59, %v818_v35  ;;  %v1802_v61 = vpop.f32.mrb[1].mxu0  ;;  %v12938_v35 = vld [vmem:[%s16509_s4 + $0x320] ss:$16 sps:$4 sm:$0xff]   ;;  %v12946_v59 = vld [vmem:[%s16509_s4 + $0x344] ss:$16 sps:$4 sm:$0xff]  }
 0x437   :  { %v12406_v63 = vadd.f32 %v1802_v61, %v822_v58  ;;  %v1804_v0 = vpop.f32.mrb[2].mxu0  ;;  %v12941_v58 = vld [vmem:[%s16509_s4 + $0x328] ss:$16 sps:$4 sm:$0xff]  }
 0x438   :  { %v2051_v1 = vmax.f32 %v12405_v60, 0.0  ;;  %v1805_v2 = vpop.f32.mrb[3].mxu0  ;;  %v12949_v60 = vld [vmem:[%s16509_s4 + $0x34c] ss:$16 sps:$4 sm:$0xff]  }
 0x439   :  { %v2052_v4 = vmax.f32 %v12406_v63, 0.0  ;;  %v12944_v2 = vld [vmem:[%s16509_s4 + $0x340] ss:$16 sps:$4 sm:$0xff]  }
 0x43a   :  { %v2058_v31 = vpack.c.bf16 %v2051_v1, %v2051_v1  ;;  %v15561_v17 = vpop.f32.mrb[0].mxu1 }
 0x43b   :  { %v2059_v8 = vpack.c.bf16 %v2052_v4, %v2052_v4  ;;  %v1884_v18 = vpop.f32.mrb[1].mxu1  ;;  %v12947_v4 = vld [vmem:[%s16509_s4 + $0x348] ss:$16 sps:$4 sm:$0xff]  }
 0x43c   :  { %v12408_v19 = vadd.f32 %v1884_v18, %v830_v11  ;;  %v1886_v20 = vpop.f32.mrb[2].mxu1  ;;  %v12961_v11 = vld [vmem:[%s16509_s4 + $0x38c] ss:$16 sps:$4 sm:$0xff]  }
 0x43d   :  { %3463 = vmatprep.mubr.bf16.mxu1 %v2059_v8  ;;  %3627 = vmatprep.mubr.bf16.mxu0 %v2059_v8  ;;  %v1887_v23 = vpop.f32.mrb[3].mxu1  ;;  %v12955_v8 = vld [vmem:[%s16509_s4 + $0x36c] ss:$16 sps:$4 sm:$0xff]   ;;  %v12965_v20 = vld [vmem:[%s16509_s4 + $0x3a8] ss:$16 sps:$4 sm:$0xff]  }
 0x43e   :  { %3464 = vmatmul.mubr.bf16.vlgmr.msra.gmra.mrb[12].mxu1 %v2058_v31  ;;  %3628 = vmatmul.mubr.bf16.vlgmr.msra.gmra.mrb[8].mxu0 %v2058_v31  ;;  %v2054_v26 = vmax.f32 %v12408_v19, 0.0  ;;  %v12950_v31 = vld [vmem:[%s16509_s4 + $0x360] ss:$16 sps:$4 sm:$0xff]   ;;  %v12967_v18 = vld [vmem:[%s16509_s4 + $0x3ac] ss:$16 sps:$4 sm:$0xff]  }
 0x43f   :  { %3473 = vmatpush1.bf16.msra.mxu1 %v12884_v5  ;;  %3637 = vmatpush1.bf16.msra.mxu0 %v12887_v6  ;;  %v12952_v6 = vld [vmem:[%s16509_s4 + $0x364] ss:$16 sps:$4 sm:$0xff]   ;;  %v12962_v19 = vld [vmem:[%s16509_s4 + $0x3a0] ss:$16 sps:$4 sm:$0xff]   ;;  %v12973_v23 = vld [vmem:[%s16509_s4 + $0x3cc] ss:$16 sps:$4 sm:$0xff]  }
 0x440   :  { %3474 = vmatprep.subr.bf16.mxu1 %v12892_v9  ;;  %3638 = vmatprep.subr.bf16.mxu0 %v12895_v10  ;;  %v2061_v27 = vpack.c.bf16 %v2054_v26, %v2054_v26  ;;  %v12953_v9 = vld [vmem:[%s16509_s4 + $0x368] ss:$16 sps:$4 sm:$0xff]   ;;  %v12958_v10 = vld [vmem:[%s16509_s4 + $0x384] ss:$16 sps:$4 sm:$0xff]  }
 0x441   :  { %v12976_v26 = vld [vmem:[%s16509_s4 + $0x3e4] ss:$16 sps:$4 sm:$0xff]  }
 0x442   :  { %3504 = vmatprep.mubr.bf16.mxu1 %v2061_v27  ;;  %3668 = vmatprep.mubr.bf16.mxu0 %v2061_v27  ;;  %v12979_v27 = vld [vmem:[%s16509_s4 + $0x3ec] ss:$16 sps:$4 sm:$0xff]  }
 0x443   :  { %3475 = vmatpush1.bf16.msra.mxu1 %v12890_v12  ;;  %3639 = vmatpush1.bf16.msra.mxu0 %v12893_v13  ;;  %v12956_v12 = vld [vmem:[%s16509_s4 + $0x380] ss:$16 sps:$4 sm:$0xff]   ;;  %v12959_v13 = vld [vmem:[%s16509_s4 + $0x388] ss:$16 sps:$4 sm:$0xff]  }
 0x444   :  { %3476 = vmatprep.subr.bf16.mxu1 %v12898_v14  ;;  %3640 = vmatprep.subr.bf16.mxu0 %v12901_v15  ;;  %v15608_v14 = vsub.s32 2, %v15534_v54  ;;  %v12964_v15 = vld [vmem:[%s16509_s4 + $0x3a4] ss:$16 sps:$4 sm:$0xff]  }
 0x447   :  { %3477 = vmatpush1.bf16.msra.mxu1 %v12896_v21  ;;  %3641 = vmatpush1.bf16.msra.mxu0 %v12899_v22  ;;  %v826_v21 = vrot.slane %v15539_v56, %v15608_v14  ;;  %v12970_v22 = vld [vmem:[%s16509_s4 + $0x3c4] ss:$16 sps:$4 sm:$0xff]  }
 0x448   :  { %3478 = vmatprep.subr.bf16.mxu1 %v12904_v24  ;;  %3642 = vmatprep.subr.bf16.mxu0 %v12907_v25  ;;  %v12968_v24 = vld [vmem:[%s16509_s4 + $0x3c0] ss:$16 sps:$4 sm:$0xff]   ;;  %v12971_v25 = vld [vmem:[%s16509_s4 + $0x3c8] ss:$16 sps:$4 sm:$0xff]  }
 0x44b   :  { %3479 = vmatpush1.bf16.msra.mxu1 %v12902_v28  ;;  %3643 = vmatpush1.bf16.msra.mxu0 %v12905_v29  ;;  %v12407_v28 = vadd.f32 %v15561_v17, %v826_v21  ;;  %v12974_v29 = vld [vmem:[%s16509_s4 + $0x3e0] ss:$16 sps:$4 sm:$0xff]   ;;  %v12983_v17 = vld [vmem:[%s16509_s4 + $0x408] ss:$16 sps:$4 sm:$0xff]  }
 0x44c   :  { %3480 = vmatprep.subr.bf16.mxu1 %v12910_v30  ;;  %3644 = vmatprep.subr.bf16.mxu0 %v12913_v32  ;;  %v12977_v30 = vld [vmem:[%s16509_s4 + $0x3e8] ss:$16 sps:$4 sm:$0xff]   ;;  %v841_v32 = vsub.s32 6, %v15534_v54 }
 0x44f   :  { %3481 = vmatpush1.bf16.msra.mxu1 %v12908_v33  ;;  %3645 = vmatpush1.bf16.msra.mxu0 %v12911_v34  ;;  %v12982_v33 = vld [vmem:[%s16509_s4 + $0x404] ss:$16 sps:$4 sm:$0xff]   ;;  %v12985_v34 = vld [vmem:[%s16509_s4 + $0x40c] ss:$16 sps:$4 sm:$0xff]  }
 0x450   :  { %3482 = vmatprep.subr.bf16.mxu1 %v12916_v36  ;;  %3646 = vmatprep.subr.bf16.mxu0 %v12919_v37  ;;  %v2053_v36 = vmax.f32 %v12407_v28, 0.0  ;;  %v12980_v37 = vld [vmem:[%s16509_s4 + $0x400] ss:$16 sps:$4 sm:$0xff]  }
 0x451   :  { %v13028_v28 = vld [vmem:[%s16509_s4 + $0x500] ss:$16 sps:$4 sm:$0xff]  }
 0x453   :  { %3483 = vmatpush1.bf16.msra.mxu1 %v12914_v38  ;;  %3647 = vmatpush1.bf16.msra.mxu0 %v12917_v39  ;;  %v842_v38 = vrot.slane %v15539_v56, %v841_v32  ;;  %v12988_v39 = vld [vmem:[%s16509_s4 + $0x424] ss:$16 sps:$4 sm:$0xff]   ;;  %v13039_v32 = vld [vmem:[%s16509_s4 + $0x52c] ss:$16 sps:$4 sm:$0xff]  }
 0x454   :  { %3484 = vmatprep.subr.bf16.mxu1 %v12922_v40  ;;  %3648 = vmatprep.subr.bf16.mxu0 %v12925_v41  ;;  %v12991_v40 = vld [vmem:[%s16509_s4 + $0x42c] ss:$16 sps:$4 sm:$0xff]   ;;  %v2060_v41 = vpack.c.bf16 %v2053_v36, %v2053_v36  ;;  %v13037_v36 = vld [vmem:[%s16509_s4 + $0x528] ss:$16 sps:$4 sm:$0xff]  }
 0x457   :  { %3485 = vmatpush1.bf16.msra.mxu1 %v12920_v62  ;;  %3649 = vmatpush1.bf16.msra.mxu0 %v12923_v42  ;;  %v12986_v62 = vld [vmem:[%s16509_s4 + $0x420] ss:$16 sps:$4 sm:$0xff]   ;;  %v12989_v42 = vld [vmem:[%s16509_s4 + $0x428] ss:$16 sps:$4 sm:$0xff]  }
 0x458   :  { %3486 = vmatprep.subr.bf16.mxu1 %v12928_v43  ;;  %3650 = vmatprep.subr.bf16.mxu0 %v12931_v44  ;;  %v12994_v44 = vld [vmem:[%s16509_s4 + $0x444] ss:$16 sps:$4 sm:$0xff]  }
 0x45a   :  { %v11850_v61 = vpop.f32.mrb[4].mxu1 }
 0x45b   :  { %3487 = vmatpush1.bf16.msra.mxu1 %v12926_v45  ;;  %3651 = vmatpush1.bf16.msra.mxu0 %v12929_v46  ;;  %v11851_v63 = vpop.f32.mrb[5].mxu1  ;;  %v12997_v45 = vld [vmem:[%s16509_s4 + $0x44c] ss:$16 sps:$4 sm:$0xff]  }
 0x45c   :  { %3488 = vmatprep.subr.bf16.mxu1 %v12934_v47  ;;  %3652 = vmatprep.subr.bf16.mxu0 %v12937_v48  ;;  %v15595_v0 = vadd.f32 %v11851_v63, %v11850_v61  ;;  %v11853_v1 = vpop.f32.mrb[6].mxu1  ;;  %v12992_v47 = vld [vmem:[%s16509_s4 + $0x440] ss:$16 sps:$4 sm:$0xff]   ;;  %v12995_v48 = vld [vmem:[%s16509_s4 + $0x448] ss:$16 sps:$4 sm:$0xff]  }
 0x45d   :  { %v11854_v5 = vpop.f32.mrb[7].mxu1  ;;  %v13001_v61 = vld [vmem:[%s16509_s4 + $0x468] ss:$16 sps:$4 sm:$0xff]   ;;  %v13006_v63 = vld [vmem:[%s16509_s4 + $0x484] ss:$16 sps:$4 sm:$0xff]  }
 0x45e   :  { %v2006_v43 = vadd.f32 %v15595_v0, %v842_v38  ;;  %v13009_v0 = vld [vmem:[%s16509_s4 + $0x48c] ss:$16 sps:$4 sm:$0xff]   ;;  %v13004_v1 = vld [vmem:[%s16509_s4 + $0x480] ss:$16 sps:$4 sm:$0xff]  }
 0x45f   :  { %3489 = vmatpush1.bf16.msra.mxu1 %v12932_v49  ;;  %3653 = vmatpush1.bf16.msra.mxu0 %v12935_v50  ;;  %v13015_v5 = vld [vmem:[%s16509_s4 + $0x4ac] ss:$16 sps:$4 sm:$0xff]   ;;  %v13040_v38 = vld [vmem:[%s16509_s4 + $0x540] ss:$16 sps:$4 sm:$0xff]  }
 0x460   :  { %3490 = vmatprep.subr.bf16.mxu1 %v12940_v51  ;;  %3654 = vmatprep.subr.bf16.mxu0 %v12943_v52  ;;  %v13000_v51 = vld [vmem:[%s16509_s4 + $0x464] ss:$16 sps:$4 sm:$0xff]   ;;  %v13003_v52 = vld [vmem:[%s16509_s4 + $0x46c] ss:$16 sps:$4 sm:$0xff]  }
 0x463   :  { %3491 = vmatpush1.bf16.msra.mxu1 %v12938_v35  ;;  %3655 = vmatpush1.bf16.msra.mxu0 %v12941_v58  ;;  %v15645_v58 = vsub.s32 5, %v15534_v54 }
 0x464   :  { %3492 = vmatprep.subr.bf16.mxu1 %v12946_v59  ;;  %3656 = vmatprep.subr.bf16.mxu0 %v12949_v60  ;;  %v12998_v60 = vld [vmem:[%s16509_s4 + $0x460] ss:$16 sps:$4 sm:$0xff]  }
 0x467   :  { %3493 = vmatpush1.bf16.msra.mxu1 %v12944_v2  ;;  %3657 = vmatpush1.bf16.msra.mxu0 %v12947_v4  ;;  %v13007_v2 = vld [vmem:[%s16509_s4 + $0x488] ss:$16 sps:$4 sm:$0xff]   ;;  %v13012_v4 = vld [vmem:[%s16509_s4 + $0x4a4] ss:$16 sps:$4 sm:$0xff]  }
 0x468   :  { %3494 = vmatprep.subr.bf16.mxu1 %v12952_v6  ;;  %3658 = vmatprep.subr.bf16.mxu0 %v12955_v8  ;;  %v13010_v6 = vld [vmem:[%s16509_s4 + $0x4a0] ss:$16 sps:$4 sm:$0xff]   ;;  %v13013_v8 = vld [vmem:[%s16509_s4 + $0x4a8] ss:$16 sps:$4 sm:$0xff]  }
 0x46b   :  { %3495 = vmatpush1.bf16.msra.mxu1 %v12950_v31  ;;  %3659 = vmatpush1.bf16.msra.mxu0 %v12953_v9  ;;  %v13018_v31 = vld [vmem:[%s16509_s4 + $0x4c4] ss:$16 sps:$4 sm:$0xff]   ;;  %v13021_v9 = vld [vmem:[%s16509_s4 + $0x4cc] ss:$16 sps:$4 sm:$0xff]  }
 0x46c   :  { %3496 = vmatprep.subr.bf16.mxu1 %v12958_v10  ;;  %3660 = vmatprep.subr.bf16.mxu0 %v12961_v11  ;;  %v13016_v10 = vld [vmem:[%s16509_s4 + $0x4c0] ss:$16 sps:$4 sm:$0xff]   ;;  %v13019_v11 = vld [vmem:[%s16509_s4 + $0x4c8] ss:$16 sps:$4 sm:$0xff]  }
 0x46f   :  { %3497 = vmatpush1.bf16.msra.mxu1 %v12956_v12  ;;  %3661 = vmatpush1.bf16.msra.mxu0 %v12959_v13  ;;  %v13024_v12 = vld [vmem:[%s16509_s4 + $0x4e4] ss:$16 sps:$4 sm:$0xff]   ;;  %v13027_v13 = vld [vmem:[%s16509_s4 + $0x4ec] ss:$16 sps:$4 sm:$0xff]  }
 0x470   :  { %3498 = vmatprep.subr.bf16.mxu1 %v12964_v15  ;;  %3662 = vmatprep.subr.bf16.mxu0 %v12967_v18  ;;  %v838_v15 = vrot.slane %v15539_v56, %v15645_v58 }
 0x473   :  { %3499 = vmatpush1.bf16.msra.mxu1 %v12962_v19  ;;  %3663 = vmatpush1.bf16.msra.mxu0 %v12965_v20  ;;  %v13022_v19 = vld [vmem:[%s16509_s4 + $0x4e0] ss:$16 sps:$4 sm:$0xff]   ;;  %v13025_v20 = vld [vmem:[%s16509_s4 + $0x4e8] ss:$16 sps:$4 sm:$0xff]  }
 0x474   :  { %3500 = vmatprep.subr.bf16.mxu1 %v12970_v22  ;;  %3664 = vmatprep.subr.bf16.mxu0 %v12973_v23  ;;  %v13030_v22 = vld [vmem:[%s16509_s4 + $0x504] ss:$16 sps:$4 sm:$0xff]   ;;  %v13033_v23 = vld [vmem:[%s16509_s4 + $0x50c] ss:$16 sps:$4 sm:$0xff]  }
 0x477   :  { %3501 = vmatpush1.bf16.msra.mxu1 %v12968_v24  ;;  %3665 = vmatpush1.bf16.msra.mxu0 %v12971_v25 }
 0x478   :  { %3502 = vmatprep.subr.bf16.mxu1 %v12976_v26  ;;  %3666 = vmatprep.subr.bf16.mxu0 %v12979_v27  ;;  %v15672_v26 = vsub.s32 4, %v15534_v54 }
 0x47a   :  { %v2045_v46 = vpop.f32.mrb[8].mxu1 }
 0x47b   :  { %3503 = vmatpush1.bf16.msra.mxu1 %v12974_v29  ;;  %3667 = vmatpush1.bf16.msra.mxu0 %v12977_v30  ;;  %v15640_v49 = vadd.f32 %v2045_v46, %v2006_v43  ;;  %v12371_v50 = vpop.f32.mrb[9].mxu1  ;;  %v13031_v29 = vld [vmem:[%s16509_s4 + $0x508] ss:$16 sps:$4 sm:$0xff]   ;;  %v13036_v30 = vld [vmem:[%s16509_s4 + $0x524] ss:$16 sps:$4 sm:$0xff]  }
 0x47c   :  { %3513 = vmatprep.subr.bf16.mxu1 %v12982_v33  ;;  %3677 = vmatprep.subr.bf16.mxu0 %v12985_v34  ;;  %v2048_v35 = vpop.f32.mrb[10].mxu1  ;;  %v13034_v34 = vld [vmem:[%s16509_s4 + $0x520] ss:$16 sps:$4 sm:$0xff]   ;;  %v13054_v43 = vld [vmem:[%s16509_s4 + $0x584] ss:$16 sps:$4 sm:$0xff]  }
 0x47d   :  { %v12372_v59 = vpop.f32.mrb[11].mxu1  ;;  %v13055_v46 = vld [vmem:[%s16509_s4 + $0x588] ss:$16 sps:$4 sm:$0xff]   ;;  %v13058_v50 = vld [vmem:[%s16509_s4 + $0x5a0] ss:$16 sps:$4 sm:$0xff]  }
 0x47e   :  { %3505 = vmatmul.mubr.bf16.vlgmr.msra.gmra.mrb[12].mxu1 %v2060_v41  ;;  %3669 = vmatmul.mubr.bf16.vlgmr.msra.gmra.mrb[8].mxu0 %v2060_v41  ;;  %v13051_v41 = vld [vmem:[%s16509_s4 + $0x56c] ss:$16 sps:$4 sm:$0xff]   ;;  %v13934_v59 = vld [vmem:[#allocation2] sm:$0xff] }
 0x47f   :  { %3514 = vmatpush1.bf16.msra.mxu1 %v12980_v37  ;;  %3678 = vmatpush1.bf16.msra.mxu0 %v12983_v17  ;;  %v13042_v37 = vld [vmem:[%s16509_s4 + $0x544] ss:$16 sps:$4 sm:$0xff]   ;;  %v13045_v17 = vld [vmem:[%s16509_s4 + $0x54c] ss:$16 sps:$4 sm:$0xff]  }
 0x480   :  { %3515 = vmatprep.subr.bf16.mxu1 %v12988_v39  ;;  %3679 = vmatprep.subr.bf16.mxu0 %v12991_v40  ;;  %v13043_v39 = vld [vmem:[%s16509_s4 + $0x548] ss:$16 sps:$4 sm:$0xff]   ;;  %v13048_v40 = vld [vmem:[%s16509_s4 + $0x564] ss:$16 sps:$4 sm:$0xff]   ;;  %v13069_v35 = vld [vmem:[%s16509_s4 + $0x5cc] ss:$16 sps:$4 sm:$0xff]  }
 0x483   :  { %3516 = vmatpush1.bf16.msra.mxu1 %v12986_v62  ;;  %3680 = vmatpush1.bf16.msra.mxu0 %v12989_v42  ;;  %v13046_v62 = vld [vmem:[%s16509_s4 + $0x560] ss:$16 sps:$4 sm:$0xff]   ;;  %v13049_v42 = vld [vmem:[%s16509_s4 + $0x568] ss:$16 sps:$4 sm:$0xff]  }
 0x484   :  { %3517 = vmatprep.subr.bf16.mxu1 %v12994_v44  ;;  %3681 = vmatprep.subr.bf16.mxu0 %v12997_v45  ;;  %v13057_v44 = vld [vmem:[%s16509_s4 + $0x58c] ss:$16 sps:$4 sm:$0xff]   ;;  %v13052_v45 = vld [vmem:[%s16509_s4 + $0x580] ss:$16 sps:$4 sm:$0xff]  }
 0x487   :  { %3518 = vmatpush1.bf16.msra.mxu1 %v12992_v47  ;;  %3682 = vmatpush1.bf16.msra.mxu0 %v12995_v48  ;;  %v13060_v47 = vld [vmem:[%s16509_s4 + $0x5a4] ss:$16 sps:$4 sm:$0xff]   ;;  %v13063_v48 = vld [vmem:[%s16509_s4 + $0x5ac] ss:$16 sps:$4 sm:$0xff]  }
 0x488   :  { %3519 = vmatprep.subr.bf16.mxu1 %v13000_v51  ;;  %3683 = vmatprep.subr.bf16.mxu0 %v13003_v52  ;;  %v13061_v51 = vld [vmem:[%s16509_s4 + $0x5a8] ss:$16 sps:$4 sm:$0xff]   ;;  %v13066_v52 = vld [vmem:[%s16509_s4 + $0x5c4] ss:$16 sps:$4 sm:$0xff]  }
 0x48b   :  { %3520 = vmatpush1.bf16.msra.mxu1 %v12998_v60  ;;  %3684 = vmatpush1.bf16.msra.mxu0 %v13001_v61  ;;  %v834_v60 = vrot.slane %v13934_v59, %v15672_v26  ;;  %v13064_v61 = vld [vmem:[%s16509_s4 + $0x5c0] ss:$16 sps:$4 sm:$0xff]  }
 0x48c   :  { %3521 = vmatprep.subr.bf16.mxu1 %v13006_v63  ;;  %3685 = vmatprep.subr.bf16.mxu0 %v13009_v0  ;;  %v13067_v63 = vld [vmem:[%s16509_s4 + $0x5c8] ss:$16 sps:$4 sm:$0xff]   ;;  %v13072_v0 = vld [vmem:[%s16509_s4 + $0x5e4] ss:$16 sps:$4 sm:$0xff]  }
 0x48d   :  { %v13133_v59 = vld [vmem:[%s16510_s17 + $0xd0] sm:$0xff]  }
 0x48f   :  { %3522 = vmatpush1.bf16.msra.mxu1 %v13004_v1  ;;  %3686 = vmatpush1.bf16.msra.mxu0 %v13007_v2  ;;  %v13075_v1 = vld [vmem:[%s16509_s4 + $0x5ec] ss:$16 sps:$4 sm:$0xff]  }
 0x490   :  { %3523 = vmatprep.subr.bf16.mxu1 %v13012_v4  ;;  %3687 = vmatprep.subr.bf16.mxu0 %v13015_v5  ;;  %v13070_v4 = vld [vmem:[%s16509_s4 + $0x5e0] ss:$16 sps:$4 sm:$0xff]   ;;  %v13073_v5 = vld [vmem:[%s16509_s4 + $0x5e8] ss:$16 sps:$4 sm:$0xff]  }
 0x493   :  { %3524 = vmatpush1.bf16.msra.mxu1 %v13010_v6  ;;  %3688 = vmatpush1.bf16.msra.mxu0 %v13013_v8  ;;  %v13078_v6 = vld [vmem:[%s16509_s4 + $0x604] ss:$16 sps:$4 sm:$0xff]   ;;  %v13081_v8 = vld [vmem:[%s16509_s4 + $0x60c] ss:$16 sps:$4 sm:$0xff]  }
 0x494   :  { %3525 = vmatprep.subr.bf16.mxu1 %v13018_v31  ;;  %3689 = vmatprep.subr.bf16.mxu0 %v13021_v9  ;;  %v13076_v9 = vld [vmem:[%s16509_s4 + $0x600] ss:$16 sps:$4 sm:$0xff]  }
 0x495   :  { %v15665_v18 = vpop.f32.mrb[4].mxu0 }
 0x496   :  { %v1966_v21 = vpop.f32.mrb[5].mxu0  ;;  %v12409_v2 = vadd.f32 %v15665_v18, %v834_v60  ;;  %v13085_v18 = vld [vmem:[%s16509_s4 + $0x628] ss:$16 sps:$4 sm:$0xff]   ;;  %v13134_v60 = vld [vmem:[%s16510_s17 + $0x10] sm:$0xff]  }
 0x497   :  { %v12410_v24 = vadd.f32 %v1966_v21, %v838_v15  ;;  %3526 = vmatpush1.bf16.msra.mxu1 %v13016_v10  ;;  %3690 = vmatpush1.bf16.msra.mxu0 %v13019_v11  ;;  %v1968_v25 = vpop.f32.mrb[6].mxu0  ;;  %v13079_v10 = vld [vmem:[%s16509_s4 + $0x608] ss:$16 sps:$4 sm:$0xff]   ;;  %v13084_v11 = vld [vmem:[%s16509_s4 + $0x624] ss:$16 sps:$4 sm:$0xff]  }
 0x498   :  { %v1969_v56 = vpop.f32.mrb[7].mxu0  ;;  %3527 = vmatprep.subr.bf16.mxu1 %v13024_v12  ;;  %3691 = vmatprep.subr.bf16.mxu0 %v13027_v13  ;;  %v2055_v31 = vmax.f32 %v12409_v2, 0.0  ;;  %v13087_v12 = vld [vmem:[%s16509_s4 + $0x62c] ss:$16 sps:$4 sm:$0xff]   ;;  %v13082_v15 = vld [vmem:[%s16509_s4 + $0x620] ss:$16 sps:$4 sm:$0xff]  }
 0x499   :  { %v2056_v27 = vmax.f32 %v12410_v24, 0.0  ;;  %v13088_v21 = vld [vmem:[%s16509_s4 + $0x640] ss:$16 sps:$4 sm:$0xff]   ;;  %v13099_v24 = vld [vmem:[%s16509_s4 + $0x66c] ss:$16 sps:$4 sm:$0xff]  }
 0x49a   :  { %v2062_v13 = vpack.c.bf16 %v2055_v31, %v2055_v31  ;;  %v13094_v25 = vld [vmem:[%s16509_s4 + $0x660] ss:$16 sps:$4 sm:$0xff]   ;;  %v13097_v56 = vld [vmem:[%s16509_s4 + $0x668] ss:$16 sps:$4 sm:$0xff]  }
 0x49b   :  { %v2063_v33 = vpack.c.bf16 %v2056_v27, %v2056_v27  ;;  %3528 = vmatpush1.bf16.msra.mxu1 %v13022_v19  ;;  %3692 = vmatpush1.bf16.msra.mxu0 %v13025_v20  ;;  %v13090_v19 = vld [vmem:[%s16509_s4 + $0x644] ss:$16 sps:$4 sm:$0xff]   ;;  %v13093_v20 = vld [vmem:[%s16509_s4 + $0x64c] ss:$16 sps:$4 sm:$0xff]  }
 0x49c   :  { %3529 = vmatprep.subr.bf16.mxu1 %v13030_v22  ;;  %3693 = vmatprep.subr.bf16.mxu0 %v13033_v23  ;;  %v13091_v22 = vld [vmem:[%s16509_s4 + $0x648] ss:$16 sps:$4 sm:$0xff]   ;;  %v13096_v23 = vld [vmem:[%s16509_s4 + $0x664] ss:$16 sps:$4 sm:$0xff]  }
 0x49d   :  { %3545 = vmatprep.mubr.bf16.mxu1 %v2063_v33  ;;  %3709 = vmatprep.mubr.bf16.mxu0 %v2063_v33  ;;  %v13102_v27 = vld [vmem:[%s16509_s4 + $0x684] ss:$16 sps:$4 sm:$0xff]   ;;  %v13111_v33 = vld [vmem:[%s16509_s4 + $0x6ac] ss:$16 sps:$4 sm:$0xff]  }
 0x49e   :  { %v13139_v2 = vld [vmem:[%s16510_s17 + $0x98] sm:$0xff]   ;;  %v13144_v31 = vld [vmem:[%s16510_s17 + $0x68] sm:$0xff]  }
 0x49f   :  { %3530 = vmatpush1.bf16.msra.mxu1 %v13028_v28  ;;  %3694 = vmatpush1.bf16.msra.mxu0 %v13031_v29  ;;  %v13105_v28 = vld [vmem:[%s16509_s4 + $0x68c] ss:$16 sps:$4 sm:$0xff]   ;;  %v13100_v29 = vld [vmem:[%s16509_s4 + $0x680] ss:$16 sps:$4 sm:$0xff]  }
 0x4a0   :  { %3531 = vmatprep.subr.bf16.mxu1 %v13036_v30  ;;  %3695 = vmatprep.subr.bf16.mxu0 %v13039_v32  ;;  %v13103_v30 = vld [vmem:[%s16509_s4 + $0x688] ss:$16 sps:$4 sm:$0xff]   ;;  %v13108_v32 = vld [vmem:[%s16509_s4 + $0x6a4] ss:$16 sps:$4 sm:$0xff]  }
 0x4a3   :  { %3532 = vmatpush1.bf16.msra.mxu1 %v13034_v34  ;;  %3696 = vmatpush1.bf16.msra.mxu0 %v13037_v36  ;;  %v13106_v34 = vld [vmem:[%s16509_s4 + $0x6a0] ss:$16 sps:$4 sm:$0xff]   ;;  %v13109_v36 = vld [vmem:[%s16509_s4 + $0x6a8] ss:$16 sps:$4 sm:$0xff]  }
 0x4a4   :  { %3533 = vmatprep.subr.bf16.mxu1 %v13042_v37  ;;  %3697 = vmatprep.subr.bf16.mxu0 %v13045_v17  ;;  %v13114_v37 = vld [vmem:[%s16509_s4 + $0x6c4] ss:$16 sps:$4 sm:$0xff]   ;;  %v13117_v17 = vld [vmem:[%s16509_s4 + $0x6cc] ss:$16 sps:$4 sm:$0xff]  }
 0x4a7   :  { %3534 = vmatpush1.bf16.msra.mxu1 %v13040_v38  ;;  %3698 = vmatpush1.bf16.msra.mxu0 %v13043_v39  ;;  %v2057_v38 = vmax.f32 %v15640_v49, 0.0  ;;  %v13112_v39 = vld [vmem:[%s16509_s4 + $0x6c0] ss:$16 sps:$4 sm:$0xff]  }
 0x4a8   :  { %3535 = vmatprep.subr.bf16.mxu1 %v13048_v40  ;;  %3699 = vmatprep.subr.bf16.mxu0 %v13051_v41  ;;  %v13115_v40 = vld [vmem:[%s16509_s4 + $0x6c8] ss:$16 sps:$4 sm:$0xff]   ;;  %v13120_v41 = vld [vmem:[%s16509_s4 + $0x6e4] ss:$16 sps:$4 sm:$0xff]  }
 0x4a9   :  { %v13126_v49 = vld [vmem:[%s16510_s17] sm:$0xff]  }
 0x4ab   :  { %3536 = vmatpush1.bf16.msra.mxu1 %v13046_v62  ;;  %3700 = vmatpush1.bf16.msra.mxu0 %v13049_v42  ;;  %v13123_v62 = vld [vmem:[%s16509_s4 + $0x6ec] ss:$16 sps:$4 sm:$0xff]   ;;  %v13118_v42 = vld [vmem:[%s16509_s4 + $0x6e0] ss:$16 sps:$4 sm:$0xff]  }
 0x4ac   :  { %3537 = vmatprep.subr.bf16.mxu1 %v13054_v43  ;;  %3701 = vmatprep.subr.bf16.mxu0 %v13057_v44  ;;  %v13121_v43 = vld [vmem:[%s16509_s4 + $0x6e8] ss:$16 sps:$4 sm:$0xff]   ;;  %v13124_v44 = vld [vmem:[%s16510_s17 + $0x40] sm:$0xff]  }
 0x4af   :  { %3538 = vmatpush1.bf16.msra.mxu1 %v13052_v45  ;;  %3702 = vmatpush1.bf16.msra.mxu0 %v13055_v46  ;;  %v13125_v45 = vld [vmem:[%s16510_s17 + $0xc0] sm:$0xff]  }
 0x4b0   :  { %3539 = vmatprep.subr.bf16.mxu1 %v13060_v47  ;;  %3703 = vmatprep.subr.bf16.mxu0 %v13063_v48  ;;  %v13127_v46 = vld [vmem:[%s16510_s17 + $0x80] sm:$0xff]   ;;  %v13128_v47 = vld [vmem:[%s16510_s17 + $0x48] sm:$0xff]  }
 0x4b1   :  { %v13129_v48 = vld [vmem:[%s16510_s17 + $0xc8] sm:$0xff]  }
 0x4b3   :  { %3540 = vmatpush1.bf16.msra.mxu1 %v13058_v50  ;;  %3704 = vmatpush1.bf16.msra.mxu0 %v13061_v51  ;;  %v2064_v50 = vpack.c.bf16 %v2057_v38, %v2057_v38  ;;  %v13130_v51 = vld [vmem:[%s16510_s17 + $0x8] sm:$0xff]  }
 0x4b4   :  { %3541 = vmatprep.subr.bf16.mxu1 %v13066_v52  ;;  %3705 = vmatprep.subr.bf16.mxu0 %v13069_v35  ;;  %v13131_v52 = vld [vmem:[%s16510_s17 + $0x88] sm:$0xff]   ;;  %v13132_v35 = vld [vmem:[%s16510_s17 + $0x50] sm:$0xff]  }
 0x4b7   :  { %3542 = vmatpush1.bf16.msra.mxu1 %v13064_v61  ;;  %3706 = vmatpush1.bf16.msra.mxu0 %v13067_v63  ;;  %v13135_v61 = vld [vmem:[%s16510_s17 + $0x90] sm:$0xff]   ;;  %v13136_v63 = vld [vmem:[%s16510_s17 + $0x58] sm:$0xff]  }
 0x4b8   :  { %3543 = vmatprep.subr.bf16.mxu1 %v13072_v0  ;;  %3707 = vmatprep.subr.bf16.mxu0 %v13075_v1  ;;  %v13137_v0 = vld [vmem:[%s16510_s17 + $0xd8] sm:$0xff]  }
 0x4b9   :  { %v13138_v1 = vld [vmem:[%s16510_s17 + $0x18] sm:$0xff]  }
 0x4bb   :  { %3544 = vmatpush1.bf16.msra.mxu1 %v13070_v4  ;;  %3708 = vmatpush1.bf16.msra.mxu0 %v13073_v5  ;;  %v13140_v4 = vld [vmem:[%s16510_s17 + $0x60] sm:$0xff]  }
 0x4bc   :  { %3554 = vmatprep.subr.bf16.mxu1 %v13078_v6  ;;  %3718 = vmatprep.subr.bf16.mxu0 %v13081_v8  ;;  %v13141_v5 = vld [vmem:[%s16510_s17 + $0xe0] sm:$0xff]  }
 0x4bd   :  { %v13142_v6 = vld [vmem:[%s16510_s17 + $0x20] sm:$0xff]  }
 0x4be   :  { %3546 = vmatmul.mubr.bf16.vlgmr.msra.gmra.mrb[12].mxu1 %v2062_v13  ;;  %3710 = vmatmul.mubr.bf16.vlgmr.msra.gmra.mrb[8].mxu0 %v2062_v13  ;;  %v13143_v8 = vld [vmem:[%s16510_s17 + $0xa0] sm:$0xff]   ;;  %v13149_v13 = vld [vmem:[%s16510_s17 + $0xf0] sm:$0xff]  }
 0x4bf   :  { %3555 = vmatpush1.bf16.msra.mxu1 %v13076_v9  ;;  %3719 = vmatpush1.bf16.msra.mxu0 %v13079_v10  ;;  %v13145_v9 = vld [vmem:[%s16510_s17 + $0xe8] sm:$0xff]  }
 0x4c0   :  { %3556 = vmatprep.subr.bf16.mxu1 %v13084_v11  ;;  %3720 = vmatprep.subr.bf16.mxu0 %v13087_v12  ;;  %v13146_v10 = vld [vmem:[%s16510_s17 + $0x28] sm:$0xff]   ;;  %v13148_v12 = vld [vmem:[%s16510_s17 + $0x70] sm:$0xff]  }
 0x4c1   :  { %3586 = vmatprep.mubr.bf16.mxu1 %v14808_v7  ;;  %3750 = vmatprep.mubr.bf16.mxu0 %v14808_v7  ;;  %v13147_v11 = vld [vmem:[%s16510_s17 + $0xa8] sm:$0xff]  }
 0x4c3   :  { %3557 = vmatpush1.bf16.msra.mxu1 %v13082_v15  ;;  %3721 = vmatpush1.bf16.msra.mxu0 %v13085_v18  ;;  %v13150_v15 = vld [vmem:[%s16510_s17 + $0x30] sm:$0xff]  }
 0x4c4   :  { %3558 = vmatprep.subr.bf16.mxu1 %v13090_v19  ;;  %3722 = vmatprep.subr.bf16.mxu0 %v13093_v20  ;;  %v13151_v18 = vld [vmem:[%s16510_s17 + $0xb0] sm:$0xff]   ;;  %v13152_v19 = vld [vmem:[%s16510_s17 + $0x78] sm:$0xff]  }
 0x4c5   :  { %v13153_v20 = vld [vmem:[%s16510_s17 + $0xf8] sm:$0xff]  }
 0x4c7   :  { %3559 = vmatpush1.bf16.msra.mxu1 %v13088_v21  ;;  %3723 = vmatpush1.bf16.msra.mxu0 %v13091_v22  ;;  %v13154_v21 = vld [vmem:[%s16510_s17 + $0x38] sm:$0xff]  }
 0x4c8   :  { %3560 = vmatprep.subr.bf16.mxu1 %v13096_v23  ;;  %3724 = vmatprep.subr.bf16.mxu0 %v13099_v24  ;;  %v13155_v22 = vld [vmem:[%s16510_s17 + $0xb8] sm:$0xff]   ;;  %v2289_v23 = vld [vmem:[#allocation4] sm:$0xf] }
 0x4c9   :  { %v2294_v24 = vrot.slane %v2289_v23, %v15537_v55 }
 0x4cb   :  { %3561 = vmatpush1.bf16.msra.mxu1 %v13094_v25  ;;  %3725 = vmatpush1.bf16.msra.mxu0 %v13097_v56  ;;  %v2302_v25 = vrot.slane %v2289_v23, %v15608_v14  ;;  %v2298_v56 = vrot.slane %v2289_v23, %v15542_v57 }
 0x4cc   :  { %3562 = vmatprep.subr.bf16.mxu1 %v13102_v27  ;;  %3726 = vmatprep.subr.bf16.mxu0 %v13105_v28  ;;  %v2306_v27 = vrot.slane %v2289_v23, %v15549_v3 }
 0x4cf   :  { %3563 = vmatpush1.bf16.msra.mxu1 %v13100_v29  ;;  %3727 = vmatpush1.bf16.msra.mxu0 %v13103_v30 }
 0x4d0   :  { %3564 = vmatprep.subr.bf16.mxu1 %v13108_v32  ;;  %3728 = vmatprep.subr.bf16.mxu0 %v13111_v33 }
 0x4d3   :  { %3565 = vmatpush1.bf16.msra.mxu1 %v13106_v34  ;;  %3729 = vmatpush1.bf16.msra.mxu0 %v13109_v36 }
 0x4d4   :  { %3566 = vmatprep.subr.bf16.mxu1 %v13114_v37  ;;  %3730 = vmatprep.subr.bf16.mxu0 %v13117_v17 }
 0x4d7   :  { %3567 = vmatpush1.bf16.msra.mxu1 %v13112_v39  ;;  %3731 = vmatpush1.bf16.msra.mxu0 %v13115_v40 }
 0x4d8   :  { %3568 = vmatprep.subr.bf16.mxu1 %v13120_v41  ;;  %3732 = vmatprep.subr.bf16.mxu0 %v13123_v62 }
 0x4db   :  { %3569 = vmatpush1.bf16.msra.mxu1 %v13118_v42  ;;  %3733 = vmatpush1.bf16.msra.mxu0 %v13121_v43 }
 0x4dc   :  { %11865 = vmatprep.subr.bf16.mxu1 %v13124_v44  ;;  %11887 = vmatprep.subr.bf16.mxu0 %v13125_v45 }
 0x4de   :  { %3587 = vmatmul.mubr.bf16.vlgmr.msra.gmra.mrb[12].mxu1 %v2064_v50  ;;  %3751 = vmatmul.mubr.bf16.vlgmr.msra.gmra.mrb[8].mxu0 %v2064_v50  ;;  %v13161_v50 = vld [vmem:[#allocation7 + $0x14] ss:$8 sps:$4 sm:$0xff]  }
 0x4df   :  { %11866 = vmatpush3.bf16.msra.mxu1 %v13126_v49  ;;  %11888 = vmatpush3.bf16.msra.mxu0 %v13127_v46 }
 0x4e0   :  { %11867 = vmatprep.subr.bf16.mxu1 %v13128_v47  ;;  %11889 = vmatprep.subr.bf16.mxu0 %v13129_v48  ;;  %v13158_v47 = vld [vmem:[#allocation7 + $0x4] ss:$8 sps:$4 sm:$0xff]   ;;  %v13156_v48 = vld [vmem:[#allocation7] ss:$8 sps:$4 sm:$0xff]  }
 0x4e3   :  { %11868 = vmatpush3.bf16.msra.mxu1 %v13130_v51  ;;  %11890 = vmatpush3.bf16.msra.mxu0 %v13131_v52  ;;  %v13159_v51 = vld [vmem:[#allocation7 + $0x10] ss:$8 sps:$4 sm:$0xff]  }
 0x4e4   :  { %11869 = vmatprep.subr.bf16.mxu1 %v13132_v35  ;;  %11891 = vmatprep.subr.bf16.mxu0 %v13133_v59  ;;  %v13164_v52 = vld [vmem:[%s16511_s0 + $0x4] ss:$24 sps:$4 sm:$0xff]   ;;  %v13165_v59 = vld [vmem:[%s16511_s0 + $0x8] ss:$24 sps:$4 sm:$0xff]  }
 0x4e5   :  { %v13167_v35 = vld [vmem:[%s16511_s0 + $0xc] ss:$24 sps:$4 sm:$0xff]  }
 0x4e7   :  { %11870 = vmatpush3.bf16.msra.mxu1 %v13134_v60  ;;  %11892 = vmatpush3.bf16.msra.mxu0 %v13135_v61  ;;  %v13173_v60 = vld [vmem:[%s16511_s0 + $0x3c] ss:$24 sps:$4 sm:$0xff]   ;;  %v13171_v61 = vld [vmem:[%s16511_s0 + $0x38] ss:$24 sps:$4 sm:$0xff]  }
 0x4e8   :  { %11871 = vmatprep.subr.bf16.mxu1 %v13136_v63  ;;  %11893 = vmatprep.subr.bf16.mxu0 %v13137_v0  ;;  %v13179_v63 = vld [vmem:[%s16511_s0 + $0x6c] ss:$24 sps:$4 sm:$0xff]   ;;  %v13177_v0 = vld [vmem:[%s16511_s0 + $0x68] ss:$24 sps:$4 sm:$0xff]  }
 0x4eb   :  { %11872 = vmatpush3.bf16.msra.mxu1 %v13138_v1  ;;  %11894 = vmatpush3.bf16.msra.mxu0 %v13139_v2  ;;  %v13185_v1 = vld [vmem:[%s16511_s0 + $0x9c] ss:$24 sps:$4 sm:$0xff]   ;;  %v13183_v2 = vld [vmem:[%s16511_s0 + $0x98] ss:$24 sps:$4 sm:$0xff]  }
 0x4ec   :  { %11873 = vmatprep.subr.bf16.mxu1 %v13140_v4  ;;  %11895 = vmatprep.subr.bf16.mxu0 %v13141_v5  ;;  %v13191_v4 = vld [vmem:[%s16511_s0 + $0xcc] ss:$24 sps:$4 sm:$0xff]   ;;  %v13189_v5 = vld [vmem:[%s16511_s0 + $0xc8] ss:$24 sps:$4 sm:$0xff]  }
 0x4ef   :  { %11874 = vmatpush3.bf16.msra.mxu1 %v13142_v6  ;;  %11896 = vmatpush3.bf16.msra.mxu0 %v13143_v8  ;;  %v13197_v6 = vld [vmem:[%s16511_s0 + $0xfc] ss:$24 sps:$4 sm:$0xff]   ;;  %v13195_v8 = vld [vmem:[%s16511_s0 + $0xf8] ss:$24 sps:$4 sm:$0xff]  }
 0x4f0   :  { %11875 = vmatprep.subr.bf16.mxu1 %v13144_v31  ;;  %11897 = vmatprep.subr.bf16.mxu0 %v13145_v9  ;;  %v13203_v31 = vld [vmem:[%s16511_s0 + $0x12c] ss:$24 sps:$4 sm:$0xff]   ;;  %v13201_v9 = vld [vmem:[%s16511_s0 + $0x128] ss:$24 sps:$4 sm:$0xff]  }
 0x4f3   :  { %11876 = vmatpush3.bf16.msra.mxu1 %v13146_v10  ;;  %11898 = vmatpush3.bf16.msra.mxu0 %v13147_v11  ;;  %v13209_v10 = vld [vmem:[%s16511_s0 + $0x15c] ss:$24 sps:$4 sm:$0xff]   ;;  %v13207_v11 = vld [vmem:[%s16511_s0 + $0x158] ss:$24 sps:$4 sm:$0xff]  }
 0x4f4   :  { %11877 = vmatprep.subr.bf16.mxu1 %v13148_v12  ;;  %11899 = vmatprep.subr.bf16.mxu0 %v13149_v13  ;;  %v15797_v12 = vld [vmem:[%s16512_s7] sm:$0xf] }
 0x4f7   :  { %11878 = vmatpush3.bf16.msra.mxu1 %v13150_v15  ;;  %11900 = vmatpush3.bf16.msra.mxu0 %v13151_v18  ;;  %v11164_v18 = vld [vmem:[#allocation6] ss:$0 sm:$0xff] }
 0x4f8   :  { %11879 = vmatprep.subr.bf16.mxu1 %v13152_v19  ;;  %11901 = vmatprep.subr.bf16.mxu0 %v13153_v20 }
 0x4fb   :  { %11880 = vmatpush3.bf16.msra.mxu1 %v13154_v21  ;;  %11902 = vmatpush3.bf16.msra.mxu0 %v13155_v22 }
 0x4fc   :  { %4152 = vmatprep.subr.bf16.mxu1 %v13158_v47  ;;  %4557 = vmatprep.subr.bf16.mxu0 %v13167_v35  ;;  %v13215_v47 = vld [vmem:[%s16511_s0 + $0x44] ss:$24 sps:$4 sm:$0xff]   ;;  %v13219_v35 = vld [vmem:[%s16511_s0 + $0xa0] ss:$24 sps:$4 sm:$0xff]  }
 0x5b1   :  { %v3588_v28 = vpop.f32.mrb[12].mxu1  ;;  %v3752_v29 = vpop.f32.mrb[8].mxu0 }
 0x5b2   :  { %v12411_v30 = vadd.f32 %v3588_v28, %v2294_v24  ;;  %v12413_v32 = vadd.f32 %v3752_v29, %v2302_v25  ;;  %v3590_v33 = vpop.f32.mrb[13].mxu1  ;;  %v3754_v34 = vpop.f32.mrb[9].mxu0 }
 0x5b3   :  { %v12412_v36 = vadd.f32 %v3590_v33, %v2298_v56  ;;  %v12414_v37 = vadd.f32 %v3754_v34, %v2306_v27  ;;  %v3592_v17 = vpop.f32.mrb[14].mxu1  ;;  %v3756_v38 = vpop.f32.mrb[10].mxu0  ;;  %v13170_v33 = vld [vmem:[%s16511_s0 + $0x34] ss:$24 sps:$4 sm:$0xff]   ;;  %v13168_v34 = vld [vmem:[%s16511_s0 + $0x30] ss:$24 sps:$4 sm:$0xff]  }
 0x5b4   :  { %v3759_v39 = vmax.f32 %v12411_v30, 0.0  ;;  %v3761_v40 = vmax.f32 %v12413_v32, 0.0  ;;  %v3593_v41 = vpop.f32.mrb[15].mxu1  ;;  %v3757_v62 = vpop.f32.mrb[11].mxu0  ;;  %v13162_v30 = vld [vmem:[%s16511_s0] ss:$24 sps:$4 sm:$0xff]  }
 0x5b5   :  { %v3760_v42 = vmax.f32 %v12412_v36, 0.0  ;;  %v3762_v43 = vmax.f32 %v12414_v37, 0.0  ;;  %v13176_v36 = vld [vmem:[%s16511_s0 + $0x64] ss:$24 sps:$4 sm:$0xff]   ;;  %v13174_v37 = vld [vmem:[%s16511_s0 + $0x60] ss:$24 sps:$4 sm:$0xff]  }
 0x5b6   :  { %v3763_v49 = vpack.c.bf16 %v3759_v39, %v3759_v39  ;;  %v3765_v46 = vpack.c.bf16 %v3761_v40, %v3761_v40  ;;  %v13182_v17 = vld [vmem:[%s16511_s0 + $0x94] ss:$24 sps:$4 sm:$0xff]   ;;  %v13180_v38 = vld [vmem:[%s16511_s0 + $0x90] ss:$24 sps:$4 sm:$0xff]   ;;  %v13188_v39 = vld [vmem:[%s16511_s0 + $0xc4] ss:$24 sps:$4 sm:$0xff]  }
 0x5b7   :  { %v3764_v44 = vpack.c.bf16 %v3760_v42, %v3760_v42  ;;  %v3766_v45 = vpack.c.bf16 %v3762_v43, %v3762_v43  ;;  %v13186_v40 = vld [vmem:[%s16511_s0 + $0xc0] ss:$24 sps:$4 sm:$0xff]   ;;  %v13194_v41 = vld [vmem:[%s16511_s0 + $0xf4] ss:$24 sps:$4 sm:$0xff]   ;;  %v13192_v62 = vld [vmem:[%s16511_s0 + $0xf0] ss:$24 sps:$4 sm:$0xff]  }
 0x5b8   :  { %v13200_v42 = vld [vmem:[%s16511_s0 + $0x124] ss:$24 sps:$4 sm:$0xff]   ;;  %v13198_v43 = vld [vmem:[%s16511_s0 + $0x120] ss:$24 sps:$4 sm:$0xff]  }
 0x5b9   :  { %4062 = vmatprep.mubr.bf16.mxu1 %v3764_v44  ;;  %4102 = vmatprep.mubr.bf16.mxu0 %v3766_v45  ;;  %v13206_v44 = vld [vmem:[%s16511_s0 + $0x154] ss:$24 sps:$4 sm:$0xff]   ;;  %v13204_v45 = vld [vmem:[%s16511_s0 + $0x150] ss:$24 sps:$4 sm:$0xff]  }
 0x5ba   :  { %4063 = vmatmul.mubr.bf16.vlgmr.msra.gmra.mrb[16].mxu1 %v3763_v49  ;;  %4103 = vmatmul.mubr.bf16.vlgmr.msra.gmra.mrb[12].mxu0 %v3765_v46  ;;  %v13212_v49 = vld [vmem:[%s16511_s0 + $0x14] ss:$24 sps:$4 sm:$0xff]   ;;  %v13210_v46 = vld [vmem:[%s16511_s0 + $0x10] ss:$24 sps:$4 sm:$0xff]  }
 0x5bb   :  { %4184 = vmatprep.mubr.bf16.mxu1 %v14808_v7  ;;  %4589 = vmatprep.mubr.bf16.mxu0 %v14808_v7 }
 0x5bc   :  { %4153 = vmatpush1.bf16.msra.mxu1 %v13156_v48  ;;  %4558 = vmatpush1.bf16.msra.mxu0 %v13165_v59  ;;  %v13213_v48 = vld [vmem:[%s16511_s0 + $0x40] ss:$24 sps:$4 sm:$0xff]   ;;  %v13224_v59 = vld [vmem:[%s16511_s0 + $0xd4] ss:$24 sps:$4 sm:$0xff]  }
 0x5bd   :  { %4154 = vmatprep.subr.bf16.mxu1 %v13161_v50  ;;  %4559 = vmatprep.subr.bf16.mxu0 %v13173_v60  ;;  %v13218_v50 = vld [vmem:[%s16511_s0 + $0x74] ss:$24 sps:$4 sm:$0xff]   ;;  %v13222_v60 = vld [vmem:[%s16511_s0 + $0xd0] ss:$24 sps:$4 sm:$0xff]  }
 0x5c0   :  { %4155 = vmatpush1.bf16.msra.mxu1 %v13159_v51  ;;  %4560 = vmatpush1.bf16.msra.mxu0 %v13171_v61  ;;  %v13216_v51 = vld [vmem:[%s16511_s0 + $0x70] ss:$24 sps:$4 sm:$0xff]   ;;  %v13227_v61 = vld [vmem:[%s16511_s0 + $0x104] ss:$24 sps:$4 sm:$0xff]  }
 0x5c1   :  { %4516 = vmatprep.subr.bf16.mxu1 %v13164_v52  ;;  %4561 = vmatprep.subr.bf16.mxu0 %v13179_v63  ;;  %v13221_v52 = vld [vmem:[%s16511_s0 + $0xa4] ss:$24 sps:$4 sm:$0xff]   ;;  %v13225_v63 = vld [vmem:[%s16511_s0 + $0x100] ss:$24 sps:$4 sm:$0xff]  }
 0x5c4   :  { %4562 = vmatpush1.bf16.msra.mxu0 %v13177_v0  ;;  %v13230_v0 = vld [vmem:[%s16511_s0 + $0x134] ss:$24 sps:$4 sm:$0xff]  }
 0x5c5   :  { %4563 = vmatprep.subr.bf16.mxu0 %v13185_v1  ;;  %v13228_v1 = vld [vmem:[%s16511_s0 + $0x130] ss:$24 sps:$4 sm:$0xff]  }
 0x5c8   :  { %4564 = vmatpush1.bf16.msra.mxu0 %v13183_v2  ;;  %v13233_v2 = vld [vmem:[%s16511_s0 + $0x164] ss:$24 sps:$4 sm:$0xff]  }
 0x5c9   :  { %4565 = vmatprep.subr.bf16.mxu0 %v13191_v4  ;;  %v13231_v4 = vld [vmem:[%s16511_s0 + $0x160] ss:$24 sps:$4 sm:$0xff]  }
 0x5cc   :  { %4566 = vmatpush1.bf16.msra.mxu0 %v13189_v5  ;;  %v13234_v5 = vld [vmem:[#allocation12 + $0x40] sm:$0xff]  }
 0x5cd   :  { %4567 = vmatprep.subr.bf16.mxu0 %v13197_v6  ;;  %v13235_v6 = vld [vmem:[#allocation12] sm:$0xff]  }
 0x5d0   :  { %4568 = vmatpush1.bf16.msra.mxu0 %v13195_v8  ;;  %v13236_v8 = vld [vmem:[#allocation12 + $0x48] sm:$0xff]  }
 0x5d1   :  { %4569 = vmatprep.subr.bf16.mxu0 %v13203_v31  ;;  %v13237_v31 = vld [vmem:[#allocation12 + $0x8] sm:$0xff]  }
 0x5d4   :  { %4570 = vmatpush1.bf16.msra.mxu0 %v13201_v9  ;;  %v13238_v9 = vld [vmem:[#allocation12 + $0x50] sm:$0xff]  }
 0x5d5   :  { %4571 = vmatprep.subr.bf16.mxu0 %v13209_v10  ;;  %v13239_v10 = vld [vmem:[#allocation12 + $0x10] sm:$0xff]  }
 0x5d8   :  { %4572 = vmatpush1.bf16.msra.mxu0 %v13207_v11  ;;  %v13240_v11 = vld [vmem:[#allocation12 + $0x58] sm:$0xff]  }
 0x5d9   :  { %11909 = vmatprep.subr.bf16.mxu0 %v13234_v5 }
 0x5db   :  { %4590 = vmatmul.mubr.bf16.vlgmr.msra.gmra.mrb[16].mxu0 %v15797_v12 }
 0x5dc   :  { %11910 = vmatpush3.bf16.msra.mxu0 %v13235_v6 }
 0x5dd   :  { %11911 = vmatprep.subr.bf16.mxu0 %v13236_v8 }
 0x5e0   :  { %11912 = vmatpush3.bf16.msra.mxu0 %v13237_v31 }
 0x5e1   :  { %11913 = vmatprep.subr.bf16.mxu0 %v13238_v9 }
 0x5e4   :  { %11914 = vmatpush3.bf16.msra.mxu0 %v13239_v10 }
 0x5e5   :  { %11915 = vmatprep.subr.bf16.mxu0 %v13240_v11 }
 0x68d   :  { %v11881_v13 = vpop.f32.mrb[16].mxu1  ;;  %v11903_v15 = vpop.f32.mrb[12].mxu0 }
 0x68e   :  { %v11882_v19 = vpop.f32.mrb[17].mxu1  ;;  %v11904_v20 = vpop.f32.mrb[13].mxu0 }
 0x68f   :  { %v11883_v21 = vadd.f32 %v11882_v19, %v11881_v13  ;;  %v11905_v22 = vadd.f32 %v11904_v20, %v11903_v15  ;;  %v11884_v23 = vpop.f32.mrb[18].mxu1  ;;  %v11906_v24 = vpop.f32.mrb[14].mxu0  ;;  %v13241_v13 = vld [vmem:[#allocation12 + $0x18] sm:$0xff]   ;;  %v13242_v15 = vld [vmem:[#allocation12 + $0x60] sm:$0xff]   ;;  %v13245_v19 = vld [vmem:[#allocation12 + $0x28] sm:$0xff]  }
 0x690   :  { %v11885_v25 = vpop.f32.mrb[19].mxu1  ;;  %v11907_v56 = vpop.f32.mrb[15].mxu0  ;;  %11916 = vmatpush3.bf16.msra.mxu0 %v13241_v13  ;;  %v15836_v20 = vld [vmem:[#allocation10] sm:$0x3f] }
 0x691   :  { %v4065_v27 = vadd.f32 %v11883_v21, %v11164_v18  ;;  %v13243_v18 = vld [vmem:[#allocation12 + $0x20] sm:$0xff]   ;;  %11917 = vmatprep.subr.bf16.mxu0 %v13242_v15  ;;  %v13246_v21 = vld [vmem:[#allocation12 + $0x70] sm:$0xff]   ;;  %v4257_v23 = vrot.slane %v15836_v20, %v15608_v14  ;;  %v13248_v25 = vld [vmem:[#allocation12 + $0x78] sm:$0xff]   ;;  %v4265_v5 = vrot.slane %v15836_v20, %v15672_v26  ;;  %v4269_v6 = vrot.slane %v15836_v20, %v15645_v58 }
 0x693   :  { %v4105_v28 = vadd.f32 %v11905_v22, %v4065_v27  ;;  %v13247_v22 = vld [vmem:[#allocation12 + $0x30] sm:$0xff]   ;;  %v13249_v27 = vld [vmem:[#allocation12 + $0x38] sm:$0xff]  }
 0x694   :  { %11918 = vmatpush3.bf16.msra.mxu0 %v13243_v18 }
 0x695   :  { %v4110_v29 = vmax.f32 %v4105_v28, 0.0 }
 0x697   :  { %v4111_v32 = vpack.c.bf16 %v4110_v29, %v4110_v29  ;;  %v4261_v29 = vrot.slane %v15836_v20, %v15549_v3 }
 0x699   :  { %11201 = vmatmul.mubr.msk.bf16.vlgmr.msra.gmra.mrb[20].mxu1 %vm4148_vm1, %v4111_v32 }
 0x69a   :  { %4517 = vmatpush1.bf16.msra.mxu1 %v13162_v30  ;;  %4548 = vmatprep.mubr.bf16.mxu1 %v14808_v7 }
 0x69b   :  { %4518 = vmatprep.subr.bf16.mxu1 %v13170_v33 }
 0x69e   :  { %4519 = vmatpush1.bf16.msra.mxu1 %v13168_v34 }
 0x69f   :  { %4520 = vmatprep.subr.bf16.mxu1 %v13176_v36 }
 0x6a2   :  { %4521 = vmatpush1.bf16.msra.mxu1 %v13174_v37 }
 0x6a3   :  { %4522 = vmatprep.subr.bf16.mxu1 %v13182_v17  ;;  %v13250_v17 = vld [vmem:[%s16513_s24 + $0x40] sm:$0xff]  }
 0x6a6   :  { %4523 = vmatpush1.bf16.msra.mxu1 %v13180_v38  ;;  %v13251_v38 = vld [vmem:[%s16513_s24] sm:$0xff]  }
 0x6a7   :  { %4524 = vmatprep.subr.bf16.mxu1 %v13188_v39  ;;  %v13252_v39 = vld [vmem:[%s16513_s24 + $0x48] sm:$0xff]  }
 0x6aa   :  { %4525 = vmatpush1.bf16.msra.mxu1 %v13186_v40  ;;  %v13253_v40 = vld [vmem:[%s16513_s24 + $0x8] sm:$0xff]  }
 0x6ab   :  { %4526 = vmatprep.subr.bf16.mxu1 %v13194_v41  ;;  %v13254_v41 = vld [vmem:[%s16513_s24 + $0x50] sm:$0xff]  }
 0x6ae   :  { %4527 = vmatpush1.bf16.msra.mxu1 %v13192_v62  ;;  %v4591_v24 = vpop.f32.mrb[16].mxu0  ;;  %v13255_v62 = vld [vmem:[%s16513_s24 + $0x10] sm:$0xff]  }
 0x6af   :  { %4528 = vmatprep.subr.bf16.mxu1 %v13200_v42  ;;  %v4593_v56 = vpop.f32.mrb[17].mxu0  ;;  %v4592_v28 = vadd.f32 %v4591_v24, %v4257_v23  ;;  %v13256_v42 = vld [vmem:[%s16513_s24 + $0x58] sm:$0xff]   ;;  %v13262_v23 = vld [vmem:[%s16513_s24 + $0x70] sm:$0xff]  }
 0x6b0   :  { %v4595_v30 = vpop.f32.mrb[18].mxu0  ;;  %v4594_v33 = vadd.f32 %v4593_v56, %v4261_v29  ;;  %v13263_v24 = vld [vmem:[%s16513_s24 + $0x30] sm:$0xff]   ;;  %v13265_v56 = vld [vmem:[%s16513_s24 + $0x38] sm:$0xff]   ;;  %v13268_v29 = vld [vmem:[%s16513_s24 + $0xc8] sm:$0xff]  }
 0x6b1   :  { %v4596_v32 = vpop.f32.mrb[19].mxu0  ;;  %v4641_v34 = vmax.f32 %v4592_v28, 0.0  ;;  %v13267_v28 = vld [vmem:[%s16513_s24 + $0x80] sm:$0xff]   ;;  %v13269_v30 = vld [vmem:[%s16513_s24 + $0x88] sm:$0xff]  }
 0x6b2   :  { %4529 = vmatpush1.bf16.msra.mxu1 %v13198_v43  ;;  %v4642_v36 = vmax.f32 %v4594_v33, 0.0  ;;  %v13257_v43 = vld [vmem:[%s16513_s24 + $0x18] sm:$0xff]   ;;  %v13271_v32 = vld [vmem:[%s16513_s24 + $0xd0] sm:$0xff]  }
 0x6b3   :  { %4530 = vmatprep.subr.bf16.mxu1 %v13206_v44  ;;  %v13258_v44 = vld [vmem:[%s16513_s24 + $0x60] sm:$0xff]   ;;  %v13272_v33 = vld [vmem:[%s16513_s24 + $0x90] sm:$0xff]  }
 0x6b4   :  { %v4647_v37 = vpack.c.bf16 %v4642_v36, %v4641_v34 }
 0x6b6   :  { %4531 = vmatpush1.bf16.msra.mxu1 %v13204_v45  ;;  %v13259_v45 = vld [vmem:[%s16513_s24 + $0x20] sm:$0xff]  }
 0x6b7   :  { %4598 = vmatprep.subr.bf16.mxu1 %v13212_v49 }
 0x6b9   :  { %4549 = vmatmul.mubr.bf16.vlgmr.msra.gmra.mrb[24].mxu1 %v15797_v12 }
 0x6ba   :  { %4599 = vmatpush1.bf16.msra.mxu1 %v13210_v46  ;;  %4630 = vmatprep.mubr.bf16.mxu1 %v14808_v7 }
 0x6bb   :  { %4600 = vmatprep.subr.bf16.mxu1 %v13215_v47 }
 0x6be   :  { %4601 = vmatpush1.bf16.msra.mxu1 %v13213_v48 }
 0x6bf   :  { %4602 = vmatprep.subr.bf16.mxu1 %v13218_v50  ;;  %v4249_v50 = vrot.slane %v15836_v20, %v15537_v55 }
 0x6c2   :  { %4603 = vmatpush1.bf16.msra.mxu1 %v13216_v51  ;;  %v4253_v51 = vrot.slane %v15836_v20, %v15542_v57 }
 0x6c3   :  { %4604 = vmatprep.subr.bf16.mxu1 %v13221_v52 }
 0x6c6   :  { %4605 = vmatpush1.bf16.msra.mxu1 %v13219_v35 }
 0x6c7   :  { %4606 = vmatprep.subr.bf16.mxu1 %v13224_v59 }
 0x6ca   :  { %4607 = vmatpush1.bf16.msra.mxu1 %v13222_v60 }
 0x6cb   :  { %4608 = vmatprep.subr.bf16.mxu1 %v13227_v61 }
 0x6ce   :  { %4609 = vmatpush1.bf16.msra.mxu1 %v13225_v63 }
 0x6cf   :  { %4610 = vmatprep.subr.bf16.mxu1 %v13230_v0 }
 0x6d2   :  { %4611 = vmatpush1.bf16.msra.mxu1 %v13228_v1 }
 0x6d3   :  { %4612 = vmatprep.subr.bf16.mxu1 %v13233_v2 }
 0x6d6   :  { %4613 = vmatpush1.bf16.msra.mxu1 %v13231_v4 }
 0x6d7   :  { %11943 = vmatprep.subr.bf16.mxu1 %v13250_v17  ;;  %v13278_v17 = vld [vmem:[%s16513_s24 + $0xa0] sm:$0xff]  }
 0x6d9   :  { %4631 = vmatmul.mubr.bf16.vlgmr.msra.gmra.mrb[28].mxu1 %v15797_v12  ;;  %v13244_v12 = vld [vmem:[#allocation12 + $0x68] sm:$0xff]  }
 0x6da   :  { %11919 = vmatprep.subr.bf16.mxu0 %v13244_v12  ;;  %11944 = vmatpush3.bf16.msra.mxu1 %v13251_v38  ;;  %v13280_v38 = vld [vmem:[%s16513_s24 + $0xe8] sm:$0xff]  }
 0x6db   :  { %11920 = vmatpush3.bf16.msra.mxu0 %v13245_v19  ;;  %11945 = vmatprep.subr.bf16.mxu1 %v13252_v39  ;;  %v13281_v39 = vld [vmem:[%s16513_s24 + $0xa8] sm:$0xff]  }
 0x6dc   :  { %11921 = vmatprep.subr.bf16.mxu0 %v13246_v21  ;;  %v13260_v21 = vld [vmem:[%s16513_s24 + $0x68] sm:$0xff]  }
 0x6de   :  { %11946 = vmatpush3.bf16.msra.mxu1 %v13253_v40  ;;  %v13283_v40 = vld [vmem:[%s16513_s24 + $0xf0] sm:$0xff]  }
 0x6df   :  { %11922 = vmatpush3.bf16.msra.mxu0 %v13247_v22  ;;  %11947 = vmatprep.subr.bf16.mxu1 %v13254_v41  ;;  %v13261_v22 = vld [vmem:[%s16513_s24 + $0x28] sm:$0xff]   ;;  %v13284_v41 = vld [vmem:[%s16513_s24 + $0xb0] sm:$0xff]  }
 0x6e0   :  { %11923 = vmatprep.subr.bf16.mxu0 %v13248_v25  ;;  %v13264_v25 = vld [vmem:[%s16513_s24 + $0x78] sm:$0xff]  }
 0x6e2   :  { %11948 = vmatpush3.bf16.msra.mxu1 %v13255_v62  ;;  %v13286_v62 = vld [vmem:[%s16513_s24 + $0xf8] sm:$0xff]  }
 0x6e3   :  { %11924 = vmatpush3.bf16.msra.mxu0 %v13249_v27  ;;  %11949 = vmatprep.subr.bf16.mxu1 %v13256_v42  ;;  %v13266_v27 = vld [vmem:[%s16513_s24 + $0xc0] sm:$0xff]   ;;  %v13287_v42 = vld [vmem:[%s16513_s24 + $0xb8] sm:$0xff]  }
 0x6e4   :  { %11965 = vmatprep.subr.bf16.mxu0 %v13266_v27 }
 0x6e6   :  { %11950 = vmatpush3.bf16.msra.mxu1 %v13257_v43 }
 0x6e7   :  { %11951 = vmatprep.subr.bf16.mxu1 %v13258_v44  ;;  %v11250_v44 = vld [vmem:[#allocation13] ss:$0 sm:$0xff] }
 0x6ea   :  { %11952 = vmatpush3.bf16.msra.mxu1 %v13259_v45 }
 0x6eb   :  { %11953 = vmatprep.subr.bf16.mxu1 %v13260_v21 }
 0x6ee   :  { %11954 = vmatpush3.bf16.msra.mxu1 %v13261_v22 }
 0x6ef   :  { %11955 = vmatprep.subr.bf16.mxu1 %v13262_v23 }
 0x6f2   :  { %11956 = vmatpush3.bf16.msra.mxu1 %v13263_v24 }
 0x6f3   :  { %11957 = vmatprep.subr.bf16.mxu1 %v13264_v25 }
 0x6f6   :  { %11958 = vmatpush3.bf16.msra.mxu1 %v13265_v56 }
 0x6f7   :  { %12373 = vmatprep.subr.bf16.mxu1 %v14809_v16 }
 0x76c   :  { %v15852_v49 = vpop.f32.mrb[20].mxu1 }
 0x76d   :  { %v15854_v46 = vpop.f32.mrb[21].mxu1 }
 0x76e   :  { %v4190_v47 = vpop.f32.mrb[22].mxu1 }
 0x76f   :  { %v4191_v48 = vpop.f32.mrb[23].mxu1 }
 0x78c   :  { %v4550_v52 = vpop.f32.mrb[24].mxu1 }
 0x78d   :  { %v4551_v35 = vadd.f32 %v4550_v52, %v4249_v50  ;;  %v4552_v59 = vpop.f32.mrb[25].mxu1 }
 0x78e   :  { %v4553_v60 = vadd.f32 %v4552_v59, %v4253_v51  ;;  %v4554_v61 = vpop.f32.mrb[26].mxu1 }
 0x78f   :  { %v4639_v63 = vmax.f32 %v4551_v35, 0.0  ;;  %v4555_v0 = vpop.f32.mrb[27].mxu1 }
 0x790   :  { %v4640_v1 = vmax.f32 %v4553_v60, 0.0 }
 0x792   :  { %v4645_v2 = vpack.c.bf16 %v4640_v1, %v4639_v63  ;;  %v4646_v4 = vpack.c.bf16 %v4641_v34, %v4640_v1  ;;  %v13274_v34 = vld [vmem:[%s16513_s24 + $0xd8] sm:$0xff]   ;;  %v13270_v63 = vld [vmem:[%s16513_s24 + $0x100] sm:$0xff]   ;;  %v13273_v1 = vld [vmem:[%s16513_s24 + $0x108] sm:$0xff]  }
 0x794   :  { %4818 = vmatprep.mubr.bf16.mxu0 %v4646_v4  ;;  %v13279_v4 = vld [vmem:[%s16513_s24 + $0x118] sm:$0xff]  }
 0x795   :  { %4819 = vmatmul.mubr.bf16.vlgmr.msra.gmra.mrb[20].mxu0 %v4645_v2  ;;  %v13276_v2 = vld [vmem:[%s16513_s24 + $0x110] sm:$0xff]  }
 0x796   :  { %11966 = vmatpush3.bf16.msra.mxu0 %v13267_v28 }
 0x797   :  { %11967 = vmatprep.subr.bf16.mxu0 %v13268_v29 }
 0x79a   :  { %11968 = vmatpush3.bf16.msra.mxu0 %v13269_v30 }
 0x79b   :  { %11969 = vmatprep.subr.bf16.mxu0 %v13271_v32 }
 0x79e   :  { %11970 = vmatpush3.bf16.msra.mxu0 %v13272_v33  ;;  %v13292_v33 = vld [vmem:[#allocation16 + $0x4] ss:$8 sps:$4 sm:$0xff]  }
 0x79f   :  { %11971 = vmatprep.subr.bf16.mxu0 %v13274_v34  ;;  %v13290_v34 = vld [vmem:[#allocation16] ss:$8 sps:$4 sm:$0xff]  }
 0x7ac   :  { %v4632_v8 = vpop.f32.mrb[28].mxu1 }
 0x7ad   :  { %v4633_v31 = vadd.f32 %v4632_v8, %v4265_v5  ;;  %v4634_v9 = vpop.f32.mrb[29].mxu1  ;;  %v13282_v5 = vld [vmem:[%s16513_s24 + $0x120] sm:$0xff]  }
 0x7ae   :  { %v4635_v10 = vadd.f32 %v4634_v9, %v4269_v6  ;;  %v4636_v11 = vpop.f32.mrb[30].mxu1  ;;  %v13285_v6 = vld [vmem:[%s16513_s24 + $0x128] sm:$0xff]  }
 0x7af   :  { %v4643_v13 = vmax.f32 %v4633_v31, 0.0  ;;  %v4637_v15 = vpop.f32.mrb[31].mxu1 }
 0x7b0   :  { %v4644_v18 = vmax.f32 %v4635_v10, 0.0 }
 0x7b1   :  { %v4648_v12 = vpack.c.bf16 %v4643_v13, %v4642_v36  ;;  %v4649_v20 = vpack.c.bf16 %v4643_v13, %v4643_v13  ;;  %v13275_v36 = vld [vmem:[%s16513_s24 + $0x98] sm:$0xff]   ;;  %v13288_v13 = vld [vmem:[%s16513_s24 + $0x130] sm:$0xff]  }
 0x7b2   :  { %v4650_v19 = vpack.c.bf16 %v4644_v18, %v4644_v18  ;;  %11972 = vmatpush3.bf16.msra.mxu0 %v13275_v36  ;;  %v13295_v36 = vld [vmem:[#allocation16 + $0x14] ss:$8 sps:$4 sm:$0xff]  }
 0x7b3   :  { %4826 = vmatprep.mubr.bf16.mxu0 %v4648_v12 }
 0x7b4   :  { %4827 = vmatmul.mubr.bf16.gmra.mrb[24].mxu0 %v4647_v37  ;;  %v13277_v37 = vld [vmem:[%s16513_s24 + $0xe0] sm:$0xff]  }
 0x7b5   :  { %4834 = vmatprep.mubr.bf16.mxu0 %v4650_v19  ;;  %11973 = vmatprep.subr.bf16.mxu0 %v13277_v37  ;;  %v13293_v37 = vld [vmem:[#allocation16 + $0x10] ss:$8 sps:$4 sm:$0xff]  }
 0x7b6   :  { %11974 = vmatpush3.bf16.msra.mxu0 %v13278_v17  ;;  %v13298_v17 = vld [vmem:[%s16514_s9 + $0xc] ss:$24 sps:$4 sm:$0xff]  }
 0x7b7   :  { %11975 = vmatprep.subr.bf16.mxu0 %v13280_v38  ;;  %v13296_v38 = vld [vmem:[%s16514_s9 + $0x8] ss:$24 sps:$4 sm:$0xff]  }
 0x7ba   :  { %11976 = vmatpush3.bf16.msra.mxu0 %v13281_v39  ;;  %v13301_v39 = vld [vmem:[%s16514_s9 + $0x4] ss:$24 sps:$4 sm:$0xff]  }
 0x7bb   :  { %11977 = vmatprep.subr.bf16.mxu0 %v13283_v40  ;;  %v13304_v40 = vld [vmem:[%s16514_s9 + $0x3c] ss:$24 sps:$4 sm:$0xff]  }
 0x7bc   :  { %4835 = vmatmul.mubr.bf16.gmra.mrb[28].mxu0 %v4649_v20  ;;  %v13289_v20 = vld [vmem:[%s16513_s24 + $0x138] sm:$0xff]  }
 0x7be   :  { %11978 = vmatpush3.bf16.msra.mxu0 %v13284_v41  ;;  %v13302_v41 = vld [vmem:[%s16514_s9 + $0x38] ss:$24 sps:$4 sm:$0xff]  }
 0x7bf   :  { %11979 = vmatprep.subr.bf16.mxu0 %v13286_v62  ;;  %v13310_v62 = vld [vmem:[%s16514_s9 + $0x6c] ss:$24 sps:$4 sm:$0xff]  }
 0x7c2   :  { %11980 = vmatpush3.bf16.msra.mxu0 %v13287_v42  ;;  %v13308_v42 = vld [vmem:[%s16514_s9 + $0x68] ss:$24 sps:$4 sm:$0xff]  }
 0x7c3   :  { %5340 = vmatprep.subr.bf16.mxu0 %v13292_v33 }
 0x868   :  { %v11925_v43 = vpop.f32.mrb[20].mxu0 }
 0x869   :  { %v11926_v45 = vpop.f32.mrb[21].mxu0 }
 0x86a   :  { %v11927_v47 = vadd.f32 %v11926_v45, %v11925_v43  ;;  %v11928_v48 = vpop.f32.mrb[22].mxu0  ;;  %v13316_v43 = vld [vmem:[%s16514_s9 + $0x9c] ss:$24 sps:$4 sm:$0xff]   ;;  %v13322_v45 = vld [vmem:[%s16514_s9 + $0xcc] ss:$24 sps:$4 sm:$0xff]  }
 0x86b   :  { %v11929_v50 = vpop.f32.mrb[23].mxu0 }
 0x86c   :  { %v4821_v51 = vadd.f32 %v11927_v47, %v11250_v44  ;;  %v11930_v52 = vadd.f32 %v11929_v50, %v11928_v48  ;;  %v13320_v47 = vld [vmem:[%s16514_s9 + $0xc8] ss:$24 sps:$4 sm:$0xff]   ;;  %v13328_v48 = vld [vmem:[%s16514_s9 + $0xfc] ss:$24 sps:$4 sm:$0xff]   ;;  %v13326_v50 = vld [vmem:[%s16514_s9 + $0xf8] ss:$24 sps:$4 sm:$0xff]  }
 0x86e   :  { %v4824_v35 = vadd.f32 %v11930_v52, %v11250_v44  ;;  %v4842_v59 = vmax.f32 %v4821_v51, 0.0  ;;  %v13334_v51 = vld [vmem:[%s16514_s9 + $0x12c] ss:$24 sps:$4 sm:$0xff]   ;;  %v13332_v52 = vld [vmem:[%s16514_s9 + $0x128] ss:$24 sps:$4 sm:$0xff]  }
 0x870   :  { %v4843_v60 = vmax.f32 %v4824_v35, 0.0  ;;  %v4847_v0 = vpack.c.bf16 %v4842_v59, %v4842_v59  ;;  %v13340_v35 = vld [vmem:[%s16514_s9 + $0x15c] ss:$24 sps:$4 sm:$0xff]   ;;  %v13338_v59 = vld [vmem:[%s16514_s9 + $0x158] ss:$24 sps:$4 sm:$0xff]  }
 0x872   :  { %v4848_v61 = vpack.c.bf16 %v4843_v60, %v4843_v60  ;;  %v15924_v60 = vld [vmem:[%s16515_s10] sm:$0xf] }
 0x874   :  { %5211 = vmatprep.mubr.bf16.mxu1 %v4848_v61  ;;  %v13368_v61 = vld [vmem:[#allocation21] ss:$8 sps:$4 sm:$0xff]  }
 0x875   :  { %5212 = vmatmul.mubr.bf16.vlgmr.msra.gmra.mrb[32].mxu1 %v4847_v0  ;;  %v13373_v0 = vld [vmem:[#allocation21 + $0x14] ss:$8 sps:$4 sm:$0xff]  }
 0x876   :  { %12374 = vmatpush3.bf16.msra.mxu1 %v13270_v63  ;;  %12389 = vmatprep.mubr.msk.bf16.mxu1 %vm14810_vm0, %v14809_v16  ;;  %v13370_v63 = vld [vmem:[#allocation21 + $0x4] ss:$8 sps:$4 sm:$0xff]  }
 0x877   :  { %12375 = vmatprep.subr.bf16.mxu1 %v14809_v16 }
 0x87a   :  { %12376 = vmatpush3.bf16.msra.mxu1 %v13273_v1  ;;  %v13371_v1 = vld [vmem:[#allocation21 + $0x10] ss:$8 sps:$4 sm:$0xff]  }
 0x87b   :  { %12377 = vmatprep.subr.bf16.mxu1 %v14809_v16 }
 0x87e   :  { %12378 = vmatpush3.bf16.msra.mxu1 %v13276_v2  ;;  %v13376_v2 = vld [vmem:[#allocation21 + $0x24] ss:$8 sps:$4 sm:$0xff]  }
 0x87f   :  { %12379 = vmatprep.subr.bf16.mxu1 %v14809_v16 }
 0x882   :  { %12380 = vmatpush3.bf16.msra.mxu1 %v13279_v4  ;;  %v13374_v4 = vld [vmem:[#allocation21 + $0x20] ss:$8 sps:$4 sm:$0xff]  }
 0x883   :  { %12381 = vmatprep.subr.bf16.mxu1 %v14809_v16 }
 0x886   :  { %12382 = vmatpush3.bf16.msra.mxu1 %v13282_v5  ;;  %v13379_v5 = vld [vmem:[#allocation21 + $0x34] ss:$8 sps:$4 sm:$0xff]  }
 0x887   :  { %v11931_v8 = vpop.f32.mrb[24].mxu0  ;;  %12383 = vmatprep.subr.bf16.mxu1 %v14809_v16 }
 0x888   :  { %v11932_v31 = vpop.f32.mrb[25].mxu0 }
 0x889   :  { %v11933_v9 = vadd.f32 %v11932_v31, %v11931_v8  ;;  %v11934_v10 = vpop.f32.mrb[26].mxu0  ;;  %v13382_v8 = vld [vmem:[#allocation21 + $0x44] ss:$8 sps:$4 sm:$0xff]   ;;  %v13380_v31 = vld [vmem:[#allocation21 + $0x40] ss:$8 sps:$4 sm:$0xff]  }
 0x88a   :  { %v11935_v11 = vpop.f32.mrb[27].mxu0  ;;  %12384 = vmatpush3.bf16.msra.mxu1 %v13285_v6  ;;  %v13377_v6 = vld [vmem:[#allocation21 + $0x30] ss:$8 sps:$4 sm:$0xff]  }
 0x88b   :  { %v4829_v15 = vadd.f32 %v11933_v9, %v11250_v44  ;;  %v11936_v18 = vadd.f32 %v11935_v11, %v11934_v10  ;;  %12385 = vmatprep.subr.bf16.mxu1 %v14809_v16  ;;  %v13385_v9 = vld [vmem:[#allocation21 + $0x54] ss:$8 sps:$4 sm:$0xff]   ;;  %v13383_v10 = vld [vmem:[#allocation21 + $0x50] ss:$8 sps:$4 sm:$0xff]  }
 0x88d   :  { %v4832_v12 = vadd.f32 %v11936_v18, %v11250_v44  ;;  %v4844_v19 = vmax.f32 %v4829_v15, 0.0 }
 0x88e   :  { %12386 = vmatpush3.bf16.msra.mxu1 %v13288_v13 }
 0x88f   :  { %v4845_v21 = vmax.f32 %v4832_v12, 0.0  ;;  %v11937_v22 = vpop.f32.mrb[28].mxu0  ;;  %12387 = vmatprep.subr.bf16.mxu1 %v14809_v16  ;;  %v4849_v27 = vpack.c.bf16 %v4844_v19, %v4844_v19  ;;  %v11267_v19 = vld [vmem:[#allocation15] ss:$0 sm:$0xff] }
 0x890   :  { %v11938_v23 = vpop.f32.mrb[29].mxu0 }
 0x891   :  { %v4850_v24 = vpack.c.bf16 %v4845_v21, %v4845_v21  ;;  %v11939_v25 = vadd.f32 %v11938_v23, %v11937_v22  ;;  %v11940_v56 = vpop.f32.mrb[30].mxu0 }
 0x892   :  { %v11941_v28 = vpop.f32.mrb[31].mxu0  ;;  %12388 = vmatpush3.bf16.msra.mxu1 %v13289_v20 }
 0x893   :  { %v4837_v29 = vadd.f32 %v11939_v25, %v11250_v44  ;;  %5251 = vmatprep.mubr.bf16.mxu0 %v4850_v24  ;;  %5747 = vmatprep.subr.bf16.mxu1 %v13298_v17  ;;  %v13314_v44 = vld [vmem:[%s16514_s9 + $0x98] ss:$24 sps:$4 sm:$0xff]  }
 0x894   :  { %5252 = vmatmul.mubr.bf16.vlgmr.msra.gmra.mrb[32].mxu0 %v4849_v27  ;;  %v13305_v17 = vld [vmem:[%s16514_s9 + $0x30] ss:$24 sps:$4 sm:$0xff]  }
 0x895   :  { %v4846_v30 = vmax.f32 %v4837_v29, 0.0  ;;  %5372 = vmatprep.mubr.bf16.mxu0 %v14808_v7  ;;  %5341 = vmatpush1.bf16.msra.mxu0 %v13290_v34  ;;  %v13299_v34 = vld [vmem:[%s16514_s9] ss:$24 sps:$4 sm:$0xff]  }
 0x896   :  { %5342 = vmatprep.subr.bf16.mxu0 %v13295_v36 }
 0x897   :  { %v4851_v32 = vpack.c.bf16 %v4846_v30, %v4846_v30 }
 0x899   :  { %12390 = vmatmul.mubr.bf16.vlgmr.msra.gmra.mrb[36].mxu1 %v4851_v32  ;;  %5343 = vmatpush1.bf16.msra.mxu0 %v13293_v37  ;;  %v13307_v37 = vld [vmem:[%s16514_s9 + $0x34] ss:$24 sps:$4 sm:$0xff]  }
 0x89a   :  { %5779 = vmatprep.mubr.bf16.mxu1 %v14808_v7  ;;  %5748 = vmatpush1.bf16.msra.mxu1 %v13296_v38  ;;  %v13313_v38 = vld [vmem:[%s16514_s9 + $0x64] ss:$24 sps:$4 sm:$0xff]  }
 0x89b   :  { %5706 = vmatprep.subr.bf16.mxu0 %v13301_v39  ;;  %5749 = vmatprep.subr.bf16.mxu1 %v13304_v40  ;;  %v13311_v39 = vld [vmem:[%s16514_s9 + $0x60] ss:$24 sps:$4 sm:$0xff]   ;;  %v13319_v40 = vld [vmem:[%s16514_s9 + $0x94] ss:$24 sps:$4 sm:$0xff]  }
 0x89e   :  { %5750 = vmatpush1.bf16.msra.mxu1 %v13302_v41  ;;  %v13317_v41 = vld [vmem:[%s16514_s9 + $0x90] ss:$24 sps:$4 sm:$0xff]  }
 0x89f   :  { %5751 = vmatprep.subr.bf16.mxu1 %v13310_v62  ;;  %v13325_v62 = vld [vmem:[%s16514_s9 + $0xc4] ss:$24 sps:$4 sm:$0xff]  }
 0x8a2   :  { %5752 = vmatpush1.bf16.msra.mxu1 %v13308_v42  ;;  %v13323_v42 = vld [vmem:[%s16514_s9 + $0xc0] ss:$24 sps:$4 sm:$0xff]  }
 0x8a3   :  { %5753 = vmatprep.subr.bf16.mxu1 %v13316_v43  ;;  %v13331_v43 = vld [vmem:[%s16514_s9 + $0xf4] ss:$24 sps:$4 sm:$0xff]  }
 0x8a6   :  { %5754 = vmatpush1.bf16.msra.mxu1 %v13314_v44  ;;  %v13329_v44 = vld [vmem:[%s16514_s9 + $0xf0] ss:$24 sps:$4 sm:$0xff]  }
 0x8a7   :  { %5755 = vmatprep.subr.bf16.mxu1 %v13322_v45  ;;  %v13337_v45 = vld [vmem:[%s16514_s9 + $0x124] ss:$24 sps:$4 sm:$0xff]  }
 0x8aa   :  { %5756 = vmatpush1.bf16.msra.mxu1 %v13320_v47  ;;  %v13335_v47 = vld [vmem:[%s16514_s9 + $0x120] ss:$24 sps:$4 sm:$0xff]  }
 0x8ab   :  { %5757 = vmatprep.subr.bf16.mxu1 %v13328_v48  ;;  %v13343_v48 = vld [vmem:[%s16514_s9 + $0x154] ss:$24 sps:$4 sm:$0xff]  }
 0x8ae   :  { %5758 = vmatpush1.bf16.msra.mxu1 %v13326_v50  ;;  %v13341_v50 = vld [vmem:[%s16514_s9 + $0x150] ss:$24 sps:$4 sm:$0xff]  }
 0x8af   :  { %5759 = vmatprep.subr.bf16.mxu1 %v13334_v51  ;;  %v13346_v51 = vld [vmem:[%s16514_s9 + $0x14] ss:$24 sps:$4 sm:$0xff]  }
 0x8b2   :  { %5760 = vmatpush1.bf16.msra.mxu1 %v13332_v52  ;;  %v13344_v52 = vld [vmem:[%s16514_s9 + $0x10] ss:$24 sps:$4 sm:$0xff]  }
 0x8b3   :  { %5761 = vmatprep.subr.bf16.mxu1 %v13340_v35  ;;  %v13349_v35 = vld [vmem:[%s16514_s9 + $0x44] ss:$24 sps:$4 sm:$0xff]  }
 0x8b6   :  { %5762 = vmatpush1.bf16.msra.mxu1 %v13338_v59  ;;  %v13347_v59 = vld [vmem:[%s16514_s9 + $0x40] ss:$24 sps:$4 sm:$0xff]  }
 0x8b7   :  { %6045 = vmatprep.subr.bf16.mxu1 %v13370_v63  ;;  %v13350_v63 = vld [vmem:[%s16514_s9 + $0x70] ss:$24 sps:$4 sm:$0xff]  }
 0x8b9   :  { %5780 = vmatmul.mubr.bf16.vlgmr.msra.gmra.mrb[40].mxu1 %v15924_v60 }
 0x8ba   :  { %6046 = vmatpush1.bf16.msra.mxu1 %v13368_v61  ;;  %v13352_v61 = vld [vmem:[%s16514_s9 + $0x74] ss:$24 sps:$4 sm:$0xff]  }
 0x8bb   :  { %6047 = vmatprep.subr.bf16.mxu1 %v13373_v0  ;;  %v13355_v0 = vld [vmem:[%s16514_s9 + $0xa4] ss:$24 sps:$4 sm:$0xff]  }
 0x8be   :  { %6048 = vmatpush1.bf16.msra.mxu1 %v13371_v1  ;;  %v13353_v1 = vld [vmem:[%s16514_s9 + $0xa0] ss:$24 sps:$4 sm:$0xff]  }
 0x8bf   :  { %6049 = vmatprep.subr.bf16.mxu1 %v13376_v2  ;;  %v13358_v2 = vld [vmem:[%s16514_s9 + $0xd4] ss:$24 sps:$4 sm:$0xff]  }
 0x8c2   :  { %6050 = vmatpush1.bf16.msra.mxu1 %v13374_v4  ;;  %v13356_v4 = vld [vmem:[%s16514_s9 + $0xd0] ss:$24 sps:$4 sm:$0xff]  }
 0x8c3   :  { %6051 = vmatprep.subr.bf16.mxu1 %v13379_v5  ;;  %v13361_v5 = vld [vmem:[%s16514_s9 + $0x104] ss:$24 sps:$4 sm:$0xff]  }
 0x8c6   :  { %6052 = vmatpush1.bf16.msra.mxu1 %v13377_v6  ;;  %v13359_v6 = vld [vmem:[%s16514_s9 + $0x100] ss:$24 sps:$4 sm:$0xff]  }
 0x8c7   :  { %6053 = vmatprep.subr.bf16.mxu1 %v13382_v8  ;;  %v13364_v8 = vld [vmem:[%s16514_s9 + $0x134] ss:$24 sps:$4 sm:$0xff]  }
 0x8ca   :  { %6054 = vmatpush1.bf16.msra.mxu1 %v13380_v31  ;;  %v13362_v31 = vld [vmem:[%s16514_s9 + $0x130] ss:$24 sps:$4 sm:$0xff]  }
 0x8cb   :  { %6055 = vmatprep.subr.bf16.mxu1 %v13385_v9  ;;  %v13367_v9 = vld [vmem:[%s16514_s9 + $0x164] ss:$24 sps:$4 sm:$0xff]  }
 0x8ce   :  { %6056 = vmatpush1.bf16.msra.mxu1 %v13383_v10  ;;  %v13365_v10 = vld [vmem:[%s16514_s9 + $0x160] ss:$24 sps:$4 sm:$0xff]  }
 0x948   :  { %v11959_v11 = vpop.f32.mrb[32].mxu1 }
 0x949   :  { %v11960_v13 = vpop.f32.mrb[33].mxu1 }
 0x94a   :  { %v11961_v15 = vadd.f32 %v11960_v13, %v11959_v11  ;;  %v11962_v18 = vpop.f32.mrb[34].mxu1  ;;  %v13388_v11 = vld [vmem:[#allocation21 + $0x64] ss:$8 sps:$4 sm:$0xff]   ;;  %v13386_v13 = vld [vmem:[#allocation21 + $0x60] ss:$8 sps:$4 sm:$0xff]  }
 0x94b   :  { %v11963_v12 = vpop.f32.mrb[35].mxu1  ;;  %6057 = vmatprep.subr.bf16.mxu1 %v13388_v11  ;;  %v13389_v18 = vld [vmem:[#allocation21 + $0x70] ss:$8 sps:$4 sm:$0xff]  }
 0x94c   :  { %v5214_v22 = vadd.f32 %v11961_v15, %v11267_v19  ;;  %6058 = vmatpush1.bf16.msra.mxu1 %v13386_v13  ;;  %v13391_v15 = vld [vmem:[#allocation21 + $0x74] ss:$8 sps:$4 sm:$0xff]   ;;  %v13392_v12 = vld [vmem:[#allocation21 + $0x80] ss:$8 sps:$4 sm:$0xff]   ;;  %v13394_v19 = vld [vmem:[#allocation21 + $0x84] ss:$8 sps:$4 sm:$0xff]  }
 0x94d   :  { %6059 = vmatprep.subr.bf16.mxu1 %v13391_v15 }
 0x950   :  { %6060 = vmatpush1.bf16.msra.mxu1 %v13389_v18 }
 0x951   :  { %6061 = vmatprep.subr.bf16.mxu1 %v13394_v19 }
 0x954   :  { %6062 = vmatpush1.bf16.msra.mxu1 %v13392_v12 }
 0x967   :  { %v11981_v20 = vpop.f32.mrb[32].mxu0 }
 0x968   :  { %v11982_v21 = vpop.f32.mrb[33].mxu0 }
 0x969   :  { %v11983_v23 = vadd.f32 %v11982_v21, %v11981_v20  ;;  %v11984_v24 = vpop.f32.mrb[34].mxu0  ;;  %v13397_v20 = vld [vmem:[#allocation21 + $0x94] ss:$8 sps:$4 sm:$0xff]   ;;  %v13395_v21 = vld [vmem:[#allocation21 + $0x90] ss:$8 sps:$4 sm:$0xff]  }
 0x96a   :  { %v11985_v25 = vpop.f32.mrb[35].mxu0  ;;  %6063 = vmatprep.subr.bf16.mxu1 %v13397_v20  ;;  %v13401_v24 = vld [vmem:[#allocation21 + $0xb0] ss:$8 sps:$4 sm:$0xff]  }
 0x96b   :  { %v5254_v56 = vadd.f32 %v11983_v23, %v5214_v22  ;;  %v13400_v22 = vld [vmem:[#allocation21 + $0xa4] ss:$8 sps:$4 sm:$0xff]   ;;  %6064 = vmatpush1.bf16.msra.mxu1 %v13395_v21  ;;  %v13398_v23 = vld [vmem:[#allocation21 + $0xa0] ss:$8 sps:$4 sm:$0xff]  }
 0x96c   :  { %v5293_v27 = vpop.f32.mrb[36].mxu1  ;;  %6065 = vmatprep.subr.bf16.mxu1 %v13400_v22  ;;  %v13406_v25 = vld [vmem:[#allocation21 + $0xc4] ss:$8 sps:$4 sm:$0xff]  }
 0x96d   :  { %v5294_v28 = vadd.f32 %v5293_v27, %v5254_v56  ;;  %v12391_v29 = vpop.f32.mrb[37].mxu1  ;;  %v13404_v56 = vld [vmem:[#allocation21 + $0xc0] ss:$8 sps:$4 sm:$0xff]   ;;  %v13409_v27 = vld [vmem:[#allocation21 + $0xd4] ss:$8 sps:$4 sm:$0xff]  }
 0x96e   :  { %v5296_v30 = vpop.f32.mrb[38].mxu1  ;;  %v13407_v29 = vld [vmem:[#allocation21 + $0xd0] ss:$8 sps:$4 sm:$0xff]  }
 0x96f   :  { %v5299_v32 = vmax.f32 %v5294_v28, 0.0  ;;  %v12392_v33 = vpop.f32.mrb[39].mxu1  ;;  %6066 = vmatpush1.bf16.msra.mxu1 %v13398_v23  ;;  %v15963_v28 = vld [vmem:[#allocation19] sm:$0x3f] }
 0x970   :  { %v5447_v30 = vrot.slane %v15963_v28, %v15608_v14 }
 0x971   :  { %v5300_v36 = vpack.c.bf16 %v5299_v32, %v5299_v32  ;;  %v5451_v32 = vrot.slane %v15963_v28, %v15549_v3 }
 0x973   :  { %11312 = vmatmul.mubr.msk.bf16.vlgmr.msra.gmra.mrb[36].mxu0 %vm4148_vm1, %v5300_v36 }
 0x974   :  { %5707 = vmatpush1.bf16.msra.mxu0 %v13299_v34  ;;  %5738 = vmatprep.mubr.bf16.mxu0 %v14808_v7 }
 0x975   :  { %5708 = vmatprep.subr.bf16.mxu0 %v13307_v37  ;;  %v13412_v37 = vld [vmem:[#allocation21 + $0xe4] ss:$8 sps:$4 sm:$0xff]  }
 0x978   :  { %5709 = vmatpush1.bf16.msra.mxu0 %v13305_v17 }
 0x979   :  { %5710 = vmatprep.subr.bf16.mxu0 %v13313_v38 }
 0x97c   :  { %5711 = vmatpush1.bf16.msra.mxu0 %v13311_v39  ;;  %v13410_v39 = vld [vmem:[#allocation21 + $0xe0] ss:$8 sps:$4 sm:$0xff]  }
 0x97d   :  { %5712 = vmatprep.subr.bf16.mxu0 %v13319_v40 }
 0x980   :  { %5713 = vmatpush1.bf16.msra.mxu0 %v13317_v41 }
 0x981   :  { %5714 = vmatprep.subr.bf16.mxu0 %v13325_v62 }
 0x984   :  { %5715 = vmatpush1.bf16.msra.mxu0 %v13323_v42  ;;  %v13415_v42 = vld [vmem:[#allocation21 + $0xf4] ss:$8 sps:$4 sm:$0xff]  }
 0x985   :  { %5716 = vmatprep.subr.bf16.mxu0 %v13331_v43 }
 0x988   :  { %5717 = vmatpush1.bf16.msra.mxu0 %v13329_v44  ;;  %v13413_v44 = vld [vmem:[#allocation21 + $0xf0] ss:$8 sps:$4 sm:$0xff]  }
 0x989   :  { %5718 = vmatprep.subr.bf16.mxu0 %v13337_v45  ;;  %v13416_v45 = vld [vmem:[%s16516_s19 + $0x40] sm:$0xff]  }
 0x98c   :  { %5719 = vmatpush1.bf16.msra.mxu0 %v13335_v47  ;;  %v5781_v33 = vpop.f32.mrb[40].mxu1  ;;  %v13417_v47 = vld [vmem:[%s16516_s19] sm:$0xff]  }
 0x98d   :  { %5720 = vmatprep.subr.bf16.mxu0 %v13343_v48  ;;  %v15969_v34 = vadd.f32 %v5781_v33, %v5447_v30  ;;  %v5783_v36 = vpop.f32.mrb[41].mxu1  ;;  %v13418_v48 = vld [vmem:[%s16516_s19 + $0x48] sm:$0xff]  }
 0x98e   :  { %v15971_v17 = vadd.f32 %v5783_v36, %v5451_v32  ;;  %v5785_v38 = vpop.f32.mrb[42].mxu1 }
 0x98f   :  { %v5831_v40 = vmax.f32 %v15969_v34, 0.0  ;;  %v5786_v41 = vpop.f32.mrb[43].mxu1 }
 0x990   :  { %5721 = vmatpush1.bf16.msra.mxu0 %v13341_v50  ;;  %v5832_v62 = vmax.f32 %v15971_v17, 0.0  ;;  %v13419_v50 = vld [vmem:[%s16516_s19 + $0x8] sm:$0xff]   ;;  %v5459_v41 = vrot.slane %v15963_v28, %v15645_v58  ;;  %v13430_v17 = vld [vmem:[%s16516_s19 + $0x78] sm:$0xff]  }
 0x991   :  { %5788 = vmatprep.subr.bf16.mxu0 %v13346_v51  ;;  %v13420_v51 = vld [vmem:[%s16516_s19 + $0x50] sm:$0xff]  }
 0x992   :  { %v15979_v43 = vpack.c.bf16 %v5832_v62, %v5831_v40 }
 0x993   :  { %5739 = vmatmul.mubr.bf16.vlgmr.msra.gmra.mrb[40].mxu0 %v15924_v60 }
 0x994   :  { %5789 = vmatpush1.bf16.msra.mxu0 %v13344_v52  ;;  %5820 = vmatprep.mubr.bf16.mxu0 %v14808_v7  ;;  %v13421_v52 = vld [vmem:[%s16516_s19 + $0x10] sm:$0xff]  }
 0x995   :  { %5790 = vmatprep.subr.bf16.mxu0 %v13349_v35  ;;  %v13422_v35 = vld [vmem:[%s16516_s19 + $0x58] sm:$0xff]  }
 0x998   :  { %5791 = vmatpush1.bf16.msra.mxu0 %v13347_v59  ;;  %v13423_v59 = vld [vmem:[%s16516_s19 + $0x18] sm:$0xff]  }
 0x999   :  { %5792 = vmatprep.subr.bf16.mxu0 %v13352_v61  ;;  %v13424_v61 = vld [vmem:[%s16516_s19 + $0x60] sm:$0xff]  }
 0x99c   :  { %5793 = vmatpush1.bf16.msra.mxu0 %v13350_v63  ;;  %v13425_v63 = vld [vmem:[%s16516_s19 + $0x20] sm:$0xff]  }
 0x99d   :  { %5794 = vmatprep.subr.bf16.mxu0 %v13355_v0  ;;  %v13426_v0 = vld [vmem:[%s16516_s19 + $0x68] sm:$0xff]  }
 0x9a0   :  { %5795 = vmatpush1.bf16.msra.mxu0 %v13353_v1  ;;  %v13427_v1 = vld [vmem:[%s16516_s19 + $0x28] sm:$0xff]  }
 0x9a1   :  { %5796 = vmatprep.subr.bf16.mxu0 %v13358_v2  ;;  %v4116_v2 = vld [vmem:[#allocation9] sm:$0x3] }
 0x9a4   :  { %5797 = vmatpush1.bf16.msra.mxu0 %v13356_v4  ;;  %v5305_v4 = vld [vmem:[#allocation18] sm:$0x3] }
 0x9a5   :  { %5798 = vmatprep.subr.bf16.mxu0 %v13361_v5  ;;  %v4121_v5 = vrot.slane %v4116_v2, %v15537_v55 }
 0x9a8   :  { %5799 = vmatpush1.bf16.msra.mxu0 %v13359_v6  ;;  %v4125_v6 = vrot.slane %v4116_v2, %v15542_v57  ;;  %v13440_v2 = vld [vmem:[%s16516_s19 + $0x150] sm:$0xff]  }
 0x9a9   :  { %5800 = vmatprep.subr.bf16.mxu0 %v13364_v8  ;;  %v5310_v8 = vrot.slane %v5305_v4, %v15537_v55 }
 0x9ac   :  { %5801 = vmatpush1.bf16.msra.mxu0 %v13362_v31  ;;  %v5314_v31 = vrot.slane %v5305_v4, %v15542_v57  ;;  %v13442_v4 = vld [vmem:[%s16516_s19 + $0x110] sm:$0xff]  }
 0x9ad   :  { %5802 = vmatprep.subr.bf16.mxu0 %v13367_v9  ;;  %v4187_v9 = vadd.f32 %v15852_v49, %v4121_v5  ;;  %v5443_v49 = vrot.slane %v15963_v28, %v15542_v57  ;;  %v13444_v5 = vld [vmem:[%s16516_s19 + $0x158] sm:$0xff]  }
 0x9af   :  { %v4193_v19 = vmax.f32 %v4187_v9, 0.0  ;;  %v13452_v9 = vld [vmem:[%s16516_s19 + $0x168] sm:$0xff]  }
 0x9b0   :  { %5803 = vmatpush1.bf16.msra.mxu0 %v13365_v10  ;;  %v4189_v10 = vadd.f32 %v15854_v46, %v4125_v6  ;;  %v13446_v6 = vld [vmem:[%s16516_s19 + $0x118] sm:$0xff]  }
 0x9b1   :  { %11996 = vmatprep.subr.bf16.mxu0 %v13416_v45 }
 0x9b2   :  { %v4194_v22 = vmax.f32 %v4189_v10, 0.0  ;;  %v13454_v10 = vld [vmem:[%s16516_s19 + $0x128] sm:$0xff]  }
 0x9b3   :  { %5821 = vmatmul.mubr.bf16.vlgmr.msra.gmra.mrb[44].mxu0 %v15924_v60  ;;  %v13403_v60 = vld [vmem:[#allocation21 + $0xb4] ss:$8 sps:$4 sm:$0xff]  }
 0x9b4   :  { %6067 = vmatprep.subr.bf16.mxu1 %v13403_v60  ;;  %11997 = vmatpush3.bf16.msra.mxu0 %v13417_v47 }
 0x9b5   :  { %6068 = vmatpush1.bf16.msra.mxu1 %v13401_v24  ;;  %11998 = vmatprep.subr.bf16.mxu0 %v13418_v48 }
 0x9b6   :  { %6069 = vmatprep.subr.bf16.mxu1 %v13406_v25  ;;  %v5439_v25 = vrot.slane %v15963_v28, %v15537_v55 }
 0x9b8   :  { %11999 = vmatpush3.bf16.msra.mxu0 %v13419_v50 }
 0x9b9   :  { %6070 = vmatpush1.bf16.msra.mxu1 %v13404_v56  ;;  %12000 = vmatprep.subr.bf16.mxu0 %v13420_v51 }
 0x9ba   :  { %6071 = vmatprep.subr.bf16.mxu1 %v13409_v27 }
 0x9bc   :  { %12001 = vmatpush3.bf16.msra.mxu0 %v13421_v52 }
 0x9bd   :  { %6072 = vmatpush1.bf16.msra.mxu1 %v13407_v29  ;;  %12002 = vmatprep.subr.bf16.mxu0 %v13422_v35  ;;  %v13428_v35 = vld [vmem:[%s16516_s19 + $0x70] sm:$0xff]  }
 0x9be   :  { %6073 = vmatprep.subr.bf16.mxu1 %v13412_v37 }
 0x9c0   :  { %12003 = vmatpush3.bf16.msra.mxu0 %v13423_v59  ;;  %v13429_v59 = vld [vmem:[%s16516_s19 + $0x30] sm:$0xff]  }
 0x9c1   :  { %6074 = vmatpush1.bf16.msra.mxu1 %v13410_v39  ;;  %12004 = vmatprep.subr.bf16.mxu0 %v13424_v61  ;;  %v5455_v39 = vrot.slane %v15963_v28, %v15672_v26  ;;  %v13431_v61 = vld [vmem:[%s16516_s19 + $0x38] sm:$0xff]  }
 0x9c2   :  { %6075 = vmatprep.subr.bf16.mxu1 %v13415_v42 }
 0x9c4   :  { %12005 = vmatpush3.bf16.msra.mxu0 %v13425_v63  ;;  %v13433_v63 = vld [vmem:[%s16516_s19 + $0xc0] sm:$0xff]  }
 0x9c5   :  { %6076 = vmatpush1.bf16.msra.mxu1 %v13413_v44  ;;  %12006 = vmatprep.subr.bf16.mxu0 %v13426_v0  ;;  %v13436_v0 = vld [vmem:[%s16516_s19 + $0x148] sm:$0xff]  }
 0x9c8   :  { %12007 = vmatpush3.bf16.msra.mxu0 %v13427_v1  ;;  %v13438_v1 = vld [vmem:[%s16516_s19 + $0x108] sm:$0xff]  }
 0x9c9   :  { %12008 = vmatprep.subr.bf16.mxu0 %v13428_v35 }
 0x9cc   :  { %12009 = vmatpush3.bf16.msra.mxu0 %v13429_v59  ;;  %v13461_v59 = vld [vmem:[%s16516_s19 + $0xf8] sm:$0xff]  }
 0x9cd   :  { %12010 = vmatprep.subr.bf16.mxu0 %v13430_v17 }
 0x9d0   :  { %12011 = vmatpush3.bf16.msra.mxu0 %v13431_v61 }
 0x9d1   :  { %12018 = vmatprep.subr.bf16.mxu0 %v13433_v63 }
 0xa46   :  { %v5374_v11 = vpop.f32.mrb[36].mxu0 }
 0xa47   :  { %v5375_v13 = vadd.f32 %v5374_v11, %v5310_v8  ;;  %v5376_v15 = vpop.f32.mrb[37].mxu0  ;;  %v13448_v8 = vld [vmem:[%s16516_s19 + $0x160] sm:$0xff]   ;;  %v13456_v11 = vld [vmem:[%s16516_s19 + $0x170] sm:$0xff]  }
 0xa48   :  { %v5377_v18 = vadd.f32 %v5376_v15, %v5314_v31  ;;  %v5378_v12 = vpop.f32.mrb[38].mxu0  ;;  %v13450_v31 = vld [vmem:[%s16516_s19 + $0x120] sm:$0xff]   ;;  %v13460_v15 = vld [vmem:[%s16516_s19 + $0x178] sm:$0xff]  }
 0xa49   :  { %v5381_v20 = vmax.f32 %v5375_v13, 0.0  ;;  %v5379_v21 = vpop.f32.mrb[39].mxu0  ;;  %v13458_v13 = vld [vmem:[%s16516_s19 + $0x130] sm:$0xff]   ;;  %v13464_v12 = vld [vmem:[%s16516_s19 + $0x240] sm:$0xff]  }
 0xa4a   :  { %v5382_v23 = vmax.f32 %v5377_v18, 0.0  ;;  %v13462_v18 = vld [vmem:[%s16516_s19 + $0x138] sm:$0xff]  }
 0xa4b   :  { %v15999_v60 = vadd.f32 %v5381_v20, %v4193_v19  ;;  %v5873_v19 = vld [vmem:[#allocation22] sm:$0x3] }
 0xa4c   :  { %v16001_v24 = vadd.f32 %v5382_v23, %v4194_v22  ;;  %v16039_v20 = vrot.slane %v5873_v19, %v15537_v55  ;;  %v16042_v21 = vrot.slane %v5873_v19, %v15542_v57  ;;  %v13468_v19 = vld [vmem:[%s16516_s19 + $0x248] sm:$0xff]  }
 0xa66   :  { %v5740_v46 = vpop.f32.mrb[40].mxu0 }
 0xa67   :  { %v5741_v56 = vadd.f32 %v5740_v46, %v5439_v25  ;;  %v5742_v27 = vpop.f32.mrb[41].mxu0 }
 0xa68   :  { %v5743_v29 = vadd.f32 %v5742_v27, %v5443_v49  ;;  %v5744_v30 = vpop.f32.mrb[42].mxu0 }
 0xa69   :  { %v5829_v32 = vmax.f32 %v5741_v56, 0.0  ;;  %v5745_v33 = vpop.f32.mrb[43].mxu0 }
 0xa6a   :  { %v5830_v36 = vmax.f32 %v5743_v29, 0.0 }
 0xa6c   :  { %v5835_v37 = vpack.c.bf16 %v5830_v36, %v5829_v32  ;;  %v5836_v38 = vpack.c.bf16 %v5831_v40, %v5830_v36  ;;  %v13435_v36 = vld [vmem:[%s16516_s19 + $0x80] sm:$0xff]  }
 0xa6e   :  { %6077 = vmatprep.mubr.bf16.mxu1 %v5836_v38  ;;  %v13437_v38 = vld [vmem:[%s16516_s19 + $0xc8] sm:$0xff]  }
 0xa6f   :  { %6078 = vmatmul.mubr.bf16.vlgmr.msra.gmra.mrb[44].mxu1 %v5835_v37 }
 0xa86   :  { %v5822_v42 = vpop.f32.mrb[44].mxu0 }
 0xa87   :  { %v5823_v44 = vadd.f32 %v5822_v42, %v5455_v39  ;;  %v5824_v45 = vpop.f32.mrb[45].mxu0  ;;  %v13441_v42 = vld [vmem:[%s16516_s19 + $0xd0] sm:$0xff]  }
 0xa88   :  { %v5825_v47 = vadd.f32 %v5824_v45, %v5459_v41  ;;  %v5826_v48 = vpop.f32.mrb[46].mxu0  ;;  %v13439_v41 = vld [vmem:[%s16516_s19 + $0x88] sm:$0xff]   ;;  %v13445_v45 = vld [vmem:[%s16516_s19 + $0xd8] sm:$0xff]  }
 0xa89   :  { %v5833_v50 = vmax.f32 %v5823_v44, 0.0  ;;  %v5827_v34 = vpop.f32.mrb[47].mxu0  ;;  %v13443_v44 = vld [vmem:[%s16516_s19 + $0x90] sm:$0xff]   ;;  %v13449_v48 = vld [vmem:[%s16516_s19 + $0xe0] sm:$0xff]  }
 0xa8a   :  { %v5834_v40 = vmax.f32 %v5825_v47, 0.0  ;;  %v13447_v47 = vld [vmem:[%s16516_s19 + $0x98] sm:$0xff]   ;;  %v13453_v34 = vld [vmem:[%s16516_s19 + $0xe8] sm:$0xff]  }
 0xa8b   :  { %v5838_v51 = vpack.c.bf16 %v5833_v50, %v5832_v62  ;;  %v5839_v28 = vpack.c.bf16 %v5833_v50, %v5833_v50  ;;  %v13432_v62 = vld [vmem:[%s16516_s19 + $0x140] sm:$0xff]  }
 0xa8c   :  { %v5840_v52 = vpack.c.bf16 %v5834_v40, %v5834_v40  ;;  %12040 = vmatprep.subr.bf16.mxu1 %v13432_v62  ;;  %v13451_v50 = vld [vmem:[%s16516_s19 + $0xa0] sm:$0xff]   ;;  %v13455_v40 = vld [vmem:[%s16516_s19 + $0xa8] sm:$0xff]  }
 0xa8d   :  { %6087 = vmatprep.mubr.bf16.mxu1 %v5838_v51  ;;  %v13457_v51 = vld [vmem:[%s16516_s19 + $0xf0] sm:$0xff]  }
 0xa8e   :  { %6088 = vmatmul.mubr.bf16.gmra.mrb[48].mxu1 %v15979_v43  ;;  %v13434_v43 = vld [vmem:[%s16516_s19 + $0x100] sm:$0xff]  }
 0xa8f   :  { %6097 = vmatprep.mubr.bf16.mxu1 %v5840_v52  ;;  %12041 = vmatpush3.bf16.msra.mxu1 %v13434_v43  ;;  %v13459_v52 = vld [vmem:[%s16516_s19 + $0xb0] sm:$0xff]  }
 0xa90   :  { %12042 = vmatprep.subr.bf16.mxu1 %v13436_v0 }
 0xa93   :  { %12043 = vmatpush3.bf16.msra.mxu1 %v13438_v1 }
 0xa94   :  { %12044 = vmatprep.subr.bf16.mxu1 %v13440_v2  ;;  %v13463_v2 = vld [vmem:[%s16516_s19 + $0xb8] sm:$0xff]  }
 0xa96   :  { %6098 = vmatmul.mubr.bf16.gmra.mrb[52].mxu1 %v5839_v28 }
 0xa97   :  { %12045 = vmatpush3.bf16.msra.mxu1 %v13442_v4 }
 0xa98   :  { %12046 = vmatprep.subr.bf16.mxu1 %v13444_v5 }
 0xa9b   :  { %12047 = vmatpush3.bf16.msra.mxu1 %v13446_v6 }
 0xa9c   :  { %12048 = vmatprep.subr.bf16.mxu1 %v13448_v8  ;;  %v13465_v8 = vld [vmem:[%s16516_s19 + $0x1c0] sm:$0xff]  }
 0xa9f   :  { %12049 = vmatpush3.bf16.msra.mxu1 %v13450_v31 }
 0xaa0   :  { %12050 = vmatprep.subr.bf16.mxu1 %v13452_v9 }
 0xaa3   :  { %12051 = vmatpush3.bf16.msra.mxu1 %v13454_v10  ;;  %v13466_v10 = vld [vmem:[%s16516_s19 + $0x200] sm:$0xff]  }
 0xaa4   :  { %12052 = vmatprep.subr.bf16.mxu1 %v13456_v11 }
 0xaa7   :  { %12053 = vmatpush3.bf16.msra.mxu1 %v13458_v13  ;;  %v13467_v13 = vld [vmem:[%s16516_s19 + $0x180] sm:$0xff]  }
 0xaa8   :  { %12054 = vmatprep.subr.bf16.mxu1 %v13460_v15 }
 0xaab   :  { %12055 = vmatpush3.bf16.msra.mxu1 %v13462_v18 }
 0xaac   :  { %12084 = vmatprep.subr.bf16.mxu1 %v13464_v12 }
 0xb42   :  { %v6079_v22 = vpop.f32.mrb[44].mxu1 }
 0xb43   :  { %v6080_v23 = vadd.f32 %v6079_v22, %v16039_v20  ;;  %v6081_v25 = vpop.f32.mrb[45].mxu1  ;;  %v13469_v22 = vld [vmem:[%s16516_s19 + $0x1c8] sm:$0xff]  }
 0xb44   :  { %v6082_v49 = vadd.f32 %v6081_v25, %v16042_v21  ;;  %v6083_v46 = vpop.f32.mrb[46].mxu1 }
 0xb45   :  { %v6106_v56 = vmax.f32 %v6080_v23, 0.0  ;;  %v6085_v27 = vpop.f32.mrb[47].mxu1  ;;  %v6084_v28 = vadd.f32 %v6083_v46, %v16039_v20 }
 0xb46   :  { %v6107_v29 = vmax.f32 %v6082_v49, 0.0  ;;  %v6086_v30 = vadd.f32 %v6085_v27, %v16042_v21 }
 0xb47   :  { %v6116_v37 = vpack.c.bf16 %v6106_v56, %v6106_v56  ;;  %v6108_v4 = vmax.f32 %v6084_v28, 0.0  ;;  %v13470_v56 = vld [vmem:[%s16516_s19 + $0x208] sm:$0xff]   ;;  %v13490_v28 = vld [vmem:[%s16516_s19 + $0x230] sm:$0xff]  }
 0xb48   :  { %v6117_v32 = vpack.c.bf16 %v6107_v29, %v6107_v29  ;;  %v6109_v33 = vmax.f32 %v6086_v30, 0.0  ;;  %v13471_v29 = vld [vmem:[%s16516_s19 + $0x188] sm:$0xff]   ;;  %v13472_v30 = vld [vmem:[%s16516_s19 + $0x250] sm:$0xff]  }
 0xb49   :  { %v6118_v15 = vpack.c.bf16 %v6108_v4, %v6108_v4  ;;  %v13496_v4 = vld [vmem:[#allocation28] ss:$24 sps:$4 sm:$0xff]  }
 0xb4a   :  { %v6119_v39 = vpack.c.bf16 %v6109_v33, %v6109_v33  ;;  %6805 = vmatprep.mubr.bf16.mxu0 %v6117_v32  ;;  %v13473_v32 = vld [vmem:[%s16516_s19 + $0x1d0] sm:$0xff]  }
 0xb4b   :  { %6806 = vmatmul.mubr.bf16.vlgmr.msra.gmra.mrb[48].mxu0 %v6116_v37  ;;  %v13474_v33 = vld [vmem:[%s16516_s19 + $0x210] sm:$0xff]   ;;  %v13476_v37 = vld [vmem:[%s16516_s19 + $0x258] sm:$0xff]  }
 0xb4c   :  { %12019 = vmatpush3.bf16.msra.mxu0 %v13435_v36  ;;  %6845 = vmatprep.mubr.bf16.mxu0 %v6119_v39  ;;  %v13475_v36 = vld [vmem:[%s16516_s19 + $0x190] sm:$0xff]   ;;  %v13478_v39 = vld [vmem:[%s16516_s19 + $0x218] sm:$0xff]  }
 0xb4d   :  { %12020 = vmatprep.subr.bf16.mxu0 %v13437_v38  ;;  %v13477_v38 = vld [vmem:[%s16516_s19 + $0x1d8] sm:$0xff]  }
 0xb50   :  { %12021 = vmatpush3.bf16.msra.mxu0 %v13439_v41  ;;  %v13479_v41 = vld [vmem:[%s16516_s19 + $0x198] sm:$0xff]  }
 0xb51   :  { %12022 = vmatprep.subr.bf16.mxu0 %v13441_v42  ;;  %v13480_v42 = vld [vmem:[%s16516_s19 + $0x260] sm:$0xff]  }
 0xb54   :  { %12023 = vmatpush3.bf16.msra.mxu0 %v13443_v44  ;;  %v13481_v44 = vld [vmem:[%s16516_s19 + $0x1e0] sm:$0xff]  }
 0xb55   :  { %12024 = vmatprep.subr.bf16.mxu0 %v13445_v45  ;;  %v13482_v45 = vld [vmem:[%s16516_s19 + $0x220] sm:$0xff]  }
 0xb58   :  { %12025 = vmatpush3.bf16.msra.mxu0 %v13447_v47  ;;  %v13483_v47 = vld [vmem:[%s16516_s19 + $0x1a0] sm:$0xff]  }
 0xb59   :  { %12026 = vmatprep.subr.bf16.mxu0 %v13449_v48  ;;  %v13484_v48 = vld [vmem:[%s16516_s19 + $0x268] sm:$0xff]  }
 0xb5c   :  { %12027 = vmatpush3.bf16.msra.mxu0 %v13451_v50  ;;  %v13485_v50 = vld [vmem:[%s16516_s19 + $0x1e8] sm:$0xff]  }
 0xb5d   :  { %12028 = vmatprep.subr.bf16.mxu0 %v13453_v34  ;;  %v13486_v34 = vld [vmem:[%s16516_s19 + $0x228] sm:$0xff]  }
 0xb60   :  { %12029 = vmatpush3.bf16.msra.mxu0 %v13455_v40  ;;  %v13487_v40 = vld [vmem:[%s16516_s19 + $0x1a8] sm:$0xff]  }
 0xb61   :  { %v6089_v35 = vpop.f32.mrb[48].mxu1  ;;  %12030 = vmatprep.subr.bf16.mxu0 %v13457_v51  ;;  %v13488_v51 = vld [vmem:[%s16516_s19 + $0x270] sm:$0xff]  }
 0xb62   :  { %v6090_v17 = vadd.f32 %v6089_v35, %v16039_v20  ;;  %v6091_v61 = vpop.f32.mrb[49].mxu1  ;;  %v13491_v35 = vld [vmem:[%s16516_s19 + $0x1b0] sm:$0xff]  }
 0xb63   :  { %v6092_v62 = vadd.f32 %v6091_v61, %v16042_v21  ;;  %v6093_v63 = vpop.f32.mrb[50].mxu1  ;;  %v13494_v61 = vld [vmem:[%s16516_s19 + $0x238] sm:$0xff]  }
 0xb64   :  { %v6110_v43 = vmax.f32 %v6090_v17, 0.0  ;;  %v16065_v0 = vadd.f32 %v6093_v63, %v16039_v20  ;;  %12031 = vmatpush3.bf16.msra.mxu0 %v13459_v52  ;;  %v6095_v1 = vpop.f32.mrb[51].mxu1  ;;  %v13489_v52 = vld [vmem:[%s16516_s19 + $0x1f0] sm:$0xff]   ;;  %v13493_v17 = vld [vmem:[%s16516_s19 + $0x1f8] sm:$0xff]  }
 0xb65   :  { %v6111_v5 = vmax.f32 %v6092_v62, 0.0  ;;  %v6096_v6 = vadd.f32 %v6095_v1, %v16042_v21  ;;  %12032 = vmatprep.subr.bf16.mxu0 %v13461_v59  ;;  %v13492_v59 = vld [vmem:[%s16516_s19 + $0x278] sm:$0xff]  }
 0xb66   :  { %v6120_v11 = vpack.c.bf16 %v6110_v43, %v6110_v43  ;;  %v13495_v63 = vld [vmem:[%s16516_s19 + $0x1b8] sm:$0xff]   ;;  %v6112_v43 = vmax.f32 %v16065_v0, 0.0  ;;  %v13502_v0 = vld [vmem:[#allocation28 + $0x60] ss:$24 sps:$4 sm:$0xff]  }
 0xb67   :  { %v6121_v31 = vpack.c.bf16 %v6111_v5, %v6111_v5  ;;  %v6113_v9 = vmax.f32 %v6096_v6, 0.0  ;;  %v13498_v5 = vld [vmem:[#allocation28 + $0x4] ss:$24 sps:$4 sm:$0xff]   ;;  %v13501_v6 = vld [vmem:[#allocation28 + $0x34] ss:$24 sps:$4 sm:$0xff]  }
 0xb68   :  { %12033 = vmatpush3.bf16.msra.mxu0 %v13463_v2  ;;  %v6122_v2 = vpack.c.bf16 %v6112_v43, %v6112_v43 }
 0xb69   :  { %v6123_v18 = vpack.c.bf16 %v6113_v9, %v6113_v9  ;;  %v6099_v12 = vpop.f32.mrb[52].mxu1  ;;  %6885 = vmatprep.mubr.bf16.mxu1 %v6121_v31  ;;  %12062 = vmatprep.subr.bf16.mxu0 %v13465_v8  ;;  %v13499_v8 = vld [vmem:[#allocation28 + $0x30] ss:$24 sps:$4 sm:$0xff]   ;;  %v13504_v31 = vld [vmem:[#allocation28 + $0x64] ss:$24 sps:$4 sm:$0xff]  }
 0xb6a   :  { %v16075_v23 = vadd.f32 %v6099_v12, %v16039_v20  ;;  %v6101_v25 = vpop.f32.mrb[53].mxu1  ;;  %6886 = vmatmul.mubr.bf16.vlgmr.msra.gmra.mrb[56].mxu1 %v6120_v11  ;;  %v13507_v9 = vld [vmem:[#allocation28 + $0x94] ss:$24 sps:$4 sm:$0xff]   ;;  %v13510_v11 = vld [vmem:[#allocation28 + $0xc4] ss:$24 sps:$4 sm:$0xff]  }
 0xb6b   :  { %v6102_v49 = vadd.f32 %v6101_v25, %v16042_v21  ;;  %6846 = vmatmul.mubr.bf16.vlgmr.msra.gmra.mrb[52].mxu0 %v6118_v15  ;;  %12085 = vmatpush3.bf16.msra.mxu1 %v13466_v10  ;;  %v6103_v46 = vpop.f32.mrb[54].mxu1  ;;  %v13505_v10 = vld [vmem:[#allocation28 + $0x90] ss:$24 sps:$4 sm:$0xff]   ;;  %v13513_v15 = vld [vmem:[#allocation28 + $0xf4] ss:$24 sps:$4 sm:$0xff]  }
 0xb6c   :  { %12063 = vmatpush3.bf16.msra.mxu0 %v13467_v13  ;;  %6925 = vmatprep.mubr.bf16.mxu0 %v6123_v18  ;;  %v6104_v27 = vpop.f32.mrb[55].mxu1  ;;  %v6114_v62 = vmax.f32 %v16075_v23, 0.0  ;;  %v13508_v13 = vld [vmem:[#allocation28 + $0xc0] ss:$24 sps:$4 sm:$0xff]   ;;  %v13511_v18 = vld [vmem:[#allocation28 + $0xf0] ss:$24 sps:$4 sm:$0xff]  }
 0xb6d   :  { %v6115_v20 = vmax.f32 %v6102_v49, 0.0  ;;  %12086 = vmatprep.subr.bf16.mxu1 %v13468_v19  ;;  %12064 = vmatprep.subr.bf16.mxu0 %v13469_v22  ;;  %v13516_v12 = vld [vmem:[#allocation25 + $0x4] ss:$8 sps:$4 sm:$0xff]   ;;  %v13514_v19 = vld [vmem:[#allocation25] ss:$8 sps:$4 sm:$0xff]  }
 0xb6e   :  { %v6124_v1 = vpack.c.bf16 %v6114_v62, %v6114_v62  ;;  %v13519_v22 = vld [vmem:[#allocation28 + $0x124] ss:$24 sps:$4 sm:$0xff]   ;;  %v13517_v23 = vld [vmem:[#allocation28 + $0x120] ss:$24 sps:$4 sm:$0xff]   ;;  %v13525_v46 = vld [vmem:[#allocation28 + $0x154] ss:$24 sps:$4 sm:$0xff]  }
 0xb6f   :  { %v6125_v21 = vpack.c.bf16 %v6115_v20, %v6115_v20  ;;  %12087 = vmatpush3.bf16.msra.mxu1 %v13470_v56  ;;  %v13522_v25 = vld [vmem:[#allocation25 + $0x14] ss:$8 sps:$4 sm:$0xff]   ;;  %v13520_v49 = vld [vmem:[#allocation25 + $0x10] ss:$8 sps:$4 sm:$0xff]  }
 0xb70   :  { %12065 = vmatpush3.bf16.msra.mxu0 %v13471_v29  ;;  %12088 = vmatprep.subr.bf16.mxu1 %v13472_v30  ;;  %v13523_v56 = vld [vmem:[#allocation28 + $0x150] ss:$24 sps:$4 sm:$0xff]   ;;  %v13528_v27 = vld [vmem:[#allocation28 + $0xc] ss:$24 sps:$4 sm:$0xff]   ;;  %v16109_v20 = vld [vmem:[%s16517_s16] sm:$0xf] }
 0xb71   :  { %6965 = vmatprep.mubr.bf16.mxu1 %v6125_v21  ;;  %12066 = vmatprep.subr.bf16.mxu0 %v13473_v32  ;;  %v13531_v29 = vld [vmem:[#allocation28 + $0x14] ss:$24 sps:$4 sm:$0xff]   ;;  %v13529_v30 = vld [vmem:[#allocation28 + $0x10] ss:$24 sps:$4 sm:$0xff]   ;;  %v13537_v32 = vld [vmem:[#allocation28 + $0x44] ss:$24 sps:$4 sm:$0xff]  }
 0xb72   :  { %v13535_v21 = vld [vmem:[#allocation28 + $0x40] ss:$24 sps:$4 sm:$0xff]  }
 0xb73   :  { %12089 = vmatpush3.bf16.msra.mxu1 %v13474_v33  ;;  %v13543_v33 = vld [vmem:[#allocation28 + $0x74] ss:$24 sps:$4 sm:$0xff]  }
 0xb74   :  { %12067 = vmatpush3.bf16.msra.mxu0 %v13475_v36  ;;  %12090 = vmatprep.subr.bf16.mxu1 %v13476_v37  ;;  %v13541_v36 = vld [vmem:[#allocation28 + $0x70] ss:$24 sps:$4 sm:$0xff]   ;;  %v13549_v37 = vld [vmem:[#allocation28 + $0xa4] ss:$24 sps:$4 sm:$0xff]  }
 0xb75   :  { %12068 = vmatprep.subr.bf16.mxu0 %v13477_v38  ;;  %v13547_v38 = vld [vmem:[#allocation28 + $0xa0] ss:$24 sps:$4 sm:$0xff]  }
 0xb77   :  { %12091 = vmatpush3.bf16.msra.mxu1 %v13478_v39  ;;  %v13555_v39 = vld [vmem:[#allocation28 + $0xd4] ss:$24 sps:$4 sm:$0xff]  }
 0xb78   :  { %12069 = vmatpush3.bf16.msra.mxu0 %v13479_v41  ;;  %12092 = vmatprep.subr.bf16.mxu1 %v13480_v42  ;;  %v13553_v41 = vld [vmem:[#allocation28 + $0xd0] ss:$24 sps:$4 sm:$0xff]   ;;  %v13561_v42 = vld [vmem:[#allocation28 + $0x104] ss:$24 sps:$4 sm:$0xff]  }
 0xb79   :  { %12070 = vmatprep.subr.bf16.mxu0 %v13481_v44  ;;  %v13559_v44 = vld [vmem:[#allocation28 + $0x100] ss:$24 sps:$4 sm:$0xff]  }
 0xb7b   :  { %12093 = vmatpush3.bf16.msra.mxu1 %v13482_v45  ;;  %v13567_v45 = vld [vmem:[#allocation28 + $0x134] ss:$24 sps:$4 sm:$0xff]  }
 0xb7c   :  { %12071 = vmatpush3.bf16.msra.mxu0 %v13483_v47  ;;  %12094 = vmatprep.subr.bf16.mxu1 %v13484_v48  ;;  %v13565_v47 = vld [vmem:[#allocation28 + $0x130] ss:$24 sps:$4 sm:$0xff]   ;;  %v13573_v48 = vld [vmem:[#allocation28 + $0x164] ss:$24 sps:$4 sm:$0xff]  }
 0xb7d   :  { %12072 = vmatprep.subr.bf16.mxu0 %v13485_v50  ;;  %v13571_v50 = vld [vmem:[#allocation28 + $0x160] ss:$24 sps:$4 sm:$0xff]  }
 0xb7f   :  { %12095 = vmatpush3.bf16.msra.mxu1 %v13486_v34 }
 0xb80   :  { %12073 = vmatpush3.bf16.msra.mxu0 %v13487_v40  ;;  %12096 = vmatprep.subr.bf16.mxu1 %v13488_v51 }
 0xb81   :  { %12074 = vmatprep.subr.bf16.mxu0 %v13489_v52 }
 0xb83   :  { %12097 = vmatpush3.bf16.msra.mxu1 %v13490_v28 }
 0xb84   :  { %12075 = vmatpush3.bf16.msra.mxu0 %v13491_v35  ;;  %12098 = vmatprep.subr.bf16.mxu1 %v13492_v59  ;;  %v11393_v35 = vld [vmem:[#allocation24] ss:$0 sm:$0xff] }
 0xb85   :  { %12076 = vmatprep.subr.bf16.mxu0 %v13493_v17 }
 0xb87   :  { %12099 = vmatpush3.bf16.msra.mxu1 %v13494_v61 }
 0xb88   :  { %12077 = vmatpush3.bf16.msra.mxu0 %v13495_v63  ;;  %7380 = vmatprep.subr.bf16.mxu1 %v13498_v5 }
 0xb89   :  { %7014 = vmatprep.subr.bf16.mxu0 %v13516_v12 }
 0xb8a   :  { %6966 = vmatmul.mubr.bf16.vlgmr.msra.gmra.mrb[60].mxu1 %v6124_v1 }
 0xb8b   :  { %6926 = vmatmul.mubr.bf16.vlgmr.msra.gmra.mrb[56].mxu0 %v6122_v2  ;;  %7412 = vmatprep.mubr.bf16.mxu1 %v14808_v7 }
 0xb8c   :  { %7046 = vmatprep.mubr.bf16.mxu0 %v14808_v7  ;;  %7381 = vmatpush1.bf16.msra.mxu1 %v13496_v4 }
 0xb8d   :  { %7382 = vmatprep.subr.bf16.mxu1 %v13501_v6  ;;  %7015 = vmatpush1.bf16.msra.mxu0 %v13514_v19 }
 0xb8e   :  { %7016 = vmatprep.subr.bf16.mxu0 %v13522_v25 }
 0xb90   :  { %7383 = vmatpush1.bf16.msra.mxu1 %v13499_v8 }
 0xb91   :  { %7384 = vmatprep.subr.bf16.mxu1 %v13504_v31  ;;  %7017 = vmatpush1.bf16.msra.mxu0 %v13520_v49 }
 0xb92   :  { %7421 = vmatprep.subr.bf16.mxu0 %v13528_v27  ;;  %v13534_v27 = vld [vmem:[#allocation28 + $0x3c] ss:$24 sps:$4 sm:$0xff]  }
 0xb94   :  { %7385 = vmatpush1.bf16.msra.mxu1 %v13502_v0 }
 0xb95   :  { %7386 = vmatprep.subr.bf16.mxu1 %v13507_v9 }
 0xb98   :  { %7387 = vmatpush1.bf16.msra.mxu1 %v13505_v10 }
 0xb99   :  { %7388 = vmatprep.subr.bf16.mxu1 %v13510_v11 }
 0xb9c   :  { %7389 = vmatpush1.bf16.msra.mxu1 %v13508_v13 }
 0xb9d   :  { %7390 = vmatprep.subr.bf16.mxu1 %v13513_v15 }
 0xba0   :  { %7391 = vmatpush1.bf16.msra.mxu1 %v13511_v18 }
 0xba1   :  { %7392 = vmatprep.subr.bf16.mxu1 %v13519_v22 }
 0xba4   :  { %7393 = vmatpush1.bf16.msra.mxu1 %v13517_v23 }
 0xba5   :  { %7394 = vmatprep.subr.bf16.mxu1 %v13525_v46  ;;  %v13526_v46 = vld [vmem:[#allocation28 + $0x8] ss:$24 sps:$4 sm:$0xff]  }
 0xba8   :  { %7395 = vmatpush1.bf16.msra.mxu1 %v13523_v56 }
 0xba9   :  { %7462 = vmatprep.subr.bf16.mxu1 %v13531_v29  ;;  %v13532_v29 = vld [vmem:[#allocation28 + $0x38] ss:$24 sps:$4 sm:$0xff]  }
 0xbab   :  { %7413 = vmatmul.mubr.bf16.vlgmr.msra.gmra.mrb[64].mxu1 %v16109_v20 }
 0xbac   :  { %7463 = vmatpush1.bf16.msra.mxu1 %v13529_v30  ;;  %7494 = vmatprep.mubr.bf16.mxu1 %v14808_v7  ;;  %v13540_v30 = vld [vmem:[#allocation28 + $0x6c] ss:$24 sps:$4 sm:$0xff]  }
 0xbad   :  { %7464 = vmatprep.subr.bf16.mxu1 %v13537_v32  ;;  %v13538_v32 = vld [vmem:[#allocation28 + $0x68] ss:$24 sps:$4 sm:$0xff]  }
 0xbb0   :  { %7465 = vmatpush1.bf16.msra.mxu1 %v13535_v21  ;;  %v13546_v21 = vld [vmem:[#allocation28 + $0x9c] ss:$24 sps:$4 sm:$0xff]  }
 0xbb1   :  { %7466 = vmatprep.subr.bf16.mxu1 %v13543_v33  ;;  %v13544_v33 = vld [vmem:[#allocation28 + $0x98] ss:$24 sps:$4 sm:$0xff]  }
 0xbb4   :  { %7467 = vmatpush1.bf16.msra.mxu1 %v13541_v36  ;;  %v13552_v36 = vld [vmem:[#allocation28 + $0xcc] ss:$24 sps:$4 sm:$0xff]  }
 0xbb5   :  { %7468 = vmatprep.subr.bf16.mxu1 %v13549_v37  ;;  %v13550_v37 = vld [vmem:[#allocation28 + $0xc8] ss:$24 sps:$4 sm:$0xff]  }
 0xbb8   :  { %7469 = vmatpush1.bf16.msra.mxu1 %v13547_v38  ;;  %v13558_v38 = vld [vmem:[#allocation28 + $0xfc] ss:$24 sps:$4 sm:$0xff]  }
 0xbb9   :  { %7470 = vmatprep.subr.bf16.mxu1 %v13555_v39  ;;  %v13556_v39 = vld [vmem:[#allocation28 + $0xf8] ss:$24 sps:$4 sm:$0xff]  }
 0xbbc   :  { %7471 = vmatpush1.bf16.msra.mxu1 %v13553_v41  ;;  %v13564_v41 = vld [vmem:[#allocation28 + $0x12c] ss:$24 sps:$4 sm:$0xff]  }
 0xbbd   :  { %7472 = vmatprep.subr.bf16.mxu1 %v13561_v42  ;;  %v13562_v42 = vld [vmem:[#allocation28 + $0x128] ss:$24 sps:$4 sm:$0xff]  }
 0xbc0   :  { %7473 = vmatpush1.bf16.msra.mxu1 %v13559_v44  ;;  %v13570_v44 = vld [vmem:[#allocation28 + $0x15c] ss:$24 sps:$4 sm:$0xff]  }
 0xbc1   :  { %7474 = vmatprep.subr.bf16.mxu1 %v13567_v45  ;;  %v13568_v45 = vld [vmem:[#allocation28 + $0x158] ss:$24 sps:$4 sm:$0xff]  }
 0xbc4   :  { %7475 = vmatpush1.bf16.msra.mxu1 %v13565_v47  ;;  %v13576_v47 = vld [vmem:[#allocation31 + $0x4] ss:$8 sps:$4 sm:$0xff]  }
 0xbc5   :  { %7476 = vmatprep.subr.bf16.mxu1 %v13573_v48  ;;  %v13574_v48 = vld [vmem:[#allocation31] ss:$8 sps:$4 sm:$0xff]  }
 0xbc8   :  { %7477 = vmatpush1.bf16.msra.mxu1 %v13571_v50  ;;  %v13579_v50 = vld [vmem:[#allocation31 + $0x14] ss:$8 sps:$4 sm:$0xff]  }
 0xbcb   :  { %7495 = vmatmul.mubr.bf16.vlgmr.msra.gmra.mrb[68].mxu1 %v16109_v20 }
 0xc1e   :  { %v12012_v34 = vpop.f32.mrb[48].mxu0 }
 0xc1f   :  { %v12013_v40 = vpop.f32.mrb[49].mxu0 }
 0xc20   :  { %v12014_v51 = vadd.f32 %v12013_v40, %v12012_v34  ;;  %v12015_v52 = vpop.f32.mrb[50].mxu0  ;;  %v13577_v34 = vld [vmem:[#allocation31 + $0x10] ss:$8 sps:$4 sm:$0xff]   ;;  %v13582_v40 = vld [vmem:[#allocation31 + $0x24] ss:$8 sps:$4 sm:$0xff]  }
 0xc21   :  { %v12016_v28 = vpop.f32.mrb[51].mxu0  ;;  %v13585_v52 = vld [vmem:[#allocation31 + $0x34] ss:$8 sps:$4 sm:$0xff]  }
 0xc22   :  { %v6808_v1 = vadd.f32 %v12014_v51, %v11393_v35  ;;  %v13580_v51 = vld [vmem:[#allocation31 + $0x20] ss:$8 sps:$4 sm:$0xff]   ;;  %v13583_v28 = vld [vmem:[#allocation31 + $0x30] ss:$8 sps:$4 sm:$0xff]   ;;  %v13588_v35 = vld [vmem:[#allocation31 + $0x44] ss:$8 sps:$4 sm:$0xff]  }
 0xc3d   :  { %v12056_v59 = vpop.f32.mrb[56].mxu1 }
 0xc3e   :  { %v12034_v17 = vpop.f32.mrb[52].mxu0  ;;  %v12057_v61 = vpop.f32.mrb[57].mxu1 }
 0xc3f   :  { %v12035_v62 = vpop.f32.mrb[53].mxu0  ;;  %v12058_v63 = vadd.f32 %v12057_v61, %v12056_v59  ;;  %v12059_v43 = vpop.f32.mrb[58].mxu1  ;;  %v13586_v59 = vld [vmem:[#allocation31 + $0x40] ss:$8 sps:$4 sm:$0xff]   ;;  %v13589_v61 = vld [vmem:[#allocation31 + $0x50] ss:$8 sps:$4 sm:$0xff]  }
 0xc40   :  { %v12036_v2 = vadd.f32 %v12035_v62, %v12034_v17  ;;  %v12037_v4 = vpop.f32.mrb[54].mxu0  ;;  %v12060_v5 = vpop.f32.mrb[59].mxu1  ;;  %v13591_v17 = vld [vmem:[#allocation31 + $0x54] ss:$8 sps:$4 sm:$0xff]   ;;  %v13592_v62 = vld [vmem:[#allocation31 + $0x60] ss:$8 sps:$4 sm:$0xff]  }
 0xc41   :  { %v12038_v6 = vpop.f32.mrb[55].mxu0  ;;  %v13595_v43 = vld [vmem:[#allocation31 + $0x70] ss:$8 sps:$4 sm:$0xff]   ;;  %v13603_v4 = vld [vmem:[#allocation31 + $0x94] ss:$8 sps:$4 sm:$0xff]  }
 0xc42   :  { %v6848_v8 = vadd.f32 %v12036_v2, %v6808_v1  ;;  %v13598_v1 = vld [vmem:[#allocation31 + $0x80] ss:$8 sps:$4 sm:$0xff]   ;;  %v13600_v2 = vld [vmem:[#allocation31 + $0x84] ss:$8 sps:$4 sm:$0xff]   ;;  %v13601_v5 = vld [vmem:[#allocation31 + $0x90] ss:$8 sps:$4 sm:$0xff]  }
 0xc43   :  { %v16117_v6 = vld [vmem:[#allocation30] sm:$0x3f] }
 0xc44   :  { %v6888_v31 = vadd.f32 %v12058_v63, %v6848_v8  ;;  %v13597_v63 = vld [vmem:[#allocation31 + $0x74] ss:$8 sps:$4 sm:$0xff]  }
 0xc5d   :  { %v12100_v0 = vpop.f32.mrb[60].mxu1 }
 0xc5e   :  { %v12078_v9 = vpop.f32.mrb[56].mxu0  ;;  %v12101_v10 = vpop.f32.mrb[61].mxu1 }
 0xc5f   :  { %v12102_v11 = vadd.f32 %v12101_v10, %v12100_v0  ;;  %v12079_v13 = vpop.f32.mrb[57].mxu0  ;;  %v12103_v15 = vpop.f32.mrb[62].mxu1  ;;  %v7113_v0 = vrot.slane %v16117_v6, %v15537_v55 }
 0xc60   :  { %v12080_v18 = vadd.f32 %v12079_v13, %v12078_v9  ;;  %v12081_v12 = vpop.f32.mrb[58].mxu0  ;;  %v12104_v19 = vpop.f32.mrb[63].mxu1  ;;  %v7117_v9 = vrot.slane %v16117_v6, %v15542_v57 }
 0xc61   :  { %v12082_v22 = vpop.f32.mrb[59].mxu0  ;;  %v13604_v12 = vld [vmem:[#allocation31 + $0xa0] ss:$8 sps:$4 sm:$0xff]   ;;  %v13609_v19 = vld [vmem:[#allocation31 + $0xb4] ss:$8 sps:$4 sm:$0xff]  }
 0xc62   :  { %v6928_v23 = vadd.f32 %v12080_v18, %v6888_v31  ;;  %v13606_v31 = vld [vmem:[#allocation31 + $0xa4] ss:$8 sps:$4 sm:$0xff]  }
 0xc64   :  { %v6968_v25 = vadd.f32 %v12102_v11, %v6928_v23 }
 0xc66   :  { %v6973_v49 = vmax.f32 %v6968_v25, 0.0 }
 0xc68   :  { %v6974_v56 = vpack.c.bf16 %v6973_v49, %v6973_v49  ;;  %v13607_v49 = vld [vmem:[#allocation31 + $0xb0] ss:$8 sps:$4 sm:$0xff]  }
 0xc6a   :  { %11478 = vmatmul.mubr.msk.bf16.vlgmr.msra.gmra.mrb[60].mxu0 %vm4148_vm1, %v6974_v56  ;;  %v13610_v56 = vld [vmem:[#allocation31 + $0xc0] ss:$8 sps:$4 sm:$0xff]  }
 0xc6b   :  { %7422 = vmatpush1.bf16.msra.mxu0 %v13526_v46  ;;  %7453 = vmatprep.mubr.bf16.mxu0 %v14808_v7  ;;  %v13612_v46 = vld [vmem:[#allocation31 + $0xc4] ss:$8 sps:$4 sm:$0xff]  }
 0xc6c   :  { %7423 = vmatprep.subr.bf16.mxu0 %v13534_v27  ;;  %v13615_v27 = vld [vmem:[#allocation31 + $0xd4] ss:$8 sps:$4 sm:$0xff]  }
 0xc6f   :  { %7424 = vmatpush1.bf16.msra.mxu0 %v13532_v29  ;;  %v13613_v29 = vld [vmem:[#allocation31 + $0xd0] ss:$8 sps:$4 sm:$0xff]  }
 0xc70   :  { %7425 = vmatprep.subr.bf16.mxu0 %v13540_v30  ;;  %v13618_v30 = vld [vmem:[#allocation31 + $0xe4] ss:$8 sps:$4 sm:$0xff]  }
 0xc73   :  { %7426 = vmatpush1.bf16.msra.mxu0 %v13538_v32  ;;  %v13616_v32 = vld [vmem:[#allocation31 + $0xe0] ss:$8 sps:$4 sm:$0xff]  }
 0xc74   :  { %7427 = vmatprep.subr.bf16.mxu0 %v13546_v21 }
 0xc77   :  { %7428 = vmatpush1.bf16.msra.mxu0 %v13544_v33  ;;  %v13621_v33 = vld [vmem:[#allocation31 + $0xf4] ss:$8 sps:$4 sm:$0xff]  }
 0xc78   :  { %7429 = vmatprep.subr.bf16.mxu0 %v13552_v36  ;;  %v13619_v36 = vld [vmem:[#allocation31 + $0xf0] ss:$8 sps:$4 sm:$0xff]  }
 0xc7b   :  { %7430 = vmatpush1.bf16.msra.mxu0 %v13550_v37 }
 0xc7c   :  { %7431 = vmatprep.subr.bf16.mxu0 %v13558_v38 }
 0xc7e   :  { %v7414_v8 = vpop.f32.mrb[64].mxu1 }
 0xc7f   :  { %7432 = vmatpush1.bf16.msra.mxu0 %v13556_v39  ;;  %v7416_v10 = vpop.f32.mrb[65].mxu1  ;;  %v7415_v13 = vadd.f32 %v7414_v8, %v7113_v0  ;;  %v7129_v0 = vrot.slane %v16117_v6, %v15672_v26 }
 0xc80   :  { %7433 = vmatprep.subr.bf16.mxu0 %v13564_v41  ;;  %v7418_v11 = vpop.f32.mrb[66].mxu1  ;;  %v16123_v15 = vadd.f32 %v7416_v10, %v7117_v9  ;;  %v13622_v41 = vld [vmem:[%s16518_s5 + $0x40] sm:$0xff]   ;;  %v7121_v9 = vrot.slane %v16117_v6, %v15608_v14  ;;  %v7125_v10 = vrot.slane %v16117_v6, %v15549_v3 }
 0xc81   :  { %v7419_v18 = vpop.f32.mrb[67].mxu1  ;;  %v7503_v22 = vmax.f32 %v7415_v13, 0.0  ;;  %12106 = vmatprep.subr.bf16.mxu1 %v13622_v41  ;;  %v13642_v41 = vld [vmem:[%s16518_s5 + $0x70] sm:$0xff]  }
 0xc82   :  { %v7504_v23 = vmax.f32 %v16123_v15, 0.0  ;;  %v13635_v15 = vld [vmem:[%s16518_s5 + $0x150] sm:$0xff]  }
 0xc83   :  { %7434 = vmatpush1.bf16.msra.mxu0 %v13562_v42  ;;  %v13623_v42 = vld [vmem:[%s16518_s5] sm:$0xff]  }
 0xc84   :  { %7435 = vmatprep.subr.bf16.mxu0 %v13570_v44  ;;  %v16128_v25 = vpack.c.bf16 %v7504_v23, %v7503_v22  ;;  %v13624_v44 = vld [vmem:[%s16518_s5 + $0x48] sm:$0xff]   ;;  %12107 = vmatpush3.bf16.msra.mxu1 %v13623_v42  ;;  %v13643_v42 = vld [vmem:[%s16518_s5 + $0x160] sm:$0xff]  }
 0xc85   :  { %12108 = vmatprep.subr.bf16.mxu1 %v13624_v44  ;;  %v13644_v44 = vld [vmem:[%s16518_s5 + $0x30] sm:$0xff]  }
 0xc87   :  { %7436 = vmatpush1.bf16.msra.mxu0 %v13568_v45  ;;  %v13627_v45 = vld [vmem:[%s16518_s5 + $0x140] sm:$0xff]  }
 0xc88   :  { %7719 = vmatprep.subr.bf16.mxu0 %v13576_v47  ;;  %v13625_v47 = vld [vmem:[%s16518_s5 + $0x8] sm:$0xff]  }
 0xc89   :  { %12109 = vmatpush3.bf16.msra.mxu1 %v13625_v47  ;;  %v13646_v47 = vld [vmem:[%s16518_s5 + $0x78] sm:$0xff]  }
 0xc8a   :  { %7454 = vmatmul.mubr.bf16.vlgmr.msra.gmra.mrb[64].mxu0 %v16109_v20  ;;  %v13594_v20 = vld [vmem:[#allocation31 + $0x64] ss:$8 sps:$4 sm:$0xff]  }
 0xc8b   :  { %7720 = vmatpush1.bf16.msra.mxu0 %v13574_v48  ;;  %v13626_v48 = vld [vmem:[%s16518_s5 + $0x50] sm:$0xff]  }
 0xc8c   :  { %7721 = vmatprep.subr.bf16.mxu0 %v13579_v50  ;;  %v13628_v50 = vld [vmem:[%s16518_s5 + $0x10] sm:$0xff]   ;;  %12110 = vmatprep.subr.bf16.mxu1 %v13626_v48  ;;  %v13647_v48 = vld [vmem:[%s16518_s5 + $0x168] sm:$0xff]  }
 0xc8d   :  { %12111 = vmatpush3.bf16.msra.mxu1 %v13628_v50  ;;  %v13648_v50 = vld [vmem:[%s16518_s5 + $0x38] sm:$0xff]  }
 0xc8f   :  { %7722 = vmatpush1.bf16.msra.mxu0 %v13577_v34  ;;  %v13630_v34 = vld [vmem:[%s16518_s5 + $0x58] sm:$0xff]  }
 0xc90   :  { %7723 = vmatprep.subr.bf16.mxu0 %v13582_v40  ;;  %v13632_v40 = vld [vmem:[%s16518_s5 + $0x18] sm:$0xff]   ;;  %12112 = vmatprep.subr.bf16.mxu1 %v13630_v34  ;;  %v13649_v34 = vld [vmem:[%s16518_s5 + $0x128] sm:$0xff]  }
 0xc91   :  { %12113 = vmatpush3.bf16.msra.mxu1 %v13632_v40  ;;  %v13650_v40 = vld [vmem:[%s16518_s5 + $0xc0] sm:$0xff]  }
 0xc93   :  { %7724 = vmatpush1.bf16.msra.mxu0 %v13580_v51  ;;  %v13634_v51 = vld [vmem:[%s16518_s5 + $0x60] sm:$0xff]  }
 0xc94   :  { %7725 = vmatprep.subr.bf16.mxu0 %v13585_v52  ;;  %v13636_v52 = vld [vmem:[%s16518_s5 + $0x20] sm:$0xff]   ;;  %12114 = vmatprep.subr.bf16.mxu1 %v13634_v51  ;;  %v13651_v51 = vld [vmem:[%s16518_s5 + $0x170] sm:$0xff]  }
 0xc95   :  { %12115 = vmatpush3.bf16.msra.mxu1 %v13636_v52  ;;  %v13653_v52 = vld [vmem:[%s16518_s5 + $0x130] sm:$0xff]  }
 0xc97   :  { %7726 = vmatpush1.bf16.msra.mxu0 %v13583_v28  ;;  %v13638_v28 = vld [vmem:[%s16518_s5 + $0x68] sm:$0xff]  }
 0xc98   :  { %7727 = vmatprep.subr.bf16.mxu0 %v13588_v35  ;;  %v13640_v35 = vld [vmem:[%s16518_s5 + $0x28] sm:$0xff]   ;;  %12116 = vmatprep.subr.bf16.mxu1 %v13638_v28  ;;  %v13655_v28 = vld [vmem:[%s16518_s5 + $0x178] sm:$0xff]  }
 0xc99   :  { %12117 = vmatpush3.bf16.msra.mxu1 %v13640_v35  ;;  %v13657_v35 = vld [vmem:[%s16518_s5 + $0x138] sm:$0xff]  }
 0xc9a   :  { %12118 = vmatprep.subr.bf16.mxu1 %v13642_v41  ;;  %v13665_v41 = vld [vmem:[%s16518_s5 + $0x208] sm:$0xff]  }
 0xc9b   :  { %7728 = vmatpush1.bf16.msra.mxu0 %v13586_v59  ;;  %v6979_v59 = vld [vmem:[#allocation27] sm:$0x3] }
 0xc9c   :  { %7729 = vmatprep.subr.bf16.mxu0 %v13591_v17  ;;  %v6984_v17 = vrot.slane %v6979_v59, %v15537_v55 }
 0xc9d   :  { %12119 = vmatpush3.bf16.msra.mxu1 %v13644_v44 }
 0xc9e   :  { %v7496_v21 = vpop.f32.mrb[68].mxu1  ;;  %12120 = vmatprep.subr.bf16.mxu1 %v13646_v47  ;;  %v13667_v47 = vld [vmem:[%s16518_s5 + $0x250] sm:$0xff]  }
 0xc9f   :  { %7730 = vmatpush1.bf16.msra.mxu0 %v13589_v61  ;;  %v7498_v37 = vpop.f32.mrb[69].mxu1  ;;  %v6988_v61 = vrot.slane %v6979_v59, %v15542_v57  ;;  %v7497_v11 = vadd.f32 %v7496_v21, %v7129_v0  ;;  %v13659_v59 = vld [vmem:[%s16518_s5 + $0x240] sm:$0xff]  }
 0xca0   :  { %7731 = vmatprep.subr.bf16.mxu0 %v13594_v20  ;;  %v7500_v38 = vpop.f32.mrb[70].mxu1 }
 0xca1   :  { %v7501_v39 = vpop.f32.mrb[71].mxu1  ;;  %v13639_v38 = vld [vmem:[%s16518_s5 + $0x158] sm:$0xff]   ;;  %12121 = vmatpush3.bf16.msra.mxu1 %v13648_v50 }
 0xca2   :  { %12128 = vmatprep.subr.bf16.mxu1 %v13650_v40  ;;  %v13669_v40 = vld [vmem:[%s16518_s5 + $0x210] sm:$0xff]  }
 0xca3   :  { %7732 = vmatpush1.bf16.msra.mxu0 %v13592_v62 }
 0xca4   :  { %7733 = vmatprep.subr.bf16.mxu0 %v13597_v63 }
 0xca7   :  { %7734 = vmatpush1.bf16.msra.mxu0 %v13595_v43 }
 0xca8   :  { %7735 = vmatprep.subr.bf16.mxu0 %v13600_v2 }
 0xcab   :  { %7736 = vmatpush1.bf16.msra.mxu0 %v13598_v1 }
 0xcac   :  { %7737 = vmatprep.subr.bf16.mxu0 %v13603_v4 }
 0xcaf   :  { %7738 = vmatpush1.bf16.msra.mxu0 %v13601_v5 }
 0xcb0   :  { %7739 = vmatprep.subr.bf16.mxu0 %v13606_v31 }
 0xcb3   :  { %7740 = vmatpush1.bf16.msra.mxu0 %v13604_v12 }
 0xcb4   :  { %7741 = vmatprep.subr.bf16.mxu0 %v13609_v19  ;;  %v7507_v19 = vmax.f32 %v7497_v11, 0.0 }
 0xcb6   :  { %v7513_v39 = vpack.c.bf16 %v7507_v19, %v7507_v19 }
 0xcb7   :  { %7742 = vmatpush1.bf16.msra.mxu0 %v13607_v49 }
 0xcb8   :  { %7743 = vmatprep.subr.bf16.mxu0 %v13612_v46 }
 0xcbb   :  { %7744 = vmatpush1.bf16.msra.mxu0 %v13610_v56 }
 0xcbc   :  { %7745 = vmatprep.subr.bf16.mxu0 %v13615_v27 }
 0xcbf   :  { %7746 = vmatpush1.bf16.msra.mxu0 %v13613_v29 }
 0xcc0   :  { %7747 = vmatprep.subr.bf16.mxu0 %v13618_v30  ;;  %v13629_v30 = vld [vmem:[%s16518_s5 + $0x100] sm:$0xff]  }
 0xcc3   :  { %7748 = vmatpush1.bf16.msra.mxu0 %v13616_v32 }
 0xcc4   :  { %7749 = vmatprep.subr.bf16.mxu0 %v13621_v33  ;;  %v13631_v33 = vld [vmem:[%s16518_s5 + $0x148] sm:$0xff]  }
 0xcc7   :  { %7750 = vmatpush1.bf16.msra.mxu0 %v13619_v36  ;;  %v13633_v36 = vld [vmem:[%s16518_s5 + $0x108] sm:$0xff]  }
 0xcc8   :  { %12150 = vmatprep.subr.bf16.mxu0 %v13627_v45  ;;  %v13645_v45 = vld [vmem:[%s16518_s5 + $0x120] sm:$0xff]  }
 0xd3d   :  { %v7048_v20 = vpop.f32.mrb[60].mxu0 }
 0xd3e   :  { %v7049_v62 = vadd.f32 %v7048_v20, %v6984_v17  ;;  %v7050_v63 = vpop.f32.mrb[61].mxu0  ;;  %v7547_v17 = vld [vmem:[#allocation33] sm:$0x3] }
 0xd3f   :  { %v7051_v43 = vadd.f32 %v7050_v63, %v6988_v61  ;;  %v7052_v1 = vpop.f32.mrb[62].mxu0  ;;  %v16184_v61 = vrot.slane %v7547_v17, %v15537_v55  ;;  %v16187_v20 = vrot.slane %v7547_v17, %v15542_v57  ;;  %v13674_v17 = vld [vmem:[%s16518_s5 + $0xf0] sm:$0xff]  }
 0xd40   :  { %v7055_v2 = vmax.f32 %v7049_v62, 0.0  ;;  %v7053_v4 = vpop.f32.mrb[63].mxu0 }
 0xd41   :  { %v7056_v5 = vmax.f32 %v7051_v43, 0.0 }
 0xd42   :  { %v16146_v8 = vadd.f32 %v7055_v2, %v15999_v60  ;;  %v7133_v60 = vrot.slane %v16117_v6, %v15645_v58 }
 0xd43   :  { %v16149_v31 = vadd.f32 %v7056_v5, %v16001_v24 }
 0xd44   :  { %v7499_v29 = vadd.f32 %v7498_v37, %v7133_v60  ;;  %v13637_v37 = vld [vmem:[%s16518_s5 + $0x110] sm:$0xff]  }
 0xd46   :  { %v7508_v6 = vmax.f32 %v7499_v29, 0.0 }
 0xd5d   :  { %v7455_v13 = vpop.f32.mrb[64].mxu0 }
 0xd5e   :  { %v7456_v18 = vadd.f32 %v7455_v13, %v7121_v9  ;;  %v7457_v12 = vpop.f32.mrb[65].mxu0  ;;  %v13652_v13 = vld [vmem:[%s16518_s5 + $0x80] sm:$0xff]  }
 0xd5f   :  { %v7458_v24 = vadd.f32 %v7457_v12, %v7125_v10  ;;  %v7459_v22 = vpop.f32.mrb[66].mxu0  ;;  %v13654_v12 = vld [vmem:[%s16518_s5 + $0xc8] sm:$0xff]  }
 0xd60   :  { %v7505_v49 = vmax.f32 %v7456_v18, 0.0  ;;  %v7460_v46 = vpop.f32.mrb[67].mxu0 }
 0xd61   :  { %v7506_v56 = vmax.f32 %v7458_v24, 0.0 }
 0xd62   :  { %v7510_v27 = vpack.c.bf16 %v7505_v49, %v7504_v23  ;;  %v7514_v23 = vpack.c.bf16 %v7508_v6, %v7508_v6  ;;  %v13660_v6 = vld [vmem:[%s16518_s5 + $0x90] sm:$0xff]  }
 0xd63   :  { %v7511_v32 = vpack.c.bf16 %v7506_v56, %v7505_v49  ;;  %v7512_v21 = vpack.c.bf16 %v7507_v19, %v7506_v56  ;;  %v13656_v56 = vld [vmem:[%s16518_s5 + $0x88] sm:$0xff]  }
 0xd64   :  { %7751 = vmatprep.mubr.bf16.mxu0 %v7510_v27 }
 0xd65   :  { %7752 = vmatmul.mubr.bf16.vlgmr.msra.gmra.mrb[68].mxu0 %v16128_v25  ;;  %v13641_v25 = vld [vmem:[%s16518_s5 + $0x118] sm:$0xff]  }
 0xd66   :  { %7761 = vmatprep.mubr.bf16.mxu0 %v7512_v21  ;;  %12151 = vmatpush3.bf16.msra.mxu0 %v13629_v30 }
 0xd67   :  { %12152 = vmatprep.subr.bf16.mxu0 %v13631_v33 }
 0xd6a   :  { %12153 = vmatpush3.bf16.msra.mxu0 %v13633_v36  ;;  %v13661_v36 = vld [vmem:[%s16518_s5 + $0x200] sm:$0xff]  }
 0xd6b   :  { %12154 = vmatprep.subr.bf16.mxu0 %v13635_v15 }
 0xd6d   :  { %7762 = vmatmul.mubr.bf16.gmra.mrb[72].mxu0 %v7511_v32  ;;  %v13658_v32 = vld [vmem:[%s16518_s5 + $0xd0] sm:$0xff]  }
 0xd6e   :  { %7771 = vmatprep.mubr.bf16.mxu0 %v7514_v23  ;;  %12155 = vmatpush3.bf16.msra.mxu0 %v13637_v37  ;;  %v13662_v23 = vld [vmem:[%s16518_s5 + $0xd8] sm:$0xff]   ;;  %v13663_v37 = vld [vmem:[%s16518_s5 + $0x248] sm:$0xff]  }
 0xd6f   :  { %12156 = vmatprep.subr.bf16.mxu0 %v13639_v38 }
 0xd72   :  { %12157 = vmatpush3.bf16.msra.mxu0 %v13641_v25 }
 0xd73   :  { %12158 = vmatprep.subr.bf16.mxu0 %v13643_v42 }
 0xd75   :  { %7772 = vmatmul.mubr.bf16.gmra.mrb[76].mxu0 %v7513_v39  ;;  %v13664_v39 = vld [vmem:[%s16518_s5 + $0x98] sm:$0xff]  }
 0xd76   :  { %12159 = vmatpush3.bf16.msra.mxu0 %v13645_v45  ;;  %v13666_v45 = vld [vmem:[%s16518_s5 + $0xe0] sm:$0xff]  }
 0xd77   :  { %12160 = vmatprep.subr.bf16.mxu0 %v13647_v48 }
 0xd7a   :  { %12161 = vmatpush3.bf16.msra.mxu0 %v13649_v34  ;;  %v13668_v34 = vld [vmem:[%s16518_s5 + $0xa0] sm:$0xff]  }
 0xd7b   :  { %12162 = vmatprep.subr.bf16.mxu0 %v13651_v51 }
 0xd7e   :  { %12163 = vmatpush3.bf16.msra.mxu0 %v13653_v52  ;;  %v13670_v52 = vld [vmem:[%s16518_s5 + $0xe8] sm:$0xff]  }
 0xd7f   :  { %12164 = vmatprep.subr.bf16.mxu0 %v13655_v28  ;;  %v13671_v28 = vld [vmem:[%s16518_s5 + $0x258] sm:$0xff]  }
 0xd82   :  { %12165 = vmatpush3.bf16.msra.mxu0 %v13657_v35  ;;  %v13672_v35 = vld [vmem:[%s16518_s5 + $0xa8] sm:$0xff]  }
 0xd83   :  { %12194 = vmatprep.subr.bf16.mxu0 %v13659_v59  ;;  %v13673_v59 = vld [vmem:[%s16518_s5 + $0x218] sm:$0xff]  }
 0xe38   :  { %v7753_v62 = vpop.f32.mrb[68].mxu0 }
 0xe39   :  { %v7754_v63 = vadd.f32 %v7753_v62, %v16184_v61  ;;  %v7755_v43 = vpop.f32.mrb[69].mxu0  ;;  %v13675_v62 = vld [vmem:[%s16518_s5 + $0x260] sm:$0xff]  }
 0xe3a   :  { %v7756_v1 = vadd.f32 %v7755_v43, %v16187_v20  ;;  %v16191_v2 = vpop.f32.mrb[70].mxu0  ;;  %v13677_v43 = vld [vmem:[%s16518_s5 + $0x220] sm:$0xff]  }
 0xe3b   :  { %v7780_v4 = vmax.f32 %v7754_v63, 0.0  ;;  %v7759_v5 = vpop.f32.mrb[71].mxu0  ;;  %v13676_v63 = vld [vmem:[%s16518_s5 + $0xb0] sm:$0xff]  }
 0xe3c   :  { %v7781_v0 = vmax.f32 %v7756_v1, 0.0  ;;  %v7760_v9 = vadd.f32 %v7759_v5, %v16187_v20  ;;  %v7758_v1 = vadd.f32 %v16191_v2, %v16184_v61  ;;  %v13679_v5 = vld [vmem:[%s16518_s5 + $0x268] sm:$0xff]  }
 0xe3d   :  { %v7790_v18 = vpack.c.bf16 %v7780_v4, %v7780_v4  ;;  %v13678_v4 = vld [vmem:[%s16518_s5 + $0xf8] sm:$0xff]  }
 0xe3e   :  { %v7791_v10 = vpack.c.bf16 %v7781_v0, %v7781_v0  ;;  %v7783_v11 = vmax.f32 %v7760_v9, 0.0  ;;  %v13680_v9 = vld [vmem:[%s16518_s5 + $0xb8] sm:$0xff]  }
 0xe40   :  { %v7793_v60 = vpack.c.bf16 %v7783_v11, %v7783_v11  ;;  %v7763_v24 = vpop.f32.mrb[72].mxu0  ;;  %8479 = vmatprep.mubr.bf16.mxu1 %v7791_v10  ;;  %v13681_v10 = vld [vmem:[%s16518_s5 + $0x228] sm:$0xff]   ;;  %v7782_v11 = vmax.f32 %v7758_v1, 0.0 }
 0xe41   :  { %v7764_v19 = vadd.f32 %v7763_v24, %v16184_v61  ;;  %v7765_v22 = vpop.f32.mrb[73].mxu0  ;;  %8480 = vmatmul.mubr.bf16.vlgmr.msra.gmra.mrb[72].mxu1 %v7790_v18  ;;  %v13683_v18 = vld [vmem:[%s16518_s5 + $0x270] sm:$0xff]   ;;  %v13686_v24 = vld [vmem:[%s16518_s5 + $0x1c8] sm:$0xff]  }
 0xe42   :  { %v7766_v49 = vadd.f32 %v7765_v22, %v16187_v20  ;;  %12129 = vmatpush3.bf16.msra.mxu1 %v13652_v13  ;;  %v7767_v46 = vpop.f32.mrb[74].mxu0  ;;  %8519 = vmatprep.mubr.bf16.mxu1 %v7793_v60  ;;  %v13682_v13 = vld [vmem:[%s16518_s5 + $0x1c0] sm:$0xff]   ;;  %v13685_v60 = vld [vmem:[%s16518_s5 + $0x230] sm:$0xff]  }
 0xe43   :  { %v7784_v27 = vmax.f32 %v7764_v19, 0.0  ;;  %v16200_v29 = vadd.f32 %v7767_v46, %v16184_v61  ;;  %v7769_v30 = vpop.f32.mrb[75].mxu0  ;;  %12130 = vmatprep.subr.bf16.mxu1 %v13654_v12  ;;  %v13684_v12 = vld [vmem:[%s16518_s5 + $0x180] sm:$0xff]   ;;  %v13688_v46 = vld [vmem:[%s16518_s5 + $0x188] sm:$0xff]  }
 0xe44   :  { %v7785_v21 = vmax.f32 %v7766_v49, 0.0  ;;  %v7770_v0 = vadd.f32 %v7769_v30, %v16187_v20  ;;  %v13687_v49 = vld [vmem:[%s16518_s5 + $0x278] sm:$0xff]   ;;  %v13726_v1 = vld [vmem:[#allocation36 + $0x10] ss:$8 sps:$4 sm:$0xff]  }
 0xe45   :  { %v7794_v15 = vpack.c.bf16 %v7784_v27, %v7784_v27  ;;  %v13690_v27 = vld [vmem:[%s16518_s5 + $0x1d0] sm:$0xff]  }
 0xe46   :  { %v7795_v33 = vpack.c.bf16 %v7785_v21, %v7785_v21  ;;  %12131 = vmatpush3.bf16.msra.mxu1 %v13656_v56  ;;  %v7787_v2 = vmax.f32 %v7770_v0, 0.0  ;;  %v13689_v56 = vld [vmem:[%s16518_s5 + $0x238] sm:$0xff]  }
 0xe47   :  { %12132 = vmatprep.subr.bf16.mxu1 %v13658_v32  ;;  %v13691_v32 = vld [vmem:[%s16518_s5 + $0x190] sm:$0xff]   ;;  %v13734_v0 = vld [vmem:[#allocation39 + $0xc] ss:$24 sps:$4 sm:$0xff]  }
 0xe48   :  { %8559 = vmatprep.mubr.bf16.mxu0 %v7795_v33  ;;  %v7773_v38 = vpop.f32.mrb[76].mxu0  ;;  %v7797_v19 = vpack.c.bf16 %v7787_v2, %v7787_v2  ;;  %v13693_v33 = vld [vmem:[%s16518_s5 + $0x198] sm:$0xff]   ;;  %v13749_v2 = vld [vmem:[#allocation39 + $0x74] ss:$24 sps:$4 sm:$0xff]  }
 0xe49   :  { %8560 = vmatmul.mubr.bf16.vlgmr.msra.gmra.mrb[80].mxu0 %v7794_v15  ;;  %v7775_v25 = vpop.f32.mrb[77].mxu0  ;;  %v7774_v22 = vadd.f32 %v7773_v38, %v16184_v61  ;;  %v13692_v61 = vld [vmem:[%s16518_s5 + $0x1d8] sm:$0xff]   ;;  %v13696_v15 = vld [vmem:[%s16518_s5 + $0x1e8] sm:$0xff]   ;;  %v13699_v38 = vld [vmem:[%s16518_s5 + $0x1b0] sm:$0xff]  }
 0xe4a   :  { %12133 = vmatpush3.bf16.msra.mxu1 %v13660_v6  ;;  %12195 = vmatpush3.bf16.msra.mxu0 %v13661_v36  ;;  %v7776_v42 = vadd.f32 %v7775_v25, %v16187_v20  ;;  %v7777_v44 = vpop.f32.mrb[78].mxu0  ;;  %v7792_v20 = vpack.c.bf16 %v7782_v11, %v7782_v11  ;;  %v13694_v6 = vld [vmem:[%s16518_s5 + $0x1e0] sm:$0xff]   ;;  %v13700_v25 = vld [vmem:[%s16518_s5 + $0x1f8] sm:$0xff]  }
 0xe4b   :  { %12134 = vmatprep.subr.bf16.mxu1 %v13662_v23  ;;  %12196 = vmatprep.subr.bf16.mxu0 %v13663_v37  ;;  %v7778_v48 = vpop.f32.mrb[79].mxu0  ;;  %v7788_v30 = vmax.f32 %v7774_v22, 0.0  ;;  %v13695_v36 = vld [vmem:[%s16518_s5 + $0x1a0] sm:$0xff]   ;;  %v13697_v23 = vld [vmem:[%s16518_s5 + $0x1a8] sm:$0xff]   ;;  %v13698_v37 = vld [vmem:[%s16518_s5 + $0x1f0] sm:$0xff]  }
 0xe4c   :  { %v7789_v50 = vmax.f32 %v7776_v42, 0.0  ;;  %v13704_v44 = vld [vmem:[#allocation39 + $0x4] ss:$24 sps:$4 sm:$0xff]   ;;  %v13705_v48 = vld [vmem:[#allocation39 + $0x30] ss:$24 sps:$4 sm:$0xff]  }
 0xe4d   :  { %v7798_v21 = vpack.c.bf16 %v7788_v30, %v7788_v30  ;;  %v16254_v11 = vld [vmem:[%s16519_s3] sm:$0xf]  ;;  %v13767_v22 = vld [vmem:[#allocation39 + $0x104] ss:$24 sps:$4 sm:$0xff]   ;;  %v13777_v30 = vld [vmem:[#allocation39 + $0x160] ss:$24 sps:$4 sm:$0xff]  }
 0xe4e   :  { %12135 = vmatpush3.bf16.msra.mxu1 %v13664_v39  ;;  %12197 = vmatpush3.bf16.msra.mxu0 %v13665_v41  ;;  %v7799_v51 = vpack.c.bf16 %v7789_v50, %v7789_v50  ;;  %v13701_v39 = vld [vmem:[%s16518_s5 + $0x1b8] sm:$0xff]   ;;  %v7786_v41 = vmax.f32 %v16200_v29, 0.0 }
 0xe4f   :  { %12136 = vmatprep.subr.bf16.mxu1 %v13666_v45  ;;  %12198 = vmatprep.subr.bf16.mxu0 %v13667_v47  ;;  %v13702_v45 = vld [vmem:[#allocation39] ss:$24 sps:$4 sm:$0xff]   ;;  %v13707_v47 = vld [vmem:[#allocation39 + $0x34] ss:$24 sps:$4 sm:$0xff]   ;;  %v13710_v50 = vld [vmem:[#allocation39 + $0x64] ss:$24 sps:$4 sm:$0xff]  }
 0xe50   :  { %8639 = vmatprep.mubr.bf16.mxu0 %v7799_v51  ;;  %v7796_v42 = vpack.c.bf16 %v7786_v41, %v7786_v41  ;;  %v13711_v29 = vld [vmem:[#allocation39 + $0x90] ss:$24 sps:$4 sm:$0xff]   ;;  %v13716_v51 = vld [vmem:[#allocation39 + $0xc4] ss:$24 sps:$4 sm:$0xff]  }
 0xe52   :  { %12137 = vmatpush3.bf16.msra.mxu1 %v13668_v34  ;;  %12199 = vmatpush3.bf16.msra.mxu0 %v13669_v40  ;;  %v13708_v34 = vld [vmem:[#allocation39 + $0x60] ss:$24 sps:$4 sm:$0xff]   ;;  %v13713_v40 = vld [vmem:[#allocation39 + $0x94] ss:$24 sps:$4 sm:$0xff]  }
 0xe53   :  { %12138 = vmatprep.subr.bf16.mxu1 %v13670_v52  ;;  %12200 = vmatprep.subr.bf16.mxu0 %v13671_v28  ;;  %v13714_v52 = vld [vmem:[#allocation39 + $0xc0] ss:$24 sps:$4 sm:$0xff]   ;;  %v13719_v28 = vld [vmem:[#allocation39 + $0xf4] ss:$24 sps:$4 sm:$0xff]  }
 0xe56   :  { %12139 = vmatpush3.bf16.msra.mxu1 %v13672_v35  ;;  %12201 = vmatpush3.bf16.msra.mxu0 %v13673_v59  ;;  %v13717_v35 = vld [vmem:[#allocation39 + $0xf0] ss:$24 sps:$4 sm:$0xff]  }
 0xe57   :  { %12140 = vmatprep.subr.bf16.mxu1 %v13674_v17  ;;  %12202 = vmatprep.subr.bf16.mxu0 %v13675_v62  ;;  %v13722_v59 = vld [vmem:[#allocation36 + $0x4] ss:$8 sps:$4 sm:$0xff]   ;;  %v13720_v17 = vld [vmem:[#allocation36] ss:$8 sps:$4 sm:$0xff]  }
 0xe58   :  { %v13725_v62 = vld [vmem:[#allocation39 + $0x124] ss:$24 sps:$4 sm:$0xff]  }
 0xe5a   :  { %12141 = vmatpush3.bf16.msra.mxu1 %v13676_v63  ;;  %12203 = vmatpush3.bf16.msra.mxu0 %v13677_v43  ;;  %v13723_v63 = vld [vmem:[#allocation39 + $0x120] ss:$24 sps:$4 sm:$0xff]  }
 0xe5b   :  { %12142 = vmatprep.subr.bf16.mxu1 %v13678_v4  ;;  %12204 = vmatprep.subr.bf16.mxu0 %v13679_v5  ;;  %v13728_v43 = vld [vmem:[#allocation36 + $0x14] ss:$8 sps:$4 sm:$0xff]  }
 0xe5c   :  { %v13731_v4 = vld [vmem:[#allocation39 + $0x154] ss:$24 sps:$4 sm:$0xff]   ;;  %v13729_v5 = vld [vmem:[#allocation39 + $0x150] ss:$24 sps:$4 sm:$0xff]  }
 0xe5e   :  { %12143 = vmatpush3.bf16.msra.mxu1 %v13680_v9  ;;  %12205 = vmatpush3.bf16.msra.mxu0 %v13681_v10  ;;  %v13737_v9 = vld [vmem:[#allocation39 + $0x14] ss:$24 sps:$4 sm:$0xff]   ;;  %v13735_v10 = vld [vmem:[#allocation39 + $0x10] ss:$24 sps:$4 sm:$0xff]  }
 0xe5f   :  { %12172 = vmatprep.subr.bf16.mxu1 %v13682_v13  ;;  %12206 = vmatprep.subr.bf16.mxu0 %v13683_v18  ;;  %v13743_v13 = vld [vmem:[#allocation39 + $0x44] ss:$24 sps:$4 sm:$0xff]   ;;  %v13741_v18 = vld [vmem:[#allocation39 + $0x40] ss:$24 sps:$4 sm:$0xff]  }
 0xe61   :  { %8520 = vmatmul.mubr.bf16.vlgmr.msra.gmra.mrb[76].mxu1 %v7792_v20  ;;  %v13755_v20 = vld [vmem:[#allocation39 + $0xa4] ss:$24 sps:$4 sm:$0xff]  }
 0xe62   :  { %12173 = vmatpush3.bf16.msra.mxu1 %v13684_v12  ;;  %8599 = vmatprep.mubr.bf16.mxu1 %v7797_v19  ;;  %v13747_v12 = vld [vmem:[#allocation39 + $0x70] ss:$24 sps:$4 sm:$0xff]  }
 0xe63   :  { %12207 = vmatpush3.bf16.msra.mxu0 %v13685_v60  ;;  %12174 = vmatprep.subr.bf16.mxu1 %v13686_v24  ;;  %v13753_v60 = vld [vmem:[#allocation39 + $0xa0] ss:$24 sps:$4 sm:$0xff]   ;;  %v13761_v24 = vld [vmem:[#allocation39 + $0xd4] ss:$24 sps:$4 sm:$0xff]   ;;  %v13759_v19 = vld [vmem:[#allocation39 + $0xd0] ss:$24 sps:$4 sm:$0xff]  }
 0xe64   :  { %12208 = vmatprep.subr.bf16.mxu0 %v13687_v49  ;;  %v13765_v49 = vld [vmem:[#allocation39 + $0x100] ss:$24 sps:$4 sm:$0xff]  }
 0xe66   :  { %12175 = vmatpush3.bf16.msra.mxu1 %v13688_v46  ;;  %v13773_v46 = vld [vmem:[#allocation39 + $0x134] ss:$24 sps:$4 sm:$0xff]  }
 0xe67   :  { %12209 = vmatpush3.bf16.msra.mxu0 %v13689_v56  ;;  %12176 = vmatprep.subr.bf16.mxu1 %v13690_v27  ;;  %v13771_v56 = vld [vmem:[#allocation39 + $0x130] ss:$24 sps:$4 sm:$0xff]   ;;  %v13779_v27 = vld [vmem:[#allocation39 + $0x164] ss:$24 sps:$4 sm:$0xff]  }
 0xe68   :  { %9054 = vmatprep.subr.bf16.mxu0 %v13704_v44 }
 0xe6a   :  { %8640 = vmatmul.mubr.bf16.vlgmr.msra.gmra.mrb[84].mxu0 %v7798_v21  ;;  %12177 = vmatpush3.bf16.msra.mxu1 %v13691_v32 }
 0xe6b   :  { %12178 = vmatprep.subr.bf16.mxu1 %v13692_v61  ;;  %9086 = vmatprep.mubr.bf16.mxu0 %v14808_v7 }
 0xe6c   :  { %9055 = vmatpush1.bf16.msra.mxu0 %v13702_v45 }
 0xe6d   :  { %9056 = vmatprep.subr.bf16.mxu0 %v13707_v47 }
 0xe6e   :  { %12179 = vmatpush3.bf16.msra.mxu1 %v13693_v33 }
 0xe6f   :  { %12180 = vmatprep.subr.bf16.mxu1 %v13694_v6 }
 0xe70   :  { %9057 = vmatpush1.bf16.msra.mxu0 %v13705_v48 }
 0xe71   :  { %9058 = vmatprep.subr.bf16.mxu0 %v13710_v50 }
 0xe72   :  { %12181 = vmatpush3.bf16.msra.mxu1 %v13695_v36 }
 0xe73   :  { %12182 = vmatprep.subr.bf16.mxu1 %v13696_v15 }
 0xe74   :  { %9059 = vmatpush1.bf16.msra.mxu0 %v13708_v34 }
 0xe75   :  { %9060 = vmatprep.subr.bf16.mxu0 %v13713_v40 }
 0xe76   :  { %12183 = vmatpush3.bf16.msra.mxu1 %v13697_v23 }
 0xe77   :  { %12184 = vmatprep.subr.bf16.mxu1 %v13698_v37 }
 0xe78   :  { %9061 = vmatpush1.bf16.msra.mxu0 %v13711_v29 }
 0xe79   :  { %9062 = vmatprep.subr.bf16.mxu0 %v13716_v51 }
 0xe7a   :  { %12185 = vmatpush3.bf16.msra.mxu1 %v13699_v38 }
 0xe7b   :  { %12186 = vmatprep.subr.bf16.mxu1 %v13700_v25  ;;  %v11559_v25 = vld [vmem:[#allocation34] ss:$0 sm:$0xff] }
 0xe7c   :  { %9063 = vmatpush1.bf16.msra.mxu0 %v13714_v52 }
 0xe7d   :  { %9064 = vmatprep.subr.bf16.mxu0 %v13719_v28 }
 0xe7e   :  { %12187 = vmatpush3.bf16.msra.mxu1 %v13701_v39 }
 0xe7f   :  { %8688 = vmatprep.subr.bf16.mxu1 %v13722_v59 }
 0xe80   :  { %9065 = vmatpush1.bf16.msra.mxu0 %v13717_v35 }
 0xe81   :  { %8600 = vmatmul.mubr.bf16.vlgmr.msra.gmra.mrb[80].mxu1 %v7796_v42  ;;  %9066 = vmatprep.subr.bf16.mxu0 %v13725_v62 }
 0xe82   :  { %8720 = vmatprep.mubr.bf16.mxu1 %v14808_v7  ;;  %8689 = vmatpush1.bf16.msra.mxu1 %v13720_v17 }
 0xe83   :  { %8690 = vmatprep.subr.bf16.mxu1 %v13728_v43 }
 0xe84   :  { %9067 = vmatpush1.bf16.msra.mxu0 %v13723_v63 }
 0xe85   :  { %9068 = vmatprep.subr.bf16.mxu0 %v13731_v4  ;;  %v13732_v4 = vld [vmem:[#allocation39 + $0x8] ss:$24 sps:$4 sm:$0xff]  }
 0xe86   :  { %8691 = vmatpush1.bf16.msra.mxu1 %v13726_v1 }
 0xe87   :  { %9095 = vmatprep.subr.bf16.mxu1 %v13734_v0  ;;  %v13740_v0 = vld [vmem:[#allocation39 + $0x3c] ss:$24 sps:$4 sm:$0xff]  }
 0xe88   :  { %9069 = vmatpush1.bf16.msra.mxu0 %v13729_v5 }
 0xe89   :  { %9136 = vmatprep.subr.bf16.mxu0 %v13737_v9  ;;  %v13738_v9 = vld [vmem:[#allocation39 + $0x38] ss:$24 sps:$4 sm:$0xff]  }
 0xe8b   :  { %9087 = vmatmul.mubr.bf16.vlgmr.msra.gmra.mrb[88].mxu0 %v16254_v11 }
 0xe8c   :  { %9137 = vmatpush1.bf16.msra.mxu0 %v13735_v10  ;;  %9168 = vmatprep.mubr.bf16.mxu0 %v14808_v7  ;;  %v13746_v10 = vld [vmem:[#allocation39 + $0x6c] ss:$24 sps:$4 sm:$0xff]  }
 0xe8d   :  { %9138 = vmatprep.subr.bf16.mxu0 %v13743_v13  ;;  %v13744_v13 = vld [vmem:[#allocation39 + $0x68] ss:$24 sps:$4 sm:$0xff]  }
 0xe90   :  { %9139 = vmatpush1.bf16.msra.mxu0 %v13741_v18  ;;  %v13752_v18 = vld [vmem:[#allocation39 + $0x9c] ss:$24 sps:$4 sm:$0xff]  }
 0xe91   :  { %9140 = vmatprep.subr.bf16.mxu0 %v13749_v2  ;;  %v13750_v2 = vld [vmem:[#allocation39 + $0x98] ss:$24 sps:$4 sm:$0xff]  }
 0xe94   :  { %9141 = vmatpush1.bf16.msra.mxu0 %v13747_v12  ;;  %v13758_v12 = vld [vmem:[#allocation39 + $0xcc] ss:$24 sps:$4 sm:$0xff]  }
 0xe95   :  { %9142 = vmatprep.subr.bf16.mxu0 %v13755_v20  ;;  %v13756_v20 = vld [vmem:[#allocation39 + $0xc8] ss:$24 sps:$4 sm:$0xff]  }
 0xe98   :  { %9143 = vmatpush1.bf16.msra.mxu0 %v13753_v60  ;;  %v13764_v60 = vld [vmem:[#allocation39 + $0xfc] ss:$24 sps:$4 sm:$0xff]  }
 0xe99   :  { %9144 = vmatprep.subr.bf16.mxu0 %v13761_v24  ;;  %v13762_v24 = vld [vmem:[#allocation39 + $0xf8] ss:$24 sps:$4 sm:$0xff]  }
 0xe9c   :  { %9145 = vmatpush1.bf16.msra.mxu0 %v13759_v19  ;;  %v13770_v19 = vld [vmem:[#allocation39 + $0x12c] ss:$24 sps:$4 sm:$0xff]  }
 0xe9d   :  { %9146 = vmatprep.subr.bf16.mxu0 %v13767_v22  ;;  %v13768_v22 = vld [vmem:[#allocation39 + $0x128] ss:$24 sps:$4 sm:$0xff]  }
 0xea0   :  { %9147 = vmatpush1.bf16.msra.mxu0 %v13765_v49  ;;  %v13776_v49 = vld [vmem:[#allocation39 + $0x15c] ss:$24 sps:$4 sm:$0xff]  }
 0xea1   :  { %9148 = vmatprep.subr.bf16.mxu0 %v13773_v46  ;;  %v13774_v46 = vld [vmem:[#allocation39 + $0x158] ss:$24 sps:$4 sm:$0xff]  }
 0xea4   :  { %9149 = vmatpush1.bf16.msra.mxu0 %v13771_v56  ;;  %v13782_v56 = vld [vmem:[#allocation42 + $0x4] ss:$8 sps:$4 sm:$0xff]  }
 0xea5   :  { %9150 = vmatprep.subr.bf16.mxu0 %v13779_v27  ;;  %v13780_v27 = vld [vmem:[#allocation42] ss:$8 sps:$4 sm:$0xff]  }
 0xea8   :  { %9151 = vmatpush1.bf16.msra.mxu0 %v13777_v30  ;;  %v13785_v30 = vld [vmem:[#allocation42 + $0x14] ss:$8 sps:$4 sm:$0xff]  }
 0xeab   :  { %9169 = vmatmul.mubr.bf16.vlgmr.msra.gmra.mrb[92].mxu0 %v16254_v11 }
 0xf14   :  { %v12122_v32 = vpop.f32.mrb[72].mxu1 }
 0xf15   :  { %v12123_v61 = vpop.f32.mrb[73].mxu1 }
 0xf16   :  { %v12124_v21 = vadd.f32 %v12123_v61, %v12122_v32  ;;  %v12125_v33 = vpop.f32.mrb[74].mxu1  ;;  %v13783_v32 = vld [vmem:[#allocation42 + $0x10] ss:$8 sps:$4 sm:$0xff]   ;;  %v13788_v61 = vld [vmem:[#allocation42 + $0x24] ss:$8 sps:$4 sm:$0xff]  }
 0xf17   :  { %v12126_v6 = vpop.f32.mrb[75].mxu1  ;;  %v13791_v33 = vld [vmem:[#allocation42 + $0x34] ss:$8 sps:$4 sm:$0xff]  }
 0xf18   :  { %v8482_v42 = vadd.f32 %v12124_v21, %v11559_v25  ;;  %v13786_v21 = vld [vmem:[#allocation42 + $0x20] ss:$8 sps:$4 sm:$0xff]   ;;  %v13789_v6 = vld [vmem:[#allocation42 + $0x30] ss:$8 sps:$4 sm:$0xff]   ;;  %v13803_v25 = vld [vmem:[#allocation42 + $0x74] ss:$8 sps:$4 sm:$0xff]  }
 0xf1c   :  { %v12166_v36 = vpop.f32.mrb[80].mxu0 }
 0xf1d   :  { %v12167_v15 = vpop.f32.mrb[81].mxu0 }
 0xf1e   :  { %v12168_v23 = vadd.f32 %v12167_v15, %v12166_v36  ;;  %v12169_v37 = vpop.f32.mrb[82].mxu0  ;;  %v13794_v36 = vld [vmem:[#allocation42 + $0x44] ss:$8 sps:$4 sm:$0xff]   ;;  %v13792_v15 = vld [vmem:[#allocation42 + $0x40] ss:$8 sps:$4 sm:$0xff]  }
 0xf1f   :  { %v12170_v38 = vpop.f32.mrb[83].mxu0  ;;  %v13795_v37 = vld [vmem:[#allocation42 + $0x50] ss:$8 sps:$4 sm:$0xff]  }
 0xf20   :  { %v13798_v38 = vld [vmem:[#allocation42 + $0x60] ss:$8 sps:$4 sm:$0xff]  }
 0xf34   :  { %v12144_v39 = vpop.f32.mrb[76].mxu1 }
 0xf35   :  { %v12145_v41 = vpop.f32.mrb[77].mxu1 }
 0xf36   :  { %v12146_v44 = vadd.f32 %v12145_v41, %v12144_v39  ;;  %v12147_v45 = vpop.f32.mrb[78].mxu1  ;;  %v13801_v39 = vld [vmem:[#allocation42 + $0x70] ss:$8 sps:$4 sm:$0xff]   ;;  %v13804_v41 = vld [vmem:[#allocation42 + $0x80] ss:$8 sps:$4 sm:$0xff]  }
 0xf37   :  { %v12148_v47 = vpop.f32.mrb[79].mxu1  ;;  %v13807_v45 = vld [vmem:[#allocation42 + $0x90] ss:$8 sps:$4 sm:$0xff]  }
 0xf38   :  { %v8522_v48 = vadd.f32 %v12146_v44, %v8482_v42  ;;  %v13806_v42 = vld [vmem:[#allocation42 + $0x84] ss:$8 sps:$4 sm:$0xff]   ;;  %v13809_v44 = vld [vmem:[#allocation42 + $0x94] ss:$8 sps:$4 sm:$0xff]  }
 0xf39   :  { %v16262_v47 = vld [vmem:[#allocation40] sm:$0x3f] }
 0xf3a   :  { %v8562_v50 = vadd.f32 %v12168_v23, %v8522_v48  ;;  %v13797_v23 = vld [vmem:[#allocation42 + $0x54] ss:$8 sps:$4 sm:$0xff]  }
 0xf3d   :  { %v12210_v34 = vpop.f32.mrb[84].mxu0 }
 0xf3e   :  { %v12211_v40 = vpop.f32.mrb[85].mxu0 }
 0xf3f   :  { %v12212_v29 = vadd.f32 %v12211_v40, %v12210_v34  ;;  %v12213_v51 = vpop.f32.mrb[86].mxu0  ;;  %v8787_v34 = vrot.slane %v16262_v47, %v15537_v55  ;;  %v8791_v40 = vrot.slane %v16262_v47, %v15542_v57 }
 0xf40   :  { %v12214_v52 = vpop.f32.mrb[87].mxu0 }
 0xf54   :  { %v12188_v28 = vpop.f32.mrb[80].mxu1 }
 0xf55   :  { %v12189_v35 = vpop.f32.mrb[81].mxu1 }
 0xf56   :  { %v12190_v59 = vadd.f32 %v12189_v35, %v12188_v28  ;;  %v12191_v17 = vpop.f32.mrb[82].mxu1 }
 0xf57   :  { %v12192_v62 = vpop.f32.mrb[83].mxu1  ;;  %v13815_v17 = vld [vmem:[#allocation42 + $0xb4] ss:$8 sps:$4 sm:$0xff]  }
 0xf58   :  { %v8602_v63 = vadd.f32 %v12190_v59, %v8562_v50  ;;  %v13812_v50 = vld [vmem:[#allocation42 + $0xa4] ss:$8 sps:$4 sm:$0xff]   ;;  %v13810_v59 = vld [vmem:[#allocation42 + $0xa0] ss:$8 sps:$4 sm:$0xff]  }
 0xf5a   :  { %v8642_v43 = vadd.f32 %v12212_v29, %v8602_v63 }
 0xf5c   :  { %v8647_v1 = vmax.f32 %v8642_v43, 0.0 }
 0xf5e   :  { %v8648_v5 = vpack.c.bf16 %v8647_v1, %v8647_v1  ;;  %v9088_v48 = vpop.f32.mrb[88].mxu0  ;;  %v13813_v1 = vld [vmem:[#allocation42 + $0xb0] ss:$8 sps:$4 sm:$0xff]  }
 0xf5f   :  { %v9090_v29 = vpop.f32.mrb[89].mxu0  ;;  %v9089_v52 = vadd.f32 %v9088_v48, %v8787_v34  ;;  %v8803_v34 = vrot.slane %v16262_v47, %v15672_v26 }
 0xf60   :  { %11644 = vmatmul.mubr.msk.bf16.vlgmr.msra.gmra.mrb[84].mxu1 %vm4148_vm1, %v8648_v5  ;;  %v9092_v51 = vpop.f32.mrb[90].mxu0  ;;  %v16268_v28 = vadd.f32 %v9090_v29, %v8791_v40  ;;  %v13816_v5 = vld [vmem:[#allocation42 + $0xc0] ss:$8 sps:$4 sm:$0xff]   ;;  %v8795_v40 = vrot.slane %v16262_v47, %v15608_v14  ;;  %v8799_v29 = vrot.slane %v16262_v47, %v15549_v3 }
 0xf61   :  { %9096 = vmatpush1.bf16.msra.mxu1 %v13732_v4  ;;  %9127 = vmatprep.mubr.bf16.mxu1 %v14808_v7  ;;  %v9093_v35 = vpop.f32.mrb[91].mxu0  ;;  %v9177_v62 = vmax.f32 %v9089_v52, 0.0  ;;  %v13818_v4 = vld [vmem:[#allocation42 + $0xc4] ss:$8 sps:$4 sm:$0xff]  }
 0xf62   :  { %9097 = vmatprep.subr.bf16.mxu1 %v13740_v0  ;;  %v9178_v63 = vmax.f32 %v16268_v28, 0.0  ;;  %v13821_v0 = vld [vmem:[#allocation42 + $0xd4] ss:$8 sps:$4 sm:$0xff]  }
 0xf63   :  { %v13841_v28 = vld [vmem:[%s16520_s14 + $0x150] sm:$0xff]  }
 0xf64   :  { %v16273_v43 = vpack.c.bf16 %v9178_v63, %v9177_v62 }
 0xf65   :  { %9098 = vmatpush1.bf16.msra.mxu1 %v13738_v9  ;;  %v13819_v9 = vld [vmem:[#allocation42 + $0xd0] ss:$8 sps:$4 sm:$0xff]  }
 0xf66   :  { %9099 = vmatprep.subr.bf16.mxu1 %v13746_v10  ;;  %v13824_v10 = vld [vmem:[#allocation42 + $0xe4] ss:$8 sps:$4 sm:$0xff]  }
 0xf69   :  { %9100 = vmatpush1.bf16.msra.mxu1 %v13744_v13  ;;  %v13822_v13 = vld [vmem:[#allocation42 + $0xe0] ss:$8 sps:$4 sm:$0xff]  }
 0xf6a   :  { %9101 = vmatprep.subr.bf16.mxu1 %v13752_v18 }
 0xf6d   :  { %9102 = vmatpush1.bf16.msra.mxu1 %v13750_v2  ;;  %v13827_v2 = vld [vmem:[#allocation42 + $0xf4] ss:$8 sps:$4 sm:$0xff]  }
 0xf6e   :  { %9103 = vmatprep.subr.bf16.mxu1 %v13758_v12  ;;  %v13825_v12 = vld [vmem:[#allocation42 + $0xf0] ss:$8 sps:$4 sm:$0xff]  }
 0xf71   :  { %9104 = vmatpush1.bf16.msra.mxu1 %v13756_v20 }
 0xf72   :  { %9105 = vmatprep.subr.bf16.mxu1 %v13764_v60 }
 0xf75   :  { %9106 = vmatpush1.bf16.msra.mxu1 %v13762_v24 }
 0xf76   :  { %9107 = vmatprep.subr.bf16.mxu1 %v13770_v19  ;;  %v13828_v19 = vld [vmem:[%s16520_s14 + $0x40] sm:$0xff]  }
 0xf77   :  { %12216 = vmatprep.subr.bf16.mxu0 %v13828_v19  ;;  %v13852_v19 = vld [vmem:[%s16520_s14 + $0x78] sm:$0xff]  }
 0xf79   :  { %9108 = vmatpush1.bf16.msra.mxu1 %v13768_v22  ;;  %v13829_v22 = vld [vmem:[%s16520_s14] sm:$0xff]  }
 0xf7a   :  { %9109 = vmatprep.subr.bf16.mxu1 %v13776_v49  ;;  %v13830_v49 = vld [vmem:[%s16520_s14 + $0x48] sm:$0xff]   ;;  %12217 = vmatpush3.bf16.msra.mxu0 %v13829_v22 }
 0xf7b   :  { %12218 = vmatprep.subr.bf16.mxu0 %v13830_v49  ;;  %v13853_v22 = vld [vmem:[%s16520_s14 + $0x168] sm:$0xff]   ;;  %v13854_v49 = vld [vmem:[%s16520_s14 + $0x38] sm:$0xff]  }
 0xf7d   :  { %9110 = vmatpush1.bf16.msra.mxu1 %v13774_v46  ;;  %v13833_v46 = vld [vmem:[%s16520_s14 + $0x140] sm:$0xff]  }
 0xf7e   :  { %9393 = vmatprep.subr.bf16.mxu1 %v13782_v56  ;;  %v9170_v18 = vpop.f32.mrb[92].mxu0  ;;  %v13831_v56 = vld [vmem:[%s16520_s14 + $0x8] sm:$0xff]  }
 0xf7f   :  { %v9172_v20 = vpop.f32.mrb[93].mxu0  ;;  %12219 = vmatpush3.bf16.msra.mxu0 %v13831_v56  ;;  %v9171_v51 = vadd.f32 %v9170_v18, %v8803_v34  ;;  %v13845_v18 = vld [vmem:[%s16520_s14 + $0x158] sm:$0xff]   ;;  %v13856_v56 = vld [vmem:[%s16520_s14 + $0xc0] sm:$0xff]  }
 0xf80   :  { %9128 = vmatmul.mubr.bf16.vlgmr.msra.gmra.mrb[88].mxu1 %v16254_v11  ;;  %v13800_v11 = vld [vmem:[#allocation42 + $0x64] ss:$8 sps:$4 sm:$0xff]   ;;  %v9174_v60 = vpop.f32.mrb[94].mxu0 }
 0xf81   :  { %9394 = vmatpush1.bf16.msra.mxu1 %v13780_v27  ;;  %v9175_v24 = vpop.f32.mrb[95].mxu0  ;;  %v13832_v27 = vld [vmem:[%s16520_s14 + $0x50] sm:$0xff]   ;;  %v13858_v34 = vld [vmem:[%s16520_s14 + $0x80] sm:$0xff]  }
 0xf82   :  { %9395 = vmatprep.subr.bf16.mxu1 %v13785_v30  ;;  %v13834_v30 = vld [vmem:[%s16520_s14 + $0x10] sm:$0xff]   ;;  %12220 = vmatprep.subr.bf16.mxu0 %v13832_v27  ;;  %v13851_v24 = vld [vmem:[%s16520_s14 + $0x120] sm:$0xff]  }
 0xf83   :  { %12221 = vmatpush3.bf16.msra.mxu0 %v13834_v30  ;;  %v13850_v60 = vld [vmem:[%s16520_s14 + $0x30] sm:$0xff]  }
 0xf84   :  { %v13857_v27 = vld [vmem:[%s16520_s14 + $0x170] sm:$0xff]  }
 0xf85   :  { %9396 = vmatpush1.bf16.msra.mxu1 %v13783_v32  ;;  %v13836_v32 = vld [vmem:[%s16520_s14 + $0x58] sm:$0xff]   ;;  %v13859_v30 = vld [vmem:[%s16520_s14 + $0x130] sm:$0xff]  }
 0xf86   :  { %9397 = vmatprep.subr.bf16.mxu1 %v13788_v61  ;;  %v13838_v61 = vld [vmem:[%s16520_s14 + $0x18] sm:$0xff]   ;;  %12222 = vmatprep.subr.bf16.mxu0 %v13836_v32 }
 0xf87   :  { %12223 = vmatpush3.bf16.msra.mxu0 %v13838_v61  ;;  %v13861_v32 = vld [vmem:[%s16520_s14 + $0x178] sm:$0xff]  }
 0xf88   :  { %v13863_v61 = vld [vmem:[%s16520_s14 + $0x138] sm:$0xff]  }
 0xf89   :  { %9398 = vmatpush1.bf16.msra.mxu1 %v13786_v21  ;;  %v13840_v21 = vld [vmem:[%s16520_s14 + $0x60] sm:$0xff]  }
 0xf8a   :  { %9399 = vmatprep.subr.bf16.mxu1 %v13791_v33  ;;  %v13842_v33 = vld [vmem:[%s16520_s14 + $0x20] sm:$0xff]   ;;  %12224 = vmatprep.subr.bf16.mxu0 %v13840_v21 }
 0xf8b   :  { %12225 = vmatpush3.bf16.msra.mxu0 %v13842_v33  ;;  %v13865_v21 = vld [vmem:[%s16520_s14 + $0x240] sm:$0xff]   ;;  %v9221_v33 = vld [vmem:[#allocation43] sm:$0x3] }
 0xf8d   :  { %9400 = vmatpush1.bf16.msra.mxu1 %v13789_v6  ;;  %v13844_v6 = vld [vmem:[%s16520_s14 + $0x68] sm:$0xff]  }
 0xf8e   :  { %9401 = vmatprep.subr.bf16.mxu1 %v13794_v36  ;;  %v13846_v36 = vld [vmem:[%s16520_s14 + $0x28] sm:$0xff]   ;;  %12226 = vmatprep.subr.bf16.mxu0 %v13844_v6  ;;  %v16329_v6 = vrot.slane %v9221_v33, %v15537_v55 }
 0xf8f   :  { %12227 = vmatpush3.bf16.msra.mxu0 %v13846_v36  ;;  %v16332_v36 = vrot.slane %v9221_v33, %v15542_v57 }
 0xf91   :  { %9402 = vmatpush1.bf16.msra.mxu1 %v13792_v15  ;;  %v8653_v15 = vld [vmem:[#allocation37] sm:$0x3] }
 0xf92   :  { %9403 = vmatprep.subr.bf16.mxu1 %v13797_v23  ;;  %v8658_v23 = vrot.slane %v8653_v15, %v15537_v55 }
 0xf95   :  { %9404 = vmatpush1.bf16.msra.mxu1 %v13795_v37  ;;  %v8662_v37 = vrot.slane %v8653_v15, %v15542_v57 }
 0xf96   :  { %9405 = vmatprep.subr.bf16.mxu1 %v13800_v11 }
 0xf99   :  { %9406 = vmatpush1.bf16.msra.mxu1 %v13798_v38 }
 0xf9a   :  { %9407 = vmatprep.subr.bf16.mxu1 %v13803_v25 }
 0xf9d   :  { %9408 = vmatpush1.bf16.msra.mxu1 %v13801_v39 }
 0xf9e   :  { %9409 = vmatprep.subr.bf16.mxu1 %v13806_v42 }
 0xfa1   :  { %9410 = vmatpush1.bf16.msra.mxu1 %v13804_v41 }
 0xfa2   :  { %9411 = vmatprep.subr.bf16.mxu1 %v13809_v44 }
 0xfa5   :  { %9412 = vmatpush1.bf16.msra.mxu1 %v13807_v45 }
 0xfa6   :  { %9413 = vmatprep.subr.bf16.mxu1 %v13812_v50 }
 0xfa9   :  { %9414 = vmatpush1.bf16.msra.mxu1 %v13810_v59 }
 0xfaa   :  { %9415 = vmatprep.subr.bf16.mxu1 %v13815_v17  ;;  %v9181_v17 = vmax.f32 %v9171_v51, 0.0 }
 0xfad   :  { %9416 = vmatpush1.bf16.msra.mxu1 %v13813_v1 }
 0xfae   :  { %9417 = vmatprep.subr.bf16.mxu1 %v13818_v4 }
 0xfb1   :  { %9418 = vmatpush1.bf16.msra.mxu1 %v13816_v5  ;;  %v13835_v5 = vld [vmem:[%s16520_s14 + $0x100] sm:$0xff]  }
 0xfb2   :  { %9419 = vmatprep.subr.bf16.mxu1 %v13821_v0 }
 0xfb5   :  { %9420 = vmatpush1.bf16.msra.mxu1 %v13819_v9 }
 0xfb6   :  { %9421 = vmatprep.subr.bf16.mxu1 %v13824_v10  ;;  %v13837_v10 = vld [vmem:[%s16520_s14 + $0x148] sm:$0xff]  }
 0xfb9   :  { %9422 = vmatpush1.bf16.msra.mxu1 %v13822_v13  ;;  %v13843_v13 = vld [vmem:[%s16520_s14 + $0x110] sm:$0xff]  }
 0xfba   :  { %9423 = vmatprep.subr.bf16.mxu1 %v13827_v2  ;;  %v9187_v2 = vpack.c.bf16 %v9181_v17, %v9181_v17 }
 0xfbd   :  { %9424 = vmatpush1.bf16.msra.mxu1 %v13825_v12  ;;  %v13848_v12 = vld [vmem:[%s16520_s14 + $0x70] sm:$0xff]  }
 0xfbe   :  { %12260 = vmatprep.subr.bf16.mxu1 %v13833_v46  ;;  %12228 = vmatprep.subr.bf16.mxu0 %v13848_v12  ;;  %v13855_v46 = vld [vmem:[%s16520_s14 + $0x128] sm:$0xff]   ;;  %v13873_v12 = vld [vmem:[%s16520_s14 + $0x250] sm:$0xff]  }
 0xfbf   :  { %12229 = vmatpush3.bf16.msra.mxu0 %v13850_v60 }
 0xfc0   :  { %12230 = vmatprep.subr.bf16.mxu0 %v13852_v19  ;;  %v13875_v19 = vld [vmem:[%s16520_s14 + $0x210] sm:$0xff]  }
 0xfc3   :  { %12231 = vmatpush3.bf16.msra.mxu0 %v13854_v49  ;;  %v13876_v49 = vld [vmem:[%s16520_s14 + $0xe8] sm:$0xff]  }
 0xfc4   :  { %12238 = vmatprep.subr.bf16.mxu0 %v13856_v56  ;;  %v13878_v56 = vld [vmem:[%s16520_s14 + $0xa8] sm:$0xff]  }
0x1033   :  { %v8722_v11 = vpop.f32.mrb[84].mxu1 }
0x1034   :  { %v8723_v38 = vadd.f32 %v8722_v11, %v8658_v23  ;;  %v8724_v25 = vpop.f32.mrb[85].mxu1 }
0x1035   :  { %v8725_v39 = vadd.f32 %v8724_v25, %v8662_v37  ;;  %v8726_v41 = vpop.f32.mrb[86].mxu1 }
0x1036   :  { %v8729_v42 = vmax.f32 %v8723_v38, 0.0  ;;  %v8727_v44 = vpop.f32.mrb[87].mxu1 }
0x1037   :  { %v8730_v45 = vmax.f32 %v8725_v39, 0.0 }
0x1038   :  { %v16291_v48 = vadd.f32 %v8729_v42, %v16146_v8  ;;  %v8807_v8 = vrot.slane %v16262_v47, %v15645_v58  ;;  %v13839_v47 = vld [vmem:[%s16520_s14 + $0x108] sm:$0xff]  }
0x1039   :  { %v16294_v50 = vadd.f32 %v8730_v45, %v16149_v31 }
0x103a   :  { %v9173_v3 = vadd.f32 %v9172_v20, %v8807_v8  ;;  %v13849_v20 = vld [vmem:[%s16520_s14 + $0x160] sm:$0xff]  }
0x103c   :  { %v9182_v58 = vmax.f32 %v9173_v3, 0.0 }
0x1053   :  { %v9129_v52 = vpop.f32.mrb[88].mxu1 }
0x1054   :  { %v9130_v35 = vadd.f32 %v9129_v52, %v8795_v40  ;;  %v9131_v59 = vpop.f32.mrb[89].mxu1 }
0x1055   :  { %v9132_v31 = vadd.f32 %v9131_v59, %v8799_v29  ;;  %v9133_v62 = vpop.f32.mrb[90].mxu1  ;;  %v13860_v29 = vld [vmem:[%s16520_s14 + $0xc8] sm:$0xff]  }
0x1056   :  { %v9179_v26 = vmax.f32 %v9130_v35, 0.0  ;;  %v9134_v1 = vpop.f32.mrb[91].mxu1 }
0x1057   :  { %v9180_v4 = vmax.f32 %v9132_v31, 0.0 }
0x1058   :  { %v9184_v14 = vpack.c.bf16 %v9179_v26, %v9178_v63  ;;  %v9188_v63 = vpack.c.bf16 %v9182_v58, %v9182_v58  ;;  %v13869_v58 = vld [vmem:[%s16520_s14 + $0x248] sm:$0xff]  }
0x1059   :  { %v9185_v0 = vpack.c.bf16 %v9180_v4, %v9179_v26  ;;  %v9186_v9 = vpack.c.bf16 %v9181_v17, %v9180_v4  ;;  %v13862_v17 = vld [vmem:[%s16520_s14 + $0x88] sm:$0xff]   ;;  %v13864_v4 = vld [vmem:[%s16520_s14 + $0xd0] sm:$0xff]  }
0x105a   :  { %9425 = vmatprep.mubr.bf16.mxu1 %v9184_v14 }
0x105b   :  { %9426 = vmatmul.mubr.bf16.vlgmr.msra.gmra.mrb[92].mxu1 %v16273_v43  ;;  %v13847_v43 = vld [vmem:[%s16520_s14 + $0x118] sm:$0xff]  }
0x105c   :  { %9435 = vmatprep.mubr.bf16.mxu1 %v9186_v9  ;;  %12261 = vmatpush3.bf16.msra.mxu1 %v13835_v5  ;;  %v13866_v5 = vld [vmem:[%s16520_s14 + $0x90] sm:$0xff]  }
0x105d   :  { %12262 = vmatprep.subr.bf16.mxu1 %v13837_v10  ;;  %v13868_v10 = vld [vmem:[%s16520_s14 + $0xd8] sm:$0xff]  }
0x1060   :  { %12263 = vmatpush3.bf16.msra.mxu1 %v13839_v47 }
0x1061   :  { %12264 = vmatprep.subr.bf16.mxu1 %v13841_v28 }
0x1063   :  { %9436 = vmatmul.mubr.bf16.gmra.mrb[96].mxu1 %v9185_v0  ;;  %v13867_v0 = vld [vmem:[%s16520_s14 + $0x200] sm:$0xff]  }
0x1064   :  { %9445 = vmatprep.mubr.bf16.mxu1 %v9188_v63  ;;  %12265 = vmatpush3.bf16.msra.mxu1 %v13843_v13  ;;  %v13870_v63 = vld [vmem:[%s16520_s14 + $0x98] sm:$0xff]   ;;  %v13871_v13 = vld [vmem:[%s16520_s14 + $0x208] sm:$0xff]  }
0x1065   :  { %12266 = vmatprep.subr.bf16.mxu1 %v13845_v18 }
0x1068   :  { %12267 = vmatpush3.bf16.msra.mxu1 %v13847_v43 }
0x1069   :  { %12268 = vmatprep.subr.bf16.mxu1 %v13849_v20 }
0x106b   :  { %9446 = vmatmul.mubr.bf16.gmra.mrb[100].mxu1 %v9187_v2  ;;  %v13872_v2 = vld [vmem:[%s16520_s14 + $0xe0] sm:$0xff]  }
0x106c   :  { %12269 = vmatpush3.bf16.msra.mxu1 %v13851_v24  ;;  %v13874_v24 = vld [vmem:[%s16520_s14 + $0xa0] sm:$0xff]  }
0x106d   :  { %12270 = vmatprep.subr.bf16.mxu1 %v13853_v22 }
0x1070   :  { %12271 = vmatpush3.bf16.msra.mxu1 %v13855_v46  ;;  %v13877_v46 = vld [vmem:[%s16520_s14 + $0x258] sm:$0xff]  }
0x1071   :  { %12272 = vmatprep.subr.bf16.mxu1 %v13857_v27  ;;  %v13879_v27 = vld [vmem:[%s16520_s14 + $0x218] sm:$0xff]  }
0x1074   :  { %12273 = vmatpush3.bf16.msra.mxu1 %v13859_v30  ;;  %v13880_v30 = vld [vmem:[%s16520_s14 + $0xf0] sm:$0xff]  }
0x1075   :  { %12274 = vmatprep.subr.bf16.mxu1 %v13861_v32  ;;  %v13881_v32 = vld [vmem:[%s16520_s14 + $0x260] sm:$0xff]  }
0x1078   :  { %12275 = vmatpush3.bf16.msra.mxu1 %v13863_v61  ;;  %v13882_v61 = vld [vmem:[%s16520_s14 + $0xb0] sm:$0xff]  }
0x1079   :  { %12304 = vmatprep.subr.bf16.mxu1 %v13865_v21  ;;  %v13883_v21 = vld [vmem:[%s16520_s14 + $0x220] sm:$0xff]  }
0x112e   :  { %v9427_v15 = vpop.f32.mrb[92].mxu1 }
0x112f   :  { %v9428_v23 = vadd.f32 %v9427_v15, %v16329_v6  ;;  %v9429_v37 = vpop.f32.mrb[93].mxu1  ;;  %v13884_v15 = vld [vmem:[%s16520_s14 + $0xf8] sm:$0xff]  }
0x1130   :  { %v9430_v11 = vadd.f32 %v9429_v37, %v16332_v36  ;;  %v16336_v38 = vpop.f32.mrb[94].mxu1 }
0x1131   :  { %v9454_v25 = vmax.f32 %v9428_v23, 0.0  ;;  %v9433_v39 = vpop.f32.mrb[95].mxu1  ;;  %v9432_v33 = vadd.f32 %v16336_v38, %v16329_v6  ;;  %v13885_v23 = vld [vmem:[%s16520_s14 + $0x268] sm:$0xff]  }
0x1132   :  { %v9455_v41 = vmax.f32 %v9430_v11, 0.0  ;;  %v9434_v42 = vadd.f32 %v9433_v39, %v16332_v36  ;;  %v13886_v11 = vld [vmem:[%s16520_s14 + $0xb8] sm:$0xff]  }
0x1133   :  { %v9464_v40 = vpack.c.bf16 %v9454_v25, %v9454_v25  ;;  %v13887_v25 = vld [vmem:[%s16520_s14 + $0x228] sm:$0xff]   ;;  %v9456_v39 = vmax.f32 %v9432_v33, 0.0 }
0x1134   :  { %v9465_v44 = vpack.c.bf16 %v9455_v41, %v9455_v41  ;;  %v9457_v45 = vmax.f32 %v9434_v42, 0.0  ;;  %v13888_v41 = vld [vmem:[%s16520_s14 + $0x1c0] sm:$0xff]   ;;  %v13889_v42 = vld [vmem:[%s16520_s14 + $0x270] sm:$0xff]  }
0x1136   :  { %v9467_v51 = vpack.c.bf16 %v9457_v45, %v9457_v45  ;;  %v9437_v52 = vpop.f32.mrb[96].mxu1  ;;  %10153 = vmatprep.mubr.bf16.mxu0 %v9465_v44  ;;  %v13890_v44 = vld [vmem:[%s16520_s14 + $0x180] sm:$0xff]   ;;  %v13891_v45 = vld [vmem:[%s16520_s14 + $0x230] sm:$0xff]  }
0x1137   :  { %v9438_v35 = vadd.f32 %v9437_v52, %v16329_v6  ;;  %v9439_v59 = vpop.f32.mrb[97].mxu1  ;;  %10154 = vmatmul.mubr.bf16.vlgmr.msra.gmra.mrb[96].mxu0 %v9464_v40  ;;  %v13894_v52 = vld [vmem:[%s16520_s14 + $0x188] sm:$0xff]  }
0x1138   :  { %v9440_v8 = vadd.f32 %v9439_v59, %v16332_v36  ;;  %12239 = vmatpush3.bf16.msra.mxu0 %v13858_v34  ;;  %v9441_v31 = vpop.f32.mrb[98].mxu1  ;;  %10193 = vmatprep.mubr.bf16.mxu0 %v9467_v51  ;;  %v13892_v34 = vld [vmem:[%s16520_s14 + $0x1c8] sm:$0xff]   ;;  %v13893_v51 = vld [vmem:[%s16520_s14 + $0x278] sm:$0xff]   ;;  %v13896_v59 = vld [vmem:[%s16520_s14 + $0x1d0] sm:$0xff]  }
0x1139   :  { %v9458_v62 = vmax.f32 %v9438_v35, 0.0  ;;  %v16345_v26 = vadd.f32 %v9441_v31, %v16329_v6  ;;  %v9443_v1 = vpop.f32.mrb[99].mxu1  ;;  %12240 = vmatprep.subr.bf16.mxu0 %v13860_v29  ;;  %v13895_v35 = vld [vmem:[%s16520_s14 + $0x238] sm:$0xff]   ;;  %v13897_v31 = vld [vmem:[%s16520_s14 + $0x190] sm:$0xff]  }
0x113a   :  { %v9459_v14 = vmax.f32 %v9440_v8, 0.0  ;;  %v9444_v37 = vadd.f32 %v9443_v1, %v16332_v36  ;;  %v13900_v1 = vld [vmem:[%s16520_s14 + $0x1e0] sm:$0xff]  }
0x113b   :  { %v9468_v9 = vpack.c.bf16 %v9458_v62, %v9458_v62  ;;  %v13899_v62 = vld [vmem:[%s16520_s14 + $0x198] sm:$0xff]  }
0x113c   :  { %v9469_v3 = vpack.c.bf16 %v9459_v14, %v9459_v14  ;;  %12241 = vmatpush3.bf16.msra.mxu0 %v13862_v17  ;;  %v9461_v38 = vmax.f32 %v9444_v37, 0.0  ;;  %v13902_v14 = vld [vmem:[%s16520_s14 + $0x1e8] sm:$0xff]   ;;  %v11725_v37 = vld [vmem:[#allocation45] ss:$0 sm:$0xff] }
0x113d   :  { %12242 = vmatprep.subr.bf16.mxu0 %v13864_v4  ;;  %v13901_v4 = vld [vmem:[%s16520_s14 + $0x1a0] sm:$0xff]  }
0x113e   :  { %10233 = vmatprep.mubr.bf16.mxu1 %v9469_v3  ;;  %v9447_v47 = vpop.f32.mrb[100].mxu1  ;;  %v9471_v40 = vpack.c.bf16 %v9461_v38, %v9461_v38  ;;  %v13903_v3 = vld [vmem:[%s16520_s14 + $0x1a8] sm:$0xff]  }
0x113f   :  { %10234 = vmatmul.mubr.bf16.vlgmr.msra.gmra.mrb[104].mxu1 %v9468_v9  ;;  %v9449_v28 = vpop.f32.mrb[101].mxu1  ;;  %v9448_v29 = vadd.f32 %v9447_v47, %v16329_v6  ;;  %v13898_v6 = vld [vmem:[%s16520_s14 + $0x1d8] sm:$0xff]  }
0x1140   :  { %12243 = vmatpush3.bf16.msra.mxu0 %v13866_v5  ;;  %12305 = vmatpush3.bf16.msra.mxu1 %v13867_v0  ;;  %v9450_v18 = vadd.f32 %v9449_v28, %v16332_v36  ;;  %v9451_v43 = vpop.f32.mrb[102].mxu1  ;;  %v9466_v36 = vpack.c.bf16 %v9456_v39, %v9456_v39  ;;  %v13904_v5 = vld [vmem:[%s16520_s14 + $0x1f0] sm:$0xff]   ;;  %v13906_v9 = vld [vmem:[%s16520_s14 + $0x1f8] sm:$0xff]   ;;  %v13910_v28 = vld [vmem:[#allocation46 + $0x4] ss:$8 sps:$4 sm:$0xff]  }
0x1141   :  { %12244 = vmatprep.subr.bf16.mxu0 %v13868_v10  ;;  %12306 = vmatprep.subr.bf16.mxu1 %v13869_v58  ;;  %v9452_v20 = vpop.f32.mrb[103].mxu1  ;;  %v9462_v8 = vmax.f32 %v9448_v29, 0.0  ;;  %v13905_v0 = vld [vmem:[%s16520_s14 + $0x1b0] sm:$0xff]   ;;  %v13907_v10 = vld [vmem:[%s16520_s14 + $0x1b8] sm:$0xff]   ;;  %v9460_v58 = vmax.f32 %v16345_v26, 0.0  ;;  %v13914_v26 = vld [vmem:[%s16521_s11 + $0x40] sm:$0xff]  }
0x1142   :  { %v9463_v60 = vmax.f32 %v9450_v18, 0.0  ;;  %v13911_v18 = vld [vmem:[#allocation46 + $0x10] ss:$8 sps:$4 sm:$0xff]   ;;  %v13915_v43 = vld [vmem:[%s16521_s11] sm:$0xff]  }
0x1143   :  { %v9472_v17 = vpack.c.bf16 %v9462_v8, %v9462_v8  ;;  %v9470_v47 = vpack.c.bf16 %v9460_v58, %v9460_v58  ;;  %v13919_v20 = vld [vmem:[%s16521_s11 + $0x10] sm:$0xff]   ;;  %v10327_v58 = vld [vmem:[#allocation48] sm:$0x3] }
0x1144   :  { %12245 = vmatpush3.bf16.msra.mxu0 %v13870_v63  ;;  %12307 = vmatpush3.bf16.msra.mxu1 %v13871_v13  ;;  %v9473_v22 = vpack.c.bf16 %v9463_v60, %v9463_v60  ;;  %v13908_v63 = vld [vmem:[#allocation46] ss:$8 sps:$4 sm:$0xff]   ;;  %v13913_v13 = vld [vmem:[#allocation46 + $0x14] ss:$8 sps:$4 sm:$0xff]  }
0x1145   :  { %12246 = vmatprep.subr.bf16.mxu0 %v13872_v2  ;;  %12308 = vmatprep.subr.bf16.mxu1 %v13873_v12  ;;  %v13916_v2 = vld [vmem:[%s16521_s11 + $0x48] sm:$0xff]   ;;  %v13918_v12 = vld [vmem:[%s16521_s11 + $0x50] sm:$0xff]   ;;  %v13920_v60 = vld [vmem:[%s16521_s11 + $0x58] sm:$0xff]  }
0x1146   :  { %10313 = vmatprep.mubr.bf16.mxu1 %v9473_v22  ;;  %v13923_v22 = vld [vmem:[%s16521_s11 + $0x20] sm:$0xff]  }
0x1148   :  { %12247 = vmatpush3.bf16.msra.mxu0 %v13874_v24  ;;  %12309 = vmatpush3.bf16.msra.mxu1 %v13875_v19  ;;  %v13921_v24 = vld [vmem:[%s16521_s11 + $0x18] sm:$0xff]   ;;  %v13922_v19 = vld [vmem:[%s16521_s11 + $0x60] sm:$0xff]  }
0x1149   :  { %12248 = vmatprep.subr.bf16.mxu0 %v13876_v49  ;;  %12310 = vmatprep.subr.bf16.mxu1 %v13877_v46  ;;  %v13924_v49 = vld [vmem:[%s16521_s11 + $0x68] sm:$0xff]  }
0x114c   :  { %12249 = vmatpush3.bf16.msra.mxu0 %v13878_v56  ;;  %12311 = vmatpush3.bf16.msra.mxu1 %v13879_v27 }
0x114d   :  { %12250 = vmatprep.subr.bf16.mxu0 %v13880_v30  ;;  %12312 = vmatprep.subr.bf16.mxu1 %v13881_v32 }
0x1150   :  { %12251 = vmatpush3.bf16.msra.mxu0 %v13882_v61  ;;  %12313 = vmatpush3.bf16.msra.mxu1 %v13883_v21 }
0x1151   :  { %12252 = vmatprep.subr.bf16.mxu0 %v13884_v15  ;;  %12314 = vmatprep.subr.bf16.mxu1 %v13885_v23 }
0x1154   :  { %12253 = vmatpush3.bf16.msra.mxu0 %v13886_v11  ;;  %12315 = vmatpush3.bf16.msra.mxu1 %v13887_v25 }
0x1155   :  { %12282 = vmatprep.subr.bf16.mxu0 %v13888_v41  ;;  %12316 = vmatprep.subr.bf16.mxu1 %v13889_v42 }
0x1157   :  { %10194 = vmatmul.mubr.bf16.vlgmr.msra.gmra.mrb[100].mxu0 %v9466_v36 }
0x1158   :  { %12283 = vmatpush3.bf16.msra.mxu0 %v13890_v44  ;;  %10273 = vmatprep.mubr.bf16.mxu0 %v9471_v40 }
0x1159   :  { %12317 = vmatpush3.bf16.msra.mxu1 %v13891_v45  ;;  %12284 = vmatprep.subr.bf16.mxu0 %v13892_v34 }
0x115a   :  { %12318 = vmatprep.subr.bf16.mxu1 %v13893_v51 }
0x115c   :  { %12285 = vmatpush3.bf16.msra.mxu0 %v13894_v52 }
0x115d   :  { %12319 = vmatpush3.bf16.msra.mxu1 %v13895_v35  ;;  %12286 = vmatprep.subr.bf16.mxu0 %v13896_v59 }
0x115e   :  { %12326 = vmatprep.subr.bf16.mxu1 %v13914_v26 }
0x1160   :  { %10314 = vmatmul.mubr.bf16.vlgmr.msra.gmra.mrb[108].mxu1 %v9472_v17  ;;  %12287 = vmatpush3.bf16.msra.mxu0 %v13897_v31 }
0x1161   :  { %12288 = vmatprep.subr.bf16.mxu0 %v13898_v6  ;;  %12327 = vmatpush3.bf16.msra.mxu1 %v13915_v43 }
0x1162   :  { %12328 = vmatprep.subr.bf16.mxu1 %v13916_v2 }
0x1164   :  { %12289 = vmatpush3.bf16.msra.mxu0 %v13899_v62 }
0x1165   :  { %12290 = vmatprep.subr.bf16.mxu0 %v13900_v1 }
0x1168   :  { %12291 = vmatpush3.bf16.msra.mxu0 %v13901_v4  ;;  %v13925_v4 = vld [vmem:[%s16521_s11 + $0x28] sm:$0xff]  }
0x1169   :  { %12292 = vmatprep.subr.bf16.mxu0 %v13902_v14  ;;  %v13926_v14 = vld [vmem:[%s16521_s11 + $0x70] sm:$0xff]  }
0x116c   :  { %12293 = vmatpush3.bf16.msra.mxu0 %v13903_v3  ;;  %v13927_v3 = vld [vmem:[%s16521_s11 + $0x30] sm:$0xff]  }
0x116d   :  { %12294 = vmatprep.subr.bf16.mxu0 %v13904_v5  ;;  %v13928_v5 = vld [vmem:[%s16521_s11 + $0x78] sm:$0xff]  }
0x1170   :  { %12295 = vmatpush3.bf16.msra.mxu0 %v13905_v0  ;;  %v13929_v0 = vld [vmem:[%s16521_s11 + $0x38] sm:$0xff]  }
0x1171   :  { %12296 = vmatprep.subr.bf16.mxu0 %v13906_v9  ;;  %v13930_v9 = vld [vmem:[#allocation51] sm:$0xff]  }
0x1174   :  { %12297 = vmatpush3.bf16.msra.mxu0 %v13907_v10  ;;  %v13931_v10 = vld [vmem:[#allocation51 + $0x8] sm:$0xff]  }
0x1175   :  { %10362 = vmatprep.subr.bf16.mxu0 %v13910_v28  ;;  %v10336_v28 = vrot.slane %v10327_v58, %v15542_v57 }
0x1177   :  { %10274 = vmatmul.mubr.bf16.vlgmr.msra.gmra.mrb[104].mxu0 %v9470_v47  ;;  %v10332_v47 = vrot.slane %v10327_v58, %v15537_v55  ;;  %v13933_v55 = vld [vmem:[#allocation51 + $0x18] sm:$0xff]  }
0x1178   :  { %10394 = vmatprep.mubr.bf16.mxu0 %v14808_v7  ;;  %10363 = vmatpush1.bf16.msra.mxu0 %v13908_v63  ;;  %v13917_v7 = vld [vmem:[%s16521_s11 + $0x8] sm:$0xff]  }
0x1179   :  { %10364 = vmatprep.subr.bf16.mxu0 %v13913_v13  ;;  %12329 = vmatpush3.bf16.msra.mxu1 %v13917_v7 }
0x117a   :  { %12330 = vmatprep.subr.bf16.mxu1 %v13918_v12 }
0x117c   :  { %10365 = vmatpush1.bf16.msra.mxu0 %v13911_v18 }
0x117d   :  { %12393 = vmatprep.subr.bf16.mxu0 %v14809_v16  ;;  %12331 = vmatpush3.bf16.msra.mxu1 %v13919_v20 }
0x117e   :  { %12332 = vmatprep.subr.bf16.mxu1 %v13920_v60 }
0x1181   :  { %12333 = vmatpush3.bf16.msra.mxu1 %v13921_v24 }
0x1182   :  { %12334 = vmatprep.subr.bf16.mxu1 %v13922_v19 }
0x1185   :  { %12335 = vmatpush3.bf16.msra.mxu1 %v13923_v22  ;;  %v13932_v22 = vld [vmem:[#allocation51 + $0x10] sm:$0xff]  }
0x1186   :  { %12336 = vmatprep.subr.bf16.mxu1 %v13924_v49  ;;  %v11811_v49 = vld [vmem:[#allocation49] ss:$0 sm:$0xff] }
0x1189   :  { %12337 = vmatpush3.bf16.msra.mxu1 %v13925_v4 }
0x118a   :  { %12338 = vmatprep.subr.bf16.mxu1 %v13926_v14 }
0x118d   :  { %12339 = vmatpush3.bf16.msra.mxu1 %v13927_v3 }
0x118e   :  { %12340 = vmatprep.subr.bf16.mxu1 %v13928_v5 }
0x1191   :  { %12341 = vmatpush3.bf16.msra.mxu1 %v13929_v0 }
0x120a   :  { %v12232_v46 = vpop.f32.mrb[96].mxu0 }
0x120b   :  { %v12233_v56 = vpop.f32.mrb[97].mxu0 }
0x120c   :  { %v12234_v27 = vadd.f32 %v12233_v56, %v12232_v46  ;;  %v12235_v30 = vpop.f32.mrb[98].mxu0 }
0x120d   :  { %v12236_v32 = vpop.f32.mrb[99].mxu0 }
0x120e   :  { %v10156_v39 = vadd.f32 %v12234_v27, %v11725_v37 }
0x1212   :  { %v12276_v61 = vpop.f32.mrb[104].mxu1 }
0x1213   :  { %v12277_v21 = vpop.f32.mrb[105].mxu1 }
0x1214   :  { %v12278_v33 = vadd.f32 %v12277_v21, %v12276_v61  ;;  %v12279_v15 = vpop.f32.mrb[106].mxu1  ;;  %v10670_v61 = vand.u32 127, %v815_v53  ;;  %v11828_v21 = vld [vmem:[#allocation52] ss:$0 sm:$0xff] }
0x1215   :  { %v12280_v23 = vpop.f32.mrb[107].mxu1 }
0x1216   :  { %vm10673_vm3 = vcmp.lt.s32.totalorder %v10670_v61, 5  ;;  %vm10689_vm6 = vcmp.eq.s32.totalorder %v10670_v61, 5 }
0x1217   :  { %vm10675_vm5 = vmand %vm10673_vm3, %vm10674_vm4 }
0x122a   :  { %v12254_v11 = vpop.f32.mrb[100].mxu0 }
0x122b   :  { %v12255_v25 = vpop.f32.mrb[101].mxu0 }
0x122c   :  { %v12256_v41 = vadd.f32 %v12255_v25, %v12254_v11  ;;  %v12257_v42 = vpop.f32.mrb[102].mxu0 }
0x122d   :  { %v12258_v38 = vpop.f32.mrb[103].mxu0 }
0x122e   :  { %v10196_v44 = vadd.f32 %v12256_v41, %v10156_v39 }
0x1230   :  { %v10236_v36 = vadd.f32 %v12278_v33, %v10196_v44 }
0x1233   :  { %v12320_v45 = vpop.f32.mrb[108].mxu1 }
0x1234   :  { %v12321_v34 = vpop.f32.mrb[109].mxu1 }
0x1235   :  { %v12322_v40 = vadd.f32 %v12321_v34, %v12320_v45  ;;  %v12323_v29 = vpop.f32.mrb[110].mxu1 }
0x1236   :  { %v12324_v51 = vpop.f32.mrb[111].mxu1 }
0x124a   :  { %v12298_v52 = vpop.f32.mrb[104].mxu0 }
0x124b   :  { %v12299_v35 = vpop.f32.mrb[105].mxu0 }
0x124c   :  { %v12300_v59 = vadd.f32 %v12299_v35, %v12298_v52  ;;  %v12301_v8 = vpop.f32.mrb[106].mxu0 }
0x124d   :  { %v12302_v31 = vpop.f32.mrb[107].mxu0 }
0x124e   :  { %v10276_v6 = vadd.f32 %v12300_v59, %v10236_v36 }
0x1250   :  { %v10316_v17 = vadd.f32 %v12322_v40, %v10276_v6 }
0x1252   :  { %v10321_v62 = vmax.f32 %v10316_v17, 0.0 }
0x1254   :  { %v10322_v1 = vpack.c.bf16 %v10321_v62, %v10321_v62 }
0x1256   :  { %11810 = vmatmul.mubr.msk.bf16.vlgmr.msra.gmra.mrb[108].mxu0 %vm4148_vm1, %v10322_v1 }
0x1257   :  { %12401 = vmatprep.mubr.msk.bf16.mxu0 %vm14810_vm0, %v14809_v16  ;;  %12394 = vmatpush3.bf16.msra.mxu0 %v13930_v9 }
0x1258   :  { %12395 = vmatprep.subr.bf16.mxu0 %v14809_v16 }
0x125b   :  { %12396 = vmatpush3.bf16.msra.mxu0 %v13931_v10 }
0x125c   :  { %12397 = vmatprep.subr.bf16.mxu0 %v14809_v16 }
0x125f   :  { %12398 = vmatpush3.bf16.msra.mxu0 %v13932_v22 }
0x1260   :  { %12399 = vmatprep.subr.bf16.mxu0 %v14809_v16 }
0x1263   :  { %12400 = vmatpush3.bf16.msra.mxu0 %v13933_v55 }
0x1329   :  { %v10396_v63 = vpop.f32.mrb[108].mxu0 }
0x132a   :  { %v10397_v13 = vadd.f32 %v10396_v63, %v10332_v47  ;;  %v10398_v18 = vpop.f32.mrb[109].mxu0 }
0x132b   :  { %v10399_v26 = vadd.f32 %v10398_v18, %v10336_v28  ;;  %v10400_v43 = vpop.f32.mrb[110].mxu0 }
0x132c   :  { %v10403_v2 = vmax.f32 %v10397_v13, 0.0  ;;  %v10401_v7 = vpop.f32.mrb[111].mxu0 }
0x132d   :  { %v10404_v12 = vmax.f32 %v10399_v26, 0.0 }
0x132e   :  { %v10405_v20 = vadd.f32 %v10403_v2, %v16291_v48 }
0x132f   :  { %v10406_v60 = vadd.f32 %v10404_v12, %v16294_v50 }
0x1330   :  { %v10407_v19 = vpack.c.bf16 %v10405_v20, %v10405_v20 }
0x1331   :  { %v10408_v24 = vpack.c.bf16 %v10406_v60, %v10406_v60 }
0x1333   :  { %10576 = vmatprep.mubr.bf16.mxu1 %v10408_v24 }
0x1334   :  { %10577 = vmatmul.mubr.bf16.vlgmr.msra.gmra.mrb[112].mxu1 %v10407_v19 }
0x1407   :  { %v12342_v57 = vpop.f32.mrb[112].mxu1 }
0x1408   :  { %v12343_v46 = vpop.f32.mrb[113].mxu1 }
0x1409   :  { %v12344_v56 = vadd.f32 %v12343_v46, %v12342_v57  ;;  %v12345_v27 = vpop.f32.mrb[114].mxu1 }
0x140a   :  { %v12346_v30 = vpop.f32.mrb[115].mxu1 }
0x140b   :  { %v10579_v32 = vadd.f32 %v12344_v56, %v11811_v49 }
0x140d   :  { %v10584_v48 = vmax.f32 %v10579_v32, 0.0 }
0x140f   :  { %v10585_v50 = vpack.c.bf16 %v10584_v48, %v10584_v48 }
0x1411   :  { %12402 = vmatmul.mubr.msk.bf16.vlgmr.msra.gmra.mrb[112].mxu0 %vm10625_vm2, %v10585_v50 }
0x14e4   :  { %v10663_v16 = vpop.f32.mrb[112].mxu0 }
0x14e5   :  { %v10664_v33 = vadd.f32 %v11828_v21, %v10663_v16  ;;  %v12403_v15 = vpop.f32.mrb[113].mxu0 }
0x14e6   :  { %v10666_v23 = vpop.f32.mrb[114].mxu0 }
0x14e7   :  { %v12404_v37 = vpop.f32.mrb[115].mxu0  ;;  %v10676_v11 = vsel %vm10675_vm5, %v10664_v33, 0.0  ;;  %v10690_v25 = vsel %vm10689_vm6, %v10664_v33, 0.0 }
0x14e8   :  { %10677 = vadd.xlane.f32.xlu0 %v10676_v11 }
0x14ec   :  { %10691 = vadd.xlane.f32.xlu0 %v10690_v25 }
0x1575   :  { %v10678_v39 = vpop.xlane.xlu0 %10677 }
0x1576   :  { %v10679_v41 = vrot.slane %v10678_v39, 4 }
0x1578   :  { %v10680_v53 = vadd.f32 %v10679_v41, %v10678_v39 }
0x1579   :  { %v10692_v34 = vpop.xlane.xlu0 %10691 }
0x157a   :  { %v10681_v42 = vrot.slane %v10680_v53, 2 }
0x157c   :  { %v10682_v38 = vadd.f32 %v10681_v42, %v10680_v53 }
0x157e   :  { %v10683_v54 = vrot.slane %v10682_v38, 1 }
0x1580   :  { %v10684_v44 = vadd.f32 %v10683_v54, %v10682_v38 }
0x1582   :  { %12451 = vpush %v10684_v44 }
0x15b3   :  { %s12452_s25 = spop %12451 }
0x15b4   :  { %s10688_s15 = smul.f32 0.1, %s12452_s25 }
0x15b6   :  { %v10693_v36 = vstv %s10688_s15 }
0x15b7   :  { %v10694_v45 = vsub.f32 %v10664_v33, %v10693_v36 }
0x15b9   :  { %v10695_v40 = vadd.f32 %v10694_v45, %v10692_v34 }
0x15bb   :  { %v10696_v29 = vsel %vm10673_vm3, %v10695_v40, 0.0 }
0x15bc   :  { %10697 = vst [vmem:[%s15064_s13] sm:$0xff] %v10696_v29 }
0x15bd   :  { %10702 = vsyncpa [#allocation3], 1 }
0x15be   :  { %10703 = vsyncpa [#allocation5], 1 }
0x15bf   :  { %10704 = vsyncpa [#allocation8], 1 }
0x15c0   :  { %10705 = vsyncpa [#allocation11], 1 }
0x15c1   :  { %10706 = vsyncpa [#allocation14], 1 }
0x15c2   :  { %10707 = vsyncpa [#allocation17], 1 }
0x15c3   :  { %10708 = vsyncpa [#allocation20], 1 }
0x15c4   :  { %10709 = vsyncpa [#allocation23], 1 }
0x15c5   :  { %10710 = vsyncpa [#allocation26], 1 }
0x15c6   :  { %10711 = vsyncpa [#allocation29], 1 }
0x15c7   :  { %10712 = vsyncpa [#allocation32], 1 }
0x15c8   :  { %10713 = vsyncpa [#allocation35], 1 }
0x15c9   :  { %10714 = vsyncpa [#allocation38], 1 }
0x15ca   :  { %10715 = vsyncpa [#allocation41], 1 }
0x15cb   :  { %10716 = vsyncpa [#allocation44], 1 }
0x15cc   :  { %10717 = vsyncpa [#allocation47], 1 }
0x15cd   :  { %10718 = vsyncpa [#allocation50], 1 }
0x15ce   :  { %10719 = vsyncpa [#allocation53], 1 }

</bundles_post_ra>
